<compile_context>
chip_gen: v5e
topology: v5e:2x2
jax: 0.10.0
libtpu: 0.0.40
codegen_flags: <defaults>
</compile_context>

<pallas_src>
import functools

import jax
import jax.numpy as jnp
from jax import lax
from jax.experimental import pallas as pl
from jax.experimental.pallas import tpu as pltpu

# ----- gate hyper-parameters (ModelArgs equivalents) -----
DIM = 32                 # args.dim
N_EXPERTS = 16           # args.n_routed_experts
TOPK = 4                 # args.n_activated_experts
N_GROUPS = 4             # args.n_expert_groups
TOPK_GROUPS = 2          # args.n_limited_groups
SCORE_FUNC = "sigmoid"   # args.score_func
ROUTE_SCALE = 2.5        # args.route_scale
GROUP_SIZE = N_EXPERTS // N_GROUPS
NEG = -1e30              # plain Python float -> jaxpr literal, no captured consts

# Kept HIGHEST so the demo's exact index comparison vs the f32 reference is
# stable; drop to lax.Precision.HIGH in production (perf-review item).
MATMUL_PRECISION = lax.Precision.HIGHEST


def gate_kernel(x_ref, w_ref, out_ref):
    # x_ref  : (TM, DIM) token-major tile (natural layout, no wrapper transpose)
    # w_ref  : (E, DIM)  grid-invariant, already float32
    # out_ref: (2*TOPK, TM) packed [weights ; indices-as-f32], tokens on lanes
    TM = x_ref.shape[0]
    E = w_ref.shape[0]

    x = x_ref[...].astype(jnp.float32)

    # logits (E, TM): contract on DIM (x's last dim) so tokens land on the
    # 128-lane axis; any operand reshuffle stays VMEM-local.
    logits = lax.dot_general(
        w_ref[...], x,
        dimension_numbers=(((1,), (1,)), ((), ())),
        preferred_element_type=jnp.float32,
        precision=MATMUL_PRECISION)

    if SCORE_FUNC == "softmax":
        m = jnp.max(logits, axis=0, keepdims=True)
        e = jnp.exp(logits - m)
        scores = e / jnp.sum(e, axis=0, keepdims=True)
    else:
        scores = jax.nn.sigmoid(logits)                        # (E, TM)

    eid = lax.broadcasted_iota(jnp.int32, (E, TM), 0)          # expert id per row

    if N_GROUPS > 1:
        # group_scores = per-group amax (bias is None): small sublane reduces.
        gscores = jnp.concatenate(
            [jnp.max(scores[g * GROUP_SIZE:(g + 1) * GROUP_SIZE, :],
                     axis=0, keepdims=True)
             for g in range(N_GROUPS)], axis=0)                # (N_GROUPS, TM)

        # Expert-row -> group id with a shift (pure VALU, no slice/concat).
        assert GROUP_SIZE & (GROUP_SIZE - 1) == 0, "GROUP_SIZE must be a power of 2"
        gid = jnp.right_shift(eid, GROUP_SIZE.bit_length() - 1)   # (E, TM)

        giota = lax.broadcasted_iota(jnp.int32, (N_GROUPS, TM), 0)
        gs_cur = gscores
        mask_e = None
        for _ in range(TOPK_GROUPS):
            gm = jnp.max(gs_cur, axis=0, keepdims=True)
            gsel = jnp.min(jnp.where(gs_cur == gm, giota, N_GROUPS),
                           axis=0, keepdims=True)              # (1, TM) group idx
            hit = gid == gsel                                  # (E, TM) VALU compare
            mask_e = hit if mask_e is None else jnp.logical_or(mask_e, hit)
            gs_cur = jnp.where(giota == gsel, NEG, gs_cur)

        scores_m = jnp.where(mask_e, scores, 0.0)              # (E, TM)
    else:
        scores_m = scores

    # torch.topk over experts: iterative (max, argmax) sublane reductions.
    # The running max equals original_scores at the selected index (scores are
    # strictly positive and unmodified inside the chosen groups) -> no extra
    # gather reduction is needed.
    s_cur = scores_m
    w_rows, i_rows = [], []
    for _ in range(TOPK):
        m = jnp.max(s_cur, axis=0, keepdims=True)              # selected value
        sel = jnp.min(jnp.where(s_cur == m, eid, E), axis=0, keepdims=True)
        w_rows.append(m)
        i_rows.append(sel)
        s_cur = jnp.where(eid == sel, NEG, s_cur)

    weights = jnp.concatenate(w_rows, axis=0)                  # (TOPK, TM) f32
    if SCORE_FUNC == "sigmoid":
        # Exact divide (fixes the ~2e-3 error of the approx reciprocal); the
        # denominator is only a (1, TM) row so this is essentially free.
        weights = weights / jnp.sum(weights, axis=0, keepdims=True)
    weights = weights * ROUTE_SCALE

    # Single (2*TOPK, TM) = (8, TM) lane-dense, full-sublane store: weights in
    # rows [0, TOPK), expert indices (exactly representable small ints) in
    # rows [TOPK, 2*TOPK) as f32.  Wrapper casts them back to int32.
    idx_rows_f32 = [r.astype(jnp.float32) for r in i_rows]
    out_ref[...] = jnp.concatenate([weights] + idx_rows_f32, axis=0)


@functools.partial(jax.jit, static_argnames=("tm",))
def gate_pallas(x, weight, tm=1024):
    """x: (tokens, dim), weight: (n_routed_experts, dim).

    Returns (weights (tokens, topk) in x.dtype, indices (tokens, topk) int32).
    """
    N, D = x.shape
    E, D2 = weight.shape
    assert D == D2 and E == N_EXPERTS

    # No jnp.pad: ragged token counts are handled by the cdiv grid; the last
    # block's out-of-range lanes compute per-column garbage whose writes are
    # masked and which valid columns never read.
    tm = max(128, min(tm, pl.cdiv(N, 128) * 128))
    assert tm % 128 == 0, "token tile must be lane-dense"
    grid = (pl.cdiv(N, tm),)

    w32 = weight.astype(jnp.float32)         # cast once, grid-invariant

    packed = pl.pallas_call(
        gate_kernel,
        out_shape=jax.ShapeDtypeStruct((2 * TOPK, N), jnp.float32),
        grid_spec=pltpu.PrefetchScalarGridSpec(
            num_scalar_prefetch=0,
            grid=grid,
            in_specs=[pl.BlockSpec((tm, D), lambda i: (i, 0)),
                      pl.BlockSpec((E, D), lambda i: (0, 0))],   # grid-invariant
            out_specs=pl.BlockSpec((2 * TOPK, tm), lambda i: (0, i))),
        compiler_params=pltpu.CompilerParams(
            dimension_semantics=("parallel",)),
    )(x, w32)

    # Module contract: (tokens, topk).  If the downstream MoE dispatch can
    # consume expert-major (TOPK, tokens) blocks, return `packed` directly and
    # drop these small transposes (perf-review item).
    wts = packed[:TOPK].T.astype(x.dtype)
    idx = packed[TOPK:].T.astype(jnp.int32)
    return wts, idx


def gate_ref(x, weight):
    """Pure-JAX mirror of the PyTorch forward (sigmoid, no bias, grouped)."""
    logits = jnp.dot(x.astype(jnp.float32), weight.astype(jnp.float32).T,
                     precision=MATMUL_PRECISION)
    if SCORE_FUNC == "softmax":
        scores = jax.nn.softmax(logits, axis=-1)
    else:
        scores = jax.nn.sigmoid(logits)
    orig = scores
    B = x.shape[0]
    s = scores.reshape(B, N_GROUPS, -1)
    gscores = s.max(axis=-1)
    gidx = lax.top_k(gscores, TOPK_GROUPS)[1]
    mask = jnp.zeros_like(gscores, dtype=bool).at[
        jnp.arange(B)[:, None], gidx].set(True)
    s = jnp.where(mask[..., None], s, 0.0).reshape(B, -1)
    tidx = lax.top_k(s, TOPK)[1]
    w = jnp.take_along_axis(orig, tidx, axis=-1)
    if SCORE_FUNC == "sigmoid":
        w = w / w.sum(-1, keepdims=True)
    w = w * ROUTE_SCALE
    return w.astype(x.dtype), tidx.astype(jnp.int32)


if __name__ == "__main__":
    key = jax.random.PRNGKey(0)
    kx, kw = jax.random.split(key)
    # 2000 tokens: exercises the ragged last block (no padding copy) and gives
    # 2 grid steps at tm=1024 so the "parallel" axis can shard on v7x.
    N_TOKENS = 2000
    x = jax.random.normal(kx, (N_TOKENS, DIM), dtype=jnp.float32)
    # deterministic synthetic gate weight (nn.Parameter(torch.empty(E, dim)))
    weight = jax.random.normal(kw, (N_EXPERTS, DIM), dtype=jnp.float32) * 0.1

    wts, idx = gate_pallas(x, weight, tm=1024)
    jax.block_until_ready((wts, idx))

    wts_ref, idx_ref = gate_ref(x, weight)
    assert jnp.array_equal(idx, idx_ref), "expert indices mismatch"
    assert jnp.allclose(wts, wts_ref, atol=1e-4, rtol=1e-4), "routing weights mismatch"

    print("KERNEL_OK")
</pallas_src>

<mosaic_0001>
module attributes {stable_mosaic.version = 11 : i64} {
  func.func @gate_kernel(%arg0: i32, %arg1: memref<1024x32xf32, #tpu.memory_space<vmem>>, %arg2: memref<16x32xf32, #tpu.memory_space<vmem>>, %arg3: memref<8x1024xf32, #tpu.memory_space<vmem>>) attributes {dimension_semantics = [#tpu.dimension_semantics<parallel>], iteration_bounds = array<i64: 2>, scalar_prefetch = 0 : i64, scratch_operands = 0 : i64, tpu.core_type = #tpu.core_type<tc>, window_params = [{transform_indices = @transform_0, window_bounds = array<i64: 1024, 32>}, {pipeline_mode = #tpu.pipeline_mode<synchronous>, transform_indices = @transform_1, window_bounds = array<i64: 16, 32>}, {transform_indices = @transform_2, window_bounds = array<i64: 8, 1024>}]} {
    %c0 = arith.constant 0 : index
    %c0_0 = arith.constant 0 : index
    %0 = vector.load %arg1[%c0, %c0_0] : memref<1024x32xf32, #tpu.memory_space<vmem>>, vector<1024x32xf32>
    %c0_1 = arith.constant 0 : index
    %c0_2 = arith.constant 0 : index
    %1 = vector.load %arg2[%c0_1, %c0_2] : memref<16x32xf32, #tpu.memory_space<vmem>>, vector<16x32xf32>
    %cst = arith.constant dense<0.000000e+00> : vector<16x1024xf32>
    %2 = tpu.matmul %1, %0, %cst {dimension_numbers = #tpu.dot_dimension_numbers<[1], [1], [0], [0], [0, 0, 1, 0], [], []>, precision = #tpu.contract_precision<fp32>} : vector<16x32xf32>, vector<1024x32xf32>, vector<16x1024xf32> -> vector<16x1024xf32>
    %3 = arith.negf %2 : vector<16x1024xf32>
    %4 = math.exp %3 : vector<16x1024xf32>
    %cst_3 = arith.constant 1.000000e+00 : f32
    %5 = vector.broadcast %cst_3 : f32 to vector<16x1024xf32>
    %6 = arith.addf %5, %4 : vector<16x1024xf32>
    %7 = arith.divf %5, %6 : vector<16x1024xf32>
    %8 = tpu.iota {dimensions = array<i32: 0>} : vector<16x1024xi32>
    %9 = vector.extract_strided_slice %7 {offsets = [0, 0], sizes = [4, 1024], strides = [1, 1]} : vector<16x1024xf32> to vector<4x1024xf32>
    %cst_4 = arith.constant dense<0xFF800000> : vector<1024xf32>
    %10 = vector.multi_reduction <maximumf>, %9, %cst_4 [0] : vector<4x1024xf32> to vector<1024xf32>
    %11 = vector.shape_cast %10 : vector<1024xf32> to vector<1x1024xf32>
    %12 = vector.extract_strided_slice %7 {offsets = [4, 0], sizes = [4, 1024], strides = [1, 1]} : vector<16x1024xf32> to vector<4x1024xf32>
    %cst_5 = arith.constant dense<0xFF800000> : vector<1024xf32>
    %13 = vector.multi_reduction <maximumf>, %12, %cst_5 [0] : vector<4x1024xf32> to vector<1024xf32>
    %14 = vector.shape_cast %13 : vector<1024xf32> to vector<1x1024xf32>
    %15 = vector.extract_strided_slice %7 {offsets = [8, 0], sizes = [4, 1024], strides = [1, 1]} : vector<16x1024xf32> to vector<4x1024xf32>
    %cst_6 = arith.constant dense<0xFF800000> : vector<1024xf32>
    %16 = vector.multi_reduction <maximumf>, %15, %cst_6 [0] : vector<4x1024xf32> to vector<1024xf32>
    %17 = vector.shape_cast %16 : vector<1024xf32> to vector<1x1024xf32>
    %18 = vector.extract_strided_slice %7 {offsets = [12, 0], sizes = [4, 1024], strides = [1, 1]} : vector<16x1024xf32> to vector<4x1024xf32>
    %cst_7 = arith.constant dense<0xFF800000> : vector<1024xf32>
    %19 = vector.multi_reduction <maximumf>, %18, %cst_7 [0] : vector<4x1024xf32> to vector<1024xf32>
    %20 = vector.shape_cast %19 : vector<1024xf32> to vector<1x1024xf32>
    %21 = tpu.concatenate %11, %14, %17, %20 in 0 : vector<1x1024xf32>, vector<1x1024xf32>, vector<1x1024xf32>, vector<1x1024xf32> -> vector<4x1024xf32>
    %c2_i32 = arith.constant 2 : i32
    %22 = vector.broadcast %c2_i32 : i32 to vector<16x1024xi32>
    %23 = arith.shrsi %8, %22 : vector<16x1024xi32>
    %24 = tpu.iota {dimensions = array<i32: 0>} : vector<4x1024xi32>
    %cst_8 = arith.constant dense<0xFF800000> : vector<1024xf32>
    %25 = vector.multi_reduction <maximumf>, %21, %cst_8 [0] : vector<4x1024xf32> to vector<1024xf32>
    %26 = vector.shape_cast %25 : vector<1024xf32> to vector<1x1024xf32>
    %27 = vector.broadcast %26 : vector<1x1024xf32> to vector<4x1024xf32>
    %28 = arith.cmpf oeq, %21, %27 : vector<4x1024xf32>
    %c4_i32 = arith.constant 4 : i32
    %29 = vector.broadcast %c4_i32 : i32 to vector<4x1024xi32>
    %30 = arith.select %28, %24, %29 : vector<4x1024xi1>, vector<4x1024xi32>
    %cst_9 = arith.constant dense<2147483647> : vector<1024xi32>
    %31 = vector.multi_reduction <minsi>, %30, %cst_9 [0] : vector<4x1024xi32> to vector<1024xi32>
    %32 = vector.shape_cast %31 : vector<1024xi32> to vector<1x1024xi32>
    %33 = vector.broadcast %32 : vector<1x1024xi32> to vector<16x1024xi32>
    %34 = arith.cmpi eq, %23, %33 : vector<16x1024xi32>
    %35 = vector.broadcast %32 : vector<1x1024xi32> to vector<4x1024xi32>
    %36 = arith.cmpi eq, %24, %35 : vector<4x1024xi32>
    %cst_10 = arith.constant -1.000000e+30 : f32
    %37 = vector.broadcast %cst_10 : f32 to vector<4x1024xf32>
    %38 = arith.select %36, %37, %21 : vector<4x1024xi1>, vector<4x1024xf32>
    %cst_11 = arith.constant dense<0xFF800000> : vector<1024xf32>
    %39 = vector.multi_reduction <maximumf>, %38, %cst_11 [0] : vector<4x1024xf32> to vector<1024xf32>
    %40 = vector.shape_cast %39 : vector<1024xf32> to vector<1x1024xf32>
    %41 = vector.broadcast %40 : vector<1x1024xf32> to vector<4x1024xf32>
    %42 = arith.cmpf oeq, %38, %41 : vector<4x1024xf32>
    %c4_i32_12 = arith.constant 4 : i32
    %43 = vector.broadcast %c4_i32_12 : i32 to vector<4x1024xi32>
    %44 = arith.select %42, %24, %43 : vector<4x1024xi1>, vector<4x1024xi32>
    %cst_13 = arith.constant dense<2147483647> : vector<1024xi32>
    %45 = vector.multi_reduction <minsi>, %44, %cst_13 [0] : vector<4x1024xi32> to vector<1024xi32>
    %46 = vector.shape_cast %45 : vector<1024xi32> to vector<1x1024xi32>
    %47 = vector.broadcast %46 : vector<1x1024xi32> to vector<16x1024xi32>
    %48 = arith.cmpi eq, %23, %47 : vector<16x1024xi32>
    %49 = arith.ori %34, %48 : vector<16x1024xi1>
    %cst_14 = arith.constant 0.000000e+00 : f32
    %50 = vector.broadcast %cst_14 : f32 to vector<16x1024xf32>
    %51 = arith.select %49, %7, %50 : vector<16x1024xi1>, vector<16x1024xf32>
    %cst_15 = arith.constant dense<0xFF800000> : vector<1024xf32>
    %52 = vector.multi_reduction <maximumf>, %51, %cst_15 [0] : vector<16x1024xf32> to vector<1024xf32>
    %53 = vector.shape_cast %52 : vector<1024xf32> to vector<1x1024xf32>
    %54 = vector.broadcast %53 : vector<1x1024xf32> to vector<16x1024xf32>
    %55 = arith.cmpf oeq, %51, %54 : vector<16x1024xf32>
    %c16_i32 = arith.constant 16 : i32
    %56 = vector.broadcast %c16_i32 : i32 to vector<16x1024xi32>
    %57 = arith.select %55, %8, %56 : vector<16x1024xi1>, vector<16x1024xi32>
    %cst_16 = arith.constant dense<2147483647> : vector<1024xi32>
    %58 = vector.multi_reduction <minsi>, %57, %cst_16 [0] : vector<16x1024xi32> to vector<1024xi32>
    %59 = vector.shape_cast %58 : vector<1024xi32> to vector<1x1024xi32>
    %60 = vector.broadcast %59 : vector<1x1024xi32> to vector<16x1024xi32>
    %61 = arith.cmpi eq, %8, %60 : vector<16x1024xi32>
    %cst_17 = arith.constant -1.000000e+30 : f32
    %62 = vector.broadcast %cst_17 : f32 to vector<16x1024xf32>
    %63 = arith.select %61, %62, %51 : vector<16x1024xi1>, vector<16x1024xf32>
    %cst_18 = arith.constant dense<0xFF800000> : vector<1024xf32>
    %64 = vector.multi_reduction <maximumf>, %63, %cst_18 [0] : vector<16x1024xf32> to vector<1024xf32>
    %65 = vector.shape_cast %64 : vector<1024xf32> to vector<1x1024xf32>
    %66 = vector.broadcast %65 : vector<1x1024xf32> to vector<16x1024xf32>
    %67 = arith.cmpf oeq, %63, %66 : vector<16x1024xf32>
    %c16_i32_19 = arith.constant 16 : i32
    %68 = vector.broadcast %c16_i32_19 : i32 to vector<16x1024xi32>
    %69 = arith.select %67, %8, %68 : vector<16x1024xi1>, vector<16x1024xi32>
    %cst_20 = arith.constant dense<2147483647> : vector<1024xi32>
    %70 = vector.multi_reduction <minsi>, %69, %cst_20 [0] : vector<16x1024xi32> to vector<1024xi32>
    %71 = vector.shape_cast %70 : vector<1024xi32> to vector<1x1024xi32>
    %72 = vector.broadcast %71 : vector<1x1024xi32> to vector<16x1024xi32>
    %73 = arith.cmpi eq, %8, %72 : vector<16x1024xi32>
    %cst_21 = arith.constant -1.000000e+30 : f32
    %74 = vector.broadcast %cst_21 : f32 to vector<16x1024xf32>
    %75 = arith.select %73, %74, %63 : vector<16x1024xi1>, vector<16x1024xf32>
    %cst_22 = arith.constant dense<0xFF800000> : vector<1024xf32>
    %76 = vector.multi_reduction <maximumf>, %75, %cst_22 [0] : vector<16x1024xf32> to vector<1024xf32>
    %77 = vector.shape_cast %76 : vector<1024xf32> to vector<1x1024xf32>
    %78 = vector.broadcast %77 : vector<1x1024xf32> to vector<16x1024xf32>
    %79 = arith.cmpf oeq, %75, %78 : vector<16x1024xf32>
    %c16_i32_23 = arith.constant 16 : i32
    %80 = vector.broadcast %c16_i32_23 : i32 to vector<16x1024xi32>
    %81 = arith.select %79, %8, %80 : vector<16x1024xi1>, vector<16x1024xi32>
    %cst_24 = arith.constant dense<2147483647> : vector<1024xi32>
    %82 = vector.multi_reduction <minsi>, %81, %cst_24 [0] : vector<16x1024xi32> to vector<1024xi32>
    %83 = vector.shape_cast %82 : vector<1024xi32> to vector<1x1024xi32>
    %84 = vector.broadcast %83 : vector<1x1024xi32> to vector<16x1024xi32>
    %85 = arith.cmpi eq, %8, %84 : vector<16x1024xi32>
    %cst_25 = arith.constant -1.000000e+30 : f32
    %86 = vector.broadcast %cst_25 : f32 to vector<16x1024xf32>
    %87 = arith.select %85, %86, %75 : vector<16x1024xi1>, vector<16x1024xf32>
    %cst_26 = arith.constant dense<0xFF800000> : vector<1024xf32>
    %88 = vector.multi_reduction <maximumf>, %87, %cst_26 [0] : vector<16x1024xf32> to vector<1024xf32>
    %89 = vector.shape_cast %88 : vector<1024xf32> to vector<1x1024xf32>
    %90 = vector.broadcast %89 : vector<1x1024xf32> to vector<16x1024xf32>
    %91 = arith.cmpf oeq, %87, %90 : vector<16x1024xf32>
    %c16_i32_27 = arith.constant 16 : i32
    %92 = vector.broadcast %c16_i32_27 : i32 to vector<16x1024xi32>
    %93 = arith.select %91, %8, %92 : vector<16x1024xi1>, vector<16x1024xi32>
    %cst_28 = arith.constant dense<2147483647> : vector<1024xi32>
    %94 = vector.multi_reduction <minsi>, %93, %cst_28 [0] : vector<16x1024xi32> to vector<1024xi32>
    %95 = vector.shape_cast %94 : vector<1024xi32> to vector<1x1024xi32>
    %96 = tpu.concatenate %53, %65, %77, %89 in 0 : vector<1x1024xf32>, vector<1x1024xf32>, vector<1x1024xf32>, vector<1x1024xf32> -> vector<4x1024xf32>
    %cst_29 = arith.constant dense<0.000000e+00> : vector<1024xf32>
    %97 = vector.multi_reduction <add>, %96, %cst_29 [0] : vector<4x1024xf32> to vector<1024xf32>
    %98 = vector.shape_cast %97 : vector<1024xf32> to vector<1x1024xf32>
    %99 = vector.broadcast %98 : vector<1x1024xf32> to vector<4x1024xf32>
    %100 = arith.divf %96, %99 : vector<4x1024xf32>
    %cst_30 = arith.constant 2.500000e+00 : f32
    %101 = vector.broadcast %cst_30 : f32 to vector<4x1024xf32>
    %102 = arith.mulf %100, %101 : vector<4x1024xf32>
    %103 = arith.sitofp %59 : vector<1x1024xi32> to vector<1x1024xf32>
    %104 = arith.sitofp %71 : vector<1x1024xi32> to vector<1x1024xf32>
    %105 = arith.sitofp %83 : vector<1x1024xi32> to vector<1x1024xf32>
    %106 = arith.sitofp %95 : vector<1x1024xi32> to vector<1x1024xf32>
    %107 = tpu.concatenate %102, %103, %104, %105, %106 in 0 : vector<4x1024xf32>, vector<1x1024xf32>, vector<1x1024xf32>, vector<1x1024xf32>, vector<1x1024xf32> -> vector<8x1024xf32>
    %c0_31 = arith.constant 0 : index
    %c0_32 = arith.constant 0 : index
    %108 = vector.load %arg3[%c0_31, %c0_32] : memref<8x1024xf32, #tpu.memory_space<vmem>>, vector<8x1024xf32>
    tpu.vector_store %arg3[%c0_31, %c0_32], %107 {strides = array<i32>} : memref<8x1024xf32, #tpu.memory_space<vmem>>, vector<8x1024xf32>,
    return
  }
  func.func @transform_0(%arg0: i32) -> (i32, i32) {
    %c0_i32 = arith.constant 0 : i32
    %c0_i32_0 = arith.constant 0 : i32
    return %arg0, %c0_i32 : i32, i32
  }
  func.func @transform_1(%arg0: i32) -> (i32, i32) {
    %c0_i32 = arith.constant 0 : i32
    %c0_i32_0 = arith.constant 0 : i32
    %c0_i32_1 = arith.constant 0 : i32
    return %c0_i32, %c0_i32_0 : i32, i32
  }
  func.func @transform_2(%arg0: i32) -> (i32, i32) {
    %c0_i32 = arith.constant 0 : i32
    %c0_i32_0 = arith.constant 0 : i32
    return %c0_i32, %arg0 : i32, i32
  }
}

</mosaic_0001>

<bundles_post_ra>
// kernel: gate_pallas.1
= control target key start
LH: loop header
LB: loop body
LE: loop exit
PB: predicated region body
PF: predicated region fallthrough
CT: control target
= control target key end

     0   :  { %s5887_s9 = smov 0   ;;  %s9617_s0 = inlined_call_operand.vmem [shape: f32[2000,32], index: 0, kind: input, shape index: {}]   ;;  %s9618_s1 = inlined_call_operand.vmem [shape: f32[16,32], index: 1, kind: input, shape index: {}]   ;;  %s9619_s2 = inlined_call_operand.vmem [shape: f32[8,2000], index: 2, kind: output, shape index: {}]  }
   0x1 LB: > { %s5749_s10 = sadd.s32 4294967295, %s5870_s9   ;;  %p5753_p0 = scmp.ge.s32.totalorder %s5870_s9, 1  ;;  %s5870_s9 = sphi %s5887_s9, %s12_s9  }
   0x2   : > { %p121_p1 = scmp.lt.s32.totalorder %s5870_s9, 3 }
   0x4   : > { %p122_p2 = pnand %p5753_p0, %p121_p1 }
   0x6   : > { %125 = sbr.rel (%p122_p2) target bundleno = 1202 (0x4b2), region = 28 }
   0xb   : > { %s5754_s11 = sshll.u32 %s5749_s10, 7  ;;  %vm297_vm0 = vcmask 261120   ;;  %vm3971_vm2 = vcmask 1043456   ;;  %vm4028_vm4 = vcmask 1047556   ;;  %vm4197_vm11 = vcmask 1040384   ;;  %s7949_s20 = sshll.u32 %s5749_s10, 3 }
   0xc   : > { %p152_p3 = scmp.lt.s32.totalorder %s5754_s11, 249  ;;  %vm4206_vm12 = vcmask 1041408   ;;  %vm4215_vm13 = vcmask 1042432   ;;  %p162_p4 = scmp.lt.s32.totalorder %s7949_s20, 15 }
   0xe   : > { %s10180_s11 = smov (!%p152_p3, %s5754_s11), 249  ;;  %s10182_s20 = smov (!%p162_p4, %s7949_s20), 15 }
   0xf   : > { %s5755_s12 = sshll.u32 %s10180_s11, 3  ;;  %s5757_s21 = sshll.u32 %s10182_s20, 3 }
  0x10   : > { %s5900_s15 = scalar_lea.vmem %s9617_s0, %s5755_s12  ;;  %s8003_s24 = scalar_lea.vmem %s9619_s2, %s5757_s21 }
  0x11   : > { %v182_v0 = vld [vmem:[%s5900_s15 + $0x78] sm:$0xff]  ;;  %v181_v1 = vld [vmem:[%s5900_s15 + $0x70] sm:$0xff]  ;;  %v180_v2 = vld [vmem:[%s5900_s15 + $0x68] sm:$0xff] }
  0x12   : > { %v350_v3 = vsel %vm297_vm0, %v182_v0, 0  ;;  %v347_v4 = vsel %vm297_vm0, %v181_v1, 0  ;;  %v344_v5 = vsel %vm297_vm0, %v180_v2, 0  ;;  %v179_v6 = vld [vmem:[%s5900_s15 + $0x60] sm:$0xff]  ;;  %v178_v7 = vld [vmem:[%s5900_s15 + $0x58] sm:$0xff]  ;;  %v177_v17 = vld [vmem:[%s5900_s15 + $0x50] sm:$0xff] }
  0x13   : > { %v5910_v8 = vand.u32 4294901760, %v350_v3  ;;  %v5912_v9 = vand.u32 4294901760, %v347_v4  ;;  %v5914_v10 = vand.u32 4294901760, %v344_v5  ;;  %v341_v11 = vsel %vm297_vm0, %v179_v6, 0  ;;  %v176_v26 = vld [vmem:[%s5900_s15 + $0x48] sm:$0xff]  ;;  %v175_v34 = vld [vmem:[%s5900_s15 + $0x40] sm:$0xff] }
  0x14   : > { %v5917_v12 = vand.u32 4294901760, %v341_v11  ;;  %v338_v16 = vsel %vm297_vm0, %v178_v7, 0  ;;  %v335_v21 = vsel %vm297_vm0, %v177_v17, 0  ;;  %v332_v29 = vsel %vm297_vm0, %v176_v26, 0  ;;  %v174_v41 = vld [vmem:[%s5900_s15 + $0x38] sm:$0xff]  ;;  %v173_v48 = vld [vmem:[%s5900_s15 + $0x30] sm:$0xff] }
  0x15   : > { %689 = vmatpush.xpose.msra.mxu0 %v5910_v8  ;;  %v5921_v13 = vsub.f32 %v350_v3, %v5910_v8  ;;  %902 = vmatpush.xpose.msra.mxu3 %v5910_v8  ;;  %v5925_v14 = vsub.f32 %v347_v4, %v5912_v9  ;;  %v5928_v15 = vsub.f32 %v344_v5, %v5914_v10  ;;  %v5935_v20 = vand.u32 4294901760, %v338_v16  ;;  %v172_v54 = vld [vmem:[%s5900_s15 + $0x28] sm:$0xff]  ;;  %v171_v62 = vld [vmem:[%s5900_s15 + $0x20] sm:$0xff]  ;;  %v170_v5 = vld [vmem:[%s5900_s15 + $0x18] sm:$0xff] }
  0x16   : > { %v5948_v25 = vsub.f32 %v341_v11, %v5917_v12  ;;  %v5952_v28 = vand.u32 4294901760, %v335_v21  ;;  %v5966_v35 = vand.u32 4294901760, %v332_v29  ;;  %v329_v40 = vsel %vm297_vm0, %v175_v34, 0 }
  0x17   : > { %844 = vmatpush.xpose.msra.mxu2 %v5921_v13  ;;  %v739_v18 = vand.u32 4294901760, %v5921_v13  ;;  %v745_v19 = vand.u32 4294901760, %v5925_v14  ;;  %v751_v24 = vand.u32 4294901760, %v5928_v15  ;;  %v5961_v33 = vsub.f32 %v338_v16, %v5935_v20 }
  0x18   : > { %v757_v32 = vand.u32 4294901760, %v5948_v25  ;;  %v5974_v39 = vsub.f32 %v335_v21, %v5952_v28  ;;  %v5981_v42 = vsub.f32 %v332_v29, %v5966_v35  ;;  %v5987_v45 = vand.u32 4294901760, %v329_v40 }
  0x19   : > { %691 = vmatpush.xpose.msra.mxu0 %v5912_v9  ;;  %v740_v22 = vsub.f32 %v5921_v13, %v739_v18  ;;  %904 = vmatpush.xpose.msra.mxu3 %v5912_v9  ;;  %v746_v23 = vsub.f32 %v5925_v14, %v745_v19  ;;  %v752_v31 = vsub.f32 %v5928_v15, %v751_v24  ;;  %v763_v38 = vand.u32 4294901760, %v5961_v33 }
  0x1a   : > { %v758_v37 = vsub.f32 %v5948_v25, %v757_v32  ;;  %v769_v46 = vand.u32 4294901760, %v5974_v39  ;;  %v326_v47 = vsel %vm297_vm0, %v174_v41, 0  ;;  %v775_v49 = vand.u32 4294901760, %v5981_v42  ;;  %v197_v41 = vld [vmem:[%s5900_s15 + $0xf0] sm:$0xff] }
  0x1b   : > { %v741_v27 = vand.u32 4294901760, %v740_v22  ;;  %847 = vmatpush.xpose.msra.mxu2 %v5925_v14  ;;  %v747_v30 = vand.u32 4294901760, %v746_v23  ;;  %v753_v36 = vand.u32 4294901760, %v752_v31  ;;  %v764_v44 = vsub.f32 %v5961_v33, %v763_v38  ;;  %v169_v22 = vld [vmem:[%s5900_s15 + $0x10] sm:$0xff]  ;;  %v198_v31 = vld [vmem:[%s5900_s15 + $0xf8] sm:$0xff] }
  0x1c   : > { %v759_v43 = vand.u32 4294901760, %v758_v37  ;;  %v770_v51 = vsub.f32 %v5974_v39, %v769_v46  ;;  %v5999_v52 = vand.u32 4294901760, %v326_v47  ;;  %v6002_v53 = vsub.f32 %v329_v40, %v5987_v45  ;;  %v190_v14 = vld [vmem:[%s5900_s15 + $0xb8] sm:$0xff] }
  0x1d   : > { %693 = vmatpush.xpose.msra.mxu0 %v5914_v10  ;;  %742 = vmatpush.xpose.msra.mxu1 %v741_v27  ;;  %v765_v50 = vand.u32 4294901760, %v764_v44  ;;  %v323_v55 = vsel %vm297_vm0, %v173_v48, 0  ;;  %v776_v56 = vsub.f32 %v5981_v42, %v775_v49  ;;  %v320_v57 = vsel %vm297_vm0, %v172_v54, 0 }
  0x1e   : > { %906 = vmatpush.xpose.msra.mxu3 %v5914_v10  ;;  %v771_v58 = vand.u32 4294901760, %v770_v51  ;;  %v6013_v59 = vand.u32 4294901760, %v323_v55  ;;  %v781_v60 = vand.u32 4294901760, %v6002_v53  ;;  %v6017_v61 = vsub.f32 %v326_v47, %v5999_v52  ;;  %v167_v51 = vld [vmem:[%s5900_s15] sm:$0xff] }
  0x1f   : > { %850 = vmatpush.xpose.msra.mxu2 %v5928_v15  ;;  %v777_v63 = vand.u32 4294901760, %v776_v56  ;;  %v6022_v0 = vand.u32 4294901760, %v320_v57  ;;  %v317_v4 = vsel %vm297_vm0, %v171_v62, 0  ;;  %v314_v21 = vsel %vm297_vm0, %v170_v5, 0  ;;  %v295_v15 = vld [vmem:[%s9618_s1] sm:$0xff] }
  0x20   : > { %v782_v1 = vsub.f32 %v6002_v53, %v781_v60  ;;  %v9630_v2 = vand.u32 4294901760, %v6017_v61  ;;  %v6030_v3 = vsub.f32 %v323_v55, %v6013_v59  ;;  %v6036_v6 = vand.u32 4294901760, %v317_v4 }
  0x21   : > { %695 = vmatpush.xpose.msra.mxu0 %v5917_v12  ;;  %748 = vmatpush.xpose.msra.mxu1 %v747_v30  ;;  %v6044_v17 = vsub.f32 %v320_v57, %v6022_v0  ;;  %v6057_v29 = vand.u32 4294901760, %v314_v21  ;;  %v311_v34 = vsel %vm297_vm0, %v169_v22, 0  ;;  %v398_v40 = vsel %vm297_vm0, %v198_v31, 0  ;;  %v196_v57 = vld [vmem:[%s5900_s15 + $0xe8] sm:$0xff] }
  0x22   : > { %908 = vmatpush.xpose.msra.mxu3 %v5917_v12  ;;  %v783_v7 = vand.u32 4294901760, %v782_v1  ;;  %v788_v11 = vsub.f32 %v6017_v61, %v9630_v2  ;;  %v9626_v16 = vand.u32 4294901760, %v6030_v3  ;;  %v6051_v23 = vsub.f32 %v317_v4, %v6036_v6 }
  0x23   : > { %853 = vmatpush.xpose.msra.mxu2 %v5948_v25  ;;  %v9625_v30 = vand.u32 4294901760, %v6044_v17  ;;  %v6072_v47 = vand.u32 4294901760, %v311_v34  ;;  %v6075_v48 = vsub.f32 %v314_v21, %v6057_v29  ;;  %v6081_v54 = vand.u32 4294901760, %v398_v40  ;;  %v188_v25 = vld [vmem:[%s5900_s15 + $0xa8] sm:$0xff] }
  0x24   : > { %v789_v26 = vand.u32 4294901760, %v788_v11  ;;  %v794_v27 = vsub.f32 %v6030_v3, %v9626_v16  ;;  %v9623_v37 = vand.u32 4294901760, %v6051_v23  ;;  %v395_v55 = vsel %vm297_vm0, %v197_v41, 0 }
  0x25   : > { %697 = vmatpush.xpose.msra.mxu0 %v5935_v20  ;;  %754 = vmatpush.xpose.msra.mxu1 %v753_v36  ;;  %v168_v36 = vld [vmem:[%s5900_s15 + $0x8] sm:$0xff]  ;;  %v800_v44 = vsub.f32 %v6044_v17, %v9625_v30  ;;  %v6093_v1 = vsub.f32 %v311_v34, %v6072_v47  ;;  %v305_v4 = vsel %vm297_vm0, %v167_v51, 0  ;;  %v6097_v5 = vand.u32 4294901760, %v395_v55  ;;  %v195_v34 = vld [vmem:[%s5900_s15 + $0xe0] sm:$0xff] }
  0x26   : > { %910 = vmatpush.xpose.msra.mxu3 %v5935_v20  ;;  %v806_v56 = vsub.f32 %v6051_v23, %v9623_v37  ;;  %v392_v11 = vsel %vm297_vm0, %v196_v57, 0  ;;  %v192_v30 = vld [vmem:[%s5900_s15 + $0xc8] sm:$0xff] }
  0x27   : > { %856 = vmatpush.xpose.msra.mxu2 %v5961_v33  ;;  %v380_v13 = vsel %vm297_vm0, %v192_v30, 0  ;;  %v368_v33 = vsel %vm297_vm0, %v188_v25, 0 }
  0x28   : > { %v807_v21 = vand.u32 4294901760, %v806_v56  ;;  %v194_v56 = vld [vmem:[%s5900_s15 + $0xd8] sm:$0xff] }
  0x29   : > { %699 = vmatpush.xpose.msra.mxu0 %v5952_v28  ;;  %760 = vmatpush.xpose.msra.mxu1 %v759_v43  ;;  %v795_v43 = vand.u32 4294901760, %v794_v27  ;;  %v9620_v27 = vand.u32 4294901760, %v6093_v1 }
  0x2a   : > { %912 = vmatpush.xpose.msra.mxu3 %v5952_v28 }
  0x2b   : > { %859 = vmatpush.xpose.msra.mxu2 %v5974_v39 }
  0x2d   : > { %701 = vmatpush.xpose.msra.mxu0 %v5966_v35  ;;  %766 = vmatpush.xpose.msra.mxu1 %v765_v50  ;;  %v308_v50 = vsel %vm297_vm0, %v168_v36, 0  ;;  %v6117_v36 = vsub.f32 %v395_v55, %v6097_v5 }
  0x2e   : > { %914 = vmatpush.xpose.msra.mxu3 %v5966_v35  ;;  %v6089_v62 = vand.u32 4294901760, %v308_v50 }
  0x2f   : > { %862 = vmatpush.xpose.msra.mxu2 %v5981_v42  ;;  %v9627_v57 = vand.u32 4294901760, %v6117_v36  ;;  %v185_v42 = vld [vmem:[%s5900_s15 + $0x90] sm:$0xff] }
  0x30   : > { %v6112_v31 = vsub.f32 %v308_v50, %v6089_v62  ;;  %v818_v50 = vsub.f32 %v6093_v1, %v9620_v27 }
  0x31   : > { %703 = vmatpush.xpose.msra.mxu0 %v5987_v45  ;;  %772 = vmatpush.xpose.msra.mxu1 %v771_v58  ;;  %v801_v58 = vand.u32 4294901760, %v800_v44 }
  0x32   : > { %916 = vmatpush.xpose.msra.mxu3 %v5987_v45  ;;  %v9624_v51 = vand.u32 4294901760, %v6112_v31 }
  0x33   : > { %865 = vmatpush.xpose.msra.mxu2 %v6002_v53  ;;  %v184_v53 = vld [vmem:[%s5900_s15 + $0x88] sm:$0xff] }
  0x35   : > { %705 = vmatpush.xpose.msra.mxu0 %v5999_v52  ;;  %778 = vmatpush.xpose.msra.mxu1 %v777_v63  ;;  %v9621_v63 = vand.u32 4294901760, %v6075_v48 }
  0x36   : > { %918 = vmatpush.xpose.msra.mxu3 %v5999_v52 }
  0x37   : > { %868 = vmatpush.xpose.msra.mxu2 %v6017_v61  ;;  %v812_v22 = vsub.f32 %v6075_v48, %v9621_v63  ;;  %v193_v63 = vld [vmem:[%s5900_s15 + $0xd0] sm:$0xff] }
  0x39   : > { %707 = vmatpush.xpose.msra.mxu0 %v6013_v59  ;;  %784 = vmatpush.xpose.msra.mxu1 %v783_v7  ;;  %v6101_v7 = vsub.f32 %v398_v40, %v6081_v54  ;;  %v6119_v40 = vand.u32 4294901760, %v392_v11  ;;  %v813_v44 = vand.u32 4294901760, %v812_v22 }
  0x3a   : > { %920 = vmatpush.xpose.msra.mxu3 %v6013_v59 }
  0x3b   : > { %871 = vmatpush.xpose.msra.mxu2 %v6030_v3  ;;  %v9622_v41 = vand.u32 4294901760, %v6101_v7 }
  0x3d   : > { %709 = vmatpush.xpose.msra.mxu0 %v6022_v0  ;;  %790 = vmatpush.xpose.msra.mxu1 %v789_v26  ;;  %v6108_v26 = vand.u32 4294901760, %v305_v4 }
  0x3e   : > { %922 = vmatpush.xpose.msra.mxu3 %v6022_v0 }
  0x3f   : > { %874 = vmatpush.xpose.msra.mxu2 %v6044_v17  ;;  %v6130_v55 = vsub.f32 %v305_v4, %v6108_v26  ;;  %v386_v4 = vsel %vm297_vm0, %v194_v56, 0 }
  0x41   : > { %711 = vmatpush.xpose.msra.mxu0 %v6036_v6  ;;  %796 = vmatpush.xpose.msra.mxu1 %v795_v43  ;;  %v389_v43 = vsel %vm297_vm0, %v195_v34, 0  ;;  %v819_v34 = vand.u32 4294901760, %v818_v50  ;;  %v9629_v27 = vand.u32 4294901760, %v6130_v55  ;;  %v6160_v50 = vand.u32 4294901760, %v386_v4 }
  0x42   : > { %924 = vmatpush.xpose.msra.mxu3 %v6036_v6  ;;  %v6142_v22 = vand.u32 4294901760, %v389_v43 }
  0x43   : > { %877 = vmatpush.xpose.msra.mxu2 %v6051_v23 }
  0x45   : > { %713 = vmatpush.xpose.msra.mxu0 %v6057_v29  ;;  %802 = vmatpush.xpose.msra.mxu1 %v801_v58  ;;  %v6136_v58 = vsub.f32 %v392_v11, %v6119_v40  ;;  %v824_v11 = vsub.f32 %v6112_v31, %v9624_v51  ;;  %v383_v51 = vsel %vm297_vm0, %v193_v63, 0 }
  0x46   : > { %926 = vmatpush.xpose.msra.mxu3 %v6057_v29 }
  0x47   : > { %880 = vmatpush.xpose.msra.mxu2 %v6075_v48  ;;  %v9628_v37 = vand.u32 4294901760, %v6136_v58  ;;  %v825_v16 = vand.u32 4294901760, %v824_v11  ;;  %v6179_v11 = vand.u32 4294901760, %v383_v51 }
  0x49   : > { %715 = vmatpush.xpose.msra.mxu0 %v6072_v47  ;;  %808 = vmatpush.xpose.msra.mxu1 %v807_v21  ;;  %v1112_v21 = vsub.f32 %v6101_v7, %v9622_v41  ;;  %v1118_v41 = vsub.f32 %v6117_v36, %v9627_v57  ;;  %v830_v57 = vsub.f32 %v6130_v55, %v9629_v27 }
  0x4a   : > { %928 = vmatpush.xpose.msra.mxu3 %v6072_v47  ;;  %v1124_v63 = vsub.f32 %v6136_v58, %v9628_v37  ;;  %v6193_v30 = vsub.f32 %v383_v51, %v6179_v11 }
  0x4b   : > { %883 = vmatpush.xpose.msra.mxu2 %v6093_v1  ;;  %v1113_v56 = vand.u32 4294901760, %v1112_v21 }
  0x4c   : > { %v1125_v37 = vand.u32 4294901760, %v1124_v63  ;;  %v374_v63 = vsel %vm297_vm0, %v190_v14, 0 }
  0x4d   : > { %717 = vmatpush.xpose.msra.mxu0 %v6089_v62  ;;  %814 = vmatpush.xpose.msra.mxu1 %v813_v44  ;;  %v6158_v44 = vsub.f32 %v389_v43, %v6142_v22  ;;  %v1119_v43 = vand.u32 4294901760, %v1118_v41  ;;  %v831_v41 = vand.u32 4294901760, %v830_v57 }
  0x4e   : > { %930 = vmatpush.xpose.msra.mxu3 %v6089_v62 }
  0x4f   : > { %886 = vmatpush.xpose.msra.mxu2 %v6112_v31  ;;  %v9634_v21 = vand.u32 4294901760, %v6158_v44 }
  0x51   : > { %719 = vmatpush.xpose.msra.mxu0 %v6108_v26  ;;  %820 = vmatpush.xpose.msra.mxu1 %v819_v34  ;;  %v6177_v34 = vsub.f32 %v386_v4, %v6160_v50  ;;  %v1130_v4 = vsub.f32 %v6158_v44, %v9634_v21 }
  0x52   : > { %932 = vmatpush.xpose.msra.mxu3 %v6108_v26 }
  0x53   : > { %889 = vmatpush.xpose.msra.mxu2 %v6130_v55  ;;  %v9633_v27 = vand.u32 4294901760, %v6177_v34  ;;  %v1131_v51 = vand.u32 4294901760, %v1130_v4 }
  0x55   : > { %949 = vmatpush.xpose.msrb.mxu0 %v739_v18  ;;  %v191_v18 = vld [vmem:[%s5900_s15 + $0xc0] sm:$0xff]  ;;  %826 = vmatpush.xpose.msra.mxu1 %v825_v16  ;;  %v1136_v57 = vsub.f32 %v6177_v34, %v9633_v27 }
  0x56   : > { %1114 = vmatpush.xpose.msrb.mxu3 %v1113_v56  ;;  %v6186_v56 = vand.u32 4294901760, %v380_v13  ;;  %v377_v2 = vsel %vm297_vm0, %v191_v18, 0 }
  0x57   : > { %1061 = vmatpush.xpose.msrb.mxu2 %v6081_v54  ;;  %v6204_v16 = vand.u32 4294901760, %v377_v2  ;;  %v1137_v4 = vand.u32 4294901760, %v1136_v57 }
  0x59   : > { %953 = vmatpush.xpose.msrb.mxu0 %v745_v19  ;;  %832 = vmatpush.xpose.msra.mxu1 %v831_v41  ;;  %v6202_v19 = vsub.f32 %v380_v13, %v6186_v56  ;;  %v6224_v18 = vsub.f32 %v377_v2, %v6204_v16  ;;  %v6226_v41 = vand.u32 4294901760, %v374_v63 }
  0x5a   : > { %1120 = vmatpush.xpose.msrb.mxu3 %v1119_v43  ;;  %v9631_v43 = vand.u32 4294901760, %v6193_v30 }
  0x5b   : > { %1063 = vmatpush.xpose.msrb.mxu2 %v6097_v5  ;;  %v9632_v13 = vand.u32 4294901760, %v6202_v19  ;;  %v6250_v57 = vsub.f32 %v374_v63, %v6226_v41 }
  0x5c   : > { %v1142_v14 = vsub.f32 %v6193_v30, %v9631_v43 }
  0x5d   : > { %957 = vmatpush.xpose.msrb.mxu0 %v751_v24  ;;  %1020 = vmatpush.xpose.msrb.mxu1 %v5910_v8  ;;  %v299_v8 = vsel %vm297_vm0, %v295_v15, 0  ;;  %v189_v24 = vld [vmem:[%s5900_s15 + $0xb0] sm:$0xff]  ;;  %v1148_v2 = vsub.f32 %v6202_v19, %v9632_v13  ;;  %v9636_v27 = vand.u32 4294901760, %v6250_v57 }
  0x5e   : > { %1126 = vmatpush.xpose.msrb.mxu3 %v1125_v37  ;;  %v6217_v37 = vand.u32 4294901760, %v299_v8 }
  0x5f   : > { %1065 = vmatpush.xpose.msrb.mxu2 %v6119_v40 }
  0x60   : > { %v6232_v15 = vsub.f32 %v299_v8, %v6217_v37  ;;  %834 = vmatmul.f32.vlgmr.msra.gmra.mxu1 %v6217_v37  ;;  %v1143_v8 = vand.u32 4294901760, %v1142_v14  ;;  %v1149_v14 = vand.u32 4294901760, %v1148_v2 }
  0x61   : > { %961 = vmatpush.xpose.msrb.mxu0 %v757_v32  ;;  %1022 = vmatpush.xpose.msrb.mxu1 %v5912_v9  ;;  %v371_v9 = vsel %vm297_vm0, %v189_v24, 0 }
  0x62   : > { %1132 = vmatpush.xpose.msrb.mxu3 %v1131_v51  ;;  %9826 = vst [vmem:[#allocation2_spill] sm:$0xff] %v6232_v15  ;;  %v6239_v32 = vand.u32 4294901760, %v6232_v15  ;;  %892 = vmatmul.f32.vlgmr.msra.gmra.mxu2 %v6232_v15  ;;  %v9635_v51 = vand.u32 4294901760, %v6224_v18  ;;  %v6252_v24 = vand.u32 4294901760, %v371_v9 }
  0x63   : > { %1067 = vmatpush.xpose.msrb.mxu2 %v6142_v22 }
  0x64   : > { %9827 = vst [vmem:[#allocation3_spill] sm:$0xff] %v6239_v32  ;;  %v723_v43 = vsub.f32 %v6232_v15, %v6239_v32  ;;  %936 = vmatmul.f32.vlgmr.msra.gmra.mxu3 %v6239_v32  ;;  %v1154_v25 = vsub.f32 %v6224_v18, %v9635_v51 }
  0x65   : > { %965 = vmatpush.xpose.msrb.mxu0 %v763_v38  ;;  %1024 = vmatpush.xpose.msrb.mxu1 %v5914_v10  ;;  %v296_v10 = vld [vmem:[%s9618_s1 + $0x8] sm:$0xff]  ;;  %v187_v38 = vld [vmem:[%s5900_s15 + $0xa0] sm:$0xff] }
  0x66   : > { %1138 = vmatpush.xpose.msrb.mxu3 %v1137_v4  ;;  %v302_v13 = vsel %vm297_vm0, %v296_v10, 0  ;;  %v6264_v63 = vand.u32 4294901760, %v723_v43  ;;  %v6276_v10 = vsub.f32 %v371_v9, %v6252_v24  ;;  %v6278_v43 = vand.u32 4294901760, %v368_v33 }
  0x67   : > { %1069 = vmatpush.xpose.msrb.mxu2 %v6160_v50  ;;  %v6266_v4 = vand.u32 4294901760, %v302_v13  ;;  %v365_v21 = vsel %vm297_vm0, %v187_v38, 0  ;;  %v1155_v9 = vand.u32 4294901760, %v1154_v25 }
  0x68   : > { %9828 = vst [vmem:[#allocation4_spill] sm:$0xff] %v6264_v63  ;;  %725 = vmatmul.f32.vlgmr.msra.gmra.mxu0 %v6264_v63  ;;  %v6295_v2 = vand.u32 4294901760, %v365_v21  ;;  %v6302_v38 = vsub.f32 %v368_v33, %v6278_v43 }
  0x69   : > { %969 = vmatpush.xpose.msrb.mxu0 %v769_v46  ;;  %1026 = vmatpush.xpose.msrb.mxu1 %v5917_v12  ;;  %v6283_v39 = vsub.f32 %v302_v13, %v6266_v4  ;;  %v186_v12 = vld [vmem:[%s5900_s15 + $0x98] sm:$0xff]  ;;  %v1160_v13 = vsub.f32 %v6250_v57, %v9636_v27 }
  0x6a   : > { %1144 = vmatpush.xpose.msrb.mxu3 %v1143_v8  ;;  %838 = vmatmul.f32.gmra.mxu1 %v6266_v4  ;;  %v9637_v8 = vand.u32 4294901760, %v6276_v10  ;;  %v6316_v33 = vsub.f32 %v365_v21, %v6295_v2 }
  0x6b   : > { %9829 = vst [vmem:[#allocation5_spill] sm:$0xff] %v6283_v39  ;;  %1071 = vmatpush.xpose.msrb.mxu2 %v6179_v11  ;;  %v6289_v46 = vand.u32 4294901760, %v6283_v39 }
  0x6c   : > { %897 = vmatmul.f32.gmra.mxu2 %v6283_v39  ;;  %v1166_v25 = vsub.f32 %v6276_v10, %v9637_v8  ;;  %v1177_v21 = vand.u32 4294901760, %v6316_v33 }
  0x6d   : > { %9830 = vst [vmem:[#allocation6_spill] sm:$0xff] %v6289_v46  ;;  %973 = vmatpush.xpose.msrb.mxu0 %v775_v49  ;;  %1028 = vmatpush.xpose.msrb.mxu1 %v5935_v20  ;;  %v731_v51 = vsub.f32 %v6283_v39, %v6289_v46  ;;  %v362_v20 = vsel %vm297_vm0, %v186_v12, 0  ;;  %v9638_v12 = vand.u32 4294901760, %v6302_v38 }
  0x6e   : > { %1150 = vmatpush.xpose.msrb.mxu3 %v1149_v14  ;;  %v1161_v14 = vand.u32 4294901760, %v1160_v13  ;;  %v6322_v27 = vand.u32 4294901760, %v362_v20 }
  0x6f   : > { %1073 = vmatpush.xpose.msrb.mxu2 %v6186_v56  ;;  %942 = vmatmul.f32.gmra.mxu3 %v6289_v46  ;;  %v6310_v49 = vand.u32 4294901760, %v731_v51  ;;  %v1167_v51 = vand.u32 4294901760, %v1166_v25 }
  0x70   : > { %v6336_v13 = vsub.f32 %v362_v20, %v6322_v27 }
  0x71   : > { %977 = vmatpush.xpose.msrb.mxu0 %v781_v60  ;;  %1030 = vmatpush.xpose.msrb.mxu1 %v5952_v28  ;;  %v359_v28 = vsel %vm297_vm0, %v185_v42, 0  ;;  %v9831_v60 = vand.u32 4294901760, %v6017_v61  ;;  %v356_v61 = vsel %vm297_vm0, %v184_v53, 0  ;;  %v183_v42 = vld [vmem:[%s5900_s15 + $0x80] sm:$0xff]  ;;  %v9833_v53 = vand.u32 4294901760, %v6044_v17 }
  0x72   : > { %1156 = vmatpush.xpose.msrb.mxu3 %v1155_v9  ;;  %733 = vmatmul.f32.gmra.mxu0 %v6310_v49  ;;  %v1172_v9 = vsub.f32 %v6302_v38, %v9638_v12  ;;  %v6338_v8 = vand.u32 4294901760, %v359_v28  ;;  %v1183_v20 = vand.u32 4294901760, %v6336_v13  ;;  %v6353_v12 = vand.u32 4294901760, %v356_v61 }
  0x73   : > { %1075 = vmatpush.xpose.msrb.mxu2 %v6204_v16  ;;  %v9834_v17 = vand.u32 4294901760, %v6051_v23 }
  0x74   : > { %v1173_v25 = vand.u32 4294901760, %v1172_v9  ;;  %v6365_v9 = vsub.f32 %v356_v61, %v6353_v12 }
  0x75   : > { %981 = vmatpush.xpose.msrb.mxu0 %v9831_v60  ;;  %1032 = vmatpush.xpose.msrb.mxu1 %v5966_v35  ;;  %v9832_v35 = vand.u32 4294901760, %v6030_v3  ;;  %v6351_v60 = vsub.f32 %v359_v28, %v6338_v8  ;;  %v353_v3 = vsel %vm297_vm0, %v183_v42, 0 }
  0x76   : > { %1162 = vmatpush.xpose.msrb.mxu3 %v1161_v14  ;;  %v1178_v14 = vsub.f32 %v6316_v33, %v1177_v21 }
  0x77   : > { %1077 = vmatpush.xpose.msrb.mxu2 %v6226_v41  ;;  %v1189_v28 = vand.u32 4294901760, %v6351_v60 }
  0x79   : > { %985 = vmatpush.xpose.msrb.mxu0 %v9832_v35  ;;  %1034 = vmatpush.xpose.msrb.mxu1 %v5987_v45  ;;  %v1179_v45 = vand.u32 4294901760, %v1178_v14  ;;  %v6367_v35 = vand.u32 4294901760, %v353_v3  ;;  %v1190_v42 = vsub.f32 %v6351_v60, %v1189_v28  ;;  %v1195_v14 = vand.u32 4294901760, %v6365_v9 }
  0x7a   : > { %1168 = vmatpush.xpose.msrb.mxu3 %v1167_v51  ;;  %v1184_v51 = vsub.f32 %v6336_v13, %v1183_v20 }
  0x7b   : > { %1079 = vmatpush.xpose.msrb.mxu2 %v6252_v24  ;;  %v6378_v61 = vsub.f32 %v353_v3, %v6367_v35  ;;  %v1196_v23 = vsub.f32 %v6365_v9, %v1195_v14  ;;  %v9836_v3 = vand.u32 4294901760, %v6093_v1  ;;  %v9838_v1 = vand.u32 4294901760, %v6130_v55  ;;  %v214_v55 = vld [vmem:[%s5900_s15 + $0x178] sm:$0xff] }
  0x7d   : > { %989 = vmatpush.xpose.msrb.mxu0 %v9833_v53  ;;  %1036 = vmatpush.xpose.msrb.mxu1 %v5999_v52  ;;  %v1185_v52 = vand.u32 4294901760, %v1184_v51  ;;  %v1201_v53 = vand.u32 4294901760, %v6378_v61 }
  0x7e   : > { %1174 = vmatpush.xpose.msrb.mxu3 %v1173_v25  ;;  %v9835_v25 = vand.u32 4294901760, %v6075_v48  ;;  %v1197_v48 = vand.u32 4294901760, %v1196_v23 }
  0x7f   : > { %1081 = vmatpush.xpose.msrb.mxu2 %v6278_v43 }
  0x81   : > { %993 = vmatpush.xpose.msrb.mxu0 %v9834_v17  ;;  %1038 = vmatpush.xpose.msrb.mxu1 %v6013_v59  ;;  %v1191_v59 = vand.u32 4294901760, %v1190_v42 }
  0x82   : > { %1180 = vmatpush.xpose.msrb.mxu3 %v1179_v45  ;;  %v9837_v45 = vand.u32 4294901760, %v6112_v31  ;;  %v9847_v31 = vand.u32 4294901760, %v6250_v57 }
  0x83   : > { %1083 = vmatpush.xpose.msrb.mxu2 %v6295_v2 }
  0x85   : > { %997 = vmatpush.xpose.msrb.mxu0 %v9835_v25  ;;  %1040 = vmatpush.xpose.msrb.mxu1 %v6022_v0  ;;  %v1202_v0 = vsub.f32 %v6378_v61, %v1201_v53 }
  0x86   : > { %1186 = vmatpush.xpose.msrb.mxu3 %v1185_v52 }
  0x87   : > { %1085 = vmatpush.xpose.msrb.mxu2 %v6322_v27  ;;  %v1203_v51 = vand.u32 4294901760, %v1202_v0  ;;  %v206_v0 = vld [vmem:[%s5900_s15 + $0x138] sm:$0xff] }
  0x89   : > { %1001 = vmatpush.xpose.msrb.mxu0 %v9836_v3  ;;  %1042 = vmatpush.xpose.msrb.mxu1 %v6036_v6  ;;  %v9839_v6 = vand.u32 4294901760, %v6101_v7 }
  0x8a   : > { %1192 = vmatpush.xpose.msrb.mxu3 %v1191_v59 }
  0x8b   : > { %1087 = vmatpush.xpose.msrb.mxu2 %v6338_v8 }
  0x8d   : > { %1005 = vmatpush.xpose.msrb.mxu0 %v9837_v45  ;;  %1044 = vmatpush.xpose.msrb.mxu1 %v6057_v29  ;;  %v9840_v29 = vand.u32 4294901760, %v6117_v36 }
  0x8e   : > { %1198 = vmatpush.xpose.msrb.mxu3 %v1197_v48 }
  0x8f   : > { %1089 = vmatpush.xpose.msrb.mxu2 %v6353_v12 }
  0x91   : > { %1009 = vmatpush.xpose.msrb.mxu0 %v9838_v1  ;;  %1046 = vmatpush.xpose.msrb.mxu1 %v6072_v47  ;;  %v9841_v47 = vand.u32 4294901760, %v6136_v58 }
  0x92   : > { %1204 = vmatpush.xpose.msrb.mxu3 %v1203_v51 }
  0x93   : > { %1091 = vmatpush.xpose.msrb.mxu2 %v6367_v35 }
  0x94   : > { %1011 = vmatmul.f32.vlgmr.msrb.gmra.mxu0 %v6217_v37 }
  0x95   : > { %1216 = vmatpush.xpose.msra.mxu0 %v6101_v7  ;;  %1048 = vmatpush.xpose.msrb.mxu1 %v6089_v62  ;;  %v9843_v62 = vand.u32 4294901760, %v6177_v34  ;;  %v9845_v7 = vand.u32 4294901760, %v6202_v19 }
  0x96   : > { %1392 = vmatpush.xpose.msra.mxu3 %v6081_v54  ;;  %1097 = vmatmul.f32.vlgmr.msrb.gmra.mxu2 %v6264_v63 }
  0x97   : > { %1321 = vmatpush.xpose.msra.mxu2 %v9839_v6  ;;  %1206 = vmatmul.f32.vlgmr.msrb.gmra.mxu3 %v6217_v37 }
  0x99   : > { %1219 = vmatpush.xpose.msra.mxu0 %v6117_v36  ;;  %1050 = vmatpush.xpose.msrb.mxu1 %v6108_v26  ;;  %v9846_v26 = vand.u32 4294901760, %v6224_v18  ;;  %v9848_v36 = vand.u32 4294901760, %v6276_v10 }
  0x9a   : > { %1394 = vmatpush.xpose.msra.mxu3 %v6097_v5 }
  0x9b   : > { %1325 = vmatpush.xpose.msra.mxu2 %v9840_v29 }
  0x9c   : > { %1052 = vmatmul.f32.vlgmr.msrb.gmra.mxu1 %v6217_v37  ;;  %1015 = vmatmul.f32.gmra.mxu0 %v6266_v4 }
  0x9d   : > { %1222 = vmatpush.xpose.msra.mxu0 %v6136_v58  ;;  %1274 = vmatpush.xpose.msra.mxu1 %v6081_v54  ;;  %v9842_v54 = vand.u32 4294901760, %v6158_v44  ;;  %v446_v58 = vsel %vm297_vm0, %v214_v55, 0 }
  0x9e   : > { %1396 = vmatpush.xpose.msra.mxu3 %v6119_v40  ;;  %1105 = vmatmul.f32.gmra.mxu2 %v6310_v49 }
  0x9f   : > { %1329 = vmatpush.xpose.msra.mxu2 %v9841_v47  ;;  %1210 = vmatmul.f32.gmra.mxu3 %v6266_v4  ;;  %v422_v47 = vsel %vm297_vm0, %v206_v0, 0 }
  0xa1   : > { %1225 = vmatpush.xpose.msra.mxu0 %v6158_v44  ;;  %1276 = vmatpush.xpose.msra.mxu1 %v6097_v5  ;;  %v9844_v5 = vand.u32 4294901760, %v6193_v30  ;;  %v6478_v44 = vand.u32 4294901760, %v446_v58 }
  0xa2   : > { %1398 = vmatpush.xpose.msra.mxu3 %v6142_v22 }
  0xa3   : > { %1333 = vmatpush.xpose.msra.mxu2 %v9842_v54  ;;  %v205_v54 = vld [vmem:[%s5900_s15 + $0x130] sm:$0xff] }
  0xa4   : > { %1056 = vmatmul.f32.gmra.mxu1 %v6266_v4 }
  0xa5   : > { %1228 = vmatpush.xpose.msra.mxu0 %v6177_v34  ;;  %1278 = vmatpush.xpose.msra.mxu1 %v6119_v40  ;;  %v9849_v40 = vand.u32 4294901760, %v6302_v38  ;;  %v212_v34 = vld [vmem:[%s5900_s15 + $0x168] sm:$0xff] }
  0xa6   : > { %1400 = vmatpush.xpose.msra.mxu3 %v6160_v50 }
  0xa7   : > { %1337 = vmatpush.xpose.msra.mxu2 %v9843_v62 }
  0xa9   : > { %1231 = vmatpush.xpose.msra.mxu0 %v6193_v30  ;;  %1280 = vmatpush.xpose.msra.mxu1 %v6142_v22  ;;  %v213_v22 = vld [vmem:[%s5900_s15 + $0x170] sm:$0xff]  ;;  %v440_v30 = vsel %vm297_vm0, %v212_v34, 0 }
  0xaa   : > { %1402 = vmatpush.xpose.msra.mxu3 %v6179_v11 }
  0xab   : > { %1341 = vmatpush.xpose.msra.mxu2 %v9844_v5 }
  0xad   : > { %1234 = vmatpush.xpose.msra.mxu0 %v6202_v19  ;;  %1282 = vmatpush.xpose.msra.mxu1 %v6160_v50  ;;  %v443_v50 = vsel %vm297_vm0, %v213_v22, 0  ;;  %v211_v19 = vld [vmem:[%s5900_s15 + $0x160] sm:$0xff] }
  0xae   : > { %1404 = vmatpush.xpose.msra.mxu3 %v6186_v56 }
  0xaf   : > { %1345 = vmatpush.xpose.msra.mxu2 %v9845_v7 }
  0xb1   : > { %1237 = vmatpush.xpose.msra.mxu0 %v6224_v18  ;;  %1284 = vmatpush.xpose.msra.mxu1 %v6179_v11  ;;  %v6486_v11 = vand.u32 4294901760, %v443_v50 }
  0xb2   : > { %1406 = vmatpush.xpose.msra.mxu3 %v6204_v16 }
  0xb3   : > { %1349 = vmatpush.xpose.msra.mxu2 %v9846_v26  ;;  %v6501_v18 = vsub.f32 %v443_v50, %v6486_v11 }
  0xb5   : > { %1240 = vmatpush.xpose.msra.mxu0 %v6250_v57  ;;  %1286 = vmatpush.xpose.msra.mxu1 %v6186_v56  ;;  %v6490_v56 = vsub.f32 %v446_v58, %v6478_v44  ;;  %v437_v57 = vsel %vm297_vm0, %v211_v19, 0  ;;  %v203_v19 = vld [vmem:[%s5900_s15 + $0x120] sm:$0xff] }
  0xb6   : > { %1408 = vmatpush.xpose.msra.mxu3 %v6226_v41 }
  0xb7   : > { %1353 = vmatpush.xpose.msra.mxu2 %v9847_v31  ;;  %v6602_v31 = vand.u32 4294901760, %v422_v47 }
  0xb9   : > { %1243 = vmatpush.xpose.msra.mxu0 %v6276_v10  ;;  %1288 = vmatpush.xpose.msra.mxu1 %v6204_v16  ;;  %v6498_v16 = vand.u32 4294901760, %v440_v30  ;;  %v6616_v34 = vsub.f32 %v422_v47, %v6602_v31 }
  0xba   : > { %1410 = vmatpush.xpose.msra.mxu3 %v6252_v24 }
  0xbb   : > { %1357 = vmatpush.xpose.msra.mxu2 %v9848_v36  ;;  %v6513_v10 = vsub.f32 %v440_v30, %v6498_v16  ;;  %v419_v36 = vsel %vm297_vm0, %v205_v54, 0 }
  0xbc   : > { %v6613_v50 = vand.u32 4294901760, %v419_v36 }
  0xbd   : > { %1246 = vmatpush.xpose.msra.mxu0 %v6302_v38  ;;  %1290 = vmatpush.xpose.msra.mxu1 %v6226_v41  ;;  %v9653_v41 = vand.u32 4294901760, %v6490_v56  ;;  %v209_v38 = vld [vmem:[%s5900_s15 + $0x150] sm:$0xff] }
  0xbe   : > { %1412 = vmatpush.xpose.msra.mxu3 %v6278_v43 }
  0xbf   : > { %1361 = vmatpush.xpose.msra.mxu2 %v9849_v40  ;;  %v204_v40 = vld [vmem:[%s5900_s15 + $0x128] sm:$0xff] }
  0xc0   : > { %v416_v30 = vsel %vm297_vm0, %v204_v40, 0 }
  0xc1   : > { %1249 = vmatpush.xpose.msra.mxu0 %v6316_v33  ;;  %1292 = vmatpush.xpose.msra.mxu1 %v6252_v24  ;;  %v210_v24 = vld [vmem:[%s5900_s15 + $0x158] sm:$0xff] }
  0xc2   : > { %1414 = vmatpush.xpose.msra.mxu3 %v6295_v2 }
  0xc3   : > { %1365 = vmatpush.xpose.msra.mxu2 %v1177_v21  ;;  %v9650_v21 = vand.u32 4294901760, %v6513_v10 }
  0xc5   : > { %1252 = vmatpush.xpose.msra.mxu0 %v6336_v13  ;;  %1294 = vmatpush.xpose.msra.mxu1 %v6278_v43  ;;  %v1484_v43 = vsub.f32 %v6490_v56, %v9653_v41  ;;  %v1496_v17 = vsub.f32 %v6513_v10, %v9650_v21 }
  0xc6   : > { %1416 = vmatpush.xpose.msra.mxu3 %v6322_v27 }
  0xc7   : > { %1369 = vmatpush.xpose.msra.mxu2 %v1183_v20  ;;  %v1485_v13 = vand.u32 4294901760, %v1484_v43  ;;  %v1497_v25 = vand.u32 4294901760, %v1496_v17  ;;  %v6626_v43 = vand.u32 4294901760, %v416_v30 }
  0xc9   : > { %1255 = vmatpush.xpose.msra.mxu0 %v6351_v60  ;;  %1296 = vmatpush.xpose.msra.mxu1 %v6295_v2  ;;  %v6520_v2 = vand.u32 4294901760, %v437_v57 }
  0xca   : > { %1418 = vmatpush.xpose.msra.mxu3 %v6338_v8 }
  0xcb   : > { %1373 = vmatpush.xpose.msra.mxu2 %v1189_v28  ;;  %v6540_v60 = vsub.f32 %v437_v57, %v6520_v2  ;;  %v208_v28 = vld [vmem:[%s5900_s15 + $0x148] sm:$0xff] }
  0xcd   : > { %1258 = vmatpush.xpose.msra.mxu0 %v6365_v9  ;;  %1298 = vmatpush.xpose.msra.mxu1 %v6322_v27  ;;  %v9652_v27 = vand.u32 4294901760, %v6501_v18  ;;  %v9649_v42 = vand.u32 4294901760, %v6540_v60 }
  0xce   : > { %1420 = vmatpush.xpose.msra.mxu3 %v6353_v12 }
  0xcf   : > { %1377 = vmatpush.xpose.msra.mxu2 %v1195_v14  ;;  %v1490_v33 = vsub.f32 %v6501_v18, %v9652_v27  ;;  %v1502_v23 = vsub.f32 %v6540_v60, %v9649_v42 }
  0xd1   : > { %1261 = vmatpush.xpose.msra.mxu0 %v6378_v61  ;;  %1300 = vmatpush.xpose.msra.mxu1 %v6338_v8  ;;  %v434_v8 = vsel %vm297_vm0, %v210_v24, 0  ;;  %v1491_v9 = vand.u32 4294901760, %v1490_v33  ;;  %v428_v61 = vsel %vm297_vm0, %v208_v28, 0  ;;  %v1503_v1 = vand.u32 4294901760, %v1502_v23 }
  0xd2   : > { %1422 = vmatpush.xpose.msra.mxu3 %v6367_v35  ;;  %v6537_v20 = vand.u32 4294901760, %v434_v8  ;;  %v6564_v59 = vand.u32 4294901760, %v428_v61  ;;  %v413_v33 = vsel %vm297_vm0, %v203_v19, 0  ;;  %v229_v19 = vld [vmem:[%s5900_s15 + $0x1f0] sm:$0xff] }
  0xd3   : > { %1381 = vmatpush.xpose.msra.mxu2 %v1201_v53 }
  0xd4   : > { %1264 = vmatmul.f32.vlgmr.msra.gmra.mxu0 %v6232_v15  ;;  %v6555_v14 = vsub.f32 %v434_v8, %v6537_v20  ;;  %v6582_v51 = vsub.f32 %v428_v61, %v6564_v59  ;;  %v9643_v8 = vand.u32 4294901760, %v6616_v34  ;;  %v6644_v61 = vsub.f32 %v416_v30, %v6626_v43 }
  0xd5   : > { %1433 = vmatpush.xpose.msrb.mxu0 %v6478_v44  ;;  %1302 = vmatpush.xpose.msra.mxu1 %v6353_v12  ;;  %v431_v12 = vsel %vm297_vm0, %v209_v38, 0  ;;  %v6630_v38 = vsub.f32 %v419_v36, %v6613_v50 }
  0xd6   : > { %1646 = vmatpush.xpose.msrb.mxu3 %v6478_v44  ;;  %1383 = vmatmul.f32.vlgmr.msra.gmra.mxu2 %v6217_v37  ;;  %v6551_v52 = vand.u32 4294901760, %v431_v12  ;;  %v9648_v53 = vand.u32 4294901760, %v6555_v14  ;;  %v9645_v62 = vand.u32 4294901760, %v6582_v51  ;;  %v9640_v47 = vand.u32 4294901760, %v6644_v61 }
  0xd7   : > { %1588 = vmatpush.xpose.msrb.mxu2 %v6490_v56  ;;  %1424 = vmatmul.f32.vlgmr.msra.gmra.mxu3 %v6217_v37  ;;  %v9641_v17 = vand.u32 4294901760, %v6630_v38 }
  0xd8   : > { %v6572_v3 = vsub.f32 %v431_v12, %v6551_v52  ;;  %v1508_v6 = vsub.f32 %v6555_v14, %v9648_v53  ;;  %v1520_v55 = vsub.f32 %v6582_v51, %v9645_v62  ;;  %v6636_v12 = vand.u32 4294901760, %v413_v33  ;;  %v225_v53 = vld [vmem:[%s5900_s15 + $0x1d0] sm:$0xff] }
  0xd9   : > { %1435 = vmatpush.xpose.msrb.mxu0 %v6486_v11  ;;  %1304 = vmatpush.xpose.msra.mxu1 %v6367_v35  ;;  %v207_v35 = vld [vmem:[%s5900_s15 + $0x140] sm:$0xff] }
  0xda   : > { %1648 = vmatpush.xpose.msrb.mxu3 %v6486_v11  ;;  %v425_v48 = vsel %vm297_vm0, %v207_v35, 0  ;;  %v9646_v29 = vand.u32 4294901760, %v6572_v3  ;;  %v1509_v7 = vand.u32 4294901760, %v1508_v6  ;;  %v1521_v57 = vand.u32 4294901760, %v1520_v55 }
  0xdb   : > { %1591 = vmatpush.xpose.msrb.mxu2 %v6501_v18  ;;  %v6579_v45 = vand.u32 4294901760, %v425_v48  ;;  %v6651_v23 = vsub.f32 %v413_v33, %v6636_v12  ;;  %v1544_v55 = vsub.f32 %v6644_v61, %v9640_v47  ;;  %v199_v33 = vld [vmem:[%s5900_s15 + $0x100] sm:$0xff] }
  0xdc   : > { %1308 = vmatmul.f32.vlgmr.msra.gmra.mxu1 %v6239_v32  ;;  %1269 = vmatmul.f32.gmra.mxu0 %v6283_v39  ;;  %v1514_v26 = vsub.f32 %v6572_v3, %v9646_v29  ;;  %v226_v29 = vld [vmem:[%s5900_s15 + $0x1d8] sm:$0xff] }
  0xdd   : > { %1437 = vmatpush.xpose.msrb.mxu0 %v6498_v16  ;;  %1486 = vmatpush.xpose.msrb.mxu1 %v1485_v13  ;;  %v6596_v5 = vsub.f32 %v425_v48, %v6579_v45  ;;  %v202_v13 = vld [vmem:[%s5900_s15 + $0x118] sm:$0xff]  ;;  %v9639_v36 = vand.u32 4294901760, %v6651_v23 }
  0xde   : > { %1650 = vmatpush.xpose.msrb.mxu3 %v6498_v16  ;;  %1387 = vmatmul.f32.gmra.mxu2 %v6266_v4  ;;  %v1515_v22 = vand.u32 4294901760, %v1514_v26  ;;  %v410_v35 = vsel %vm297_vm0, %v202_v13, 0  ;;  %v230_v48 = vld [vmem:[%s5900_s15 + $0x1f8] sm:$0xff] }
  0xdf   : > { %1594 = vmatpush.xpose.msrb.mxu2 %v6513_v10  ;;  %1428 = vmatmul.f32.gmra.mxu3 %v6266_v4  ;;  %v9644_v58 = vand.u32 4294901760, %v6596_v5  ;;  %v6658_v6 = vand.u32 4294901760, %v410_v35  ;;  %v494_v26 = vsel %vm297_vm0, %v230_v48, 0  ;;  %v1550_v13 = vsub.f32 %v6651_v23, %v9639_v36 }
  0xe1   : > { %1439 = vmatpush.xpose.msrb.mxu0 %v6520_v2  ;;  %1492 = vmatpush.xpose.msrb.mxu1 %v1491_v9  ;;  %v1526_v24 = vsub.f32 %v6596_v5, %v9644_v58  ;;  %v1532_v9 = vsub.f32 %v6616_v34, %v9643_v8  ;;  %v6674_v30 = vsub.f32 %v410_v35, %v6658_v6  ;;  %v1545_v35 = vand.u32 4294901760, %v1544_v55 }
  0xe2   : > { %1652 = vmatpush.xpose.msrb.mxu3 %v6520_v2  ;;  %v1551_v36 = vand.u32 4294901760, %v1550_v13 }
  0xe3   : > { %1597 = vmatpush.xpose.msrb.mxu2 %v6540_v60  ;;  %v1527_v28 = vand.u32 4294901760, %v1526_v24  ;;  %v1533_v0 = vand.u32 4294901760, %v1532_v9  ;;  %v6679_v24 = vand.u32 4294901760, %v494_v26  ;;  %v228_v9 = vld [vmem:[%s5900_s15 + $0x1e8] sm:$0xff]  ;;  %v9642_v48 = vand.u32 4294901760, %v6674_v30 }
  0xe4   : > { %1314 = vmatmul.f32.gmra.mxu1 %v6289_v46  ;;  %v488_v55 = vsel %vm297_vm0, %v228_v9, 0 }
  0xe5   : > { %1441 = vmatpush.xpose.msrb.mxu0 %v6537_v20  ;;  %1498 = vmatpush.xpose.msrb.mxu1 %v1497_v25  ;;  %v201_v25 = vld [vmem:[%s5900_s15 + $0x110] sm:$0xff]  ;;  %v6717_v9 = vand.u32 4294901760, %v488_v55 }
  0xe6   : > { %1654 = vmatpush.xpose.msrb.mxu3 %v6537_v20  ;;  %v407_v54 = vsel %vm297_vm0, %v201_v25, 0 }
  0xe7   : > { %1600 = vmatpush.xpose.msrb.mxu2 %v6555_v14 }
  0xe9   : > { %1443 = vmatpush.xpose.msrb.mxu0 %v6551_v52  ;;  %1504 = vmatpush.xpose.msrb.mxu1 %v1503_v1  ;;  %v1538_v1 = vsub.f32 %v6630_v38, %v9641_v17  ;;  %v227_v17 = vld [vmem:[%s5900_s15 + $0x1e0] sm:$0xff] }
  0xea   : > { %1656 = vmatpush.xpose.msrb.mxu3 %v6551_v52 }
  0xeb   : > { %1603 = vmatpush.xpose.msrb.mxu2 %v6572_v3  ;;  %v1539_v40 = vand.u32 4294901760, %v1538_v1  ;;  %v401_v1 = vsel %vm297_vm0, %v199_v33, 0 }
  0xec   : > { %v6708_v47 = vand.u32 4294901760, %v401_v1 }
  0xed   : > { %1445 = vmatpush.xpose.msrb.mxu0 %v6564_v59  ;;  %1510 = vmatpush.xpose.msrb.mxu1 %v1509_v7  ;;  %v200_v7 = vld [vmem:[%s5900_s15 + $0x108] sm:$0xff] }
  0xee   : > { %1658 = vmatpush.xpose.msrb.mxu3 %v6564_v59  ;;  %9853 = vst [vmem:[#allocation10_spill] sm:$0xff] %v6708_v47  ;;  %v6730_v62 = vsub.f32 %v401_v1, %v6708_v47  ;;  %v482_v1 = vsel %vm297_vm0, %v226_v29, 0  ;;  %v893_v29 = vpop.f32.mrf.mxu2 }
  0xef   : > { %1606 = vmatpush.xpose.msrb.mxu2 %v6582_v51 }
  0xf0   : > { %v9855_v41 = vand.u32 4294901760, %v6730_v62 }
  0xf1   : > { %1447 = vmatpush.xpose.msrb.mxu0 %v6579_v45  ;;  %1516 = vmatpush.xpose.msrb.mxu1 %v1515_v22  ;;  %v6671_v22 = vand.u32 4294901760, %v407_v54 }
  0xf2   : > { %1660 = vmatpush.xpose.msrb.mxu3 %v6579_v45 }
  0xf3   : > { %1609 = vmatpush.xpose.msrb.mxu2 %v6596_v5  ;;  %9850 = vst [vmem:[#allocation7_spill] sm:$0xff] %v6671_v22 }
  0xf5   : > { %1449 = vmatpush.xpose.msrb.mxu0 %v6602_v31  ;;  %1522 = vmatpush.xpose.msrb.mxu1 %v1521_v57  ;;  %v404_v57 = vsel %vm297_vm0, %v200_v7, 0  ;;  %v6698_v7 = vsub.f32 %v494_v26, %v6679_v24 }
  0xf6   : > { %1662 = vmatpush.xpose.msrb.mxu3 %v6602_v31  ;;  %v6689_v25 = vand.u32 4294901760, %v404_v57 }
  0xf7   : > { %1612 = vmatpush.xpose.msrb.mxu2 %v6616_v34  ;;  %9852 = vst [vmem:[#allocation9_spill] sm:$0xff] %v6698_v7  ;;  %v9651_v13 = vand.u32 4294901760, %v6698_v7 }
  0xf8   : > { %9851 = vst [vmem:[#allocation8_spill] sm:$0xff] %v6689_v25  ;;  %v6712_v33 = vsub.f32 %v404_v57, %v6689_v25 }
  0xf9   : > { %1451 = vmatpush.xpose.msrb.mxu0 %v6613_v50  ;;  %1528 = vmatpush.xpose.msrb.mxu1 %v1527_v28  ;;  %v491_v28 = vsel %vm297_vm0, %v229_v19, 0  ;;  %v726_v19 = vpop.f32.mrf.mxu0 }
  0xfa   : > { %1664 = vmatpush.xpose.msrb.mxu3 %v6613_v50  ;;  %v9656_v58 = vand.u32 4294901760, %v6712_v33 }
  0xfb   : > { %1615 = vmatpush.xpose.msrb.mxu2 %v6630_v38 }
  0xfd   : > { %1453 = vmatpush.xpose.msrb.mxu0 %v6626_v43  ;;  %1534 = vmatpush.xpose.msrb.mxu1 %v1533_v0  ;;  %v6693_v0 = vsub.f32 %v407_v54, %v6671_v22  ;;  %v1556_v54 = vsub.f32 %v6674_v30, %v9642_v48  ;;  %v485_v48 = vsel %vm297_vm0, %v227_v17, 0  ;;  %v1856_v17 = vsub.f32 %v6698_v7, %v9651_v13 }
  0xfe   : > { %1666 = vmatpush.xpose.msrb.mxu3 %v6626_v43  ;;  %v6760_v7 = vand.u32 4294901760, %v482_v1 }
  0xff   : > { %1618 = vmatpush.xpose.msrb.mxu2 %v6644_v61  ;;  %v9647_v26 = vand.u32 4294901760, %v6693_v0  ;;  %v1557_v57 = vand.u32 4294901760, %v1556_v54  ;;  %v1857_v27 = vand.u32 4294901760, %v1856_v17 }
 0x101   : > { %1455 = vmatpush.xpose.msrb.mxu0 %v6636_v12  ;;  %1540 = vmatpush.xpose.msrb.mxu1 %v1539_v40  ;;  %v6701_v40 = vand.u32 4294901760, %v491_v28  ;;  %v1562_v8 = vsub.f32 %v6693_v0, %v9647_v26  ;;  %v6742_v26 = vand.u32 4294901760, %v485_v48  ;;  %v734_v21 = vpop.f32.mrf.mxu0 }
 0x102   : > { %1668 = vmatpush.xpose.msrb.mxu3 %v6636_v12 }
 0x103   : > { %1621 = vmatpush.xpose.msrb.mxu2 %v6651_v23  ;;  %v1563_v42 = vand.u32 4294901760, %v1562_v8 }
 0x105   : > { %1457 = vmatpush.xpose.msrb.mxu0 %v6658_v6  ;;  %1546 = vmatpush.xpose.msrb.mxu1 %v1545_v35  ;;  %v6721_v35 = vsub.f32 %v491_v28, %v6701_v40  ;;  %v6738_v28 = vsub.f32 %v488_v55, %v6717_v9  ;;  %v1568_v55 = vsub.f32 %v6712_v33, %v9656_v58  ;;  %v479_v58 = vsel %vm297_vm0, %v225_v53, 0 }
 0x106   : > { %1670 = vmatpush.xpose.msrb.mxu3 %v6658_v6 }
 0x107   : > { %1624 = vmatpush.xpose.msrb.mxu2 %v6674_v30  ;;  %9854 = vst [vmem:[#allocation11_spill] sm:$0xff] %v6738_v28  ;;  %v9659_v54 = vand.u32 4294901760, %v6721_v35  ;;  %v1569_v17 = vand.u32 4294901760, %v1568_v55 }
 0x109   : > { %1459 = vmatpush.xpose.msrb.mxu0 %v6671_v22  ;;  %1552 = vmatpush.xpose.msrb.mxu1 %v1551_v36  ;;  %v835_v36 = vpop.f32.mrf.mxu1  ;;  %v1862_v8 = vsub.f32 %v6721_v35, %v9659_v54  ;;  %v9856_v54 = vand.u32 4294901760, %v6490_v56 }
 0x10a   : > { %1672 = vmatpush.xpose.msrb.mxu3 %v6671_v22  ;;  %v836_v13 = vadd.f32 %v835_v36, %v726_v19  ;;  %v224_v22 = vld [vmem:[%s5900_s15 + $0x1c8] sm:$0xff]  ;;  %v6774_v19 = vand.u32 4294901760, %v479_v58 }
 0x10b   : > { %1627 = vmatpush.xpose.msrb.mxu2 %v6693_v0  ;;  %v1863_v36 = vand.u32 4294901760, %v1862_v8 }
 0x10c   : > { %v894_v56 = vadd.f32 %v893_v29, %v836_v13 }
 0x10d   : > { %1461 = vmatpush.xpose.msrb.mxu0 %v6689_v25  ;;  %1558 = vmatpush.xpose.msrb.mxu1 %v1557_v57  ;;  %v6758_v57 = vsub.f32 %v485_v48, %v6742_v26  ;;  %v9857_v48 = vand.u32 4294901760, %v6738_v28 }
 0x10e   : > { %1674 = vmatpush.xpose.msrb.mxu3 %v6689_v25  ;;  %v1574_v25 = vsub.f32 %v6730_v62, %v9855_v41  ;;  %v6779_v41 = vsub.f32 %v482_v1, %v6760_v7  ;;  %v6789_v1 = vsub.f32 %v479_v58, %v6774_v19  ;;  %v898_v58 = vpop.f32.mrf.mxu2 }
 0x10f   : > { %1630 = vmatpush.xpose.msrb.mxu2 %v6712_v33  ;;  %v1868_v53 = vsub.f32 %v6738_v28, %v9857_v48  ;;  %v9663_v55 = vand.u32 4294901760, %v6758_v57 }
 0x110   : > { %v1575_v28 = vand.u32 4294901760, %v1574_v25 }
 0x111   : > { %1463 = vmatpush.xpose.msrb.mxu0 %v6708_v47  ;;  %1564 = vmatpush.xpose.msrb.mxu1 %v1563_v42  ;;  %v937_v42 = vpop.f32.mrf.mxu3  ;;  %v839_v48 = vpop.f32.mrf.mxu1  ;;  %v1869_v8 = vand.u32 4294901760, %v1868_v53  ;;  %v1874_v13 = vsub.f32 %v6758_v57, %v9663_v55  ;;  %v9673_v55 = vand.u32 4294901760, %v6789_v1 }
 0x112   : > { %1676 = vmatpush.xpose.msrb.mxu3 %v6708_v47  ;;  %v223_v47 = vld [vmem:[%s5900_s15 + $0x1c0] sm:$0xff]  ;;  %v938_v53 = vadd.f32 %v937_v42, %v894_v56 }
 0x113   : > { %1633 = vmatpush.xpose.msrb.mxu2 %v6730_v62 }
 0x114   : > { %1469 = vmatmul.f32.vlgmr.msrb.gmra.mxu0 %v6264_v63 }
 0x115   : > { %1693 = vmatpush.xpose.msra.mxu0 %v9856_v54  ;;  %v476_v54 = vsel %vm297_vm0, %v224_v22, 0  ;;  %1570 = vmatpush.xpose.msrb.mxu1 %v1569_v17  ;;  %v1012_v22 = vpop.f32.mrf.mxu0  ;;  %v840_v17 = vadd.f32 %v839_v48, %v734_v21  ;;  %v9860_v21 = vand.u32 4294901760, %v6779_v41  ;;  %v221_v48 = vld [vmem:[%s5900_s15 + $0x1b0] sm:$0xff] }
 0x116   : > { %1858 = vmatpush.xpose.msra.mxu3 %v1857_v27  ;;  %v9858_v27 = vand.u32 4294901760, %v6501_v18  ;;  %1636 = vmatmul.f32.vlgmr.msrb.gmra.mxu2 %v6232_v15  ;;  %v6796_v29 = vand.u32 4294901760, %v476_v54  ;;  %v473_v18 = vsel %vm297_vm0, %v223_v47, 0  ;;  %v1013_v42 = vadd.f32 %v1012_v22, %v938_v53 }
 0x117   : > { %1805 = vmatpush.xpose.msra.mxu2 %v6679_v24  ;;  %1680 = vmatmul.f32.vlgmr.msrb.gmra.mxu3 %v6239_v32  ;;  %v6805_v25 = vand.u32 4294901760, %v473_v18  ;;  %v1875_v32 = vand.u32 4294901760, %v1874_v13  ;;  %v1880_v47 = vsub.f32 %v6779_v41, %v9860_v21 }
 0x119   : > { %1697 = vmatpush.xpose.msra.mxu0 %v9858_v27  ;;  %1576 = vmatpush.xpose.msrb.mxu1 %v1575_v28  ;;  %v222_v27 = vld [vmem:[%s5900_s15 + $0x1b8] sm:$0xff]  ;;  %v6811_v28 = vsub.f32 %v476_v54, %v6796_v29  ;;  %v1886_v54 = vsub.f32 %v6789_v1, %v9673_v55  ;;  %v6826_v22 = vsub.f32 %v473_v18, %v6805_v25  ;;  %v1053_v13 = vpop.f32.mrf.mxu1 }
 0x11a   : > { %1864 = vmatpush.xpose.msra.mxu3 %v1863_v36  ;;  %v9859_v36 = vand.u32 4294901760, %v6513_v10  ;;  %v899_v10 = vadd.f32 %v898_v58, %v840_v17  ;;  %v470_v56 = vsel %vm297_vm0, %v222_v27, 0  ;;  %v1881_v17 = vand.u32 4294901760, %v1880_v47 }
 0x11b   : > { %1807 = vmatpush.xpose.msra.mxu2 %v6701_v40  ;;  %v9667_v53 = vand.u32 4294901760, %v6811_v28  ;;  %v6829_v58 = vand.u32 4294901760, %v470_v56  ;;  %v467_v27 = vsel %vm297_vm0, %v221_v48, 0  ;;  %v1887_v47 = vand.u32 4294901760, %v1886_v54  ;;  %v218_v54 = vld [vmem:[%s5900_s15 + $0x198] sm:$0xff] }
 0x11c   : > { %1578 = vmatmul.f32.vlgmr.msrb.gmra.mxu1 %v6217_v37  ;;  %1477 = vmatmul.f32.gmra.mxu0 %v6310_v49 }
 0x11d   : > { %1701 = vmatpush.xpose.msra.mxu0 %v9859_v36  ;;  %1764 = vmatpush.xpose.msra.mxu1 %v6478_v44  ;;  %v943_v44 = vpop.f32.mrf.mxu3  ;;  %v220_v36 = vld [vmem:[%s5900_s15 + $0x1a8] sm:$0xff]  ;;  %v1016_v21 = vpop.f32.mrf.mxu0 }
 0x11e   : > { %1870 = vmatpush.xpose.msra.mxu3 %v1869_v8  ;;  %v9861_v8 = vand.u32 4294901760, %v6540_v60  ;;  %1641 = vmatmul.f32.gmra.mxu2 %v6283_v39  ;;  %v1054_v60 = vadd.f32 %v1053_v13, %v1013_v42  ;;  %v1892_v42 = vsub.f32 %v6811_v28, %v9667_v53  ;;  %v464_v48 = vsel %vm297_vm0, %v220_v36, 0 }
 0x11f   : > { %1809 = vmatpush.xpose.msra.mxu2 %v6717_v9  ;;  %1686 = vmatmul.f32.gmra.mxu3 %v6289_v46  ;;  %v9863_v13 = vand.u32 4294901760, %v6572_v3  ;;  %v9864_v53 = vand.u32 4294901760, %v6582_v51 }
 0x120   : > { %v5758_v18 = vmul.f32 -1.442695, %v1054_v60 }
 0x121   : > { %1705 = vmatpush.xpose.msra.mxu0 %v9861_v8  ;;  %1766 = vmatpush.xpose.msra.mxu1 %v6486_v11  ;;  %v944_v11 = vadd.f32 %v943_v44, %v899_v10  ;;  %v9666_v8 = vand.u32 4294901760, %v6826_v22  ;;  %v6843_v10 = vsub.f32 %v470_v56, %v6829_v58  ;;  %v6845_v44 = vand.u32 4294901760, %v467_v27  ;;  %v1057_v60 = vpop.f32.mrf.mxu1 }
 0x122   : > { %1876 = vmatpush.xpose.msra.mxu3 %v1875_v32  ;;  %v9862_v32 = vand.u32 4294901760, %v6555_v14  ;;  %5784 = vpow2.f32 %v5758_v18 }
 0x123   : > { %1811 = vmatpush.xpose.msra.mxu2 %v6742_v26  ;;  %v1017_v14 = vadd.f32 %v1016_v21, %v944_v11  ;;  %v1898_v56 = vsub.f32 %v6826_v22, %v9666_v8  ;;  %v1893_v11 = vand.u32 4294901760, %v1892_v42  ;;  %v9670_v36 = vand.u32 4294901760, %v6843_v10 }
 0x124   : > { %1582 = vmatmul.f32.gmra.mxu1 %v6266_v4  ;;  %v6862_v21 = vsub.f32 %v467_v27, %v6845_v44 }
 0x125   : > { %1709 = vmatpush.xpose.msra.mxu0 %v9862_v32  ;;  %1768 = vmatpush.xpose.msra.mxu1 %v6498_v16  ;;  %v219_v16 = vld [vmem:[%s5900_s15 + $0x1a0] sm:$0xff]  ;;  %v1058_v3 = vadd.f32 %v1057_v60, %v1017_v14  ;;  %v217_v32 = vld [vmem:[%s5900_s15 + $0x190] sm:$0xff]  ;;  %v1904_v14 = vsub.f32 %v6843_v10, %v9670_v36 }
 0x126   : > { %1882 = vmatpush.xpose.msra.mxu3 %v1881_v17  ;;  %v6858_v17 = vand.u32 4294901760, %v464_v48  ;;  %v461_v18 = vsel %vm297_vm0, %v219_v16, 0 }
 0x127   : > { %1813 = vmatpush.xpose.msra.mxu2 %v6760_v7  ;;  %v5766_v8 = vmul.f32 -1.442695, %v1058_v3  ;;  %v6874_v27 = vand.u32 4294901760, %v461_v18  ;;  %v1905_v60 = vand.u32 4294901760, %v1904_v14 }
 0x128   : > { %v6872_v42 = vsub.f32 %v464_v48, %v6858_v17 }
 0x129   : > { %1713 = vmatpush.xpose.msra.mxu0 %v9863_v13  ;;  %1770 = vmatpush.xpose.msra.mxu1 %v6520_v2  ;;  %v458_v2 = vsel %vm297_vm0, %v218_v54, 0  ;;  %v5785_v13 = vpop.eup %5784  ;;  %v9668_v54 = vand.u32 4294901760, %v6862_v21  ;;  %5786 = vpow2.f32 %v5766_v8 }
 0x12a   : > { %1888 = vmatpush.xpose.msra.mxu3 %v1887_v47  ;;  %v1899_v47 = vand.u32 4294901760, %v1898_v56  ;;  %v6876_v16 = vadd.f32 1.0, %v5785_v13  ;;  %v6882_v51 = vand.u32 4294901760, %v458_v2  ;;  %v9669_v48 = vand.u32 4294901760, %v6872_v42 }
 0x12b   : > { %1815 = vmatpush.xpose.msra.mxu2 %v6774_v19  ;;  %v6892_v56 = vsub.f32 %v461_v18, %v6874_v27  ;;  %v1910_v8 = vsub.f32 %v6862_v21, %v9668_v54 }
 0x12c   : > { %5788 = vrcp.f32 %v6876_v16  ;;  %v1916_v18 = vsub.f32 %v6872_v42, %v9669_v48  ;;  %vm3733_vm3 = vweird.f32 %v6876_v16 }
 0x12d   : > { %1717 = vmatpush.xpose.msra.mxu0 %v9864_v53  ;;  %1772 = vmatpush.xpose.msra.mxu1 %v6537_v20  ;;  %v455_v20 = vsel %vm297_vm0, %v217_v32, 0  ;;  %v9865_v53 = vand.u32 4294901760, %v6596_v5  ;;  %v216_v5 = vld [vmem:[%s5900_s15 + $0x188] sm:$0xff]  ;;  %v9866_v32 = vand.u32 4294901760, %v6616_v34  ;;  %v9672_v13 = vand.u32 4294901760, %v6892_v56 }
 0x12e   : > { %1894 = vmatpush.xpose.msra.mxu3 %v1893_v11  ;;  %v6898_v11 = vsub.f32 %v458_v2, %v6882_v51  ;;  %v6900_v3 = vand.u32 4294901760, %v455_v20  ;;  %v1911_v14 = vand.u32 4294901760, %v1910_v8  ;;  %v3739_v8 = vand.u32 2147483648, %v6876_v16 }
 0x12f   : > { %1817 = vmatpush.xpose.msra.mxu2 %v6796_v29 }
 0x130   : > { %v6915_v54 = vsub.f32 %v455_v20, %v6900_v3  ;;  %v1922_v20 = vsub.f32 %v6892_v56, %v9672_v13 }
 0x131   : > { %1721 = vmatpush.xpose.msra.mxu0 %v9865_v53  ;;  %1774 = vmatpush.xpose.msra.mxu1 %v6551_v52  ;;  %v5787_v52 = vpop.eup %5786  ;;  %v9671_v53 = vand.u32 4294901760, %v6898_v11 }
 0x132   : > { %1900 = vmatpush.xpose.msra.mxu3 %v1899_v47  ;;  %v5789_v2 = vpop.eup %5788  ;;  %v6911_v47 = vadd.f32 1.0, %v5787_v52  ;;  %v9867_v52 = vand.u32 4294901760, %v6630_v38 }
 0x133   : > { %1819 = vmatpush.xpose.msra.mxu2 %v6805_v25  ;;  %v3729_v34 = vmul.f32 %v5789_v2, %v6876_v16  ;;  %vm3734_vm1 = vweird.f32 %v5789_v2 }
 0x134   : > { %5790 = vrcp.f32 %v6911_v47  ;;  %vm3735_vm5 = vmor %vm3733_vm3, %vm3734_vm1  ;;  %vm3853_vm7 = vweird.f32 %v6911_v47 }
 0x135   : > { %1725 = vmatpush.xpose.msra.mxu0 %v9866_v32  ;;  %1776 = vmatpush.xpose.msra.mxu1 %v6564_v59  ;;  %v452_v59 = vsel %vm297_vm0, %v216_v5, 0  ;;  %v215_v32 = vld [vmem:[%s5900_s15 + $0x180] sm:$0xff]  ;;  %v3730_v48 = vsub.f32 1.0, %v3729_v34  ;;  %v1928_v5 = vsub.f32 %v6898_v11, %v9671_v53  ;;  %v1923_v53 = vand.u32 4294901760, %v1922_v20 }
 0x136   : > { %1906 = vmatpush.xpose.msra.mxu3 %v1905_v60  ;;  %v1917_v60 = vand.u32 4294901760, %v1916_v18  ;;  %v6933_v34 = vand.u32 4294901760, %v452_v59  ;;  %v449_v18 = vsel %vm297_vm0, %v215_v32, 0 }
 0x137   : > { %1821 = vmatpush.xpose.msra.mxu2 %v6829_v58  ;;  %v3731_v38 = vmul.f32 %v5789_v2, %v3730_v48  ;;  %v3740_v48 = vor.u32 1.1754944e-38, %v3739_v8  ;;  %v1929_v55 = vand.u32 4294901760, %v1928_v5  ;;  %v6945_v32 = vand.u32 4294901760, %v449_v18 }
 0x138   : > { %v6943_v36 = vsub.f32 %v452_v59, %v6933_v34  ;;  %v3859_v59 = vand.u32 2147483648, %v6911_v47 }
 0x139   : > { %1729 = vmatpush.xpose.msra.mxu0 %v9867_v52  ;;  %1778 = vmatpush.xpose.msra.mxu1 %v6579_v45  ;;  %v3737_v45 = vand.u32 2147483647, %v6876_v16  ;;  %v3732_v52 = vadd.f32 %v5789_v2, %v3731_v38 }
 0x13a   : > { %1912 = vmatpush.xpose.msra.mxu3 %v1911_v14  ;;  %v9868_v14 = vand.u32 4294901760, %v6644_v61  ;;  %v5791_v13 = vpop.eup %5790  ;;  %v9869_v61 = vand.u32 4294901760, %v6915_v54 }
 0x13b   : > { %1823 = vmatpush.xpose.msra.mxu2 %v6845_v44  ;;  %v3736_v38 = vsel %vm3735_vm5, %v5789_v2, %v3732_v52  ;;  %vm3738_vm6 = vcmp.eq.f32.partialorder %v3737_v45, 8.507059e+37  ;;  %v3849_v16 = vmul.f32 %v5791_v13, %v6911_v47  ;;  %vm3854_vm8 = vweird.f32 %v5791_v13 }
 0x13c   : > { %v6952_v20 = vsel %vm3738_vm6, %v3740_v48, %v3736_v38  ;;  %v9870_v45 = vand.u32 4294901760, %v6651_v23  ;;  %v1939_v48 = vand.u32 4294901760, %v6943_v36  ;;  %v6966_v38 = vsub.f32 %v449_v18, %v6945_v32  ;;  %vm3855_vm9 = vmor %vm3853_vm7, %vm3854_vm8 }
 0x13d   : > { %1733 = vmatpush.xpose.msra.mxu0 %v9868_v14  ;;  %1780 = vmatpush.xpose.msra.mxu1 %v6602_v31  ;;  %v1934_v31 = vsub.f32 %v6915_v54, %v9869_v61  ;;  %v3972_v2 = vsel %vm3971_vm2, %v6952_v20, -inf  ;;  %v4029_v8 = vsel %vm4028_vm4, %v6952_v20, -inf  ;;  %v3850_v5 = vsub.f32 1.0, %v3849_v16 }
 0x13e   : > { %1918 = vmatpush.xpose.msra.mxu3 %v1917_v60  ;;  %v3857_v60 = vand.u32 2147483647, %v6911_v47  ;;  %v3973_v52 = vrot.slane %v3972_v2, 4  ;;  %v4030_v14 = vrot.slane %v4029_v8, 4  ;;  %v3860_v23 = vor.u32 1.1754944e-38, %v3859_v59 }
 0x13f   : > { %1825 = vmatpush.xpose.msra.mxu2 %v6858_v17  ;;  %v3851_v61 = vmul.f32 %v5791_v13, %v3850_v5 }
 0x140   : > { %v3974_v46 = vmax.f32 %v3972_v2, %v3973_v52  ;;  %v4031_v39 = vmax.f32 %v4029_v8, %v4030_v14  ;;  %vm3858_vm10 = vcmp.eq.f32.partialorder %v3857_v60, 8.507059e+37  ;;  %v1940_v2 = vsub.f32 %v6943_v36, %v1939_v48 }
 0x141   : > { %1737 = vmatpush.xpose.msra.mxu0 %v9870_v45  ;;  %1782 = vmatpush.xpose.msra.mxu1 %v6613_v50  ;;  %v3852_v16 = vadd.f32 %v5791_v13, %v3851_v61  ;;  %v9871_v50 = vand.u32 4294901760, %v6674_v30  ;;  %v1945_v8 = vand.u32 4294901760, %v6966_v38 }
 0x142   : > { %1924 = vmatpush.xpose.msra.mxu3 %v1923_v53  ;;  %v1935_v53 = vand.u32 4294901760, %v1934_v31  ;;  %v3975_v45 = vrot.slane %v3974_v46, 2  ;;  %v4032_v18 = vrot.slane %v4031_v39, 2  ;;  %v1941_v14 = vand.u32 4294901760, %v1940_v2 }
 0x143   : > { %1827 = vmatpush.xpose.msra.mxu2 %v6874_v27  ;;  %v3856_v47 = vsel %vm3855_vm9, %v5791_v13, %v3852_v16  ;;  %v1207_v13 = vpop.f32.mrf.mxu3 }
 0x144   : > { %v6979_v59 = vsel %vm3858_vm10, %v3860_v23, %v3856_v47  ;;  %v3976_v60 = vmax.f32 %v3974_v46, %v3975_v45  ;;  %v4033_v30 = vmax.f32 %v4031_v39, %v4032_v18  ;;  %v1946_v39 = vsub.f32 %v6966_v38, %v1945_v8  ;;  %v1098_v46 = vpop.f32.mrf.mxu2 }
 0x145   : > { %1741 = vmatpush.xpose.msra.mxu0 %v9871_v50  ;;  %1784 = vmatpush.xpose.msra.mxu1 %v6626_v43  ;;  %v4085_v43 = vsel %vm3971_vm2, %v6979_v59, -inf  ;;  %v4141_v31 = vsel %vm4028_vm4, %v6979_v59, -inf }
 0x146   : > { %1930 = vmatpush.xpose.msra.mxu3 %v1929_v55  ;;  %v9872_v55 = vand.u32 4294901760, %v6693_v0  ;;  %v4086_v5 = vrot.slane %v4085_v43, 4  ;;  %v4142_v52 = vrot.slane %v4141_v31, 4  ;;  %v3977_v16 = vrot.slane %v3976_v60, 1 }
 0x147   : > { %1829 = vmatpush.xpose.msra.mxu2 %v6882_v51  ;;  %v4034_v50 = vrot.slane %v4033_v30, 1  ;;  %v9873_v0 = vand.u32 4294901760, %v6712_v33  ;;  %v1947_v45 = vand.u32 4294901760, %v1946_v39  ;;  %v9878_v39 = vld [vmem:[#allocation8_spill] sm:$0xff] }
 0x148   : > { %v4087_v61 = vmax.f32 %v4085_v43, %v4086_v5  ;;  %v4143_v23 = vmax.f32 %v4141_v31, %v4142_v52  ;;  %v3978_v47 = vmax.f32 %v3976_v60, %v3977_v16  ;;  %v9874_v43 = vand.u32 4294901760, %v6730_v62  ;;  %v9875_v31 = vld [vmem:[#allocation7_spill] sm:$0xff]  ;;  %v9876_v52 = vld [vmem:[#allocation9_spill] sm:$0xff] }
 0x149   : > { %1745 = vmatpush.xpose.msra.mxu0 %v9872_v55  ;;  %1786 = vmatpush.xpose.msra.mxu1 %v6636_v12  ;;  %v4035_v55 = vmax.f32 %v4033_v30, %v4034_v50  ;;  %v9877_v60 = vand.u32 4294901760, %v9876_v52 }
 0x14a   : > { %1936 = vmatpush.xpose.msra.mxu3 %v1935_v53  ;;  %v4088_v12 = vrot.slane %v4087_v61, 2  ;;  %v4144_v53 = vrot.slane %v4143_v23, 2 }
 0x14b   : > { %1831 = vmatpush.xpose.msra.mxu2 %v6900_v3  ;;  %v1211_v62 = vpop.f32.mrf.mxu3  ;;  %v4198_v30 = vsel %vm4197_vm11, %v3978_v47, %v4035_v55 }
 0x14c   : > { %v4089_v18 = vmax.f32 %v4087_v61, %v4088_v12  ;;  %v4145_v2 = vmax.f32 %v4143_v23, %v4144_v53  ;;  %v1106_v61 = vpop.f32.mrf.mxu2  ;;  %v1208_v12 = vadd.f32 %v1207_v13, %v1098_v46  ;;  %v9879_v53 = vand.u32 4294901760, %v6721_v35 }
 0x14d   : > { %1749 = vmatpush.xpose.msra.mxu0 %v9873_v0  ;;  %1788 = vmatpush.xpose.msra.mxu1 %v6658_v6 }
 0x14e   : > { %1942 = vmatpush.xpose.msra.mxu3 %v1941_v14  ;;  %v4090_v33 = vrot.slane %v4089_v18, 1  ;;  %v4146_v5 = vrot.slane %v4145_v2, 1 }
 0x14f   : > { %1833 = vmatpush.xpose.msra.mxu2 %v6933_v34 }
 0x150   : > { %v4091_v6 = vmax.f32 %v4089_v18, %v4090_v33  ;;  %v4147_v14 = vmax.f32 %v4145_v2, %v4146_v5  ;;  %v9880_v18 = vld [vmem:[#allocation10_spill] sm:$0xff]  ;;  %v9881_v2 = vld [vmem:[#allocation11_spill] sm:$0xff]  ;;  %v1212_v5 = vadd.f32 %v1211_v62, %v1106_v61  ;;  %v9884_v61 = vand.u32 4294901760, %v6779_v41 }
 0x151   : > { %1753 = vmatpush.xpose.msra.mxu0 %v9874_v43  ;;  %1790 = vmatpush.xpose.msra.mxu1 %v9875_v31  ;;  %v1265_v50 = vpop.f32.mrf.mxu0  ;;  %v9882_v43 = vand.u32 4294901760, %v9881_v2 }
 0x152   : > { %1948 = vmatpush.xpose.msra.mxu3 %v1947_v45  ;;  %v4207_v23 = vsel %vm4206_vm12, %v4198_v30, %v4091_v6  ;;  %v1266_v55 = vadd.f32 %v1265_v50, %v1208_v12  ;;  %v9883_v6 = vand.u32 4294901760, %v6758_v57 }
 0x153   : > { %1835 = vmatpush.xpose.msra.mxu2 %v6945_v32  ;;  %v7012_v16 = vsel %vm4215_vm13, %v4207_v23, %v4147_v14 }
 0x154   : > { %1755 = vmatmul.f32.vlgmr.msra.gmra.mxu0 %v6217_v37  ;;  %v4226_v0 = vsel %vm3971_vm2, %v7012_v16, -inf }
 0x155   : > { %1960 = vmatpush.xpose.msrb.mxu0 %v9876_v52  ;;  %1792 = vmatpush.xpose.msra.mxu1 %v9878_v39  ;;  %v4227_v45 = vrot.slane %v4226_v0, 4 }
 0x156   : > { %2136 = vmatpush.xpose.msrb.mxu3 %v6679_v24  ;;  %1841 = vmatmul.f32.vlgmr.msra.gmra.mxu2 %v6264_v63 }
 0x157   : > { %2065 = vmatpush.xpose.msrb.mxu2 %v9877_v60  ;;  %1950 = vmatmul.f32.vlgmr.msra.gmra.mxu3 %v6217_v37  ;;  %v4228_v47 = vmax.f32 %v4226_v0, %v4227_v45 }
 0x159   : > { %1963 = vmatpush.xpose.msrb.mxu0 %v6721_v35  ;;  %1794 = vmatpush.xpose.msra.mxu1 %v9880_v18  ;;  %v4229_v13 = vrot.slane %v4228_v47, 2  ;;  %v3968_v35 = vlaneseq  ;;  %v1309_v31 = vpop.f32.mrf.mxu1  ;;  %v1384_v33 = vpop.f32.mrf.mxu2 }
 0x15a   : > { %2138 = vmatpush.xpose.msrb.mxu3 %v6701_v40  ;;  %v1310_v52 = vadd.f32 %v1309_v31, %v1266_v55  ;;  %v1270_v60 = vpop.f32.mrf.mxu0 }
 0x15b   : > { %2069 = vmatpush.xpose.msrb.mxu2 %v9879_v53  ;;  %v4230_v46 = vmax.f32 %v4228_v47, %v4229_v13  ;;  %v7034_v30 = vshrl.u32 %v3968_v35, 7  ;;  %v1271_v62 = vadd.f32 %v1270_v60, %v1212_v5 }
 0x15c   : > { %1796 = vmatmul.f32.vlgmr.msra.gmra.mxu1 %v6217_v37  ;;  %1759 = vmatmul.f32.gmra.mxu0 %v6266_v4  ;;  %v1385_v39 = vadd.f32 %v1384_v33, %v1310_v52 }
 0x15d   : > { %1966 = vmatpush.xpose.msrb.mxu0 %v9881_v2  ;;  %2018 = vmatpush.xpose.msrb.mxu1 %v6679_v24  ;;  %v1425_v24 = vpop.f32.mrf.mxu3  ;;  %v4231_v14 = vrot.slane %v4230_v46, 1 }
 0x15e   : > { %2140 = vmatpush.xpose.msrb.mxu3 %v6717_v9  ;;  %1849 = vmatmul.f32.gmra.mxu2 %v6310_v49  ;;  %v1426_v23 = vadd.f32 %v1425_v24, %v1385_v39 }
 0x15f   : > { %2073 = vmatpush.xpose.msrb.mxu2 %v9882_v43  ;;  %1954 = vmatmul.f32.gmra.mxu3 %v6266_v4  ;;  %v9886_v43 = vand.u32 4294901760, %v6811_v28 }
 0x160   : > { %v5759_v50 = vmul.f32 -1.442695, %v1426_v23 }
 0x161   : > { %1969 = vmatpush.xpose.msrb.mxu0 %v6758_v57  ;;  %2020 = vmatpush.xpose.msrb.mxu1 %v6701_v40  ;;  %v4232_v40 = vmax.f32 %v4230_v46, %v4231_v14  ;;  %v1315_v0 = vpop.f32.mrf.mxu1  ;;  %v1388_v45 = vpop.f32.mrf.mxu2  ;;  %v9887_v46 = vand.u32 4294901760, %v6826_v22  ;;  %v9889_v14 = vand.u32 4294901760, %v6862_v21 }
 0x162   : > { %2142 = vmatpush.xpose.msrb.mxu3 %v6742_v26  ;;  %5792 = vpow2.f32 %v5759_v50  ;;  %v1316_v53 = vadd.f32 %v1315_v0, %v1271_v62  ;;  %v7088_v50 = vadd.s32 8, %v7034_v30 }
 0x163   : > { %2077 = vmatpush.xpose.msrb.mxu2 %v9883_v6  ;;  %vm4282_vm14 = vcmp.eq.f32.partialorder %v7012_v16, %v4232_v40 }
 0x164   : > { %1800 = vmatmul.f32.gmra.mxu1 %v6266_v4  ;;  %v4290_v57 = vsel %vm4282_vm14, %v7034_v30, 4  ;;  %v1389_v2 = vadd.f32 %v1388_v45, %v1316_v53 }
 0x165   : > { %1972 = vmatpush.xpose.msrb.mxu0 %v6779_v41  ;;  %2022 = vmatpush.xpose.msrb.mxu1 %v6717_v9  ;;  %v4298_v9 = vsel %vm3971_vm2, %v4290_v57, 2147483647  ;;  %v9885_v41 = vand.u32 4294901760, %v6789_v1  ;;  %v1429_v18 = vpop.f32.mrf.mxu3  ;;  %v245_v57 = vld [vmem:[%s5900_s15 + $0x270] sm:$0xff] }
 0x166   : > { %2144 = vmatpush.xpose.msrb.mxu3 %v6760_v7  ;;  %v4299_v12 = vrot.slane %v4298_v9, 4  ;;  %v1430_v55 = vadd.f32 %v1429_v18, %v1389_v2  ;;  %v539_v18 = vsel %vm297_vm0, %v245_v57, 0 }
 0x167   : > { %2081 = vmatpush.xpose.msrb.mxu2 %v9884_v61 }
 0x168   : > { %vm4300_vm15 = vcmp.lt.s32.totalorder %v4298_v9, %v4299_v12  ;;  %v5793_v13 = vpop.eup %5792  ;;  %v5767_v35 = vmul.f32 -1.442695, %v1430_v55 }
 0x169   : > { %1975 = vmatpush.xpose.msrb.mxu0 %v6789_v1  ;;  %2024 = vmatpush.xpose.msrb.mxu1 %v6742_v26  ;;  %v4301_v26 = vsel %vm4300_vm15, %v4298_v9, %v4299_v12  ;;  %v3713_v24 = vadd.f32 1.0, %v5793_v13 }
 0x16a   : > { %2146 = vmatpush.xpose.msrb.mxu3 %v6774_v19  ;;  %v4302_v47 = vrot.slane %v4301_v26, 2  ;;  %5794 = vpow2.f32 %v5767_v35 }
 0x16b   : > { %2085 = vmatpush.xpose.msrb.mxu2 %v9885_v41  ;;  %5796 = vrcp.f32 %v3713_v24  ;;  %v3752_v39 = vand.u32 2147483647, %v3713_v24  ;;  %v3754_v40 = vand.u32 2147483648, %v3713_v24  ;;  %vm3748_vm7 = vweird.f32 %v3713_v24 }
 0x16c   : > { %vm4303_vm1 = vcmp.lt.s32.totalorder %v4301_v26, %v4302_v47  ;;  %v9891_v41 = vand.u32 4294901760, %v6892_v56 }
 0x16d   : > { %1978 = vmatpush.xpose.msrb.mxu0 %v6811_v28  ;;  %2026 = vmatpush.xpose.msrb.mxu1 %v6760_v7  ;;  %v4304_v1 = vsel %vm4303_vm1, %v4301_v26, %v4302_v47  ;;  %vm3753_vm9 = vcmp.eq.f32.partialorder %v3752_v39, 8.507059e+37  ;;  %v3755_v12 = vor.u32 1.1754944e-38, %v3754_v40 }
 0x16e   : > { %2148 = vmatpush.xpose.msrb.mxu3 %v6796_v29  ;;  %v4305_v7 = vrot.slane %v4304_v1, 1 }
 0x16f   : > { %2089 = vmatpush.xpose.msrb.mxu2 %v9886_v43 }
 0x170   : > { %vm4306_vm3 = vcmp.lt.s32.totalorder %v4304_v1, %v4305_v7  ;;  %v5795_v31 = vpop.eup %5794 }
 0x171   : > { %1981 = vmatpush.xpose.msrb.mxu0 %v6826_v22  ;;  %2028 = vmatpush.xpose.msrb.mxu1 %v6774_v19  ;;  %v7062_v28 = vsel %vm4306_vm3, %v4304_v1, %v4305_v7  ;;  %v9888_v19 = vand.u32 4294901760, %v6843_v10  ;;  %v7073_v52 = vadd.f32 1.0, %v5795_v31  ;;  %v7111_v1 = vand.u32 4294901760, %v539_v18 }
 0x172   : > { %2150 = vmatpush.xpose.msrb.mxu3 %v6805_v25  ;;  %vm4394_vm5 = vcmp.eq.s32.totalorder %v7034_v30, %v7062_v28 }
 0x173   : > { %2093 = vmatpush.xpose.msrb.mxu2 %v9887_v46  ;;  %v4402_v22 = vsel %vm4394_vm5, -1e+30, %v7012_v16  ;;  %5798 = vrcp.f32 %v7073_v52  ;;  %v246_v16 = vld [vmem:[%s5900_s15 + $0x278] sm:$0xff]  ;;  %vm3868_vm10 = vweird.f32 %v7073_v52  ;;  %v3872_v26 = vand.u32 2147483647, %v7073_v52 }
 0x174   : > { %v4410_v33 = vsel %vm3971_vm2, %v4402_v22, -inf  ;;  %v542_v62 = vsel %vm297_vm0, %v246_v16, 0  ;;  %v3874_v47 = vand.u32 2147483648, %v7073_v52  ;;  %v7144_v40 = vsub.f32 %v539_v18, %v7111_v1 }
 0x175   : > { %1984 = vmatpush.xpose.msrb.mxu0 %v6843_v10  ;;  %2030 = vmatpush.xpose.msrb.mxu1 %v6796_v29  ;;  %v5797_v29 = vpop.eup %5796  ;;  %v4411_v5 = vrot.slane %v4410_v33, 4  ;;  %vm7135_vm3 = vcmp.eq.f32.partialorder %v3872_v26, 8.507059e+37 }
 0x176   : > { %2152 = vmatpush.xpose.msrb.mxu3 %v6829_v58  ;;  %v3744_v6 = vmul.f32 %v5797_v29, %v3713_v24  ;;  %vm3749_vm6 = vweird.f32 %v5797_v29  ;;  %v7114_v24 = vshra.s32 %v7034_v30, 2 }
 0x177   : > { %2097 = vmatpush.xpose.msrb.mxu2 %v9888_v19  ;;  %v4412_v10 = vmax.f32 %v4410_v33, %v4411_v5  ;;  %vm3750_vm8 = vmor %vm3748_vm7, %vm3749_vm6  ;;  %v9893_v19 = vand.u32 4294901760, %v6898_v11  ;;  %v241_v5 = vld [vmem:[%s5900_s15 + $0x250] sm:$0xff] }
 0x178   : > { %v3745_v60 = vsub.f32 1.0, %v3744_v6  ;;  %9892 = vst [vmem:[#allocation7_spill] sm:$0xff] %v7114_v24  ;;  %v3875_v6 = vor.u32 1.1754944e-38, %v3874_v47  ;;  %vm4378_vm7 = vcmp.eq.s32.totalorder %v7114_v24, %v7062_v28 }
 0x179   : > { %1987 = vmatpush.xpose.msrb.mxu0 %v6862_v21  ;;  %2032 = vmatpush.xpose.msrb.mxu1 %v6805_v25  ;;  %v4413_v25 = vrot.slane %v4412_v10, 2  ;;  %v9890_v21 = vand.u32 4294901760, %v6872_v42 }
 0x17a   : > { %2154 = vmatpush.xpose.msrb.mxu3 %v6845_v44  ;;  %v3746_v23 = vmul.f32 %v5797_v29, %v3745_v60 }
 0x17b   : > { %2101 = vmatpush.xpose.msrb.mxu2 %v9889_v14  ;;  %v4414_v61 = vmax.f32 %v4412_v10, %v4413_v25  ;;  %v243_v14 = vld [vmem:[%s5900_s15 + $0x260] sm:$0xff] }
 0x17c   : > { %v3747_v9 = vadd.f32 %v5797_v29, %v3746_v23 }
 0x17d   : > { %1990 = vmatpush.xpose.msrb.mxu0 %v6872_v42  ;;  %2034 = vmatpush.xpose.msrb.mxu1 %v6829_v58  ;;  %v5799_v58 = vpop.eup %5798  ;;  %v4415_v0 = vrot.slane %v4414_v61, 1  ;;  %v7093_v42 = vand.u32 4294901760, %v542_v62 }
 0x17e   : > { %2156 = vmatpush.xpose.msrb.mxu3 %v6858_v17  ;;  %v3751_v53 = vsel %vm3750_vm8, %v5797_v29, %v3747_v9  ;;  %v3864_v45 = vmul.f32 %v5799_v58, %v7073_v52  ;;  %vm3869_vm14 = vweird.f32 %v5799_v58 }
 0x17f   : > { %2105 = vmatpush.xpose.msrb.mxu2 %v9890_v21  ;;  %v7100_v2 = vsel %vm3753_vm9, %v3755_v12, %v3751_v53  ;;  %v7120_v31 = vsub.f32 %v542_v62, %v7093_v42  ;;  %vm7127_vm1 = vmor %vm3868_vm10, %vm3869_vm14  ;;  %v9899_v21 = vand.u32 4294901760, %v6915_v54 }
 0x180   : > { %v3979_v55 = vsel %vm3971_vm2, %v7100_v2, -inf  ;;  %v4036_v43 = vsel %vm4028_vm4, %v7100_v2, -inf  ;;  %v3865_v13 = vsub.f32 1.0, %v3864_v45 }
 0x181   : > { %1993 = vmatpush.xpose.msrb.mxu0 %v6892_v56  ;;  %2036 = vmatpush.xpose.msrb.mxu1 %v6845_v44  ;;  %v4416_v44 = vmax.f32 %v4414_v61, %v4415_v0  ;;  %v3980_v56 = vrot.slane %v3979_v55, 4  ;;  %v4037_v35 = vrot.slane %v4036_v43, 4  ;;  %v9687_v62 = vand.u32 4294901760, %v7120_v31 }
 0x182   : > { %2158 = vmatpush.xpose.msrb.mxu3 %v6874_v27  ;;  %v3866_v46 = vmul.f32 %v5799_v58, %v3865_v13 }
 0x183   : > { %2109 = vmatpush.xpose.msrb.mxu2 %v9891_v41  ;;  %vm4466_vm15 = vcmp.eq.f32.partialorder %v4402_v22, %v4416_v44  ;;  %v3981_v33 = vmax.f32 %v3979_v55, %v3980_v56  ;;  %v4038_v29 = vmax.f32 %v4036_v43, %v4037_v35  ;;  %v9686_v44 = vand.u32 4294901760, %v7144_v40  ;;  %v242_v43 = vld [vmem:[%s5900_s15 + $0x258] sm:$0xff] }
 0x184   : > { %v4474_v7 = vsel %vm4466_vm15, %v7034_v30, 4  ;;  %v3867_v16 = vadd.f32 %v5799_v58, %v3866_v46 }
 0x185   : > { %1996 = vmatpush.xpose.msrb.mxu0 %v6898_v11  ;;  %2038 = vmatpush.xpose.msrb.mxu1 %v6858_v17  ;;  %v244_v17 = vld [vmem:[%s5900_s15 + $0x268] sm:$0xff]  ;;  %v4482_v22 = vsel %vm3971_vm2, %v4474_v7, 2147483647  ;;  %v7133_v11 = vshra.s32 %v7088_v50, 2  ;;  %v3982_v52 = vrot.slane %v3981_v33, 2  ;;  %v4039_v25 = vrot.slane %v4038_v29, 2 }
 0x186   : > { %2160 = vmatpush.xpose.msrb.mxu3 %v6882_v51  ;;  %v4483_v10 = vrot.slane %v4482_v22, 4  ;;  %v536_v39 = vsel %vm297_vm0, %v244_v17, 0  ;;  %v3871_v23 = vsel %vm7127_vm1, %v5799_v58, %v3867_v16  ;;  %v7185_v35 = vsub.f32 %v7144_v40, %v9686_v44  ;;  %v240_v16 = vld [vmem:[%s5900_s15 + $0x248] sm:$0xff] }
 0x187   : > { %2113 = vmatpush.xpose.msrb.mxu2 %v9893_v19  ;;  %9896 = vst [vmem:[#allocation9_spill] sm:$0xff] %v7133_v11  ;;  %v3983_v57 = vmax.f32 %v3981_v33, %v3982_v52  ;;  %v4040_v9 = vmax.f32 %v4038_v29, %v4039_v25  ;;  %v7154_v0 = vsel %vm7135_vm3, %v3875_v6, %v3871_v23  ;;  %v530_v17 = vsel %vm297_vm0, %v242_v43, 0 }
 0x188   : > { %vm4484_vm5 = vcmp.lt.s32.totalorder %v4482_v22, %v4483_v10  ;;  %v4092_v53 = vsel %vm3971_vm2, %v7154_v0, -inf  ;;  %v4148_v58 = vsel %vm4028_vm4, %v7154_v0, -inf  ;;  %vm4386_vm8 = vcmp.eq.s32.totalorder %v7133_v11, %v7062_v28 }
 0x189   : > { %1999 = vmatpush.xpose.msrb.mxu0 %v6915_v54  ;;  %2040 = vmatpush.xpose.msrb.mxu1 %v6874_v27  ;;  %v533_v27 = vsel %vm297_vm0, %v243_v14, 0  ;;  %v4485_v61 = vsel %vm4484_vm5, %v4482_v22, %v4483_v10  ;;  %v7162_v54 = vand.u32 4294901760, %v536_v39  ;;  %v4093_v45 = vrot.slane %v4092_v53, 4 }
 0x18a   : > { %2162 = vmatpush.xpose.msrb.mxu3 %v6900_v3  ;;  %v4486_v12 = vrot.slane %v4485_v61, 2  ;;  %v4149_v41 = vrot.slane %v4148_v58, 4  ;;  %v7165_v18 = vand.u32 4294901760, %v533_v27  ;;  %v3984_v26 = vrot.slane %v3983_v57, 1 }
 0x18b   : > { %2117 = vmatpush.xpose.msrb.mxu2 %v9899_v21  ;;  %v4094_v55 = vmax.f32 %v4092_v53, %v4093_v45  ;;  %v7188_v7 = vsub.f32 %v536_v39, %v7162_v54  ;;  %v7209_v14 = vand.u32 4294901760, %v530_v17  ;;  %v527_v52 = vsel %vm297_vm0, %v241_v5, 0  ;;  %v9901_v45 = vld [vmem:[#allocation3_spill] sm:$0xff] }
 0x18c   : > { %vm4487_vm6 = vcmp.lt.s32.totalorder %v4485_v61, %v4486_v12  ;;  %v4150_v56 = vmax.f32 %v4148_v58, %v4149_v41  ;;  %v3985_v46 = vmax.f32 %v3983_v57, %v3984_v26  ;;  %v2235_v23 = vand.u32 4294901760, %v7185_v35  ;;  %v239_v26 = vld [vmem:[%s5900_s15 + $0x240] sm:$0xff] }
 0x18d   : > { %2002 = vmatpush.xpose.msrb.mxu0 %v6943_v36  ;;  %2042 = vmatpush.xpose.msrb.mxu1 %v6882_v51  ;;  %v4488_v47 = vsel %vm4487_vm6, %v4485_v61, %v4486_v12  ;;  %v4041_v51 = vrot.slane %v4040_v9, 1  ;;  %v2228_v36 = vsub.f32 %v7120_v31, %v9687_v62  ;;  %v9685_v10 = vand.u32 4294901760, %v7188_v7 }
 0x18e   : > { %2164 = vmatpush.xpose.msrb.mxu3 %v6933_v34  ;;  %v4489_v13 = vrot.slane %v4488_v47, 1  ;;  %v4151_v19 = vrot.slane %v4150_v56, 2  ;;  %v524_v61 = vsel %vm297_vm0, %v240_v16, 0  ;;  %v7240_v12 = vsub.f32 %v530_v17, %v7209_v14 }
 0x18f   : > { %2121 = vmatpush.xpose.msrb.mxu2 %v1939_v48  ;;  %v4095_v48 = vrot.slane %v4094_v55, 2  ;;  %v4042_v33 = vmax.f32 %v4040_v9, %v4041_v51  ;;  %v2240_v57 = vsub.f32 %v7188_v7, %v9685_v10  ;;  %v7237_v9 = vand.u32 4294901760, %v527_v52 }
 0x190   : > { %vm4490_vm9 = vcmp.lt.s32.totalorder %v4488_v47, %v4489_v13  ;;  %v4152_v6 = vmax.f32 %v4150_v56, %v4151_v19  ;;  %v7250_v41 = vand.u32 4294901760, %v524_v61  ;;  %v9682_v56 = vand.u32 4294901760, %v7240_v12  ;;  %v238_v19 = vld [vmem:[%s5900_s15 + $0x238] sm:$0xff] }
 0x191   : > { %2005 = vmatpush.xpose.msrb.mxu0 %v6966_v38  ;;  %2044 = vmatpush.xpose.msrb.mxu1 %v6900_v3  ;;  %v7191_v3 = vsub.f32 %v533_v27, %v7165_v18  ;;  %v4491_v22 = vsel %vm4490_vm9, %v4488_v47, %v4489_v13  ;;  %v4096_v29 = vmax.f32 %v4094_v55, %v4095_v48  ;;  %v9903_v55 = vld [vmem:[#allocation5_spill] sm:$0xff]  ;;  %v2241_v13 = vand.u32 4294901760, %v2240_v57 }
 0x192   : > { %2166 = vmatpush.xpose.msrb.mxu3 %v6945_v32  ;;  %vm4562_vm10 = vcmp.eq.s32.totalorder %v7114_v24, %v4491_v22  ;;  %vm4570_vm14 = vcmp.eq.s32.totalorder %v7133_v11, %v4491_v22  ;;  %v4153_v60 = vrot.slane %v4152_v6, 1  ;;  %9900 = vst [vmem:[#allocation8_spill] sm:$0xff] %v7237_v9  ;;  %v7269_v17 = vsub.f32 %v524_v61, %v7250_v41 }
 0x193   : > { %2125 = vmatpush.xpose.msrb.mxu2 %v1945_v8  ;;  %vm4578_vm15 = vmor %vm4378_vm7, %vm4562_vm10  ;;  %v4097_v38 = vrot.slane %v4096_v29, 1  ;;  %v2229_v8 = vand.u32 4294901760, %v2228_v36  ;;  %v9684_v21 = vand.u32 4294901760, %v7191_v3  ;;  %9902 = vst [vmem:[#allocation10_spill] sm:$0xff] %v7250_v41  ;;  %v7261_v36 = vsub.f32 %v527_v52, %v7237_v9  ;;  %v237_v52 = vld [vmem:[%s5900_s15 + $0x230] sm:$0xff] }
 0x194   : > { %2008 = vmatmul.f32.vlgmr.msrb.gmra.mxu0 %v6232_v15  ;;  %vm4586_vm1 = vmor %vm4386_vm8, %vm4570_vm14  ;;  %v4154_v27 = vmax.f32 %v4152_v6, %v4153_v60  ;;  %v2252_v5 = vsub.f32 %v7240_v12, %v9682_v56 }
 0x195   : > { %2177 = vmatpush.xpose.msra.mxu0 %v7093_v42  ;;  %2046 = vmatpush.xpose.msrb.mxu1 %v6933_v34  ;;  %v7217_v34 = vsel %vm4578_vm15, %v6952_v20, 0.0  ;;  %v7222_v25 = vsel %vm4586_vm1, %v6979_v59, 0.0  ;;  %v4098_v39 = vmax.f32 %v4096_v29, %v4097_v38  ;;  %v4199_v20 = vsel %vm4197_vm11, %v3985_v46, %v4042_v33 }
 0x196   : > { %2390 = vmatpush.xpose.msra.mxu3 %v7093_v42  ;;  %2127 = vmatmul.f32.vlgmr.msrb.gmra.mxu2 %v6217_v37  ;;  %v4610_v28 = vmax.f32 %v7217_v34, %v7222_v25  ;;  %v2246_v43 = vsub.f32 %v7191_v3, %v9684_v21  ;;  %v521_v46 = vsel %vm297_vm0, %v239_v26, 0  ;;  %v9680_v38 = vand.u32 4294901760, %v7261_v36 }
 0x197   : > { %2332 = vmatpush.xpose.msra.mxu2 %v7120_v31  ;;  %2168 = vmatmul.f32.vlgmr.msrb.gmra.mxu3 %v6217_v37  ;;  %v4208_v59 = vsel %vm4206_vm12, %v4199_v20, %v4098_v39  ;;  %v7275_v6 = vand.u32 4294901760, %v521_v46  ;;  %v9905_v39 = vld [vmem:[#allocation6_spill] sm:$0xff]  ;;  %v2253_v61 = vand.u32 4294901760, %v2252_v5 }
 0x198   : > { %v4611_v53 = vrot.slane %v4610_v28, 4  ;;  %v7243_v58 = vsel %vm4215_vm13, %v4208_v59, %v4154_v27  ;;  %v2247_v29 = vand.u32 4294901760, %v2246_v43  ;;  %v2258_v59 = vsub.f32 %v7261_v36, %v9680_v38  ;;  %v236_v43 = vld [vmem:[%s5900_s15 + $0x228] sm:$0xff]  ;;  %v233_v38 = vld [vmem:[%s5900_s15 + $0x210] sm:$0xff] }
 0x199   : > { %2179 = vmatpush.xpose.msra.mxu0 %v7111_v1  ;;  %2048 = vmatpush.xpose.msrb.mxu1 %v6945_v32  ;;  %v4233_v32 = vsel %vm3971_vm2, %v7243_v58, -inf  ;;  %9904 = vst [vmem:[#allocation11_spill] sm:$0xff] %v7275_v6  ;;  %v7293_v57 = vsub.f32 %v521_v46, %v7275_v6 }
 0x19a   : > { %2392 = vmatpush.xpose.msra.mxu3 %v7111_v1  ;;  %v4612_v47 = vmax.f32 %v4610_v28, %v4611_v53  ;;  %v4234_v51 = vrot.slane %v4233_v32, 4  ;;  %v515_v53 = vsel %vm297_vm0, %v237_v52, 0 }
 0x19b   : > { %2335 = vmatpush.xpose.msra.mxu2 %v7144_v40  ;;  %9908 = vst [vmem:[#allocation14_spill] sm:$0xff] %v7293_v57 }
 0x19c   : > { %2052 = vmatmul.f32.vlgmr.msrb.gmra.mxu1 %v9901_v45  ;;  %2013 = vmatmul.f32.gmra.mxu0 %v9903_v55  ;;  %v4613_v48 = vrot.slane %v4612_v47, 2  ;;  %v4235_v35 = vmax.f32 %v4233_v32, %v4234_v51 }
 0x19d   : > { %2181 = vmatpush.xpose.msra.mxu0 %v7162_v54  ;;  %2230 = vmatpush.xpose.msra.mxu1 %v2229_v8  ;;  %v518_v8 = vsel %vm297_vm0, %v238_v19, 0  ;;  %v2259_v19 = vand.u32 4294901760, %v2258_v59 }
 0x19e   : > { %2394 = vmatpush.xpose.msra.mxu3 %v7162_v54  ;;  %2131 = vmatmul.f32.gmra.mxu2 %v6266_v4  ;;  %v4614_v22 = vmax.f32 %v4612_v47, %v4613_v48  ;;  %v4236_v33 = vrot.slane %v4235_v35, 2  ;;  %v7286_v27 = vand.u32 4294901760, %v518_v8 }
 0x19f   : > { %2338 = vmatpush.xpose.msra.mxu2 %v7188_v7  ;;  %2172 = vmatmul.f32.gmra.mxu3 %v6266_v4 }
 0x1a0   : > { %v4615_v16 = vrot.slane %v4614_v22, 1  ;;  %v4237_v60 = vmax.f32 %v4235_v35, %v4236_v33  ;;  %9907 = vst [vmem:[#allocation13_spill] sm:$0xff] %v7286_v27  ;;  %v7312_v48 = vsub.f32 %v518_v8, %v7286_v27  ;;  %v235_v33 = vld [vmem:[%s5900_s15 + $0x220] sm:$0xff] }
 0x1a1   : > { %2183 = vmatpush.xpose.msra.mxu0 %v7165_v18  ;;  %2236 = vmatpush.xpose.msra.mxu1 %v2235_v23  ;;  %v9679_v23 = vand.u32 4294901760, %v7269_v17 }
 0x1a2   : > { %2396 = vmatpush.xpose.msra.mxu3 %v7165_v18  ;;  %v7284_v28 = vmax.f32 %v4614_v22, %v4615_v16  ;;  %v4238_v20 = vrot.slane %v4237_v60, 1  ;;  %9910 = vst [vmem:[#allocation16_spill] sm:$0xff] %v7312_v48  ;;  %v9678_v22 = vand.u32 4294901760, %v7293_v57  ;;  %v512_v16 = vsel %vm297_vm0, %v236_v43, 0 }
 0x1a3   : > { %2341 = vmatpush.xpose.msra.mxu2 %v7191_v3  ;;  %v2264_v51 = vsub.f32 %v7269_v17, %v9679_v23  ;;  %v9681_v52 = vand.u32 4294901760, %v7312_v48 }
 0x1a4   : > { %2058 = vmatmul.f32.gmra.mxu1 %v9905_v39  ;;  %9906 = vst [vmem:[#allocation12_spill] sm:$0xff] %v7284_v28  ;;  %vm4666_vm3 = vcmp.eq.f32.partialorder %v7217_v34, %v7284_v28  ;;  %vm4674_vm5 = vcmp.eq.f32.partialorder %v7222_v25, %v7284_v28  ;;  %v4239_v32 = vmax.f32 %v4237_v60, %v4238_v20 }
 0x1a5   : > { %2185 = vmatpush.xpose.msra.mxu0 %v7209_v14  ;;  %2242 = vmatpush.xpose.msra.mxu1 %v2241_v13  ;;  %v4682_v26 = vsel %vm4666_vm3, %v7034_v30, 16  ;;  %v4690_v47 = vsel %vm4674_vm5, %v7088_v50, 16  ;;  %v7309_v13 = vand.u32 4294901760, %v515_v53  ;;  %v2265_v60 = vand.u32 4294901760, %v2264_v51 }
 0x1a6   : > { %2398 = vmatpush.xpose.msra.mxu3 %v7209_v14  ;;  %vm4698_vm6 = vcmp.lt.s32.totalorder %v4682_v26, %v4690_v47  ;;  %vm4283_vm7 = vcmp.eq.f32.partialorder %v7243_v58, %v4239_v32  ;;  %v2270_v32 = vsub.f32 %v7293_v57, %v9678_v22 }
 0x1a7   : > { %2344 = vmatpush.xpose.msra.mxu2 %v7240_v12  ;;  %9909 = vst [vmem:[#allocation15_spill] sm:$0xff] %v7309_v13  ;;  %v4699_v35 = vsel %vm4698_vm6, %v4682_v26, %v4690_v47  ;;  %v4291_v46 = vsel %vm4283_vm7, %v7034_v30, 4  ;;  %v7324_v20 = vsub.f32 %v515_v53, %v7309_v13  ;;  %v7331_v26 = vand.u32 4294901760, %v512_v16  ;;  %v234_v47 = vld [vmem:[%s5900_s15 + $0x218] sm:$0xff] }
 0x1a8   : > { %v4308_v5 = vsel %vm3971_vm2, %v4291_v46, 2147483647  ;;  %v2276_v46 = vsub.f32 %v7312_v48, %v9681_v52 }
 0x1a9   : > { %2187 = vmatpush.xpose.msra.mxu0 %v7237_v9  ;;  %2248 = vmatpush.xpose.msra.mxu1 %v2247_v29  ;;  %v4700_v29 = vrot.slane %v4699_v35, 4  ;;  %v4309_v8 = vrot.slane %v4308_v5, 4  ;;  %9911 = vst [vmem:[#allocation17_spill] sm:$0xff] %v7324_v20 }
 0x1aa   : > { %2400 = vmatpush.xpose.msra.mxu3 %v7237_v9  ;;  %9912 = vst [vmem:[#allocation18_spill] sm:$0xff] %v7331_v26 }
 0x1ab   : > { %2347 = vmatpush.xpose.msra.mxu2 %v7261_v36  ;;  %vm4701_vm8 = vcmp.lt.s32.totalorder %v4699_v35, %v4700_v29  ;;  %vm4310_vm9 = vcmp.lt.s32.totalorder %v4308_v5, %v4309_v8 }
 0x1ac   : > { %v4702_v59 = vsel %vm4701_vm8, %v4699_v35, %v4700_v29  ;;  %v4311_v43 = vsel %vm4310_vm9, %v4308_v5, %v4309_v8  ;;  %v2271_v5 = vand.u32 4294901760, %v2270_v32  ;;  %v7345_v8 = vsub.f32 %v512_v16, %v7331_v26 }
 0x1ad   : > { %2189 = vmatpush.xpose.msra.mxu0 %v7250_v41  ;;  %2254 = vmatpush.xpose.msra.mxu1 %v2253_v61  ;;  %v509_v61 = vsel %vm297_vm0, %v235_v33, 0  ;;  %v4703_v51 = vrot.slane %v4702_v59, 2  ;;  %v4312_v53 = vrot.slane %v4311_v43, 2  ;;  %v506_v33 = vsel %vm297_vm0, %v234_v47, 0  ;;  %v262_v47 = vld [vmem:[%s5900_s15 + $0x2f8] sm:$0xff] }
 0x1ae   : > { %2402 = vmatpush.xpose.msra.mxu3 %v7250_v41  ;;  %v7336_v35 = vand.u32 4294901760, %v509_v61  ;;  %9914 = vst [vmem:[#allocation20_spill] sm:$0xff] %v7345_v8  ;;  %v7350_v56 = vand.u32 4294901760, %v506_v33 }
 0x1af   : > { %2350 = vmatpush.xpose.msra.mxu2 %v7269_v17  ;;  %vm4704_vm10 = vcmp.lt.s32.totalorder %v4702_v59, %v4703_v51  ;;  %vm4313_vm14 = vcmp.lt.s32.totalorder %v4311_v43, %v4312_v53 }
 0x1b0   : > { %9913 = vst [vmem:[#allocation19_spill] sm:$0xff] %v7336_v35  ;;  %v4705_v29 = vsel %vm4704_vm10, %v4702_v59, %v4703_v51  ;;  %v4314_v23 = vsel %vm4313_vm14, %v4311_v43, %v4312_v53  ;;  %v7353_v59 = vsub.f32 %v509_v61, %v7336_v35  ;;  %v9688_v51 = vand.u32 4294901760, %v7345_v8 }
 0x1b1   : > { %2191 = vmatpush.xpose.msra.mxu0 %v7275_v6  ;;  %2260 = vmatpush.xpose.msra.mxu1 %v2259_v19  ;;  %v9683_v19 = vand.u32 4294901760, %v7324_v20  ;;  %v4706_v22 = vrot.slane %v4705_v29, 1  ;;  %v4315_v52 = vrot.slane %v4314_v23, 1  ;;  %9915 = vst [vmem:[#allocation21_spill] sm:$0xff] %v7350_v56  ;;  %v503_v43 = vsel %vm297_vm0, %v233_v38, 0 }
 0x1b2   : > { %2404 = vmatpush.xpose.msra.mxu3 %v7275_v6  ;;  %9916 = vst [vmem:[#allocation22_spill] sm:$0xff] %v7353_v59  ;;  %v590_v53 = vsel %vm297_vm0, %v262_v47, 0  ;;  %v9694_v38 = vand.u32 4294901760, %v7353_v59 }
 0x1b3   : > { %2353 = vmatpush.xpose.msra.mxu2 %v7293_v57  ;;  %vm4707_vm15 = vcmp.lt.s32.totalorder %v4705_v29, %v4706_v22  ;;  %v2282_v16 = vsub.f32 %v7324_v20, %v9683_v19  ;;  %vm4316_vm1 = vcmp.lt.s32.totalorder %v4314_v23, %v4315_v52  ;;  %v261_v19 = vld [vmem:[%s5900_s15 + $0x2f0] sm:$0xff]  ;;  %v7400_v10 = vand.u32 4294901760, %v590_v53 }
 0x1b4   : > { %v7359_v32 = vsel %vm4707_vm15, %v4705_v29, %v4706_v22  ;;  %v7368_v61 = vsel %vm4316_vm1, %v4314_v23, %v4315_v52  ;;  %v232_v22 = vld [vmem:[%s5900_s15 + $0x208] sm:$0xff]  ;;  %v231_v23 = vld [vmem:[%s5900_s15 + $0x200] sm:$0xff] }
 0x1b5   : > { %2193 = vmatpush.xpose.msra.mxu0 %v7286_v27  ;;  %2266 = vmatpush.xpose.msra.mxu1 %v2265_v60  ;;  %v2277_v60 = vand.u32 4294901760, %v2276_v46  ;;  %9917 = vst [vmem:[#allocation23_spill] sm:$0xff] %v7359_v32  ;;  %vm4786_vm3 = vcmp.eq.s32.totalorder %v7034_v30, %v7359_v32  ;;  %vm4794_vm5 = vcmp.eq.s32.totalorder %v7088_v50, %v7359_v32  ;;  %v2283_v47 = vand.u32 4294901760, %v2282_v16 }
 0x1b6   : > { %2406 = vmatpush.xpose.msra.mxu3 %v7286_v27  ;;  %v7374_v46 = vsel %vm4786_vm3, -1e+30, %v7217_v34  ;;  %v7377_v29 = vsel %vm4794_vm5, -1e+30, %v7222_v25  ;;  %vm4395_vm6 = vcmp.eq.s32.totalorder %v7034_v30, %v7368_v61  ;;  %v7389_v34 = vand.u32 4294901760, %v503_v43 }
 0x1b7   : > { %2356 = vmatpush.xpose.msra.mxu2 %v7312_v48  ;;  %v4818_v52 = vmax.f32 %v7374_v46, %v7377_v29  ;;  %v7393_v25 = vsel %vm4395_vm6, -1e+30, %v7243_v58  ;;  %v500_v21 = vsel %vm297_vm0, %v232_v22, 0  ;;  %v497_v58 = vsel %vm297_vm0, %v231_v23, 0  ;;  %v257_v48 = vld [vmem:[%s5900_s15 + $0x2d0] sm:$0xff] }
 0x1b8   : > { %9919 = vst [vmem:[#allocation25_spill] sm:$0xff] %v7389_v34  ;;  %v4417_v16 = vsel %vm3971_vm2, %v7393_v25, -inf  ;;  %v7412_v28 = vand.u32 4294901760, %v500_v21  ;;  %v7418_v27 = vand.u32 4294901760, %v497_v58  ;;  %vm4379_vm5 = vcmp.eq.s32.totalorder %v7114_v24, %v7368_v61 }
 0x1b9   : > { %2195 = vmatpush.xpose.msra.mxu0 %v7309_v13  ;;  %2272 = vmatpush.xpose.msra.mxu1 %v2271_v5  ;;  %v7382_v5 = vsub.f32 %v506_v33, %v7350_v56  ;;  %v2288_v33 = vsub.f32 %v7345_v8, %v9688_v51  ;;  %v4819_v44 = vrot.slane %v4818_v52, 4  ;;  %v4418_v62 = vrot.slane %v4417_v16, 4 }
 0x1ba   : > { %2408 = vmatpush.xpose.msra.mxu3 %v7309_v13  ;;  %v587_v51 = vsel %vm297_vm0, %v261_v19, 0  ;;  %9920 = vst [vmem:[#allocation26_spill] sm:$0xff] %v7412_v28  ;;  %v259_v19 = vld [vmem:[%s5900_s15 + $0x2e0] sm:$0xff]  ;;  %v7434_v6 = vsub.f32 %v500_v21, %v7412_v28  ;;  %vm4387_vm6 = vcmp.eq.s32.totalorder %v7133_v11, %v7368_v61 }
 0x1bb   : > { %2359 = vmatpush.xpose.msra.mxu2 %v7324_v20  ;;  %9918 = vst [vmem:[#allocation24_spill] sm:$0xff] %v7382_v5  ;;  %v4820_v32 = vmax.f32 %v4818_v52, %v4819_v44  ;;  %v4419_v13 = vmax.f32 %v4417_v16, %v4418_v62  ;;  %v2289_v23 = vand.u32 4294901760, %v2288_v33  ;;  %v7425_v44 = vand.u32 4294901760, %v587_v51 }
 0x1bd   : > { %2197 = vmatpush.xpose.msra.mxu0 %v7331_v26  ;;  %2278 = vmatpush.xpose.msra.mxu1 %v2277_v60  ;;  %v2294_v60 = vsub.f32 %v7353_v59, %v9694_v38  ;;  %v7421_v38 = vsub.f32 %v590_v53, %v7400_v10  ;;  %v4821_v22 = vrot.slane %v4820_v32, 2  ;;  %v4420_v52 = vrot.slane %v4419_v13, 2  ;;  %v1579_v53 = vpop.f32.mrf.mxu1 }
 0x1be   : > { %2410 = vmatpush.xpose.msra.mxu3 %v7331_v26  ;;  %v7415_v26 = vsub.f32 %v503_v43, %v7389_v34  ;;  %v1470_v43 = vpop.f32.mrf.mxu0 }
 0x1bf   : > { %2362 = vmatpush.xpose.msra.mxu2 %v7345_v8  ;;  %9922 = vst [vmem:[#allocation28_spill] sm:$0xff] %v7421_v38  ;;  %v260_v8 = vld [vmem:[%s5900_s15 + $0x2e8] sm:$0xff]  ;;  %v2295_v62 = vand.u32 4294901760, %v2294_v60  ;;  %v4822_v16 = vmax.f32 %v4820_v32, %v4821_v22  ;;  %v4421_v20 = vmax.f32 %v4419_v13, %v4420_v52  ;;  %v7439_v60 = vsub.f32 %v497_v58, %v7418_v27 }
 0x1c0   : > { %9921 = vst [vmem:[#allocation27_spill] sm:$0xff] %v7415_v26  ;;  %v7445_v22 = vsub.f32 %v587_v51, %v7425_v44  ;;  %v9707_v52 = vand.u32 4294901760, %v7434_v6  ;;  %v9925_v51 = vand.u32 4294901760, %v7415_v26 }
 0x1c1   : > { %2199 = vmatpush.xpose.msra.mxu0 %v7336_v35  ;;  %2284 = vmatpush.xpose.msra.mxu1 %v2283_v47  ;;  %v9923_v47 = vand.u32 4294901760, %v7382_v5  ;;  %v4823_v32 = vrot.slane %v4822_v16, 1  ;;  %v4422_v21 = vrot.slane %v4421_v20, 1 }
 0x1c2   : > { %2412 = vmatpush.xpose.msra.mxu3 %v7336_v35  ;;  %v584_v35 = vsel %vm297_vm0, %v260_v8, 0  ;;  %v258_v8 = vld [vmem:[%s5900_s15 + $0x2d8] sm:$0xff] }
 0x1c3   : > { %2365 = vmatpush.xpose.msra.mxu2 %v7353_v59  ;;  %v2300_v33 = vsub.f32 %v7382_v5, %v9923_v47  ;;  %v581_v47 = vsel %vm297_vm0, %v259_v19, 0  ;;  %v7448_v13 = vand.u32 4294901760, %v584_v35  ;;  %v4423_v19 = vmax.f32 %v4421_v20, %v4422_v21 }
 0x1c4   : > { %v7454_v59 = vand.u32 4294901760, %v581_v47  ;;  %v2312_v20 = vsub.f32 %v7434_v6, %v9707_v52  ;;  %v9927_v52 = vand.u32 4294901760, %v7439_v60 }
 0x1c5   : > { %2201 = vmatpush.xpose.msra.mxu0 %v7350_v56  ;;  %2290 = vmatpush.xpose.msra.mxu1 %v2289_v23  ;;  %v7451_v23 = vmax.f32 %v4822_v16, %v4823_v32  ;;  %v2301_v58 = vand.u32 4294901760, %v2300_v33  ;;  %vm4467_vm9 = vcmp.eq.f32.partialorder %v7393_v25, %v4423_v19  ;;  %v7476_v21 = vsub.f32 %v584_v35, %v7448_v13 }
 0x1c6   : > { %2414 = vmatpush.xpose.msra.mxu3 %v7350_v56  ;;  %v2306_v56 = vsub.f32 %v7415_v26, %v9925_v51  ;;  %v4475_v51 = vsel %vm4467_vm9, %v7034_v30, 4  ;;  %v1478_v35 = vpop.f32.mrf.mxu0 }
 0x1c7   : > { %2368 = vmatpush.xpose.msra.mxu2 %v7382_v5  ;;  %9924 = vst [vmem:[#allocation29_spill] sm:$0xff] %v7451_v23  ;;  %v9926_v5 = vand.u32 4294901760, %v7421_v38  ;;  %vm4874_vm7 = vcmp.eq.f32.partialorder %v7374_v46, %v7451_v23  ;;  %vm4882_vm8 = vcmp.eq.f32.partialorder %v7377_v29, %v7451_v23  ;;  %v2313_v23 = vand.u32 4294901760, %v2312_v20 }
 0x1c8   : > { %v4890_v33 = vsel %vm4874_vm7, %v7034_v30, 16  ;;  %v4898_v32 = vsel %vm4882_vm8, %v7088_v50, 16  ;;  %v2307_v25 = vand.u32 4294901760, %v2306_v56 }
 0x1c9   : > { %2203 = vmatpush.xpose.msra.mxu0 %v7389_v34  ;;  %2296 = vmatpush.xpose.msra.mxu1 %v2295_v62  ;;  %v2600_v41 = vsub.f32 %v7421_v38, %v9926_v5  ;;  %v578_v62 = vsel %vm297_vm0, %v258_v8, 0  ;;  %v1637_v5 = vpop.f32.mrf.mxu2  ;;  %vm4906_vm10 = vcmp.lt.s32.totalorder %v4890_v33, %v4898_v32  ;;  %v7483_v8 = vsub.f32 %v581_v47, %v7454_v59 }
 0x1ca   : > { %2416 = vmatpush.xpose.msra.mxu3 %v7389_v34  ;;  %v4907_v16 = vsel %vm4906_vm10, %v4890_v33, %v4898_v32  ;;  %v4492_v38 = vsel %vm3971_vm2, %v4475_v51, 2147483647  ;;  %v7487_v19 = vand.u32 4294901760, %v578_v62  ;;  %v7493_v47 = vsub.f32 %v7439_v60, %v9927_v52 }
 0x1cb   : > { %2371 = vmatpush.xpose.msra.mxu2 %v7415_v26  ;;  %v4908_v34 = vrot.slane %v4907_v16, 4  ;;  %v4493_v26 = vrot.slane %v4492_v38, 4  ;;  %v1580_v33 = vadd.f32 %v1579_v53, %v1470_v43  ;;  %v2601_v32 = vand.u32 4294901760, %v2600_v41  ;;  %v1681_v43 = vpop.f32.mrf.mxu3 }
 0x1cc   : > { %v7504_v41 = vsub.f32 %v578_v62, %v7487_v19  ;;  %v575_v53 = vsel %vm297_vm0, %v257_v48, 0  ;;  %v9929_v51 = vand.u32 4294901760, %v7120_v31  ;;  %v9930_v48 = vand.u32 4294901760, %v7476_v21 }
 0x1cd   : > { %2205 = vmatpush.xpose.msra.mxu0 %v7412_v28  ;;  %2302 = vmatpush.xpose.msra.mxu1 %v2301_v58  ;;  %v9928_v58 = vand.u32 4294901760, %v7445_v22  ;;  %vm4909_vm14 = vcmp.lt.s32.totalorder %v4907_v16, %v4908_v34  ;;  %vm4494_vm15 = vcmp.lt.s32.totalorder %v4492_v38, %v4493_v26  ;;  %v7510_v20 = vand.u32 4294901760, %v575_v53 }
 0x1ce   : > { %2418 = vmatpush.xpose.msra.mxu3 %v7412_v28  ;;  %v9713_v28 = vand.u32 4294901760, %v7483_v8  ;;  %v4910_v9 = vsel %vm4909_vm14, %v4907_v16, %v4908_v34  ;;  %v4495_v57 = vsel %vm4494_vm15, %v4492_v38, %v4493_v26  ;;  %v1583_v26 = vpop.f32.mrf.mxu1  ;;  %v1638_v38 = vadd.f32 %v1637_v5, %v1580_v33 }
 0x1cf   : > { %2374 = vmatpush.xpose.msra.mxu2 %v7434_v6  ;;  %v2606_v56 = vsub.f32 %v7445_v22, %v9928_v58  ;;  %v4911_v52 = vrot.slane %v4910_v9, 2  ;;  %v4496_v58 = vrot.slane %v4495_v57, 2  ;;  %v2319_v34 = vand.u32 4294901760, %v7493_v47 }
 0x1d0   : > { %v2612_v62 = vsub.f32 %v7476_v21, %v9930_v48  ;;  %v1584_v31 = vadd.f32 %v1583_v26, %v1478_v35  ;;  %v9715_v33 = vand.u32 4294901760, %v7504_v41  ;;  %v9931_v26 = vand.u32 4294901760, %v7144_v40 }
 0x1d1   : > { %2207 = vmatpush.xpose.msra.mxu0 %v7418_v27  ;;  %2308 = vmatpush.xpose.msra.mxu1 %v2307_v25  ;;  %v2607_v16 = vand.u32 4294901760, %v2606_v56  ;;  %vm4912_vm1 = vcmp.lt.s32.totalorder %v4910_v9, %v4911_v52  ;;  %vm4497_vm3 = vcmp.lt.s32.totalorder %v4495_v57, %v4496_v58  ;;  %v7521_v25 = vsub.f32 %v7483_v8, %v9713_v28  ;;  %v1642_v47 = vpop.f32.mrf.mxu2 }
 0x1d2   : > { %2420 = vmatpush.xpose.msra.mxu3 %v7418_v27  ;;  %v4498_v5 = vsel %vm4497_vm3, %v4495_v57, %v4496_v58  ;;  %v1682_v57 = vadd.f32 %v1681_v43, %v1638_v38  ;;  %v1643_v40 = vadd.f32 %v1642_v47, %v1584_v31  ;;  %v2624_v43 = vsub.f32 %v7504_v41, %v9715_v33 }
 0x1d3   : > { %2377 = vmatpush.xpose.msra.mxu2 %v7439_v60  ;;  %v4499_v35 = vrot.slane %v4498_v5, 1 }
 0x1d4   : > { %2213 = vmatmul.f32.vlgmr.msra.gmra.mxu0 %v6264_v63 }
 0x1d5   : > { %2437 = vmatpush.xpose.msrb.mxu0 %v9929_v51  ;;  %v256_v51 = vld [vmem:[%s5900_s15 + $0x2c8] sm:$0xff]  ;;  %2314 = vmatpush.xpose.msra.mxu1 %v2313_v23  ;;  %v1756_v23 = vpop.f32.mrf.mxu0  ;;  %vm4500_vm8 = vcmp.lt.s32.totalorder %v4498_v5, %v4499_v35 }
 0x1d6   : > { %2602 = vmatpush.xpose.msrb.mxu3 %v2601_v32  ;;  %v4913_v32 = vsel %vm4912_vm1, %v4910_v9, %v4911_v52  ;;  %v572_v56 = vsel %vm297_vm0, %v256_v51, 0  ;;  %v7532_v9 = vsub.f32 %v575_v53, %v7510_v20  ;;  %2380 = vmatmul.f32.vlgmr.msra.gmra.mxu2 %v6232_v15  ;;  %v2613_v52 = vand.u32 4294901760, %v2612_v62  ;;  %v255_v53 = vld [vmem:[%s5900_s15 + $0x2c0] sm:$0xff] }
 0x1d7   : > { %2549 = vmatpush.xpose.msrb.mxu2 %v7400_v10  ;;  %v4914_v48 = vrot.slane %v4913_v32, 1  ;;  %v7537_v58 = vand.u32 4294901760, %v572_v56  ;;  %v2619_v51 = vand.u32 4294901760, %v7521_v25  ;;  %v4501_v28 = vsel %vm4500_vm8, %v4498_v5, %v4499_v35  ;;  %2424 = vmatmul.f32.vlgmr.msra.gmra.mxu3 %v9901_v45  ;;  %v9952_v45 = vld [vmem:[#allocation17_spill] sm:$0xff] }
 0x1d8   : > { %v569_v38 = vsel %vm297_vm0, %v255_v53, 0  ;;  %vm4563_vm14 = vcmp.eq.s32.totalorder %v7114_v24, %v4501_v28  ;;  %vm4571_vm15 = vcmp.eq.s32.totalorder %v7133_v11, %v4501_v28  ;;  %v1757_v28 = vadd.f32 %v1756_v23, %v1682_v57 }
 0x1d9   : > { %2441 = vmatpush.xpose.msrb.mxu0 %v9931_v26  ;;  %vm4915_vm7 = vcmp.lt.s32.totalorder %v4913_v32, %v4914_v48  ;;  %2320 = vmatpush.xpose.msra.mxu1 %v2319_v34  ;;  %v9714_v34 = vand.u32 4294901760, %v7532_v9  ;;  %vm4579_vm1 = vmor %vm4379_vm5, %vm4563_vm14  ;;  %v7569_v25 = vsub.f32 %v572_v56, %v7537_v58  ;;  %v9933_v56 = vand.u32 4294901760, %v7191_v3 }
 0x1da   : > { %2608 = vmatpush.xpose.msrb.mxu3 %v2607_v16  ;;  %v7542_v26 = vsel %vm4915_vm7, %v4913_v32, %v4914_v48  ;;  %v9932_v16 = vand.u32 4294901760, %v7188_v7  ;;  %v1687_v7 = vpop.f32.mrf.mxu3  ;;  %vm4587_vm3 = vmor %vm4387_vm6, %vm4571_vm15  ;;  %v254_v32 = vld [vmem:[%s5900_s15 + $0x2b8] sm:$0xff]  ;;  %v2625_v57 = vand.u32 4294901760, %v2624_v43 }
 0x1db   : > { %2551 = vmatpush.xpose.msrb.mxu2 %v7425_v44  ;;  %vm4994_vm9 = vcmp.eq.s32.totalorder %v7034_v30, %v7542_v26  ;;  %vm5002_vm10 = vcmp.eq.s32.totalorder %v7088_v50, %v7542_v26  ;;  %v7585_v5 = vsel %vm4587_vm3, %v7154_v0, 0.0  ;;  %v566_v47 = vsel %vm297_vm0, %v254_v32, 0  ;;  %v1797_v0 = vpop.f32.mrf.mxu1 }
 0x1dc   : > { %v7559_v62 = vsel %vm4994_vm9, -1e+30, %v7374_v46  ;;  %v7562_v31 = vsel %vm5002_vm10, -1e+30, %v7377_v29  ;;  %v7577_v46 = vsel %vm4579_vm1, %v7100_v2, 0.0  ;;  %v7580_v29 = vand.u32 4294901760, %v569_v38  ;;  %2322 = vmatmul.f32.vlgmr.msra.gmra.mxu1 %v6217_v37  ;;  %2221 = vmatmul.f32.gmra.mxu0 %v6310_v49 }
 0x1dd   : > { %2445 = vmatpush.xpose.msrb.mxu0 %v9932_v16  ;;  %2508 = vmatpush.xpose.msrb.mxu1 %v7093_v42  ;;  %v5026_v42 = vmax.f32 %v7559_v62, %v7562_v31  ;;  %v4617_v2 = vmax.f32 %v7577_v46, %v7585_v5  ;;  %v1688_v48 = vadd.f32 %v1687_v7, %v1643_v40  ;;  %v7601_v53 = vand.u32 4294901760, %v566_v47  ;;  %v1760_v40 = vpop.f32.mrf.mxu0 }
 0x1de   : > { %2614 = vmatpush.xpose.msrb.mxu3 %v2613_v52  ;;  %v7595_v35 = vsub.f32 %v569_v38, %v7580_v29  ;;  %v2630_v23 = vsub.f32 %v7532_v9, %v9714_v34  ;;  %v9719_v52 = vand.u32 4294901760, %v7569_v25  ;;  %2385 = vmatmul.f32.gmra.mxu2 %v9903_v55  ;;  %v253_v38 = vld [vmem:[%s5900_s15 + $0x2b0] sm:$0xff]  ;;  %v9953_v55 = vand.u32 4294901760, %v9952_v45 }
 0x1df   : > { %2553 = vmatpush.xpose.msrb.mxu2 %v7448_v13  ;;  %v5027_v61 = vrot.slane %v5026_v42, 4  ;;  %9934 = vst [vmem:[#allocation30_spill] sm:$0xff] %v7601_v53  ;;  %v4618_v16 = vrot.slane %v4617_v2, 4  ;;  %v7608_v43 = vsub.f32 %v566_v47, %v7601_v53  ;;  %v563_v7 = vsel %vm297_vm0, %v253_v38, 0  ;;  %2430 = vmatmul.f32.gmra.mxu3 %v9905_v39 }
 0x1e0   : > { %v2636_v47 = vsub.f32 %v7569_v25, %v9719_v52  ;;  %v249_v52 = vld [vmem:[%s5900_s15 + $0x290] sm:$0xff] }
 0x1e1   : > { %2449 = vmatpush.xpose.msrb.mxu0 %v9933_v56  ;;  %2510 = vmatpush.xpose.msrb.mxu1 %v7111_v1  ;;  %v5028_v3 = vmax.f32 %v5026_v42, %v5027_v61  ;;  %v1798_v1 = vadd.f32 %v1797_v0, %v1757_v28  ;;  %v4619_v56 = vmax.f32 %v4617_v2, %v4618_v16  ;;  %v9935_v42 = vand.u32 4294901760, %v7240_v12  ;;  %v252_v12 = vld [vmem:[%s5900_s15 + $0x2a8] sm:$0xff] }
 0x1e2   : > { %2620 = vmatpush.xpose.msrb.mxu3 %v2619_v51  ;;  %v9716_v51 = vand.u32 4294901760, %v7595_v35  ;;  %v7615_v28 = vand.u32 4294901760, %v563_v7  ;;  %v1761_v61 = vadd.f32 %v1760_v40, %v1688_v48  ;;  %v2631_v0 = vand.u32 4294901760, %v2630_v23 }
 0x1e3   : > { %2555 = vmatpush.xpose.msrb.mxu2 %v7454_v59  ;;  %v5029_v32 = vrot.slane %v5028_v3, 2  ;;  %v5760_v34 = vmul.f32 -1.442695, %v1798_v1  ;;  %v4620_v33 = vrot.slane %v4619_v56, 2  ;;  %v9718_v48 = vand.u32 4294901760, %v7608_v43  ;;  %v1801_v40 = vpop.f32.mrf.mxu1 }
 0x1e4   : > { %9936 = vst [vmem:[#allocation31_spill] sm:$0xff] %v7615_v28  ;;  %v7622_v2 = vsub.f32 %v563_v7, %v7615_v28  ;;  %2326 = vmatmul.f32.gmra.mxu1 %v6266_v4  ;;  %v2637_v7 = vand.u32 4294901760, %v2636_v47 }
 0x1e5   : > { %2453 = vmatpush.xpose.msrb.mxu0 %v9935_v42  ;;  %2512 = vmatpush.xpose.msrb.mxu1 %v7162_v54  ;;  %v5030_v38 = vmax.f32 %v5028_v3, %v5029_v32  ;;  %5800 = vpow2.f32 %v5760_v34  ;;  %v2642_v54 = vsub.f32 %v7595_v35, %v9716_v51  ;;  %v4621_v3 = vmax.f32 %v4619_v56, %v4620_v33  ;;  %v251_v33 = vld [vmem:[%s5900_s15 + $0x2a0] sm:$0xff] }
 0x1e6   : > { %2626 = vmatpush.xpose.msrb.mxu3 %v2625_v57  ;;  %v560_v57 = vsel %vm297_vm0, %v252_v12, 0  ;;  %v9937_v34 = vand.u32 4294901760, %v7261_v36  ;;  %v9717_v16 = vand.u32 4294901760, %v7622_v2  ;;  %v1802_v51 = vadd.f32 %v1801_v40, %v1761_v61 }
 0x1e7   : > { %2557 = vmatpush.xpose.msrb.mxu2 %v7487_v19  ;;  %v5031_v23 = vrot.slane %v5030_v38, 1  ;;  %v7635_v1 = vand.u32 4294901760, %v560_v57  ;;  %v4622_v42 = vrot.slane %v4621_v3, 1  ;;  %v2643_v12 = vand.u32 4294901760, %v2642_v54 }
 0x1e8   : > { %v2648_v36 = vsub.f32 %v7608_v43, %v9718_v48 }
 0x1e9   : > { %2457 = vmatpush.xpose.msrb.mxu0 %v9937_v34  ;;  %2514 = vmatpush.xpose.msrb.mxu1 %v7165_v18  ;;  %9938 = vst [vmem:[#allocation32_spill] sm:$0xff] %v7635_v1  ;;  %v7637_v32 = vmax.f32 %v5030_v38, %v5031_v23  ;;  %v7646_v18 = vsub.f32 %v7622_v2, %v9717_v16  ;;  %v5768_v34 = vmul.f32 -1.442695, %v1802_v51  ;;  %v9941_v51 = vld [vmem:[#allocation14_spill] sm:$0xff] }
 0x1ea   : > { %2632 = vmatpush.xpose.msrb.mxu3 %v2631_v0  ;;  %v7653_v61 = vmax.f32 %v4621_v3, %v4622_v42  ;;  %v9939_v0 = vand.u32 4294901760, %v7269_v17  ;;  %v7658_v47 = vsub.f32 %v560_v57, %v7635_v1  ;;  %v557_v17 = vsel %vm297_vm0, %v251_v33, 0  ;;  %v250_v42 = vld [vmem:[%s5900_s15 + $0x298] sm:$0xff] }
 0x1eb   : > { %2559 = vmatpush.xpose.msrb.mxu2 %v7510_v20  ;;  %v5801_v56 = vpop.eup %5800  ;;  %vm5082_vm5 = vcmp.eq.f32.partialorder %v7559_v62, %v7637_v32  ;;  %vm5090_vm6 = vcmp.eq.f32.partialorder %v7562_v31, %v7637_v32  ;;  %v2649_v33 = vand.u32 4294901760, %v2648_v36  ;;  %v7680_v16 = vand.u32 4294901760, %v557_v17 }
 0x1ec   : > { %9940 = vst [vmem:[#allocation33_spill] sm:$0xff] %v7658_v47  ;;  %v5098_v38 = vsel %vm5082_vm5, %v7034_v30, 16  ;;  %v5106_v54 = vsel %vm5090_vm6, %v7088_v50, 16  ;;  %v7662_v23 = vadd.f32 1.0, %v5801_v56  ;;  %vm4667_vm8 = vcmp.eq.f32.partialorder %v7577_v46, %v7653_v61 }
 0x1ed   : > { %2461 = vmatpush.xpose.msrb.mxu0 %v9939_v0  ;;  %2516 = vmatpush.xpose.msrb.mxu1 %v7209_v14  ;;  %vm5114_vm7 = vcmp.lt.s32.totalorder %v5098_v38, %v5106_v54  ;;  %vm4675_vm9 = vcmp.eq.f32.partialorder %v7585_v5, %v7653_v61  ;;  %v4683_v3 = vsel %vm4667_vm8, %v7034_v30, 16  ;;  %v9943_v0 = vld [vmem:[#allocation8_spill] sm:$0xff]  ;;  %9944 = vst [vmem:[#allocation14_spill] sm:$0xff] %v7680_v16 }
 0x1ee   : > { %2638 = vmatpush.xpose.msrb.mxu3 %v2637_v7  ;;  %v5115_v57 = vsel %vm5114_vm7, %v5098_v38, %v5106_v54  ;;  %v4691_v40 = vsel %vm4675_vm9, %v7088_v50, 16  ;;  %5802 = vrcp.f32 %v7662_v23  ;;  %v9942_v7 = vand.u32 4294901760, %v9941_v51 }
 0x1ef   : > { %2561 = vmatpush.xpose.msrb.mxu2 %v7537_v58  ;;  %v5116_v14 = vrot.slane %v5115_v57, 4  ;;  %vm4709_vm10 = vcmp.lt.s32.totalorder %v4683_v3, %v4691_v40  ;;  %5804 = vpow2.f32 %v5768_v34  ;;  %v2655_v51 = vand.u32 4294901760, %v7646_v18  ;;  %v9945_v34 = vld [vmem:[#allocation16_spill] sm:$0xff] }
 0x1f0   : > { %v4710_v56 = vsel %vm4709_vm10, %v4683_v3, %v4691_v40  ;;  %v9946_v40 = vand.u32 4294901760, %v9945_v34  ;;  %vm3763_vm1 = vweird.f32 %v7662_v23  ;;  %v3767_v18 = vand.u32 2147483647, %v7662_v23 }
 0x1f1   : > { %2465 = vmatpush.xpose.msrb.mxu0 %v9942_v7  ;;  %2518 = vmatpush.xpose.msrb.mxu1 %v9943_v0  ;;  %vm5117_vm14 = vcmp.lt.s32.totalorder %v5115_v57, %v5116_v14  ;;  %v4711_v54 = vrot.slane %v4710_v56, 4  ;;  %v554_v7 = vsel %vm297_vm0, %v250_v42, 0  ;;  %v3769_v39 = vand.u32 2147483648, %v7662_v23 }
 0x1f2   : > { %2644 = vmatpush.xpose.msrb.mxu3 %v2643_v12  ;;  %v5118_v48 = vsel %vm5117_vm14, %v5115_v57, %v5116_v14  ;;  %v7688_v12 = vsub.f32 %v557_v17, %v7680_v16  ;;  %v7690_v36 = vand.u32 4294901760, %v554_v7  ;;  %v9949_v57 = vld [vmem:[#allocation10_spill] sm:$0xff]  ;;  %v9950_v14 = vand.u32 4294901760, %v7658_v47 }
 0x1f3   : > { %2563 = vmatpush.xpose.msrb.mxu2 %v7580_v29  ;;  %v5119_v3 = vrot.slane %v5118_v48, 2  ;;  %vm4712_vm15 = vcmp.lt.s32.totalorder %v4710_v56, %v4711_v54  ;;  %vm7713_vm6 = vcmp.eq.f32.partialorder %v3767_v18, 8.507059e+37  ;;  %v9958_v18 = vld [vmem:[#allocation20_spill] sm:$0xff] }
 0x1f4   : > { %9947 = vst [vmem:[#allocation8_spill] sm:$0xff] %v7688_v12  ;;  %v7692_v0 = vpop.eup %5802  ;;  %v4713_v38 = vsel %vm4712_vm15, %v4710_v56, %v4711_v54  ;;  %v2660_v42 = vsub.f32 %v7658_v47, %v9950_v14  ;;  %v551_v56 = vsel %vm297_vm0, %v249_v52, 0 }
 0x1f5   : > { %2469 = vmatpush.xpose.msrb.mxu0 %v9946_v40  ;;  %9948 = vst [vmem:[#allocation16_spill] sm:$0xff] %v7690_v36  ;;  %2520 = vmatpush.xpose.msrb.mxu1 %v9949_v57  ;;  %vm5120_vm3 = vcmp.lt.s32.totalorder %v5118_v48, %v5119_v3  ;;  %v4714_v34 = vrot.slane %v4713_v38, 2  ;;  %v3759_v17 = vmul.f32 %v7692_v0, %v7662_v23  ;;  %v5805_v54 = vpop.eup %5804  ;;  %v7718_v57 = vand.u32 4294901760, %v551_v56 }
 0x1f6   : > { %2650 = vmatpush.xpose.msrb.mxu3 %v2649_v33  ;;  %v5121_v40 = vsel %vm5120_vm3, %v5118_v48, %v5119_v3  ;;  %v7707_v33 = vsub.f32 %v554_v7, %v7690_v36  ;;  %v7709_v24 = vadd.f32 1.0, %v5805_v54  ;;  %v9956_v48 = vld [vmem:[#allocation11_spill] sm:$0xff]  ;;  %v2661_v3 = vand.u32 4294901760, %v2660_v42 }
 0x1f7   : > { %2565 = vmatpush.xpose.msrb.mxu2 %v7601_v53  ;;  %v5122_v11 = vrot.slane %v5121_v40, 1  ;;  %vm4715_vm5 = vcmp.lt.s32.totalorder %v4713_v38, %v4714_v34  ;;  %v3760_v14 = vsub.f32 1.0, %v3759_v17  ;;  %vm3764_vm8 = vweird.f32 %v7692_v0 }
 0x1f8   : > { %9951 = vst [vmem:[#allocation10_spill] sm:$0xff] %v7707_v33  ;;  %v4716_v15 = vsel %vm4715_vm5, %v4713_v38, %v4714_v34  ;;  %5806 = vrcp.f32 %v7709_v24  ;;  %v9957_v38 = vand.u32 4294901760, %v7688_v12  ;;  %v9959_v42 = vand.u32 4294901760, %v9958_v18  ;;  %vm3765_vm5 = vmor %vm3763_vm1, %vm3764_vm8 }
 0x1f9   : > { %2473 = vmatpush.xpose.msrb.mxu0 %v9953_v55  ;;  %2522 = vmatpush.xpose.msrb.mxu1 %v9956_v48  ;;  %vm5123_vm7 = vcmp.lt.s32.totalorder %v5121_v40, %v5122_v11  ;;  %v4717_v7 = vrot.slane %v4716_v15, 1  ;;  %v3761_v17 = vmul.f32 %v7692_v0, %v3760_v14  ;;  %v3770_v55 = vor.u32 1.1754944e-38, %v3769_v39  ;;  %v9961_v14 = vld [vmem:[#allocation13_spill] sm:$0xff] }
 0x1fa   : > { %2656 = vmatpush.xpose.msrb.mxu3 %v2655_v51  ;;  %v7723_v45 = vsel %vm5123_vm7, %v5121_v40, %v5122_v11  ;;  %v2666_v51 = vsub.f32 %v7688_v12, %v9957_v38  ;;  %vm3883_vm7 = vweird.f32 %v7709_v24  ;;  %v9964_v38 = vld [vmem:[#allocation22_spill] sm:$0xff] }
 0x1fb   : > { %2567 = vmatpush.xpose.msrb.mxu2 %v7615_v28  ;;  %vm5202_vm9 = vcmp.eq.s32.totalorder %v7034_v30, %v7723_v45  ;;  %vm5210_vm10 = vcmp.eq.s32.totalorder %v7088_v50, %v7723_v45  ;;  %vm4718_vm14 = vcmp.lt.s32.totalorder %v4716_v15, %v4717_v7  ;;  %v3762_v40 = vadd.f32 %v7692_v0, %v3761_v17 }
 0x1fc   : > { %v7737_v34 = vsel %vm5202_vm9, -1e+30, %v7559_v62  ;;  %v7740_v39 = vsel %vm5210_vm10, -1e+30, %v7562_v31  ;;  %v7742_v54 = vsel %vm4718_vm14, %v4716_v15, %v4717_v7  ;;  %v7758_v15 = vsub.f32 %v551_v56, %v7718_v57 }
 0x1fd   : > { %2477 = vmatpush.xpose.msrb.mxu0 %v9959_v42  ;;  %9960 = vst [vmem:[#allocation17_spill] sm:$0xff] %v7742_v54  ;;  %2524 = vmatpush.xpose.msrb.mxu1 %v9961_v14  ;;  %v5234_v48 = vmax.f32 %v7737_v34, %v7740_v39  ;;  %vm4787_vm15 = vcmp.eq.s32.totalorder %v7034_v30, %v7742_v54  ;;  %v2667_v11 = vand.u32 4294901760, %v2666_v51 }
 0x1fe   : > { %2662 = vmatpush.xpose.msrb.mxu3 %v2661_v3  ;;  %vm4795_vm3 = vcmp.eq.s32.totalorder %v7088_v50, %v7742_v54  ;;  %9962 = vst [vmem:[#allocation11_spill] sm:$0xff] %v7758_v15  ;;  %v7761_v62 = vsel %vm4787_vm15, -1e+30, %v7577_v46  ;;  %v3766_v3 = vsel %vm3765_vm5, %v7692_v0, %v3762_v40  ;;  %v7768_v7 = vpop.eup %5806  ;;  %v3887_v46 = vand.u32 2147483647, %v7709_v24  ;;  %v9966_v40 = vld [vmem:[#allocation15_spill] sm:$0xff] }
 0x1ff   : > { %2569 = vmatpush.xpose.msrb.mxu2 %v7635_v1  ;;  %v7764_v31 = vsel %vm4795_vm3, -1e+30, %v7585_v5  ;;  %v5235_v23 = vrot.slane %v5234_v48, 4  ;;  %v7774_v56 = vsel %vm7713_vm6, %v3770_v55, %v3766_v3  ;;  %v9965_v5 = vand.u32 4294901760, %v9964_v38  ;;  %v248_v38 = vld [vmem:[%s5900_s15 + $0x288] sm:$0xff] }
 0x200   : > { %v4825_v17 = vmax.f32 %v7761_v62, %v7764_v31  ;;  %9963 = vst [vmem:[#allocation20_spill] sm:$0xff] %v7774_v56  ;;  %v3986_v0 = vsel %vm3971_vm2, %v7774_v56, -inf  ;;  %v4043_v18 = vsel %vm4028_vm4, %v7774_v56, -inf  ;;  %v3879_v42 = vmul.f32 %v7768_v7, %v7709_v24 }
 0x201   : > { %2481 = vmatpush.xpose.msrb.mxu0 %v9965_v5  ;;  %vm3884_vm1 = vweird.f32 %v7768_v7  ;;  %2526 = vmatpush.xpose.msrb.mxu1 %v9966_v40  ;;  %v5236_v52 = vmax.f32 %v5234_v48, %v5235_v23  ;;  %v3987_v14 = vrot.slane %v3986_v0, 4  ;;  %v4044_v3 = vrot.slane %v4043_v18, 4  ;;  %v9968_v40 = vld [vmem:[#allocation24_spill] sm:$0xff] }
 0x202   : > { %v4826_v55 = vrot.slane %v4825_v17, 4  ;;  %v3880_v5 = vsub.f32 1.0, %v3879_v42  ;;  %v9967_v1 = vand.u32 4294901760, %v7707_v33  ;;  %v9746_v28 = vand.u32 4294901760, %v7758_v15  ;;  %2668 = vmatpush.xpose.msrb.mxu3 %v2667_v11  ;;  %vm7814_vm6 = vmor %vm3883_vm7, %vm3884_vm1 }
 0x203   : > { %2571 = vmatpush.xpose.msrb.mxu2 %v7680_v16  ;;  %v5237_v12 = vrot.slane %v5236_v52, 2  ;;  %v3988_v47 = vmax.f32 %v3986_v0, %v3987_v14  ;;  %v4045_v54 = vmax.f32 %v4043_v18, %v4044_v3  ;;  %v9969_v48 = vand.u32 4294901760, %v9968_v40  ;;  %v9970_v16 = vld [vmem:[#allocation18_spill] sm:$0xff] }
 0x204   : > { %v2672_v56 = vsub.f32 %v7707_v33, %v9967_v1  ;;  %v4827_v53 = vmax.f32 %v4825_v17, %v4826_v55  ;;  %v3881_v23 = vmul.f32 %v7768_v7, %v3880_v5  ;;  %v2678_v1 = vsub.f32 %v7758_v15, %v9746_v28  ;;  %v9972_v5 = vld [vmem:[#allocation12_spill] sm:$0xff] }
 0x205   : > { %2485 = vmatpush.xpose.msrb.mxu0 %v9969_v48  ;;  %2528 = vmatpush.xpose.msrb.mxu1 %v9970_v16  ;;  %v548_v42 = vsel %vm297_vm0, %v248_v38, 0  ;;  %v5238_v33 = vmax.f32 %v5236_v52, %v5237_v12  ;;  %v3889_v0 = vand.u32 2147483648, %v7709_v24  ;;  %v3989_v18 = vrot.slane %v3988_v47, 2  ;;  %v247_v16 = vld [vmem:[%s5900_s15 + $0x280] sm:$0xff]  ;;  %v9975_v52 = vld [vmem:[#allocation27_spill] sm:$0xff]  ;;  %v9985_v12 = vld [vmem:[#allocation25_spill] sm:$0xff] }
 0x206   : > { %v2673_v51 = vand.u32 4294901760, %v2672_v56  ;;  %v4828_v17 = vrot.slane %v4827_v53, 2  ;;  %v4046_v55 = vrot.slane %v4045_v54, 2  ;;  %v3882_v14 = vadd.f32 %v7768_v7, %v3881_v23  ;;  %v9971_v56 = vld [vmem:[#allocation29_spill] sm:$0xff] }
 0x207   : > { %2573 = vmatpush.xpose.msrb.mxu2 %v7690_v36  ;;  %v7804_v3 = vand.u32 4294901760, %v548_v42  ;;  %v5239_v11 = vrot.slane %v5238_v33, 1  ;;  %v5410_v40 = vsel %vm4197_vm11, %v9972_v5, %v9971_v56  ;;  %v9976_v38 = vand.u32 4294901760, %v9975_v52  ;;  %v9979_v56 = vld [vmem:[#allocation19_spill] sm:$0xff]  ;;  %v1842_v52 = vpop.f32.mrf.mxu2 }
 0x208   : > { %v4829_v48 = vmax.f32 %v4827_v53, %v4828_v17  ;;  %v5418_v23 = vsel %vm4206_vm12, %v5410_v40, %v7637_v32  ;;  %vm7822_vm8 = vcmp.eq.f32.partialorder %v3887_v46, 8.507059e+37  ;;  %2674 = vmatpush.xpose.msrb.mxu3 %v2673_v51  ;;  %v2679_v53 = vand.u32 4294901760, %v2678_v1  ;;  %v7827_v17 = vpop.f32.mrf.mxu3 }
 0x209   : > { %2489 = vmatpush.xpose.msrb.mxu0 %v9976_v38  ;;  %2530 = vmatpush.xpose.msrb.mxu1 %v9979_v56  ;;  %v5240_v24 = vmax.f32 %v5238_v33, %v5239_v11  ;;  %v3890_v36 = vor.u32 1.1754944e-38, %v3889_v0  ;;  %v545_v38 = vsel %vm297_vm0, %v247_v16, 0  ;;  %v7831_v15 = vmax.f32 %v3988_v47, %v3989_v18 }
 0x20a   : > { %v4830_v5 = vrot.slane %v4829_v48, 1  ;;  %v7833_v32 = vmax.f32 %v4045_v54, %v4046_v55  ;;  %v3886_v46 = vsel %vm7814_vm6, %v7768_v7, %v3882_v14  ;;  %v7839_v51 = vsub.f32 %v548_v42, %v7804_v3  ;;  %v9981_v42 = vld [vmem:[#allocation21_spill] sm:$0xff] }
 0x20b   : > { %2575 = vmatpush.xpose.msrb.mxu2 %v7718_v57  ;;  %vm5290_vm9 = vcmp.eq.f32.partialorder %v7737_v34, %v5240_v24  ;;  %vm5298_vm10 = vcmp.eq.f32.partialorder %v7740_v39, %v5240_v24  ;;  %v7844_v33 = vsel %vm4215_vm13, %v5418_v23, %v5240_v24  ;;  %v9980_v47 = vand.u32 4294901760, %v7434_v6  ;;  %v9986_v23 = vld [vmem:[#allocation28_spill] sm:$0xff] }
 0x20c   : > { %v7846_v1 = vmax.f32 %v4829_v48, %v4830_v5  ;;  %v5306_v54 = vsel %vm5290_vm9, %v7034_v30, 16  ;;  %v5314_v0 = vsel %vm5298_vm10, %v7088_v50, 16  ;;  %v5434_v7 = vsel %vm3971_vm2, %v7844_v33, 0.0  ;;  %2680 = vmatpush.xpose.msrb.mxu3 %v2679_v53 }
 0x20d   : > { %2493 = vmatpush.xpose.msrb.mxu0 %v9980_v47  ;;  %2532 = vmatpush.xpose.msrb.mxu1 %v9981_v42  ;;  %v7855_v34 = vand.u32 4294901760, %v545_v38  ;;  %vm5322_vm14 = vcmp.lt.s32.totalorder %v5306_v54, %v5314_v0  ;;  %v5435_v39 = vrot.slane %v5434_v7, 4  ;;  %v7866_v14 = vsel %vm7822_vm8, %v3890_v36, %v3886_v46 }
 0x20e   : > { %vm4875_vm15 = vcmp.eq.f32.partialorder %v7761_v62, %v7846_v1  ;;  %vm4883_vm3 = vcmp.eq.f32.partialorder %v7764_v31, %v7846_v1  ;;  %v5323_v6 = vsel %vm5322_vm14, %v5306_v54, %v5314_v0  ;;  %9983 = vst [vmem:[#allocation22_spill] sm:$0xff] %v7866_v14  ;;  %v9984_v40 = vand.u32 4294901760, %v7439_v60 }
 0x20f   : > { %9982 = vst [vmem:[#allocation13_spill] sm:$0xff] %v7855_v34  ;;  %2577 = vmatpush.xpose.msrb.mxu2 %v7804_v3  ;;  %v4891_v18 = vsel %vm4875_vm15, %v7034_v30, 16  ;;  %v4899_v55 = vsel %vm4883_vm3, %v7088_v50, 16  ;;  %v5324_v16 = vrot.slane %v5323_v6, 4  ;;  %v5436_v11 = vadd.f32 %v5435_v39, %v5434_v7  ;;  %v1850_v39 = vpop.f32.mrf.mxu2 }
 0x210   : > { %vm4917_vm5 = vcmp.lt.s32.totalorder %v4891_v18, %v4899_v55  ;;  %v9754_v56 = vand.u32 4294901760, %v7839_v51  ;;  %v7874_v53 = vsub.f32 %v545_v38, %v7855_v34  ;;  %v4099_v36 = vsel %vm3971_vm2, %v7866_v14, -inf  ;;  %v1955_v38 = vpop.f32.mrf.mxu3 }
 0x211   : > { %2497 = vmatpush.xpose.msrb.mxu0 %v9984_v40  ;;  %v4918_v48 = vsel %vm4917_vm5, %v4891_v18, %v4899_v55  ;;  %2534 = vmatpush.xpose.msrb.mxu1 %v9985_v12  ;;  %v5437_v24 = vrot.slane %v5436_v11, 2  ;;  %v3991_v60 = vrot.slane %v7831_v15, 1  ;;  %v4048_v5 = vrot.slane %v7833_v32, 1  ;;  %v9990_v12 = vld [vmem:[#allocation26_spill] sm:$0xff] }
 0x212   : > { %v4919_v28 = vrot.slane %v4918_v48, 4  ;;  %v4100_v46 = vrot.slane %v4099_v36, 4  ;;  %v4155_v47 = vsel %vm4028_vm4, %v7866_v14, -inf  ;;  %v9987_v54 = vand.u32 4294901760, %v9986_v23 }
 0x213   : > { %2579 = vmatpush.xpose.msrb.mxu2 %v7855_v34  ;;  %vm7886_vm7 = vcmp.lt.s32.totalorder %v5323_v6, %v5324_v16  ;;  %v5438_v7 = vadd.f32 %v5437_v24, %v5436_v11  ;;  %v4156_v42 = vrot.slane %v4155_v47, 4  ;;  %v2684_v40 = vsub.f32 %v7839_v51, %v9754_v56  ;;  %v2009_v24 = vpop.f32.mrf.mxu0 }
 0x214   : > { %2499 = vmatmul.f32.vlgmr.msrb.gmra.mxu0 %v6217_v37  ;;  %vm4920_vm1 = vcmp.lt.s32.totalorder %v4918_v48, %v4919_v28  ;;  %v4101_v55 = vmax.f32 %v4099_v36, %v4100_v46  ;;  %v1952_v11 = vadd.f32 %v7827_v17, %v1842_v52  ;;  %v3992_v17 = vmax.f32 %v7831_v15, %v3991_v60 }
 0x215   : > { %2704 = vmatpush.xpose.msra.mxu0 %v9986_v23  ;;  %v4921_v18 = vsel %vm4920_vm1, %v4918_v48, %v4919_v28  ;;  %2536 = vmatpush.xpose.msrb.mxu1 %v9990_v12  ;;  %v2689_v23 = vand.u32 4294901760, %v7874_v53  ;;  %v4157_v34 = vmax.f32 %v4155_v47, %v4156_v42  ;;  %v5326_v48 = vsel %vm7886_vm7, %v5323_v6, %v5324_v16 }
 0x216   : > { %v4922_v14 = vrot.slane %v4921_v18, 2  ;;  %2585 = vmatmul.f32.vlgmr.msrb.gmra.mxu2 %v6264_v63  ;;  %v4102_v28 = vrot.slane %v4101_v55, 2  ;;  %v2685_v36 = vand.u32 4294901760, %v2684_v40  ;;  %v9991_v12 = vand.u32 4294901760, %v7445_v22 }
 0x217   : > { %2809 = vmatpush.xpose.msra.mxu2 %v9987_v54  ;;  %v5439_v54 = vrot.slane %v5438_v7, 1  ;;  %v2690_v46 = vsub.f32 %v7874_v53, %v2689_v23  ;;  %v4158_v52 = vrot.slane %v4157_v34, 2  ;;  %v4049_v42 = vmax.f32 %v7833_v32, %v4048_v5 }
 0x218   : > { %vm4923_vm6 = vcmp.lt.s32.totalorder %v4921_v18, %v4922_v14  ;;  %v4103_v0 = vmax.f32 %v4101_v55, %v4102_v28  ;;  %2686 = vmatpush.xpose.msrb.mxu3 %v2685_v36  ;;  %v5327_v16 = vrot.slane %v5326_v48, 2  ;;  %v9992_v15 = vand.u32 4294901760, %v7476_v21 }
 0x219   : > { %2707 = vmatpush.xpose.msra.mxu0 %v7445_v22  ;;  %v7905_v56 = vadd.f32 %v5439_v54, %v5438_v7  ;;  %v4924_v47 = vsel %vm4923_vm6, %v4921_v18, %v4922_v14  ;;  %v2691_v6 = vand.u32 4294901760, %v2690_v46  ;;  %2538 = vmatpush.xpose.msrb.mxu1 %v7418_v27  ;;  %v4159_v32 = vmax.f32 %v4157_v34, %v4158_v52  ;;  %v2053_v34 = vpop.f32.mrf.mxu1  ;;  %v2128_v54 = vpop.f32.mrf.mxu2 }
 0x21a   : > { %v4925_v22 = vrot.slane %v4924_v47, 1  ;;  %v4104_v7 = vrot.slane %v4103_v0, 1  ;;  %v2010_v14 = vadd.f32 %v2009_v24, %v1952_v11  ;;  %v4200_v27 = vsel %vm4197_vm11, %v3992_v17, %v4049_v42  ;;  %v2169_v5 = vpop.f32.mrf.mxu3 }
 0x21b   : > { %2813 = vmatpush.xpose.msra.mxu2 %v9991_v12  ;;  %5808 = vrcp.f32 %v7905_v56  ;;  %vm7918_vm9 = vcmp.lt.s32.totalorder %v5326_v48, %v5327_v16  ;;  %v1956_v40 = vadd.f32 %v1955_v38, %v1850_v39  ;;  %v9995_v24 = vand.u32 4294901760, %v7483_v8  ;;  %v2014_v46 = vpop.f32.mrf.mxu0 }
 0x21c   : > { %2503 = vmatmul.f32.gmra.mxu0 %v6266_v4  ;;  %2540 = vmatmul.f32.vlgmr.msrb.gmra.mxu1 %v6217_v37  ;;  %vm4926_vm8 = vcmp.lt.s32.totalorder %v4924_v47, %v4925_v22  ;;  %v4105_v60 = vmax.f32 %v4103_v0, %v4104_v7  ;;  %v2054_v36 = vadd.f32 %v2053_v34, %v2010_v14  ;;  %v9996_v0 = vand.u32 4294901760, %v7504_v41 }
 0x21d   : > { %2710 = vmatpush.xpose.msra.mxu0 %v7476_v21  ;;  %2762 = vmatpush.xpose.msra.mxu1 %v7400_v10  ;;  %v7922_v55 = vsel %vm4926_vm8, %v4924_v47, %v4925_v22  ;;  %v4160_v21 = vrot.slane %v4159_v32, 1  ;;  %v5329_v12 = vsel %vm7918_vm9, %v5326_v48, %v5327_v16  ;;  %v2015_v42 = vadd.f32 %v2014_v46, %v1956_v40 }
 0x21e   : > { %2692 = vmatpush.xpose.msrb.mxu3 %v2691_v6  ;;  %vm4995_vm10 = vcmp.eq.s32.totalorder %v7034_v30, %v7922_v55  ;;  %vm5003_vm14 = vcmp.eq.s32.totalorder %v7088_v50, %v7922_v55  ;;  %v4209_v11 = vsel %vm4206_vm12, %v4200_v27, %v4105_v60  ;;  %2593 = vmatmul.f32.gmra.mxu2 %v6310_v49  ;;  %v5330_v6 = vrot.slane %v5329_v12, 1 }
 0x21f   : > { %2817 = vmatpush.xpose.msra.mxu2 %v9992_v15  ;;  %v7935_v38 = vsel %vm4995_vm10, -1e+30, %v7761_v62  ;;  %v7938_v39 = vsel %vm5003_vm14, -1e+30, %v7764_v31  ;;  %v4161_v28 = vmax.f32 %v4159_v32, %v4160_v21  ;;  %v2129_v31 = vadd.f32 %v2128_v54, %v2054_v36 }
 0x220   : > { %v5033_v17 = vmax.f32 %v7935_v38, %v7938_v39  ;;  %v5501_v16 = vand.u32 2147483648, %v7905_v56  ;;  %v5499_v15 = vand.u32 2147483647, %v7905_v56  ;;  %vm5495_vm3 = vweird.f32 %v7905_v56 }
 0x221   : > { %2713 = vmatpush.xpose.msra.mxu0 %v7483_v8  ;;  %2764 = vmatpush.xpose.msra.mxu1 %v7425_v44  ;;  %v7952_v62 = vsel %vm4215_vm13, %v4209_v11, %v4161_v28  ;;  %v2170_v7 = vadd.f32 %v2169_v5, %v2129_v31  ;;  %v2132_v21 = vpop.f32.mrf.mxu2  ;;  %v9997_v40 = vand.u32 4294901760, %v7532_v9  ;;  %vm7971_vm5 = vcmp.lt.s32.totalorder %v5329_v12, %v5330_v6 }
 0x222   : > { %2880 = vmatpush.xpose.msra.mxu3 %v7400_v10  ;;  %v5809_v10 = vpop.eup %5808  ;;  %v5034_v47 = vrot.slane %v5033_v17, 4  ;;  %v4240_v48 = vsel %vm3971_vm2, %v7952_v62, -inf  ;;  %v2173_v11 = vpop.f32.mrf.mxu3  ;;  %vm5500_vm1 = vcmp.eq.f32.partialorder %v5499_v15, 8.507059e+37  ;;  %v10000_v31 = vand.u32 4294901760, %v7569_v25 }
 0x223   : > { %2821 = vmatpush.xpose.msra.mxu2 %v9995_v24  ;;  %2694 = vmatmul.f32.vlgmr.msrb.gmra.mxu3 %v6217_v37  ;;  %v5491_v8 = vmul.f32 %v5809_v10, %v7905_v56  ;;  %v4241_v22 = vrot.slane %v4240_v48, 4  ;;  %vm5496_vm15 = vweird.f32 %v5809_v10  ;;  %v5761_v27 = vmul.f32 -1.442695, %v2170_v7 }
 0x224   : > { %2544 = vmatmul.f32.gmra.mxu1 %v6266_v4  ;;  %v5035_v32 = vmax.f32 %v5033_v17, %v5034_v47  ;;  %vm5497_vm7 = vmor %vm5495_vm3, %vm5496_vm15  ;;  %vm5658_vm6 = vcmask 1044480   ;;  %vm9825_vm8 = vcmask 1045504   ;;  %vm9755_vm9 = vcmask 1046528  }
 0x225   : > { %2716 = vmatpush.xpose.msra.mxu0 %v7504_v41  ;;  %v5492_v52 = vsub.f32 1.0, %v5491_v8  ;;  %2766 = vmatpush.xpose.msra.mxu1 %v7448_v13  ;;  %v4242_v14 = vmax.f32 %v4240_v48, %v4241_v22  ;;  %v2059_v41 = vpop.f32.mrf.mxu1  ;;  %5810 = vpow2.f32 %v5761_v27  ;;  %v5626_v48 = vcvt.s32.f32 %v7542_v26 }
 0x226   : > { %2882 = vmatpush.xpose.msra.mxu3 %v7425_v44  ;;  %v5036_v5 = vrot.slane %v5035_v32, 2  ;;  %v2060_v18 = vadd.f32 %v2059_v41, %v2015_v42  ;;  %v10002_v7 = vand.u32 4294901760, %v7595_v35 }
 0x227   : > { %2825 = vmatpush.xpose.msra.mxu2 %v9996_v0  ;;  %v5493_v44 = vmul.f32 %v5809_v10, %v5492_v52  ;;  %v4243_v54 = vrot.slane %v4242_v14, 2  ;;  %v10001_v52 = vld [vmem:[#allocation23_spill] sm:$0xff]  ;;  %v5634_v0 = vcvt.s32.f32 %v7723_v45 }
 0x228   : > { %v2133_v24 = vadd.f32 %v2132_v21, %v2060_v18  ;;  %v5618_v47 = vcvt.s32.f32 %v10001_v52 }
 0x229   : > { %2719 = vmatpush.xpose.msra.mxu0 %v7532_v9  ;;  %v5494_v60 = vadd.f32 %v5809_v10, %v5493_v44  ;;  %2768 = vmatpush.xpose.msra.mxu1 %v7454_v59  ;;  %v5037_v9 = vmax.f32 %v5035_v32, %v5036_v5  ;;  %v4244_v36 = vmax.f32 %v4242_v14, %v4243_v54  ;;  %v10003_v5 = vand.u32 4294901760, %v7608_v43  ;;  %v10004_v54 = vld [vmem:[#allocation17_spill] sm:$0xff] }
 0x22a   : > { %2884 = vmatpush.xpose.msra.mxu3 %v7448_v13  ;;  %v5502_v13 = vor.u32 1.1754944e-38, %v5501_v16  ;;  %v2174_v17 = vadd.f32 %v2173_v11, %v2133_v24 }
 0x22b   : > { %2829 = vmatpush.xpose.msra.mxu2 %v9997_v40  ;;  %2698 = vmatmul.f32.gmra.mxu3 %v6266_v4  ;;  %v5498_v56 = vsel %vm5497_vm7, %v5809_v10, %v5494_v60  ;;  %v5038_v8 = vrot.slane %v5037_v9, 1  ;;  %v5332_v10 = vsel %vm7971_vm5, %v5329_v12, %v5330_v6  ;;  %v4245_v42 = vrot.slane %v4244_v36, 1  ;;  %v5811_v16 = vpop.eup %5810 }
 0x22c   : > { %v5503_v28 = vsel %vm5500_vm1, %v5502_v13, %v5498_v56  ;;  %v5642_v12 = vcvt.s32.f32 %v5332_v10  ;;  %v8013_v32 = vadd.f32 1.0, %v5811_v16  ;;  %v5411_v40 = vsel %vm4197_vm11, %v7653_v61, %v7846_v1  ;;  %v10007_v10 = vld [vmem:[#allocation30_spill] sm:$0xff] }
 0x22d   : > { %2722 = vmatpush.xpose.msra.mxu0 %v7569_v25  ;;  %v5504_v46 = vmul.f32 %v5503_v28, %v7844_v33  ;;  %2770 = vmatpush.xpose.msra.mxu1 %v7487_v19  ;;  %v5039_v33 = vmax.f32 %v5037_v9, %v5038_v8  ;;  %v4246_v22 = vmax.f32 %v4244_v36, %v4245_v42  ;;  %v5769_v25 = vmul.f32 -1.442695, %v2174_v17  ;;  %v10006_v8 = vld [vmem:[#allocation33_spill] sm:$0xff] }
 0x22e   : > { %2886 = vmatpush.xpose.msra.mxu3 %v7454_v59  ;;  %v3782_v56 = vand.u32 2147483647, %v8013_v32  ;;  %v3784_v61 = vand.u32 2147483648, %v8013_v32 }
 0x22f   : > { %2833 = vmatpush.xpose.msra.mxu2 %v10000_v31  ;;  %v5610_v59 = vmul.f32 2.5, %v5504_v46  ;;  %vm5083_vm10 = vcmp.eq.f32.partialorder %v7935_v38, %v5039_v33  ;;  %vm5091_vm14 = vcmp.eq.f32.partialorder %v7938_v39, %v5039_v33  ;;  %vm4284_vm15 = vcmp.eq.f32.partialorder %v7952_v62, %v4246_v22 }
 0x230   : > { %v5099_v26 = vsel %vm5083_vm10, %v7034_v30, 16  ;;  %v5107_v45 = vsel %vm5091_vm14, %v7088_v50, 16  ;;  %v4292_v15 = vsel %vm4284_vm15, %v7034_v30, 4  ;;  %5812 = vpow2.f32 %v5769_v25  ;;  %v10011_v25 = vld [vmem:[#allocation8_spill] sm:$0xff] }
 0x231   : > { %2725 = vmatpush.xpose.msra.mxu0 %v7595_v35  ;;  %v5650_v6 = vsel %vm3971_vm2, %v5610_v59, %v5618_v47  ;;  %2772 = vmatpush.xpose.msra.mxu1 %v7510_v20  ;;  %vm5125_vm3 = vcmp.lt.s32.totalorder %v5099_v26, %v5107_v45  ;;  %v4318_v41 = vsel %vm3971_vm2, %v4292_v15, 2147483647  ;;  %5814 = vrcp.f32 %v8013_v32 }
 0x232   : > { %2888 = vmatpush.xpose.msra.mxu3 %v7487_v19  ;;  %v5659_v19 = vsel %vm5658_vm6, %v5650_v6, %v5626_v48  ;;  %v5126_v27 = vsel %vm5125_vm3, %v5099_v26, %v5107_v45  ;;  %v4319_v60 = vrot.slane %v4318_v41, 4  ;;  %vm3778_vm14 = vweird.f32 %v8013_v32 }
 0x233   : > { %2837 = vmatpush.xpose.msra.mxu2 %v10002_v7  ;;  %v5668_v44 = vsel %vm9825_vm8, %v5659_v19, %v5634_v0  ;;  %v5127_v35 = vrot.slane %v5126_v27, 4  ;;  %vm8051_vm15 = vcmp.eq.f32.partialorder %v3782_v56, 8.507059e+37  ;;  %v3785_v59 = vor.u32 1.1754944e-38, %v3784_v61  ;;  %v277_v19 = vld [vmem:[%s5900_s15 + $0x370] sm:$0xff] }
 0x234   : > { %v5677_v14 = vsel %vm9755_vm9, %v5668_v44, %v5642_v12  ;;  %vm4320_vm7 = vcmp.lt.s32.totalorder %v4318_v41, %v4319_v60  ;;  %v10012_v12 = vld [vmem:[#allocation31_spill] sm:$0xff]  ;;  %v10015_v44 = vand.u32 4294901760, %v10011_v25 }
 0x235   : > { %2728 = vmatpush.xpose.msra.mxu0 %v7608_v43  ;;  %5685 = vst [vmem:[%s8003_s24] sm:$0xff] %v5677_v14  ;;  %2774 = vmatpush.xpose.msra.mxu1 %v7537_v58  ;;  %vm5128_vm5 = vcmp.lt.s32.totalorder %v5126_v27, %v5127_v35  ;;  %v4321_v21 = vsel %vm4320_vm7, %v4318_v41, %v4319_v60 }
 0x236   : > { %2890 = vmatpush.xpose.msra.mxu3 %v7510_v20  ;;  %v5129_v18 = vsel %vm5128_vm5, %v5126_v27, %v5127_v35  ;;  %v4322_v34 = vrot.slane %v4321_v21, 2  ;;  %v5813_v13 = vpop.eup %5812  ;;  %v8031_v43 = vsel %vm4206_vm12, %v5411_v40, %v5039_v33  ;;  %v10017_v40 = vld [vmem:[#allocation32_spill] sm:$0xff] }
 0x237   : > { %2841 = vmatpush.xpose.msra.mxu2 %v10003_v5  ;;  %v5130_v20 = vrot.slane %v5129_v18, 2  ;;  %v8037_v9 = vpop.eup %5814  ;;  %v8040_v1 = vadd.f32 1.0, %v5813_v13  ;;  %v10016_v5 = vld [vmem:[#allocation10_spill] sm:$0xff]  ;;  %v276_v13 = vld [vmem:[%s5900_s15 + $0x368] sm:$0xff] }
 0x238   : > { %vm4323_vm10 = vcmp.lt.s32.totalorder %v4321_v21, %v4322_v34  ;;  %v3774_v46 = vmul.f32 %v8037_v9, %v8013_v32  ;;  %vm3779_vm7 = vweird.f32 %v8037_v9 }
 0x239   : > { %2731 = vmatpush.xpose.msra.mxu0 %v7622_v2  ;;  %2776 = vmatpush.xpose.msra.mxu1 %v7580_v29  ;;  %vm5131_vm1 = vcmp.lt.s32.totalorder %v5129_v18, %v5130_v20  ;;  %v4324_v36 = vsel %vm4323_vm10, %v4321_v21, %v4322_v34  ;;  %5816 = vrcp.f32 %v8040_v1  ;;  %v3902_v48 = vand.u32 2147483647, %v8040_v1 }
 0x23a   : > { %2892 = vmatpush.xpose.msra.mxu3 %v7537_v58  ;;  %v10005_v58 = vand.u32 4294901760, %v7622_v2  ;;  %v5132_v24 = vsel %vm5131_vm1, %v5129_v18, %v5130_v20  ;;  %v278_v2 = vld [vmem:[%s5900_s15 + $0x378] sm:$0xff]  ;;  %v4325_v31 = vrot.slane %v4324_v36, 1  ;;  %v3775_v52 = vsub.f32 1.0, %v3774_v46 }
 0x23b   : > { %v5133_v17 = vrot.slane %v5132_v24, 1  ;;  %v638_v42 = vsel %vm297_vm0, %v278_v2, 0  ;;  %v3904_v22 = vand.u32 2147483648, %v8040_v1  ;;  %vm3898_vm9 = vweird.f32 %v8040_v1 }
 0x23c   : > { %2845 = vmatpush.xpose.msra.mxu2 %v10005_v58  ;;  %vm4326_vm5 = vcmp.lt.s32.totalorder %v4324_v36, %v4325_v31  ;;  %v3776_v16 = vmul.f32 %v8037_v9, %v3775_v52  ;;  %v8074_v6 = vand.u32 4294901760, %v638_v42  ;;  %v10018_v58 = vand.u32 4294901760, %v10016_v5  ;;  %v275_v52 = vld [vmem:[%s5900_s15 + $0x360] sm:$0xff] }
 0x23d   : > { %2734 = vmatpush.xpose.msra.mxu0 %v10006_v8  ;;  %2778 = vmatpush.xpose.msra.mxu1 %v10007_v10  ;;  %vm5134_vm3 = vcmp.lt.s32.totalorder %v5132_v24, %v5133_v17  ;;  %v8062_v33 = vsel %vm4326_vm5, %v4324_v36, %v4325_v31  ;;  %vm8085_vm5 = vcmp.eq.f32.partialorder %v3902_v48, 8.507059e+37  ;;  %v3905_v60 = vor.u32 1.1754944e-38, %v3904_v22  ;;  %v10019_v31 = vld [vmem:[#allocation11_spill] sm:$0xff] }
 0x23e   : > { %2894 = vmatpush.xpose.msra.mxu3 %v7580_v29  ;;  %v10010_v29 = vand.u32 4294901760, %v10006_v8  ;;  %v8060_v0 = vsel %vm5134_vm3, %v5132_v24, %v5133_v17  ;;  %vm4396_vm3 = vcmp.eq.s32.totalorder %v7034_v30, %v8062_v33  ;;  %v3777_v27 = vadd.f32 %v8037_v9, %v3776_v16 }
 0x23f   : > { %vm5203_vm1 = vcmp.eq.s32.totalorder %v7034_v30, %v8060_v0  ;;  %vm5211_vm10 = vcmp.eq.s32.totalorder %v7088_v50, %v8060_v0  ;;  %v5817_v15 = vpop.eup %5816  ;;  %v8120_v61 = vsub.f32 %v638_v42, %v8074_v6  ;;  %v10022_v42 = vld [vmem:[#allocation14_spill] sm:$0xff] }
 0x240   : > { %2849 = vmatpush.xpose.msra.mxu2 %v10010_v29  ;;  %v8078_v26 = vsel %vm5203_vm1, -1e+30, %v7935_v38  ;;  %v8081_v45 = vsel %vm5211_vm10, -1e+30, %v7938_v39  ;;  %v8095_v39 = vsel %vm4396_vm3, -1e+30, %v7952_v62  ;;  %vm3780_vm1 = vmor %vm3778_vm14, %vm3779_vm7  ;;  %v3894_v35 = vmul.f32 %v5817_v15, %v8040_v1 }
 0x241   : > { %2737 = vmatpush.xpose.msra.mxu0 %v10011_v25  ;;  %2780 = vmatpush.xpose.msra.mxu1 %v10012_v12  ;;  %v5241_v14 = vmax.f32 %v8078_v26, %v8081_v45  ;;  %v4424_v41 = vsel %vm3971_vm2, %v8095_v39, -inf  ;;  %v635_v62 = vsel %vm297_vm0, %v277_v19, 0  ;;  %v3781_v20 = vsel %vm3780_vm1, %v8037_v9, %v3777_v27 }
 0x242   : > { %2896 = vmatpush.xpose.msra.mxu3 %v10007_v10  ;;  %v4425_v21 = vrot.slane %v4424_v41, 4  ;;  %v8110_v34 = vand.u32 4294901760, %v635_v62  ;;  %v8115_v32 = vsel %vm8051_vm15, %v3785_v59, %v3781_v20  ;;  %v3895_v56 = vsub.f32 1.0, %v3894_v35 }
 0x243   : > { %v5242_v18 = vrot.slane %v5241_v14, 4  ;;  %vm3899_vm14 = vweird.f32 %v5817_v15  ;;  %v3993_v36 = vsel %vm3971_vm2, %v8115_v32, -inf  ;;  %v4050_v46 = vsel %vm4028_vm4, %v8115_v32, -inf }
 0x244   : > { %2853 = vmatpush.xpose.msra.mxu2 %v10015_v44  ;;  %v4426_v9 = vmax.f32 %v4424_v41, %v4425_v21  ;;  %v3994_v8 = vrot.slane %v3993_v36, 4  ;;  %v4051_v2 = vrot.slane %v4050_v46, 4  ;;  %v3896_v17 = vmul.f32 %v5817_v15, %v3895_v56  ;;  %vm8135_vm15 = vmor %vm3898_vm9, %vm3899_vm14 }
 0x245   : > { %2740 = vmatpush.xpose.msra.mxu0 %v10016_v5  ;;  %2782 = vmatpush.xpose.msra.mxu1 %v10017_v40  ;;  %v5243_v24 = vmax.f32 %v5241_v14, %v5242_v18  ;;  %v8129_v10 = vsel %vm297_vm0, %v276_v13, 0  ;;  %v9760_v59 = vand.u32 4294901760, %v8120_v61  ;;  %v8142_v16 = vsub.f32 %v635_v62, %v8110_v34  ;;  %v10024_v13 = vld [vmem:[#allocation16_spill] sm:$0xff] }
 0x246   : > { %2898 = vmatpush.xpose.msra.mxu3 %v10012_v12  ;;  %v4427_v48 = vrot.slane %v4426_v9, 2  ;;  %v3995_v22 = vmax.f32 %v3993_v36, %v3994_v8  ;;  %v4052_v25 = vmax.f32 %v4050_v46, %v4051_v2  ;;  %v3897_v12 = vadd.f32 %v5817_v15, %v3896_v17 }
 0x247   : > { %v5244_v47 = vrot.slane %v5243_v24, 2  ;;  %v10023_v19 = vand.u32 4294901760, %v10019_v31  ;;  %v8147_v44 = vsel %vm297_vm0, %v275_v52, 0  ;;  %v8150_v27 = vand.u32 4294901760, %v8129_v10 }
 0x248   : > { %2857 = vmatpush.xpose.msra.mxu2 %v10018_v58  ;;  %v4428_v14 = vmax.f32 %v4426_v9, %v4427_v48  ;;  %v8155_v41 = vsub.f32 %v8120_v61, %v9760_v59  ;;  %v3996_v35 = vrot.slane %v3995_v22, 2  ;;  %v4053_v5 = vrot.slane %v4052_v25, 2 }
 0x249   : > { %2743 = vmatpush.xpose.msra.mxu0 %v10019_v31  ;;  %2784 = vmatpush.xpose.msra.mxu1 %v10022_v42  ;;  %v5245_v1 = vmax.f32 %v5243_v24, %v5244_v47  ;;  %v3901_v62 = vsel %vm8135_vm15, %v5817_v15, %v3897_v12  ;;  %v9759_v18 = vand.u32 4294901760, %v8142_v16  ;;  %v8168_v56 = vand.u32 4294901760, %v8147_v44 }
 0x24a   : > { %2900 = vmatpush.xpose.msra.mxu3 %v10017_v40  ;;  %v4429_v20 = vrot.slane %v4428_v14, 1  ;;  %v8164_v40 = vsel %vm8085_vm5, %v3905_v60, %v3901_v62  ;;  %v3997_v58 = vmax.f32 %v3995_v22, %v3996_v35  ;;  %v4054_v24 = vmax.f32 %v4052_v25, %v4053_v5 }
 0x24b   : > { %v5246_v21 = vrot.slane %v5245_v1, 1  ;;  %v4106_v15 = vsel %vm3971_vm2, %v8164_v40, -inf  ;;  %v4162_v9 = vsel %vm4028_vm4, %v8164_v40, -inf  ;;  %v10025_v36 = vand.u32 4294901760, %v7839_v51 }
 0x24c   : > { %2861 = vmatpush.xpose.msra.mxu2 %v10023_v19  ;;  %v4430_v7 = vmax.f32 %v4428_v14, %v4429_v20  ;;  %v4107_v60 = vrot.slane %v4106_v15, 4  ;;  %v2973_v8 = vand.u32 4294901760, %v8155_v41  ;;  %v3998_v2 = vrot.slane %v3997_v58, 1  ;;  %v274_v41 = vld [vmem:[%s5900_s15 + $0x358] sm:$0xff] }
 0x24d   : > { %2746 = vmatpush.xpose.msra.mxu0 %v7839_v51  ;;  %2786 = vmatpush.xpose.msra.mxu1 %v10024_v13  ;;  %v5247_v46 = vmax.f32 %v5245_v1, %v5246_v21  ;;  %v4055_v17 = vrot.slane %v4054_v24, 1  ;;  %v4163_v31 = vrot.slane %v4162_v9, 4  ;;  %v8182_v52 = vsub.f32 %v8142_v16, %v9759_v18 }
 0x24e   : > { %2902 = vmatpush.xpose.msra.mxu3 %v10022_v42  ;;  %vm4468_vm10 = vcmp.eq.f32.partialorder %v8095_v39, %v4430_v7  ;;  %v10026_v39 = vld [vmem:[#allocation2_spill] sm:$0xff]  ;;  %v4108_v19 = vmax.f32 %v4106_v15, %v4107_v60  ;;  %v626_v15 = vsel %vm297_vm0, %v274_v41, 0  ;;  %v10027_v7 = vld [vmem:[#allocation13_spill] sm:$0xff] }
 0x24f   : > { %vm5291_vm9 = vcmp.eq.f32.partialorder %v8078_v26, %v5247_v46  ;;  %vm5299_vm7 = vcmp.eq.f32.partialorder %v8081_v45, %v5247_v46  ;;  %v8188_v51 = vsel %vm4215_vm13, %v8031_v43, %v5247_v46  ;;  %v4476_v42 = vsel %vm4468_vm10, %v7034_v30, 4 }
 0x250   : > { %2865 = vmatpush.xpose.msra.mxu2 %v10025_v36  ;;  %v5307_v47 = vsel %vm5291_vm9, %v7034_v30, 16  ;;  %v5315_v48 = vsel %vm5299_vm7, %v7088_v50, 16  ;;  %v5441_v29 = vsel %vm3971_vm2, %v8188_v51, 0.0  ;;  %v4502_v26 = vsel %vm3971_vm2, %v4476_v42, 2147483647 }
 0x251   : > { %2749 = vmatpush.xpose.msra.mxu0 %v7874_v53  ;;  %2788 = vmatpush.xpose.msra.mxu1 %v7718_v57  ;;  %vm5333_vm3 = vcmp.lt.s32.totalorder %v5307_v47, %v5315_v48  ;;  %v5442_v43 = vrot.slane %v5441_v29, 4  ;;  %v3999_v45 = vmax.f32 %v3997_v58, %v3998_v2  ;;  %v4503_v25 = vrot.slane %v4502_v26, 4 }
 0x252   : > { %2904 = vmatpush.xpose.msra.mxu3 %v10024_v13  ;;  %v5334_v22 = vsel %vm5333_vm3, %v5307_v47, %v5315_v48  ;;  %v4056_v12 = vmax.f32 %v4054_v24, %v4055_v17  ;;  %v4164_v53 = vmax.f32 %v4162_v9, %v4163_v31  ;;  %v4109_v5 = vrot.slane %v4108_v19, 2  ;;  %v273_v13 = vld [vmem:[%s5900_s15 + $0x350] sm:$0xff]  ;;  %v10028_v48 = vld [vmem:[#allocation5_spill] sm:$0xff] }
 0x253   : > { %v5335_v1 = vrot.slane %v5334_v22, 4  ;;  %v5443_v14 = vadd.f32 %v5442_v43, %v5441_v29  ;;  %vm4504_vm5 = vcmp.lt.s32.totalorder %v4502_v26, %v4503_v25  ;;  %v8223_v17 = vsub.f32 %v8147_v44, %v8168_v56 }
 0x254   : > { %2869 = vmatpush.xpose.msra.mxu2 %v2689_v23  ;;  %2752 = vmatmul.f32.vlgmr.msra.gmra.mxu0 %v10026_v39  ;;  %v8208_v23 = vsub.f32 %v8129_v10, %v8150_v27  ;;  %v4201_v35 = vsel %vm4197_vm11, %v3999_v45, %v4056_v12  ;;  %v4505_v21 = vsel %vm4504_vm5, %v4502_v26, %v4503_v25  ;;  %v4165_v20 = vrot.slane %v4164_v53, 2 }
 0x255   : > { %2921 = vmatpush.xpose.msrb.mxu0 %v8074_v6  ;;  %2790 = vmatpush.xpose.msra.mxu1 %v7804_v3  ;;  %vm5336_vm1 = vcmp.lt.s32.totalorder %v5334_v22, %v5335_v1  ;;  %v5444_v62 = vrot.slane %v5443_v14, 2  ;;  %v4506_v24 = vrot.slane %v4505_v21, 2  ;;  %v4110_v10 = vmax.f32 %v4108_v19, %v4109_v5 }
 0x256   : > { %2906 = vmatpush.xpose.msra.mxu3 %v7718_v57  ;;  %v2979_v57 = vand.u32 4294901760, %v8182_v52  ;;  %v5337_v58 = vsel %vm5336_vm1, %v5334_v22, %v5335_v1  ;;  %v4166_v46 = vmax.f32 %v4164_v53, %v4165_v20  ;;  %v9758_v60 = vand.u32 4294901760, %v8208_v23 }
 0x257   : > { %2871 = vmatmul.f32.vlgmr.msra.gmra.mxu2 %v6217_v37  ;;  %v5338_v9 = vrot.slane %v5337_v58, 2  ;;  %v5445_v36 = vadd.f32 %v5444_v62, %v5443_v14  ;;  %vm4507_vm14 = vcmp.lt.s32.totalorder %v4505_v21, %v4506_v24  ;;  %v4111_v2 = vrot.slane %v4110_v10, 1  ;;  %v10030_v14 = vld [vmem:[#allocation7_spill] sm:$0xff] }
 0x258   : > { %3076 = vmatpush.xpose.msrb.mxu2 %v8120_v61  ;;  %v4508_v52 = vsel %vm4507_vm14, %v4505_v21, %v4506_v24  ;;  %v4167_v47 = vrot.slane %v4166_v46, 1  ;;  %v2984_v44 = vsub.f32 %v8208_v23, %v9758_v60  ;;  %v8237_v25 = vand.u32 4294901760, %v626_v15  ;;  %v272_v62 = vld [vmem:[%s5900_s15 + $0x348] sm:$0xff] }
 0x259   : > { %2923 = vmatpush.xpose.msrb.mxu0 %v8110_v34  ;;  %2792 = vmatpush.xpose.msra.mxu1 %v10027_v7  ;;  %vm5339_vm15 = vcmp.lt.s32.totalorder %v5337_v58, %v5338_v9  ;;  %v5446_v31 = vrot.slane %v5445_v36, 1  ;;  %v4509_v42 = vrot.slane %v4508_v52, 1  ;;  %v4112_v43 = vmax.f32 %v4110_v10, %v4111_v2 }
 0x25a   : > { %2908 = vmatpush.xpose.msra.mxu3 %v7804_v3  ;;  %v623_v3 = vsel %vm297_vm0, %v273_v13, 0  ;;  %v5340_v29 = vsel %vm5339_vm15, %v5337_v58, %v5338_v9  ;;  %v4168_v22 = vmax.f32 %v4166_v46, %v4167_v47  ;;  %v2985_v19 = vand.u32 4294901760, %v2984_v44  ;;  %v271_v9 = vld [vmem:[%s5900_s15 + $0x340] sm:$0xff] }
 0x25b   : > { %v5341_v26 = vrot.slane %v5340_v29, 1  ;;  %v8233_v45 = vadd.f32 %v5446_v31, %v5445_v36  ;;  %vm4510_vm9 = vcmp.lt.s32.totalorder %v4508_v52, %v4509_v42  ;;  %v4210_v12 = vsel %vm4206_vm12, %v4201_v35, %v4112_v43  ;;  %v10032_v35 = vld [vmem:[#allocation9_spill] sm:$0xff]  ;;  %v10033_v36 = vld [vmem:[#allocation20_spill] sm:$0xff]  ;;  %v10035_v47 = vld [vmem:[#allocation6_spill] sm:$0xff] }
 0x25c   : > { %3079 = vmatpush.xpose.msrb.mxu2 %v8142_v16  ;;  %2757 = vmatmul.f32.gmra.mxu0 %v10028_v48  ;;  %v9757_v1 = vand.u32 4294901760, %v8223_v17  ;;  %vm4380_vm10 = vcmp.eq.s32.totalorder %v10030_v14, %v8062_v33  ;;  %v8247_v53 = vand.u32 4294901760, %v623_v3  ;;  %vm4388_vm3 = vcmp.eq.s32.totalorder %v10032_v35, %v8062_v33 }
 0x25d   : > { %2925 = vmatpush.xpose.msrb.mxu0 %v8150_v27  ;;  %2974 = vmatpush.xpose.msrb.mxu1 %v2973_v8  ;;  %v10029_v8 = vld [vmem:[#allocation3_spill] sm:$0xff]  ;;  %vm5342_vm7 = vcmp.lt.s32.totalorder %v5340_v29, %v5341_v26  ;;  %5818 = vrcp.f32 %v8233_v45  ;;  %v4511_v5 = vsel %vm4510_vm9, %v4508_v52, %v4509_v42  ;;  %v5514_v21 = vand.u32 2147483647, %v8233_v45  ;;  %v10034_v52 = vld [vmem:[#allocation22_spill] sm:$0xff] }
 0x25e   : > { %2910 = vmatpush.xpose.msra.mxu3 %v10027_v7  ;;  %2796 = vmatmul.f32.vlgmr.msra.gmra.mxu1 %v10029_v8  ;;  %10031 = vst [vmem:[#allocation15_spill] sm:$0xff] %v8247_v53  ;;  %v8249_v41 = vsel %vm5342_vm7, %v5340_v29, %v5341_v26  ;;  %v5516_v20 = vand.u32 2147483648, %v8233_v45  ;;  %vm4564_vm5 = vcmp.eq.s32.totalorder %v10030_v14, %v4511_v5  ;;  %v620_v2 = vsel %vm297_vm0, %v272_v62, 0 }
 0x25f   : > { %2875 = vmatmul.f32.gmra.mxu2 %v6266_v4  ;;  %vm4572_vm1 = vcmp.eq.s32.totalorder %v10032_v35, %v4511_v5  ;;  %vm4580_vm14 = vmor %vm4380_vm10, %vm4564_vm5  ;;  %v2990_v24 = vsub.f32 %v8223_v17, %v9757_v1  ;;  %v8273_v10 = vsub.f32 %v626_v15, %v8237_v25  ;;  %v8284_v31 = vsub.f32 %v623_v3, %v8247_v53 }
 0x260   : > { %3082 = vmatpush.xpose.msrb.mxu2 %v8208_v23  ;;  %vm4588_vm15 = vmor %vm4388_vm3, %vm4572_vm1  ;;  %v8280_v46 = vsel %vm4580_vm14, %v10033_v36, 0.0  ;;  %vm5510_vm9 = vweird.f32 %v8233_v45  ;;  %v8292_v33 = vand.u32 4294901760, %v620_v2  ;;  %v617_v26 = vsel %vm297_vm0, %v271_v9, 0 }
 0x261   : > { %2927 = vmatpush.xpose.msrb.mxu0 %v8168_v56  ;;  %2980 = vmatpush.xpose.msrb.mxu1 %v2979_v57  ;;  %v8254_v57 = vsel %vm4215_vm13, %v4210_v12, %v4168_v22  ;;  %v8288_v15 = vsel %vm4588_vm15, %v10034_v52, 0.0  ;;  %v2991_v29 = vand.u32 4294901760, %v2990_v24  ;;  %v9756_v42 = vand.u32 4294901760, %v8273_v10  ;;  %v270_v12 = vld [vmem:[%s5900_s15 + $0x338] sm:$0xff] }
 0x262   : > { %3134 = vmatpush.xpose.msrb.mxu3 %v8074_v6  ;;  %v4247_v58 = vsel %vm3971_vm2, %v8254_v57, -inf  ;;  %10036 = vst [vmem:[#allocation24_spill] sm:$0xff] %v8292_v33  ;;  %v4624_v44 = vmax.f32 %v8280_v46, %v8288_v15  ;;  %v9761_v22 = vand.u32 4294901760, %v8284_v31  ;;  %vm8302_vm10 = vcmp.eq.f32.partialorder %v5514_v21, 8.507059e+37 }
 0x263   : > { %2912 = vmatmul.f32.vlgmr.msra.gmra.mxu3 %v6217_v37  ;;  %v4248_v7 = vrot.slane %v4247_v58, 4  ;;  %v5819_v43 = vpop.eup %5818  ;;  %v2996_v62 = vsub.f32 %v8273_v10, %v9756_v42  ;;  %v8317_v36 = vsub.f32 %v620_v2, %v8292_v33  ;;  %v614_v42 = vsel %vm297_vm0, %v270_v12, 0 }
 0x264   : > { %3085 = vmatpush.xpose.msrb.mxu2 %v8223_v17  ;;  %vm5511_vm7 = vweird.f32 %v5819_v43  ;;  %v4625_v24 = vrot.slane %v4624_v44, 4  ;;  %v3002_v21 = vsub.f32 %v8284_v31, %v9761_v22  ;;  %v8326_v13 = vand.u32 4294901760, %v614_v42  ;;  %v268_v22 = vld [vmem:[%s5900_s15 + $0x328] sm:$0xff] }
 0x265   : > { %2929 = vmatpush.xpose.msrb.mxu0 %v8237_v25  ;;  %2986 = vmatpush.xpose.msrb.mxu1 %v2985_v19  ;;  %v4249_v3 = vmax.f32 %v4247_v58, %v4248_v7  ;;  %v5506_v19 = vmul.f32 %v5819_v43, %v8233_v45  ;;  %v8310_v58 = vand.u32 4294901760, %v617_v26  ;;  %v269_v7 = vld [vmem:[%s5900_s15 + $0x330] sm:$0xff]  ;;  %vm5512_vm3 = vmor %vm5510_vm9, %vm5511_vm7  ;;  %vm10054_vm7 = vcmask 1046528  }
 0x266   : > { %3136 = vmatpush.xpose.msrb.mxu3 %v8110_v34  ;;  %2802 = vmatmul.f32.gmra.mxu1 %v10035_v47  ;;  %v4626_v60 = vmax.f32 %v4624_v44, %v4625_v24  ;;  %v3003_v59 = vand.u32 4294901760, %v3002_v21  ;;  %10040 = vst [vmem:[#allocation29_spill] sm:$0xff] %v8326_v13  ;;  %v8336_v24 = vsub.f32 %v614_v42, %v8326_v13  ;;  %v5517_v42 = vor.u32 1.1754944e-38, %v5516_v20 }
 0x267   : > { %10039 = vst [vmem:[#allocation18_spill] sm:$0xff] %v8310_v58  ;;  %v4250_v9 = vrot.slane %v4249_v3, 2  ;;  %v5507_v52 = vsub.f32 1.0, %v5506_v19  ;;  %v8323_v1 = vsub.f32 %v617_v26, %v8310_v58  ;;  %v9762_v19 = vand.u32 4294901760, %v8317_v36 }
 0x268   : > { %3088 = vmatpush.xpose.msrb.mxu2 %v8273_v10  ;;  %v4627_v26 = vrot.slane %v4626_v60, 2  ;;  %10042 = vst [vmem:[#allocation27_spill] sm:$0xff] %v8336_v24  ;;  %v9767_v38 = vand.u32 4294901760, %v8336_v24 }
 0x269   : > { %2931 = vmatpush.xpose.msrb.mxu0 %v8247_v53  ;;  %2992 = vmatpush.xpose.msrb.mxu1 %v2991_v29  ;;  %v2997_v29 = vand.u32 4294901760, %v2996_v62  ;;  %v4251_v18 = vmax.f32 %v4249_v3, %v4250_v9  ;;  %v5508_v2 = vmul.f32 %v5819_v43, %v5507_v52  ;;  %v611_v62 = vsel %vm297_vm0, %v269_v7, 0 }
 0x26a   : > { %3138 = vmatpush.xpose.msrb.mxu3 %v8150_v27  ;;  %v9763_v12 = vand.u32 4294901760, %v8323_v1  ;;  %v8333_v3 = vand.u32 4294901760, %v611_v62  ;;  %v3008_v21 = vsub.f32 %v8317_v36, %v9762_v19  ;;  %v608_v52 = vsel %vm297_vm0, %v268_v22, 0  ;;  %v267_v19 = vld [vmem:[%s5900_s15 + $0x320] sm:$0xff] }
 0x26b   : > { %2916 = vmatmul.f32.gmra.mxu3 %v6266_v4  ;;  %v4252_v44 = vrot.slane %v4251_v18, 1  ;;  %v5509_v9 = vadd.f32 %v5819_v43, %v5508_v2  ;;  %v3020_v45 = vsub.f32 %v8336_v24, %v9767_v38  ;;  %v2214_v38 = vpop.f32.mrf.mxu0 }
 0x26c   : > { %3091 = vmatpush.xpose.msrb.mxu2 %v8284_v31  ;;  %10041 = vst [vmem:[#allocation12_spill] sm:$0xff] %v8333_v3  ;;  %v3014_v7 = vsub.f32 %v8323_v1, %v9763_v12  ;;  %v3009_v22 = vand.u32 4294901760, %v3008_v21  ;;  %v8355_v12 = vand.u32 4294901760, %v608_v52  ;;  %v8358_v11 = vsub.f32 %v611_v62, %v8333_v3 }
 0x26d   : > { %2933 = vmatpush.xpose.msrb.mxu0 %v8292_v33  ;;  %2998 = vmatpush.xpose.msrb.mxu1 %v2997_v29  ;;  %v4628_v29 = vmax.f32 %v4626_v60, %v4627_v26  ;;  %v4253_v2 = vmax.f32 %v4251_v18, %v4252_v44  ;;  %v5513_v28 = vsel %vm5512_vm3, %v5819_v43, %v5509_v9  ;;  %v605_v62 = vsel %vm297_vm0, %v267_v19, 0  ;;  %v266_v26 = vld [vmem:[%s5900_s15 + $0x318] sm:$0xff] }
 0x26e   : > { %3140 = vmatpush.xpose.msrb.mxu3 %v8168_v56  ;;  %10043 = vst [vmem:[#allocation19_spill] sm:$0xff] %v8355_v12  ;;  %v5518_v60 = vsel %vm8302_vm10, %v5517_v42, %v5513_v28  ;;  %v3015_v43 = vand.u32 4294901760, %v3014_v7  ;;  %v8375_v5 = vand.u32 4294901760, %v605_v62  ;;  %v9764_v9 = vand.u32 4294901760, %v8358_v11 }
 0x26f   : > { %10044 = vst [vmem:[#allocation21_spill] sm:$0xff] %v8358_v11  ;;  %v4629_v18 = vrot.slane %v4628_v29, 1  ;;  %vm4285_vm5 = vcmp.eq.f32.partialorder %v8254_v57, %v4253_v2  ;;  %v5519_v20 = vmul.f32 %v5518_v60, %v8188_v51  ;;  %v3021_v7 = vand.u32 4294901760, %v3020_v45 }
 0x270   : > { %3094 = vmatpush.xpose.msrb.mxu2 %v8317_v36  ;;  %10046 = vst [vmem:[#allocation28_spill] sm:$0xff] %v8375_v5  ;;  %v8380_v19 = vsub.f32 %v608_v52, %v8355_v12  ;;  %v602_v42 = vsel %vm297_vm0, %v266_v26, 0  ;;  %v10049_v2 = vcvt.s32.f32 %v10004_v54  ;;  %v10050_v45 = vcvt.s32.f32 %v7922_v55 }
 0x271   : > { %2935 = vmatpush.xpose.msrb.mxu0 %v8310_v58  ;;  %3004 = vmatpush.xpose.msrb.mxu1 %v3003_v59  ;;  %v4293_v59 = vsel %vm4285_vm5, %v7034_v30, 4  ;;  %v8371_v44 = vmax.f32 %v4628_v29, %v4629_v18  ;;  %v5611_v51 = vmul.f32 2.5, %v5519_v20  ;;  %v8388_v29 = vsub.f32 %v605_v62, %v8375_v5  ;;  %v265_v18 = vld [vmem:[%s5900_s15 + $0x310] sm:$0xff] }
 0x272   : > { %3142 = vmatpush.xpose.msrb.mxu3 %v8237_v25  ;;  %v4328_v28 = vsel %vm3971_vm2, %v4293_v59, 2147483647  ;;  %10047 = vst [vmem:[#allocation26_spill] sm:$0xff] %v8380_v19  ;;  %v3026_v54 = vsub.f32 %v8358_v11, %v9764_v9  ;;  %v10051_v62 = vcvt.s32.f32 %v8060_v0  ;;  %v8408_v55 = vand.u32 4294901760, %v602_v42  ;;  %v264_v0 = vld [vmem:[%s5900_s15 + $0x308] sm:$0xff] }
 0x273   : > { %10045 = vst [vmem:[#allocation25_spill] sm:$0xff] %v8371_v44  ;;  %v4329_v21 = vrot.slane %v4328_v28, 4  ;;  %vm4668_vm1 = vcmp.eq.f32.partialorder %v8280_v46, %v8371_v44  ;;  %vm4676_vm14 = vcmp.eq.f32.partialorder %v8288_v15, %v8371_v44  ;;  %v5651_v60 = vsel %vm3971_vm2, %v5611_v51, %v10049_v2 }
 0x274   : > { %3097 = vmatpush.xpose.msrb.mxu2 %v8323_v1  ;;  %10048 = vst [vmem:[#allocation23_spill] sm:$0xff] %v8388_v29  ;;  %v4692_v52 = vsel %vm4676_vm14, %v7088_v50, 16  ;;  %v5660_v20 = vsel %vm5658_vm6, %v5651_v60, %v10050_v45  ;;  %v10053_v60 = vcvt.s32.f32 %v8249_v41  ;;  %v9766_v45 = vand.u32 4294901760, %v8380_v19 }
 0x275   : > { %2937 = vmatpush.xpose.msrb.mxu0 %v8326_v13  ;;  %3010 = vmatpush.xpose.msrb.mxu1 %v3009_v22  ;;  %v4684_v22 = vsel %vm4668_vm1, %v7034_v30, 16  ;;  %vm4330_vm15 = vcmp.lt.s32.totalorder %v4328_v28, %v4329_v21  ;;  %v5669_v26 = vsel %vm9825_vm8, %v5660_v20, %v10051_v62  ;;  %10052 = vst [vmem:[#allocation17_spill] sm:$0xff] %v8408_v55  ;;  %v599_v9 = vsel %vm297_vm0, %v265_v18, 0 }
 0x276   : > { %3144 = vmatpush.xpose.msrb.mxu3 %v8247_v53  ;;  %vm4720_vm9 = vcmp.lt.s32.totalorder %v4684_v22, %v4692_v52  ;;  %v4331_v59 = vsel %vm4330_vm15, %v4328_v28, %v4329_v21  ;;  %v5678_v28 = vsel %vm10054_vm7, %v5669_v26, %v10053_v60  ;;  %v8420_v41 = vand.u32 4294901760, %v599_v9  ;;  %v263_v26 = vld [vmem:[%s5900_s15 + $0x300] sm:$0xff]  ;;  %v2425_v53 = vpop.f32.mrf.mxu3 }
 0x277   : > { %v4721_v51 = vsel %vm4720_vm9, %v4684_v22, %v4692_v52  ;;  %v4332_v2 = vrot.slane %v4331_v59, 2  ;;  %5686 = vst [vmem:[%s8003_s24 + $0x8] sm:$0xff] %v5678_v28  ;;  %v9765_v22 = vand.u32 4294901760, %v8388_v29  ;;  %v8424_v18 = vsub.f32 %v602_v42, %v8408_v55 }
 0x278   : > { %3100 = vmatpush.xpose.msrb.mxu2 %v8336_v24  ;;  %v4722_v21 = vrot.slane %v4721_v51, 4  ;;  %v596_v62 = vsel %vm297_vm0, %v264_v0, 0  ;;  %v3027_v28 = vand.u32 4294901760, %v3026_v54  ;;  %v593_v54 = vsel %vm297_vm0, %v263_v26, 0 }
 0x279   : > { %2939 = vmatpush.xpose.msrb.mxu0 %v8333_v3  ;;  %3016 = vmatpush.xpose.msrb.mxu1 %v3015_v43  ;;  %vm4333_vm10 = vcmp.lt.s32.totalorder %v4331_v59, %v4332_v2  ;;  %10055 = vst [vmem:[#allocation33_spill] sm:$0xff] %v8424_v18  ;;  %v8446_v0 = vsub.f32 %v599_v9, %v8420_v41  ;;  %v8455_v26 = vand.u32 4294901760, %v593_v54 }
 0x27a   : > { %3146 = vmatpush.xpose.msrb.mxu3 %v8292_v33  ;;  %vm4723_vm3 = vcmp.lt.s32.totalorder %v4721_v51, %v4722_v21  ;;  %v4334_v43 = vsel %vm4333_vm10, %v4331_v59, %v4332_v2  ;;  %v3032_v59 = vsub.f32 %v8380_v19, %v9766_v45 }
 0x27b   : > { %v4724_v52 = vsel %vm4723_vm3, %v4721_v51, %v4722_v21  ;;  %v4335_v20 = vrot.slane %v4334_v43, 1  ;;  %v8438_v51 = vand.u32 4294901760, %v596_v62  ;;  %10057 = vst [vmem:[#allocation8_spill] sm:$0xff] %v8446_v0 }
 0x27c   : > { %3103 = vmatpush.xpose.msrb.mxu2 %v8358_v11  ;;  %v4725_v60 = vrot.slane %v4724_v52, 2  ;;  %v3033_v45 = vand.u32 4294901760, %v3032_v59 }
 0x27d   : > { %2941 = vmatpush.xpose.msrb.mxu0 %v8355_v12  ;;  %3022 = vmatpush.xpose.msrb.mxu1 %v3021_v7  ;;  %vm4336_vm5 = vcmp.lt.s32.totalorder %v4334_v43, %v4335_v20  ;;  %v3038_v7 = vsub.f32 %v8388_v29, %v9765_v22  ;;  %10056 = vst [vmem:[#allocation30_spill] sm:$0xff] %v8438_v51 }
 0x27e   : > { %3148 = vmatpush.xpose.msrb.mxu3 %v8310_v58  ;;  %vm4726_vm1 = vcmp.lt.s32.totalorder %v4724_v52, %v4725_v60  ;;  %v8435_v42 = vsel %vm4336_vm5, %v4334_v43, %v4335_v20  ;;  %v294_v43 = vld [vmem:[%s5900_s15 + $0x3f8] sm:$0xff] }
 0x27f   : > { %v4727_v2 = vsel %vm4726_vm1, %v4724_v52, %v4725_v60  ;;  %vm4397_vm14 = vcmp.eq.s32.totalorder %v7034_v30, %v8435_v42  ;;  %v293_v60 = vld [vmem:[%s5900_s15 + $0x3f0] sm:$0xff]  ;;  %v3039_v21 = vand.u32 4294901760, %v3038_v7 }
 0x280   : > { %3106 = vmatpush.xpose.msrb.mxu2 %v8380_v19  ;;  %v4728_v20 = vrot.slane %v4727_v2, 1  ;;  %v8450_v22 = vsel %vm4397_vm14, -1e+30, %v8254_v57  ;;  %v686_v57 = vsel %vm297_vm0, %v294_v43, 0  ;;  %v292_v43 = vld [vmem:[%s5900_s15 + $0x3e8] sm:$0xff]  ;;  %vm4381_vm14 = vcmp.eq.s32.totalorder %v10030_v14, %v8435_v42 }
 0x281   : > { %2943 = vmatpush.xpose.msrb.mxu0 %v8375_v5  ;;  %3028 = vmatpush.xpose.msrb.mxu1 %v3027_v28  ;;  %v4431_v52 = vsel %vm3971_vm2, %v8450_v22, -inf  ;;  %v10059_v28 = vand.u32 4294901760, %v8424_v18 }
 0x282   : > { %3150 = vmatpush.xpose.msrb.mxu3 %v8326_v13  ;;  %vm4729_vm15 = vcmp.lt.s32.totalorder %v4727_v2, %v4728_v20  ;;  %v4432_v9 = vrot.slane %v4431_v52, 4  ;;  %v8468_v13 = vsub.f32 %v596_v62, %v8438_v51  ;;  %v8484_v62 = vsub.f32 %v593_v54, %v8455_v26 }
 0x283   : > { %v8460_v44 = vsel %vm4729_vm15, %v4727_v2, %v4728_v20  ;;  %v3044_v59 = vsub.f32 %v8424_v18, %v10059_v28  ;;  %v683_v2 = vsel %vm297_vm0, %v293_v60, 0  ;;  %v2323_v60 = vpop.f32.mrf.mxu1 }
 0x284   : > { %3109 = vmatpush.xpose.msrb.mxu2 %v8388_v29  ;;  %10058 = vst [vmem:[#allocation31_spill] sm:$0xff] %v8460_v44  ;;  %vm4788_vm9 = vcmp.eq.s32.totalorder %v7034_v30, %v8460_v44  ;;  %vm4796_vm7 = vcmp.eq.s32.totalorder %v7088_v50, %v8460_v44  ;;  %v4433_v7 = vmax.f32 %v4431_v52, %v4432_v9  ;;  %v8486_v29 = vand.u32 4294901760, %v686_v57  ;;  %v291_v44 = vld [vmem:[%s5900_s15 + $0x3e0] sm:$0xff] }
 0x285   : > { %2945 = vmatpush.xpose.msrb.mxu0 %v8408_v55  ;;  %3034 = vmatpush.xpose.msrb.mxu1 %v3033_v45  ;;  %v8477_v20 = vsel %vm4788_vm9, -1e+30, %v8280_v46  ;;  %v8480_v28 = vsel %vm4796_vm7, -1e+30, %v8288_v15  ;;  %v3045_v46 = vand.u32 4294901760, %v3044_v59  ;;  %v8492_v9 = vand.u32 4294901760, %v683_v2 }
 0x286   : > { %3152 = vmatpush.xpose.msrb.mxu3 %v8333_v3  ;;  %10060 = vst [vmem:[#allocation10_spill] sm:$0xff] %v8486_v29  ;;  %v4832_v45 = vmax.f32 %v8477_v20, %v8480_v28  ;;  %v4434_v52 = vrot.slane %v4433_v7, 2  ;;  %v680_v15 = vsel %vm297_vm0, %v292_v43, 0  ;;  %v10062_v3 = vand.u32 4294901760, %v8446_v0 }
 0x287   : > { %10061 = vst [vmem:[#allocation32_spill] sm:$0xff] %v8492_v9  ;;  %v8502_v59 = vsub.f32 %v686_v57, %v8486_v29  ;;  %v2324_v58 = vadd.f32 %v2323_v60, %v2214_v38  ;;  %vm4389_vm9 = vcmp.eq.s32.totalorder %v10032_v35, %v8435_v42  ;;  %v284_v42 = vld [vmem:[%s5900_s15 + $0x3a8] sm:$0xff] }
 0x288   : > { %3112 = vmatpush.xpose.msrb.mxu2 %v8424_v18  ;;  %v4833_v54 = vrot.slane %v4832_v45, 4  ;;  %v4435_v18 = vmax.f32 %v4433_v7, %v4434_v52  ;;  %v3050_v19 = vsub.f32 %v8446_v0, %v10062_v3  ;;  %v2222_v7 = vpop.f32.mrf.mxu0  ;;  %v677_v52 = vsel %vm297_vm0, %v291_v44, 0  ;;  %v290_v3 = vld [vmem:[%s5900_s15 + $0x3d8] sm:$0xff] }
 0x289   : > { %2947 = vmatpush.xpose.msrb.mxu0 %v8420_v41  ;;  %3040 = vmatpush.xpose.msrb.mxu1 %v3039_v21  ;;  %10063 = vst [vmem:[#allocation11_spill] sm:$0xff] %v8502_v59  ;;  %v8506_v21 = vand.u32 4294901760, %v680_v15  ;;  %v8523_v38 = vand.u32 4294901760, %v677_v52 }
 0x28a   : > { %3154 = vmatpush.xpose.msrb.mxu3 %v8355_v12  ;;  %v2381_v12 = vpop.f32.mrf.mxu2  ;;  %v4834_v43 = vmax.f32 %v4832_v45, %v4833_v54  ;;  %v4436_v33 = vrot.slane %v4435_v18, 1  ;;  %v3051_v11 = vand.u32 4294901760, %v3050_v19  ;;  %v10065_v45 = vand.u32 4294901760, %v8468_v13 }
 0x28b   : > { %v2327_v19 = vpop.f32.mrf.mxu1 }
 0x28c   : > { %3115 = vmatpush.xpose.msrb.mxu2 %v8446_v0  ;;  %v8512_v0 = vsub.f32 %v683_v2, %v8492_v9  ;;  %v4835_v57 = vrot.slane %v4834_v43, 2  ;;  %v4437_v24 = vmax.f32 %v4435_v18, %v4436_v33  ;;  %v3056_v54 = vsub.f32 %v8468_v13, %v10065_v45 }
 0x28d   : > { %2949 = vmatpush.xpose.msrb.mxu0 %v8438_v51  ;;  %3046 = vmatpush.xpose.msrb.mxu1 %v3045_v46  ;;  %v674_v2 = vsel %vm297_vm0, %v290_v3, 0  ;;  %v8530_v18 = vsub.f32 %v680_v15, %v8506_v21 }
 0x28e   : > { %3156 = vmatpush.xpose.msrb.mxu3 %v8375_v5  ;;  %10064 = vst [vmem:[#allocation14_spill] sm:$0xff] %v8512_v0  ;;  %v10066_v5 = vand.u32 4294901760, %v8484_v62  ;;  %v4836_v33 = vmax.f32 %v4834_v43, %v4835_v57  ;;  %vm4469_vm10 = vcmp.eq.f32.partialorder %v8450_v22, %v4437_v24  ;;  %v9784_v60 = vand.u32 4294901760, %v8512_v0  ;;  %v289_v57 = vld [vmem:[%s5900_s15 + $0x3d0] sm:$0xff] }
 0x28f   : > { %v4477_v46 = vsel %vm4469_vm10, %v7034_v30, 4  ;;  %v10067_v24 = vand.u32 4294901760, %v8120_v61  ;;  %v3057_v22 = vand.u32 4294901760, %v3056_v54  ;;  %v8538_v43 = vand.u32 4294901760, %v674_v2 }
 0x290   : > { %3118 = vmatpush.xpose.msrb.mxu2 %v8468_v13  ;;  %v8521_v44 = vsub.f32 %v8484_v62, %v10066_v5  ;;  %v2382_v5 = vadd.f32 %v2381_v12, %v2324_v58  ;;  %v4837_v45 = vrot.slane %v4836_v33, 1  ;;  %v4512_v3 = vsel %vm3971_vm2, %v4477_v46, 2147483647 }
 0x291   : > { %2951 = vmatpush.xpose.msrb.mxu0 %v8455_v26  ;;  %3052 = vmatpush.xpose.msrb.mxu1 %v3051_v11  ;;  %v4513_v15 = vrot.slane %v4512_v3, 4  ;;  %v8544_v58 = vsub.f32 %v677_v52, %v8523_v38  ;;  %v2328_v11 = vadd.f32 %v2327_v19, %v2222_v7  ;;  %v10068_v61 = vand.u32 4294901760, %v8502_v59  ;;  %v2500_v19 = vpop.f32.mrf.mxu0 }
 0x292   : > { %3158 = vmatpush.xpose.msrb.mxu3 %v8408_v55  ;;  %v3063_v55 = vand.u32 4294901760, %v8521_v44  ;;  %v8546_v12 = vmax.f32 %v4836_v33, %v4837_v45  ;;  %v9796_v46 = vand.u32 4294901760, %v8530_v18  ;;  %v8557_v52 = vsub.f32 %v8512_v0, %v9784_v60  ;;  %v2386_v44 = vpop.f32.mrf.mxu2 }
 0x293   : > { %v3344_v54 = vsub.f32 %v8502_v59, %v10068_v61  ;;  %vm4514_vm3 = vcmp.lt.s32.totalorder %v4512_v3, %v4513_v15  ;;  %v671_v33 = vsel %vm297_vm0, %v289_v57, 0  ;;  %v10069_v60 = vand.u32 4294901760, %v8142_v16 }
 0x294   : > { %3121 = vmatpush.xpose.msrb.mxu2 %v8484_v62  ;;  %2957 = vmatmul.f32.vlgmr.msrb.gmra.mxu0 %v6264_v63  ;;  %vm4876_vm5 = vcmp.eq.f32.partialorder %v8477_v20, %v8546_v12  ;;  %vm4884_vm1 = vcmp.eq.f32.partialorder %v8480_v28, %v8546_v12  ;;  %v4515_v7 = vsel %vm4514_vm3, %v4512_v3, %v4513_v15  ;;  %v2431_v3 = vpop.f32.mrf.mxu3 }
 0x295   : > { %3181 = vmatpush.xpose.msra.mxu0 %v10067_v24  ;;  %v2426_v24 = vadd.f32 %v2425_v53, %v2382_v5  ;;  %3058 = vmatpush.xpose.msrb.mxu1 %v3057_v22  ;;  %v8566_v53 = vsub.f32 %v674_v2, %v8538_v43  ;;  %v288_v5 = vld [vmem:[%s5900_s15 + $0x3c8] sm:$0xff]  ;;  %v4892_v45 = vsel %vm4876_vm5, %v7034_v30, 16  ;;  %v4900_v57 = vsel %vm4884_vm1, %v7088_v50, 16 }
 0x296   : > { %3160 = vmatpush.xpose.msrb.mxu3 %v8420_v41  ;;  %v4516_v61 = vrot.slane %v4515_v7, 2  ;;  %vm4928_vm15 = vcmp.lt.s32.totalorder %v4892_v45, %v4900_v57  ;;  %v3345_v2 = vand.u32 4294901760, %v3344_v54  ;;  %v8584_v22 = vsub.f32 %v8530_v18, %v9796_v46 }
 0x297   : > { %3124 = vmatmul.f32.vlgmr.msrb.gmra.mxu2 %v10026_v39  ;;  %v2387_v16 = vadd.f32 %v2386_v44, %v2328_v11  ;;  %v4929_v15 = vsel %vm4928_vm15, %v4892_v45, %v4900_v57  ;;  %v8587_v39 = vand.u32 4294901760, %v671_v33  ;;  %v3351_v54 = vand.u32 4294901760, %v8557_v52 }
 0x298   : > { %3293 = vmatpush.xpose.msra.mxu2 %v8486_v29  ;;  %vm4517_vm7 = vcmp.lt.s32.totalorder %v4515_v7, %v4516_v61  ;;  %v668_v29 = vsel %vm297_vm0, %v288_v5, 0  ;;  %v4930_v0 = vrot.slane %v4929_v15, 4  ;;  %v10070_v46 = vand.u32 4294901760, %v8208_v23 }
 0x299   : > { %3185 = vmatpush.xpose.msra.mxu0 %v10069_v60  ;;  %v287_v60 = vld [vmem:[%s5900_s15 + $0x3c0] sm:$0xff]  ;;  %v4518_v63 = vsel %vm4517_vm7, %v4515_v7, %v4516_v61  ;;  %3064 = vmatpush.xpose.msrb.mxu1 %v3063_v55  ;;  %v2501_v11 = vadd.f32 %v2500_v19, %v2426_v24  ;;  %v10071_v44 = vand.u32 4294901760, %v8544_v58  ;;  %v3357_v55 = vand.u32 4294901760, %v8584_v22  ;;  %v2541_v57 = vpop.f32.mrf.mxu1 }
 0x29a   : > { %3162 = vmatpush.xpose.msrb.mxu3 %v8438_v51  ;;  %v286_v51 = vld [vmem:[%s5900_s15 + $0x3b8] sm:$0xff]  ;;  %v4519_v59 = vrot.slane %v4518_v63, 1  ;;  %v665_v7 = vsel %vm297_vm0, %v287_v60, 0  ;;  %vm4931_vm10 = vcmp.lt.s32.totalorder %v4929_v15, %v4930_v0  ;;  %v2432_v23 = vadd.f32 %v2431_v3, %v2387_v16  ;;  %v285_v3 = vld [vmem:[%s5900_s15 + $0x3b0] sm:$0xff] }
 0x29b   : > { %v8599_v45 = vsub.f32 %v8544_v58, %v10071_v44  ;;  %v8608_v24 = vsub.f32 %v671_v33, %v8587_v39  ;;  %v662_v52 = vsel %vm297_vm0, %v286_v51, 0  ;;  %v8616_v22 = vand.u32 4294901760, %v665_v7 }
 0x29c   : > { %3295 = vmatpush.xpose.msra.mxu2 %v8492_v9  ;;  %v9803_v9 = vand.u32 4294901760, %v8566_v53  ;;  %vm4520_vm3 = vcmp.lt.s32.totalorder %v4518_v63, %v4519_v59  ;;  %3066 = vmatmul.f32.vlgmr.msrb.gmra.mxu1 %v6217_v37  ;;  %v10072_v51 = vand.u32 4294901760, %v8223_v17  ;;  %v659_v17 = vsel %vm297_vm0, %v285_v3, 0 }
 0x29d   : > { %3189 = vmatpush.xpose.msra.mxu0 %v10070_v46  ;;  %3252 = vmatpush.xpose.msra.mxu1 %v8074_v6  ;;  %v8605_v46 = vand.u32 4294901760, %v668_v29  ;;  %v4932_v6 = vsel %vm4931_vm10, %v4929_v15, %v4930_v0  ;;  %v4521_v5 = vsel %vm4520_vm3, %v4518_v63, %v4519_v59  ;;  %v2542_v63 = vadd.f32 %v2541_v57, %v2501_v11  ;;  %v2504_v59 = vpop.f32.mrf.mxu0 }
 0x29e   : > { %3164 = vmatpush.xpose.msrb.mxu3 %v8455_v26  ;;  %v4933_v19 = vrot.slane %v4932_v6, 2  ;;  %v8614_v61 = vsub.f32 %v8566_v53, %v9803_v9  ;;  %2965 = vmatmul.f32.gmra.mxu0 %v6310_v49  ;;  %vm4565_vm5 = vcmp.eq.s32.totalorder %v10030_v14, %v4521_v5  ;;  %vm4573_vm1 = vcmp.eq.s32.totalorder %v10032_v35, %v4521_v5 }
 0x29f   : > { %v3363_v0 = vand.u32 4294901760, %v8599_v45  ;;  %vm4581_vm7 = vmor %vm4381_vm14, %vm4565_vm5  ;;  %v8632_v33 = vsub.f32 %v668_v29, %v8605_v46  ;;  %v5762_v60 = vmul.f32 -1.442695, %v2542_v63  ;;  %v8644_v15 = vand.u32 4294901760, %v659_v17  ;;  %3129 = vmatmul.f32.gmra.mxu2 %v10028_v48  ;;  %v283_v63 = vld [vmem:[%s5900_s15 + $0x3a0] sm:$0xff] }
 0x2a0   : > { %3297 = vmatpush.xpose.msra.mxu2 %v8506_v21  ;;  %vm4934_vm15 = vcmp.lt.s32.totalorder %v4932_v6, %v4933_v19  ;;  %vm4589_vm10 = vmor %vm4389_vm9, %vm4573_vm1  ;;  %v8642_v16 = vsel %vm4581_vm7, %v8115_v32, 0.0  ;;  %v9802_v44 = vand.u32 4294901760, %v8608_v24  ;;  %v8652_v45 = vsub.f32 %v665_v7, %v8616_v22 }
 0x2a1   : > { %3193 = vmatpush.xpose.msra.mxu0 %v10072_v51  ;;  %3254 = vmatpush.xpose.msra.mxu1 %v8110_v34  ;;  %v4935_v34 = vsel %vm4934_vm15, %v4932_v6, %v4933_v19  ;;  %10073 = vst [vmem:[#allocation16_spill] sm:$0xff] %v8644_v15  ;;  %v8648_v11 = vsel %vm4589_vm10, %v8164_v40, 0.0  ;;  %5820 = vpow2.f32 %v5762_v60  ;;  %v2505_v6 = vadd.f32 %v2504_v59, %v2432_v23 }
 0x2a2   : > { %3346 = vmatpush.xpose.msra.mxu3 %v3345_v2  ;;  %v8634_v2 = vand.u32 4294901760, %v662_v52  ;;  %v4936_v29 = vrot.slane %v4935_v34, 1  ;;  %v4631_v32 = vmax.f32 %v8642_v16, %v8648_v11  ;;  %v656_v19 = vsel %vm297_vm0, %v284_v42, 0 }
 0x2a3   : > { %3168 = vmatmul.f32.vlgmr.msrb.gmra.mxu3 %v10029_v8  ;;  %v8666_v7 = vsub.f32 %v659_v17, %v8644_v15  ;;  %v8668_v5 = vand.u32 4294901760, %v656_v19  ;;  %v9799_v23 = vand.u32 4294901760, %v8632_v33  ;;  %v9797_v3 = vand.u32 4294901760, %v8652_v45 }
 0x2a4   : > { %3299 = vmatpush.xpose.msra.mxu2 %v8523_v38  ;;  %vm4937_vm14 = vcmp.lt.s32.totalorder %v4935_v34, %v4936_v29  ;;  %v8663_v40 = vsub.f32 %v662_v52, %v8634_v2  ;;  %v2545_v52 = vpop.f32.mrf.mxu1  ;;  %3070 = vmatmul.f32.gmra.mxu1 %v6266_v4  ;;  %v10076_v17 = vand.u32 4294901760, %v8284_v31  ;;  %v653_v42 = vsel %vm297_vm0, %v283_v63, 0 }
 0x2a5   : > { %3256 = vmatpush.xpose.msra.mxu1 %v8150_v27  ;;  %10075 = vst [vmem:[#allocation13_spill] sm:$0xff] %v8668_v5  ;;  %v8670_v57 = vsel %vm4937_vm14, %v4935_v34, %v4936_v29  ;;  %v3369_v27 = vand.u32 4294901760, %v8614_v61  ;;  %v8680_v51 = vsub.f32 %v656_v19, %v8668_v5  ;;  %v2546_v34 = vadd.f32 %v2545_v52, %v2505_v6 }
 0x2a6   : > { %3352 = vmatpush.xpose.msra.mxu3 %v3351_v54  ;;  %v10074_v54 = vand.u32 4294901760, %v8273_v10  ;;  %v4632_v10 = vrot.slane %v4631_v32, 4  ;;  %vm4996_vm9 = vcmp.eq.s32.totalorder %v7034_v30, %v8670_v57  ;;  %vm5004_vm3 = vcmp.eq.s32.totalorder %v7088_v50, %v8670_v57 }
 0x2a7   : > { %v8688_v61 = vsel %vm5004_vm3, -1e+30, %v8480_v28  ;;  %v9798_v29 = vand.u32 4294901760, %v8663_v40  ;;  %v5821_v28 = vpop.eup %5820  ;;  %v10078_v63 = vand.u32 4294901760, %v8317_v36 }
 0x2a8   : > { %3197 = vmatpush.xpose.msra.mxu0 %v10074_v54  ;;  %3301 = vmatpush.xpose.msra.mxu2 %v8538_v43  ;;  %v4633_v59 = vmax.f32 %v4631_v32, %v4632_v10  ;;  %v5770_v32 = vmul.f32 -1.442695, %v2546_v34  ;;  %v8703_v54 = vand.u32 4294901760, %v653_v42  ;;  %v8705_v19 = vadd.f32 1.0, %v5821_v28  ;;  %v282_v34 = vld [vmem:[%s5900_s15 + $0x398] sm:$0xff] }
 0x2a9   : > { %3258 = vmatpush.xpose.msra.mxu1 %v8168_v56  ;;  %v3374_v56 = vsub.f32 %v8608_v24, %v9802_v44  ;;  %v3380_v10 = vsub.f32 %v8632_v33, %v9799_v23  ;;  %v8725_v36 = vsub.f32 %v8663_v40, %v9798_v29  ;;  %v10082_v29 = vld [vmem:[#allocation15_spill] sm:$0xff] }
 0x2aa   : > { %3358 = vmatpush.xpose.msra.mxu3 %v3357_v55  ;;  %v8685_v55 = vsel %vm4996_vm9, -1e+30, %v8477_v20  ;;  %v9800_v20 = vand.u32 4294901760, %v8666_v7  ;;  %v4634_v31 = vrot.slane %v4633_v59, 2  ;;  %10077 = vst [vmem:[#allocation20_spill] sm:$0xff] %v8703_v54  ;;  %5822 = vpow2.f32 %v5770_v32 }
 0x2ab   : > { %v5040_v60 = vmax.f32 %v8685_v55, %v8688_v61  ;;  %3174 = vmatmul.f32.gmra.mxu3 %v10035_v47  ;;  %5824 = vrcp.f32 %v8705_v19  ;;  %v8733_v32 = vsub.f32 %v653_v42, %v8703_v54  ;;  %v3381_v23 = vand.u32 4294901760, %v3380_v10 }
 0x2ac   : > { %3201 = vmatpush.xpose.msra.mxu0 %v10076_v17  ;;  %3303 = vmatpush.xpose.msra.mxu2 %v8587_v39  ;;  %v4635_v52 = vmax.f32 %v4633_v59, %v4634_v31  ;;  %v9801_v17 = vand.u32 4294901760, %v8680_v51  ;;  %v3375_v31 = vand.u32 4294901760, %v3374_v56  ;;  %v3797_v56 = vand.u32 2147483647, %v8705_v19 }
 0x2ad   : > { %v5041_v6 = vrot.slane %v5040_v60, 4  ;;  %3260 = vmatpush.xpose.msra.mxu1 %v8237_v25  ;;  %v8730_v25 = vsub.f32 %v8666_v7, %v9800_v20  ;;  %10079 = vst [vmem:[#allocation22_spill] sm:$0xff] %v8733_v32  ;;  %vm3793_vm15 = vweird.f32 %v8705_v19  ;;  %v3799_v9 = vand.u32 2147483648, %v8705_v19 }
 0x2ae   : > { %3364 = vmatpush.xpose.msra.mxu3 %v3363_v0  ;;  %v8716_v0 = vsub.f32 %v8652_v45, %v9797_v3  ;;  %v4636_v59 = vrot.slane %v4635_v52, 1  ;;  %v10081_v3 = vand.u32 4294901760, %v8323_v1  ;;  %v10084_v1 = vld [vmem:[#allocation27_spill] sm:$0xff]  ;;  %vm8772_vm10 = vcmp.eq.f32.partialorder %v3797_v56, 8.507059e+37 }
 0x2af   : > { %v5042_v28 = vmax.f32 %v5040_v60, %v5041_v6  ;;  %v650_v6 = vsel %vm297_vm0, %v282_v34, 0 }
 0x2b0   : > { %3205 = vmatpush.xpose.msra.mxu0 %v10078_v63  ;;  %3305 = vmatpush.xpose.msra.mxu2 %v8605_v46  ;;  %v8736_v63 = vmax.f32 %v4635_v52, %v4636_v59  ;;  %v3387_v20 = vand.u32 4294901760, %v8716_v0  ;;  %v8757_v10 = vand.u32 4294901760, %v650_v6  ;;  %v10086_v52 = vld [vmem:[#allocation24_spill] sm:$0xff] }
 0x2b1   : > { %v5043_v60 = vrot.slane %v5042_v28, 2  ;;  %3262 = vmatpush.xpose.msra.mxu1 %v10082_v29 }
 0x2b2   : > { %3370 = vmatpush.xpose.msra.mxu3 %v3369_v27  ;;  %10080 = vst [vmem:[#allocation34_spill] sm:$0xff] %v8736_v63  ;;  %v8745_v27 = vsub.f32 %v8680_v51, %v9801_v17  ;;  %vm4669_vm5 = vcmp.eq.f32.partialorder %v8642_v16, %v8736_v63  ;;  %vm4677_vm1 = vcmp.eq.f32.partialorder %v8648_v11, %v8736_v63  ;;  %v281_v17 = vld [vmem:[%s5900_s15 + $0x390] sm:$0xff] }
 0x2b3   : > { %v5044_v42 = vmax.f32 %v5042_v28, %v5043_v60  ;;  %10083 = vst [vmem:[#allocation15_spill] sm:$0xff] %v8757_v10  ;;  %v4685_v28 = vsel %vm4669_vm5, %v7034_v30, 16  ;;  %v4693_v59 = vsel %vm4677_vm1, %v7088_v50, 16  ;;  %v8789_v56 = vsub.f32 %v650_v6, %v8757_v10 }
 0x2b4   : > { %3209 = vmatpush.xpose.msra.mxu0 %v10081_v3  ;;  %3307 = vmatpush.xpose.msra.mxu2 %v8616_v22  ;;  %v5823_v3 = vpop.eup %5822  ;;  %vm4731_vm7 = vcmp.lt.s32.totalorder %v4685_v28, %v4693_v59 }
 0x2b5   : > { %v5825_v0 = vpop.eup %5824  ;;  %v5045_v34 = vrot.slane %v5044_v42, 1  ;;  %v8761_v60 = vadd.f32 1.0, %v5823_v3  ;;  %3264 = vmatpush.xpose.msra.mxu1 %v10086_v52  ;;  %v4732_v8 = vsel %vm4731_vm7, %v4685_v28, %v4693_v59  ;;  %v10090_v28 = vld [vmem:[#allocation21_spill] sm:$0xff] }
 0x2b6   : > { %3376 = vmatpush.xpose.msra.mxu3 %v3375_v31  ;;  %v3789_v44 = vmul.f32 %v5825_v0, %v8705_v19  ;;  %v10085_v31 = vand.u32 4294901760, %v10084_v1  ;;  %v4733_v3 = vrot.slane %v4732_v8, 4  ;;  %v10089_v1 = vand.u32 4294901760, %v8733_v32  ;;  %v280_v19 = vld [vmem:[%s5900_s15 + $0x388] sm:$0xff] }
 0x2b7   : > { %v8770_v47 = vmax.f32 %v5044_v42, %v5045_v34  ;;  %5826 = vrcp.f32 %v8761_v60  ;;  %v647_v42 = vsel %vm297_vm0, %v281_v17, 0  ;;  %vm3794_vm3 = vweird.f32 %v5825_v0  ;;  %v10092_v17 = vld [vmem:[#allocation18_spill] sm:$0xff] }
 0x2b8   : > { %3213 = vmatpush.xpose.msra.mxu0 %v10085_v31  ;;  %3309 = vmatpush.xpose.msra.mxu2 %v8634_v2  ;;  %v3790_v35 = vsub.f32 1.0, %v3789_v44  ;;  %v8781_v52 = vsub.f32 %v8733_v32, %v10089_v1  ;;  %vm4734_vm5 = vcmp.lt.s32.totalorder %v4732_v8, %v4733_v3  ;;  %v10091_v59 = vand.u32 4294901760, %v10090_v28  ;;  %vm3795_vm7 = vmor %vm3793_vm15, %vm3794_vm3 }
 0x2b9   : > { %vm5084_vm14 = vcmp.eq.f32.partialorder %v8685_v55, %v8770_v47  ;;  %vm5092_vm9 = vcmp.eq.f32.partialorder %v8688_v61, %v8770_v47  ;;  %3266 = vmatpush.xpose.msra.mxu1 %v10092_v17  ;;  %v4735_v31 = vsel %vm4734_vm5, %v4732_v8, %v4733_v3  ;;  %v3800_v1 = vor.u32 1.1754944e-38, %v3799_v9 }
 0x2ba   : > { %3382 = vmatpush.xpose.msra.mxu3 %v3381_v23  ;;  %v5100_v44 = vsel %vm5084_vm14, %v7034_v30, 16  ;;  %v5108_v23 = vsel %vm5092_vm9, %v7088_v50, 16  ;;  %v3791_v34 = vmul.f32 %v5825_v0, %v3790_v35  ;;  %v8797_v29 = vand.u32 4294901760, %v647_v42 }
 0x2bb   : > { %vm5136_vm1 = vcmp.lt.s32.totalorder %v5100_v44, %v5108_v23  ;;  %v4736_v14 = vrot.slane %v4735_v31, 2  ;;  %vm3913_vm14 = vweird.f32 %v8761_v60 }
 0x2bc   : > { %3217 = vmatpush.xpose.msra.mxu0 %v10091_v59  ;;  %3311 = vmatpush.xpose.msra.mxu2 %v8644_v15  ;;  %10093 = vst [vmem:[#allocation27_spill] sm:$0xff] %v8797_v29  ;;  %v5137_v6 = vsel %vm5136_vm1, %v5100_v44, %v5108_v23  ;;  %v3792_v63 = vadd.f32 %v5825_v0, %v3791_v34  ;;  %v3919_v44 = vand.u32 2147483648, %v8761_v60  ;;  %v10094_v23 = vld [vmem:[#allocation26_spill] sm:$0xff]  ;;  %v10096_v59 = vld [vmem:[#allocation29_spill] sm:$0xff] }
 0x2bd   : > { %v8800_v35 = vpop.eup %5826  ;;  %v5138_v28 = vrot.slane %v5137_v6, 4  ;;  %vm4737_vm9 = vcmp.lt.s32.totalorder %v4735_v31, %v4736_v14  ;;  %v10095_v34 = vand.u32 4294901760, %v10094_v23  ;;  %3268 = vmatpush.xpose.msra.mxu1 %v10096_v59  ;;  %v10101_v59 = vld [vmem:[#allocation12_spill] sm:$0xff] }
 0x2be   : > { %3388 = vmatpush.xpose.msra.mxu3 %v3387_v20  ;;  %v3796_v3 = vsel %vm3795_vm7, %v5825_v0, %v3792_v63  ;;  %v3909_v20 = vmul.f32 %v8800_v35, %v8761_v60  ;;  %v4738_v17 = vsel %vm4737_vm9, %v4735_v31, %v4736_v14  ;;  %v8821_v63 = vsub.f32 %v647_v42, %v8797_v29  ;;  %v279_v0 = vld [vmem:[%s5900_s15 + $0x380] sm:$0xff] }
 0x2bf   : > { %vm5139_vm15 = vcmp.lt.s32.totalorder %v5137_v6, %v5138_v28  ;;  %v8817_v32 = vsel %vm8772_vm10, %v3800_v1, %v3796_v3  ;;  %v4739_v9 = vrot.slane %v4738_v17, 1  ;;  %v10098_v14 = vand.u32 4294901760, %v8725_v36 }
 0x2c0   : > { %3221 = vmatpush.xpose.msra.mxu0 %v10095_v34  ;;  %10097 = vst [vmem:[#allocation24_spill] sm:$0xff] %v8817_v32  ;;  %3313 = vmatpush.xpose.msra.mxu2 %v8668_v5  ;;  %v5140_v8 = vsel %vm5139_vm15, %v5137_v6, %v5138_v28  ;;  %v4000_v23 = vsel %vm3971_vm2, %v8817_v32, -inf  ;;  %v4057_v34 = vsel %vm4028_vm4, %v8817_v32, -inf  ;;  %v644_v3 = vsel %vm297_vm0, %v280_v19, 0  ;;  %v10099_v6 = vld [vmem:[#allocation23_spill] sm:$0xff] }
 0x2c1   : > { %v5141_v48 = vrot.slane %v5140_v8, 2  ;;  %v4001_v31 = vrot.slane %v4000_v23, 4  ;;  %v4058_v1 = vrot.slane %v4057_v34, 4  ;;  %vm4740_vm10 = vcmp.lt.s32.totalorder %v4738_v17, %v4739_v9  ;;  %3270 = vmatpush.xpose.msra.mxu1 %v10101_v59 }
 0x2c2   : > { %3394 = vmatpush.xpose.msra.mxu3 %v10098_v14  ;;  %v3910_v42 = vsub.f32 1.0, %v3909_v20  ;;  %vm3914_vm3 = vweird.f32 %v8800_v35  ;;  %v10100_v28 = vand.u32 4294901760, %v10099_v6  ;;  %v641_v5 = vsel %vm297_vm0, %v279_v0, 0 }
 0x2c3   : > { %vm5142_vm5 = vcmp.lt.s32.totalorder %v5140_v8, %v5141_v48  ;;  %v8836_v32 = vsel %vm4740_vm10, %v4738_v17, %v4739_v9  ;;  %v4002_v36 = vmax.f32 %v4000_v23, %v4001_v31  ;;  %v4059_v14 = vmax.f32 %v4057_v34, %v4058_v1  ;;  %v10104_v31 = vld [vmem:[#allocation33_spill] sm:$0xff]  ;;  %v10106_v1 = vld [vmem:[#allocation19_spill] sm:$0xff]  ;;  %vm8873_vm9 = vmor %vm3913_vm14, %vm3914_vm3 }
 0x2c4   : > { %3225 = vmatpush.xpose.msra.mxu0 %v10100_v28  ;;  %10102 = vst [vmem:[#allocation21_spill] sm:$0xff] %v8836_v32  ;;  %3315 = vmatpush.xpose.msra.mxu2 %v8703_v54  ;;  %v5143_v15 = vsel %vm5142_vm5, %v5140_v8, %v5141_v48  ;;  %vm4789_vm1 = vcmp.eq.s32.totalorder %v7034_v30, %v8836_v32  ;;  %v10103_v20 = vand.u32 4294901760, %v8730_v25  ;;  %v8845_v19 = vand.u32 4294901760, %v644_v3 }
 0x2c5   : > { %vm4797_vm7 = vcmp.eq.s32.totalorder %v7088_v50, %v8836_v32  ;;  %v5144_v0 = vrot.slane %v5143_v15, 1  ;;  %v8848_v9 = vsel %vm4789_vm1, -1e+30, %v8642_v16  ;;  %v4003_v34 = vrot.slane %v4002_v36, 2  ;;  %3272 = vmatpush.xpose.msra.mxu1 %v10106_v1 }
 0x2c6   : > { %3400 = vmatpush.xpose.msra.mxu3 %v10103_v20  ;;  %v8851_v17 = vsel %vm4797_vm7, -1e+30, %v8648_v11  ;;  %v3911_v48 = vmul.f32 %v8800_v35, %v3910_v42  ;;  %v10105_v25 = vand.u32 4294901760, %v10104_v31  ;;  %v10107_v6 = vand.u32 4294901760, %v8789_v56 }
 0x2c7   : > { %v4839_v23 = vmax.f32 %v8848_v9, %v8851_v17  ;;  %vm5145_vm0 = vcmp.lt.s32.totalorder %v5143_v15, %v5144_v0  ;;  %v4060_v11 = vrot.slane %v4059_v14, 2  ;;  %v3920_v28 = vor.u32 1.1754944e-38, %v3919_v44 }
 0x2c8   : > { %3229 = vmatpush.xpose.msra.mxu0 %v10105_v25  ;;  %v3416_v16 = vsub.f32 %v8789_v56, %v10107_v6  ;;  %3317 = vmatpush.xpose.msra.mxu2 %v8757_v10  ;;  %v8864_v59 = vand.u32 4294901760, %v641_v5  ;;  %v8866_v20 = vsel %vm5145_vm0, %v5143_v15, %v5144_v0  ;;  %v3912_v42 = vadd.f32 %v8800_v35, %v3911_v48  ;;  %v10115_v10 = vld [vmem:[#allocation28_spill] sm:$0xff] }
 0x2c9   : > { %v4840_v8 = vrot.slane %v4839_v23, 4  ;;  %v10110_v25 = vand.u32 4294901760, %v8745_v27  ;;  %v8880_v44 = vsub.f32 %v644_v3, %v8845_v19  ;;  %vm5204_vm15 = vcmp.eq.s32.totalorder %v7034_v30, %v8866_v20  ;;  %3274 = vmatpush.xpose.msra.mxu1 %v10115_v10 }
 0x2ca   : > { %vm5212_vm10 = vcmp.eq.s32.totalorder %v7088_v50, %v8866_v20  ;;  %v10111_v15 = vand.u32 2147483647, %v8761_v60  ;;  %v10112_v0 = vand.u32 4294901760, %v8821_v63  ;;  %v8892_v1 = vsel %vm5204_vm15, -1e+30, %v8685_v55 }
 0x2cb   : > { %3406 = vmatpush.xpose.msra.mxu3 %v10110_v25  ;;  %v8895_v27 = vsel %vm5212_vm10, -1e+30, %v8688_v61  ;;  %v4841_v3 = vmax.f32 %v4839_v23, %v4840_v8  ;;  %v4004_v6 = vmax.f32 %v4002_v36, %v4003_v34  ;;  %v10113_v25 = vld [vmem:[#allocation8_spill] sm:$0xff]  ;;  %v8907_v55 = vsub.f32 %v641_v5, %v8864_v59  ;;  %v2586_v8 = vpop.f32.mrf.mxu2 }
 0x2cc   : > { %vm3918_vm5 = vcmp.eq.f32.partialorder %v10111_v15, 8.507059e+37  ;;  %v3422_v48 = vsub.f32 %v8821_v63, %v10112_v0  ;;  %v10114_v32 = vand.u32 4294901760, %v10113_v25  ;;  %v5248_v60 = vmax.f32 %v8892_v1, %v8895_v27  ;;  %3319 = vmatpush.xpose.msra.mxu2 %v8797_v29 }
 0x2cd   : > { %v4061_v15 = vmax.f32 %v4059_v14, %v4060_v11  ;;  %v3916_v0 = vsel %vm8873_vm9, %v8800_v35, %v3912_v42  ;;  %v4842_v61 = vrot.slane %v4841_v3, 2  ;;  %v3417_v10 = vand.u32 4294901760, %v3416_v16 }
 0x2ce   : > { %3233 = vmatpush.xpose.msra.mxu0 %v10114_v32  ;;  %v8909_v36 = vsel %vm3918_vm5, %v3920_v28, %v3916_v0  ;;  %v10117_v32 = vand.u32 4294901760, %v8781_v52  ;;  %v5249_v14 = vrot.slane %v5248_v60, 4  ;;  %v4005_v5 = vrot.slane %v4004_v6, 1  ;;  %v10119_v52 = vld [vmem:[#allocation17_spill] sm:$0xff] }
 0x2cf   : > { %10116 = vst [vmem:[#allocation18_spill] sm:$0xff] %v8909_v36  ;;  %v4113_v34 = vsel %vm3971_vm2, %v8909_v36, -inf  ;;  %v4169_v35 = vsel %vm4028_vm4, %v8909_v36, -inf  ;;  %v4843_v11 = vmax.f32 %v4841_v3, %v4842_v61  ;;  %v10118_v28 = vand.u32 4294901760, %v8468_v13  ;;  %3276 = vmatpush.xpose.msra.mxu1 %v10119_v52  ;;  %v10121_v13 = vld [vmem:[#allocation25_spill] sm:$0xff] }
 0x2d0   : > { %3412 = vmatpush.xpose.msra.mxu3 %v10117_v32  ;;  %v4114_v42 = vrot.slane %v4113_v34, 4  ;;  %v4170_v31 = vrot.slane %v4169_v35, 4  ;;  %v5250_v16 = vmax.f32 %v5248_v60, %v5249_v14  ;;  %v4062_v25 = vrot.slane %v4061_v15, 1  ;;  %3321 = vmatpush.xpose.msra.mxu2 %v8845_v19 }
 0x2d1   : > { %v3423_v0 = vand.u32 4294901760, %v3422_v48  ;;  %v4844_v23 = vrot.slane %v4843_v11, 1  ;;  %v10120_v3 = vand.u32 4294901760, %v8880_v44  ;;  %v4006_v48 = vmax.f32 %v4004_v6, %v4005_v5  ;;  %v2695_v6 = vpop.f32.mrf.mxu3 }
 0x2d2   : > { %3237 = vmatpush.xpose.msra.mxu0 %v10118_v28  ;;  %v4115_v29 = vmax.f32 %v4113_v34, %v4114_v42  ;;  %v4171_v54 = vmax.f32 %v4169_v35, %v4170_v31  ;;  %v5251_v36 = vrot.slane %v5250_v16, 2  ;;  %v5412_v28 = vsel %vm4197_vm11, %v10121_v13, %v8546_v12  ;;  %v10123_v35 = vld [vmem:[#allocation11_spill] sm:$0xff] }
 0x2d3   : > { %v3428_v61 = vsub.f32 %v8880_v44, %v10120_v3  ;;  %v8929_v60 = vmax.f32 %v4843_v11, %v4844_v23  ;;  %v10122_v32 = vand.u32 4294901760, %v8484_v62  ;;  %3278 = vmatpush.xpose.msra.mxu1 %v8420_v41  ;;  %v4063_v34 = vmax.f32 %v4061_v15, %v4062_v25  ;;  %v2594_v25 = vpop.f32.mrf.mxu2 }
 0x2d4   : > { %3418 = vmatpush.xpose.msra.mxu3 %v3417_v10  ;;  %v4116_v14 = vrot.slane %v4115_v29, 2  ;;  %v4172_v52 = vrot.slane %v4171_v54, 2  ;;  %v5252_v10 = vmax.f32 %v5250_v16, %v5251_v36  ;;  %3323 = vmatpush.xpose.msra.mxu2 %v8864_v59  ;;  %v10124_v42 = vand.u32 4294901760, %v8907_v55 }
 0x2d5   : > { %vm4877_vm14 = vcmp.eq.f32.partialorder %v8848_v9, %v8929_v60  ;;  %vm4885_vm3 = vcmp.eq.f32.partialorder %v8851_v17, %v8929_v60  ;;  %v3429_v41 = vand.u32 4294901760, %v3428_v61  ;;  %v10125_v5 = vand.u32 4294901760, %v10123_v35 }
 0x2d6   : > { %3241 = vmatpush.xpose.msra.mxu0 %v10122_v32  ;;  %v3434_v12 = vsub.f32 %v8907_v55, %v10124_v42  ;;  %v4117_v62 = vmax.f32 %v4115_v29, %v4116_v14  ;;  %v5253_v36 = vrot.slane %v5252_v10, 1  ;;  %v4893_v15 = vsel %vm4877_vm14, %v7034_v30, 16  ;;  %v10126_v29 = vld [vmem:[#allocation30_spill] sm:$0xff]  ;;  %v2753_v14 = vpop.f32.mrf.mxu0 }
 0x2d7   : > { %v4901_v23 = vsel %vm4885_vm3, %v7088_v50, 16  ;;  %v4173_v11 = vmax.f32 %v4171_v54, %v4172_v52  ;;  %v5420_v31 = vsel %vm4206_vm12, %v5412_v28, %v8770_v47  ;;  %3280 = vmatpush.xpose.msra.mxu1 %v10126_v29  ;;  %v2696_v13 = vadd.f32 %v2695_v6, %v2586_v8  ;;  %v10128_v54 = vld [vmem:[#allocation14_spill] sm:$0xff] }
 0x2d8   : > { %3424 = vmatpush.xpose.msra.mxu3 %v3423_v0  ;;  %3553 = vmatpush.xpose.msrb.mxu2 %v10125_v5  ;;  %vm4939_vm1 = vcmp.lt.s32.totalorder %v4893_v15, %v4901_v23  ;;  %v4118_v16 = vrot.slane %v4117_v62, 1  ;;  %v10127_v0 = vld [vmem:[#allocation4_spill] sm:$0xff]  ;;  %v5254_v32 = vmax.f32 %v5252_v10, %v5253_v36  ;;  %v3435_v47 = vand.u32 4294901760, %v3434_v12  ;;  %v10130_v12 = vld [vmem:[#allocation10_spill] sm:$0xff] }
 0x2d9   : > { %3243 = vmatmul.f32.vlgmr.msra.gmra.mxu0 %v6217_v37  ;;  %3329 = vmatmul.f32.vlgmr.msra.gmra.mxu2 %v10127_v0  ;;  %v4940_v3 = vsel %vm4939_vm1, %v4893_v15, %v4901_v23  ;;  %v4174_v61 = vrot.slane %v4173_v11, 1  ;;  %v10129_v36 = vand.u32 4294901760, %v10128_v54  ;;  %v2754_v5 = vadd.f32 %v2753_v14, %v2696_v13 }
 0x2da   : > { %3448 = vmatpush.xpose.msrb.mxu0 %v10123_v35  ;;  %v4941_v52 = vrot.slane %v4940_v3, 4  ;;  %v4202_v35 = vsel %vm4197_vm11, %v4006_v48, %v4063_v34  ;;  %v4119_v42 = vmax.f32 %v4117_v62, %v4118_v16  ;;  %vm5292_vm7 = vcmp.eq.f32.partialorder %v8892_v1, %v5254_v32  ;;  %v2699_v16 = vpop.f32.mrf.mxu3 }
 0x2db   : > { %vm5300_vm0 = vcmp.eq.f32.partialorder %v8895_v27, %v5254_v32  ;;  %v8957_v28 = vsel %vm4215_vm13, %v5420_v31, %v5254_v32  ;;  %v4175_v10 = vmax.f32 %v4173_v11, %v4174_v61  ;;  %v5308_v8 = vsel %vm5292_vm7, %v7034_v30, 16  ;;  %3282 = vmatpush.xpose.msra.mxu1 %v8455_v26  ;;  %v2797_v61 = vpop.f32.mrf.mxu1  ;;  %v2872_v14 = vpop.f32.mrf.mxu2 }
 0x2dc   : > { %3430 = vmatpush.xpose.msra.mxu3 %v3429_v41  ;;  %3557 = vmatpush.xpose.msrb.mxu2 %v10129_v36  ;;  %v5316_v6 = vsel %vm5300_vm0, %v7088_v50, 16  ;;  %v5448_v48 = vsel %vm3971_vm2, %v8957_v28, 0.0  ;;  %vm4942_vm9 = vcmp.lt.s32.totalorder %v4940_v3, %v4941_v52  ;;  %v4211_v34 = vsel %vm4206_vm12, %v4202_v35, %v4119_v42 }
 0x2dd   : > { %vm5344_vm15 = vcmp.lt.s32.totalorder %v5308_v8, %v5316_v6  ;;  %v5449_v1 = vrot.slane %v5448_v48, 4  ;;  %v4943_v27 = vsel %vm4942_vm9, %v4940_v3, %v4941_v52  ;;  %v8970_v15 = vsel %vm4215_vm13, %v4211_v34, %v4175_v10  ;;  %v10132_v3 = vld [vmem:[#allocation32_spill] sm:$0xff] }
 0x2de   : > { %3451 = vmatpush.xpose.msrb.mxu0 %v10128_v54  ;;  %v5345_v62 = vsel %vm5344_vm15, %v5308_v8, %v5316_v6  ;;  %v4944_v41 = vrot.slane %v4943_v27, 2  ;;  %v4254_v26 = vsel %vm3971_vm2, %v8970_v15, -inf  ;;  %3284 = vmatmul.f32.vlgmr.msra.gmra.mxu1 %v6217_v37  ;;  %v10131_v29 = vand.u32 4294901760, %v8530_v18 }
 0x2df   : > { %3506 = vmatpush.xpose.msrb.mxu1 %v10130_v12  ;;  %v5346_v23 = vrot.slane %v5345_v62, 4  ;;  %v5450_v11 = vadd.f32 %v5449_v1, %v5448_v48  ;;  %v4255_v31 = vrot.slane %v4254_v26, 4  ;;  %v2700_v13 = vadd.f32 %v2699_v16, %v2594_v25 }
 0x2e0   : > { %3436 = vmatpush.xpose.msra.mxu3 %v3435_v47  ;;  %vm4945_vm10 = vcmp.lt.s32.totalorder %v4943_v27, %v4944_v41  ;;  %3561 = vmatpush.xpose.msrb.mxu2 %v10131_v29  ;;  %v2798_v42 = vadd.f32 %v2797_v61, %v2754_v5  ;;  %v2758_v47 = vpop.f32.mrf.mxu0  ;;  %v10133_v36 = vand.u32 4294901760, %v8544_v58  ;;  %v10135_v16 = vand.u32 4294901760, %v8608_v24 }
 0x2e1   : > { %3247 = vmatmul.f32.gmra.mxu0 %v6266_v4  ;;  %vm5347_vm5 = vcmp.lt.s32.totalorder %v5345_v62, %v5346_v23  ;;  %v5451_v0 = vrot.slane %v5450_v11, 2  ;;  %v4946_v32 = vsel %vm4945_vm10, %v4943_v27, %v4944_v41  ;;  %v4256_v35 = vmax.f32 %v4254_v26, %v4255_v31  ;;  %3337 = vmatmul.f32.gmra.mxu2 %v6310_v49 }
 0x2e2   : > { %3454 = vmatpush.xpose.msrb.mxu0 %v8530_v18  ;;  %v5348_v54 = vsel %vm5347_vm5, %v5345_v62, %v5346_v23  ;;  %v4947_v52 = vrot.slane %v4946_v32, 1  ;;  %v2759_v49 = vadd.f32 %v2758_v47, %v2700_v13  ;;  %v2873_v27 = vadd.f32 %v2872_v14, %v2798_v42 }
 0x2e3   : > { %3508 = vmatpush.xpose.msrb.mxu1 %v10132_v3  ;;  %3438 = vmatmul.f32.vlgmr.msra.gmra.mxu3 %v6217_v37  ;;  %v5452_v18 = vadd.f32 %v5451_v0, %v5450_v11  ;;  %v4257_v10 = vrot.slane %v4256_v35, 2  ;;  %v5349_v8 = vrot.slane %v5348_v54, 2  ;;  %v10134_v62 = vand.u32 4294901760, %v8566_v53  ;;  %v2876_v31 = vpop.f32.mrf.mxu2 }
 0x2e4   : > { %3624 = vmatpush.xpose.msrb.mxu3 %v10130_v12  ;;  %vm4948_vm14 = vcmp.lt.s32.totalorder %v4946_v32, %v4947_v52  ;;  %3565 = vmatpush.xpose.msrb.mxu2 %v10133_v36 }
 0x2e5   : > { %v5453_v6 = vrot.slane %v5452_v18, 1  ;;  %v8986_v48 = vsel %vm4948_vm14, %v4946_v32, %v4947_v52  ;;  %v4258_v12 = vmax.f32 %v4256_v35, %v4257_v10  ;;  %vm5350_vm7 = vcmp.lt.s32.totalorder %v5348_v54, %v5349_v8 }
 0x2e6   : > { %3457 = vmatpush.xpose.msrb.mxu0 %v8544_v58  ;;  %vm4997_vm3 = vcmp.eq.s32.totalorder %v7034_v30, %v8986_v48  ;;  %vm5005_vm1 = vcmp.eq.s32.totalorder %v7088_v50, %v8986_v48  ;;  %3288 = vmatmul.f32.gmra.mxu1 %v6266_v4  ;;  %v2913_v41 = vpop.f32.mrf.mxu3  ;;  %v9013_v26 = vsel %vm5350_vm7, %v5348_v54, %v5349_v8  ;;  %v10136_v35 = vand.u32 4294901760, %v8632_v33 }
 0x2e7   : > { %3510 = vmatpush.xpose.msrb.mxu1 %v8506_v21  ;;  %v8994_v25 = vadd.f32 %v5453_v6, %v5452_v18  ;;  %v8997_v58 = vsel %vm4997_vm3, -1e+30, %v8848_v9  ;;  %v9000_v1 = vsel %vm5005_vm1, -1e+30, %v8851_v17  ;;  %v2803_v9 = vpop.f32.mrf.mxu1  ;;  %v2914_v23 = vadd.f32 %v2913_v41, %v2873_v27 }
 0x2e8   : > { %3626 = vmatpush.xpose.msrb.mxu3 %v10132_v3  ;;  %v5047_v34 = vmax.f32 %v8997_v58, %v9000_v1  ;;  %3569 = vmatpush.xpose.msrb.mxu2 %v10134_v62  ;;  %v2804_v11 = vadd.f32 %v2803_v9, %v2759_v49  ;;  %v10139_v49 = vand.u32 4294901760, %v8652_v45 }
 0x2e9   : > { %5828 = vrcp.f32 %v8994_v25  ;;  %v5763_v29 = vmul.f32 -1.442695, %v2914_v23  ;;  %v5529_v13 = vand.u32 2147483647, %v8994_v25  ;;  %v5531_v42 = vand.u32 2147483648, %v8994_v25 }
 0x2ea   : > { %3460 = vmatpush.xpose.msrb.mxu0 %v8566_v53  ;;  %v5048_v17 = vrot.slane %v5047_v34, 4  ;;  %v2877_v61 = vadd.f32 %v2876_v31, %v2804_v11  ;;  %vm5525_vm5 = vweird.f32 %v8994_v25  ;;  %v10142_v23 = vand.u32 4294901760, %v8663_v40 }
 0x2eb   : > { %3512 = vmatpush.xpose.msrb.mxu1 %v8523_v38  ;;  %3442 = vmatmul.f32.gmra.mxu3 %v6266_v4  ;;  %5830 = vpow2.f32 %v5763_v29  ;;  %vm9042_vm14 = vcmp.eq.f32.partialorder %v5529_v13, 8.507059e+37  ;;  %v5532_v9 = vor.u32 1.1754944e-38, %v5531_v42 }
 0x2ec   : > { %3628 = vmatpush.xpose.msrb.mxu3 %v8506_v21  ;;  %v4259_v21 = vrot.slane %v4258_v12, 1  ;;  %v5049_v53 = vmax.f32 %v5047_v34, %v5048_v17  ;;  %3573 = vmatpush.xpose.msrb.mxu2 %v10135_v16  ;;  %v10143_v16 = vld [vmem:[#allocation31_spill] sm:$0xff] }
 0x2ed   : > { %v5620_v29 = vcvt.s32.f32 %v10143_v16 }
 0x2ee   : > { %3463 = vmatpush.xpose.msrb.mxu0 %v8608_v24  ;;  %v4260_v5 = vmax.f32 %v4258_v12, %v4259_v21  ;;  %v5050_v0 = vrot.slane %v5049_v53, 2  ;;  %v2917_v47 = vpop.f32.mrf.mxu3 }
 0x2ef   : > { %3514 = vmatpush.xpose.msrb.mxu1 %v8538_v43  ;;  %v5829_v32 = vpop.eup %5828 }
 0x2f0   : > { %3630 = vmatpush.xpose.msrb.mxu3 %v8523_v38  ;;  %vm4286_vm0 = vcmp.eq.f32.partialorder %v8970_v15, %v4260_v5  ;;  %v5352_v38 = vrot.slane %v9013_v26, 1  ;;  %v5521_v24 = vmul.f32 %v5829_v32, %v8994_v25  ;;  %v5051_v54 = vmax.f32 %v5049_v53, %v5050_v0  ;;  %3577 = vmatpush.xpose.msrb.mxu2 %v10136_v35 }
 0x2f1   : > { %v4294_v3 = vsel %vm4286_vm0, %v7034_v30, 4  ;;  %vm5526_vm10 = vweird.f32 %v5829_v32  ;;  %v5831_v27 = vpop.eup %5830 }
 0x2f2   : > { %3466 = vmatpush.xpose.msrb.mxu0 %v8632_v33  ;;  %v4338_v52 = vsel %vm3971_vm2, %v4294_v3, 2147483647  ;;  %v5522_v18 = vsub.f32 1.0, %v5521_v24  ;;  %vm9032_vm9 = vcmp.lt.s32.totalorder %v9013_v26, %v5352_v38  ;;  %v2918_v33 = vadd.f32 %v2917_v47, %v2877_v61  ;;  %vm5527_vm7 = vmor %vm5525_vm5, %vm5526_vm10  ;;  %v10147_v47 = vld [vmem:[#allocation22_spill] sm:$0xff] }
 0x2f3   : > { %v4339_v14 = vrot.slane %v4338_v52, 4  ;;  %3516 = vmatpush.xpose.msrb.mxu1 %v8587_v39  ;;  %v9055_v17 = vadd.f32 1.0, %v5831_v27  ;;  %v10144_v3 = vand.u32 4294901760, %v8666_v7  ;;  %v5628_v61 = vcvt.s32.f32 %v8670_v57 }
 0x2f4   : > { %3632 = vmatpush.xpose.msrb.mxu3 %v8538_v43  ;;  %v5052_v43 = vrot.slane %v5051_v54, 1  ;;  %v5523_v36 = vmul.f32 %v5829_v32, %v5522_v18  ;;  %3581 = vmatpush.xpose.msrb.mxu2 %v10139_v49  ;;  %v5771_v62 = vmul.f32 -1.442695, %v2918_v33  ;;  %v5636_v24 = vcvt.s32.f32 %v8866_v20 }
 0x2f5   : > { %vm4340_vm15 = vcmp.lt.s32.totalorder %v4338_v52, %v4339_v14  ;;  %v10145_v18 = vand.u32 4294901760, %v8680_v51  ;;  %v10149_v27 = vand.u32 4294901760, %v10147_v47 }
 0x2f6   : > { %3469 = vmatpush.xpose.msrb.mxu0 %v8652_v45  ;;  %v9037_v8 = vmax.f32 %v5051_v54, %v5052_v43  ;;  %v4341_v6 = vsel %vm4340_vm15, %v4338_v52, %v4339_v14  ;;  %5832 = vpow2.f32 %v5771_v62 }
 0x2f7   : > { %v4342_v12 = vrot.slane %v4341_v6, 2  ;;  %3518 = vmatpush.xpose.msrb.mxu1 %v8605_v46  ;;  %5834 = vrcp.f32 %v9055_v17 }
 0x2f8   : > { %3634 = vmatpush.xpose.msrb.mxu3 %v8587_v39  ;;  %v5524_v39 = vadd.f32 %v5829_v32, %v5523_v36  ;;  %vm5085_vm3 = vcmp.eq.f32.partialorder %v8997_v58, %v9037_v8  ;;  %vm5093_vm1 = vcmp.eq.f32.partialorder %v9000_v1, %v9037_v8  ;;  %3585 = vmatpush.xpose.msrb.mxu2 %v10142_v23  ;;  %v10148_v36 = vld [vmem:[#allocation16_spill] sm:$0xff] }
 0x2f9   : > { %v5101_v45 = vsel %vm5085_vm3, %v7034_v30, 16  ;;  %v5109_v25 = vsel %vm5093_vm1, %v7088_v50, 16  ;;  %vm4343_vm0 = vcmp.lt.s32.totalorder %v4341_v6, %v4342_v12  ;;  %vm10146_vm3 = vcmask 1046528  }
 0x2fa   : > { %3472 = vmatpush.xpose.msrb.mxu0 %v8663_v40  ;;  %v5528_v21 = vsel %vm5527_vm7, %v5829_v32, %v5524_v39  ;;  %vm5147_vm15 = vcmp.lt.s32.totalorder %v5101_v45, %v5109_v25  ;;  %v4344_v41 = vsel %vm4343_vm0, %v4341_v6, %v4342_v12  ;;  %v5354_v40 = vsel %vm9032_vm9, %v9013_v26, %v5352_v38  ;;  %v10150_v39 = vld [vmem:[#allocation13_spill] sm:$0xff] }
 0x2fb   : > { %v5533_v11 = vsel %vm9042_vm14, %v5532_v9, %v5528_v21  ;;  %v5148_v53 = vsel %vm5147_vm15, %v5101_v45, %v5109_v25  ;;  %v4345_v5 = vrot.slane %v4344_v41, 1  ;;  %3520 = vmatpush.xpose.msrb.mxu1 %v8616_v22  ;;  %v5644_v57 = vcvt.s32.f32 %v5354_v40 }
 0x2fc   : > { %3636 = vmatpush.xpose.msrb.mxu3 %v8605_v46  ;;  %v5534_v46 = vmul.f32 %v5533_v11, %v8957_v28  ;;  %v5149_v31 = vrot.slane %v5148_v53, 4  ;;  %3589 = vmatpush.xpose.msrb.mxu2 %v10144_v3  ;;  %v3812_v12 = vand.u32 2147483647, %v9055_v17 }
 0x2fd   : > { %vm4346_vm10 = vcmp.lt.s32.totalorder %v4344_v41, %v4345_v5 }
 0x2fe   : > { %3475 = vmatpush.xpose.msrb.mxu0 %v8666_v7  ;;  %v5612_v0 = vmul.f32 2.5, %v5534_v46  ;;  %vm5150_vm5 = vcmp.lt.s32.totalorder %v5148_v53, %v5149_v31  ;;  %v9071_v32 = vsel %vm4346_vm10, %v4344_v41, %v4345_v5  ;;  %vm3808_vm10 = vweird.f32 %v9055_v17 }
 0x2ff   : > { %v5151_v28 = vsel %vm5150_vm5, %v5148_v53, %v5149_v31  ;;  %vm4398_vm14 = vcmp.eq.s32.totalorder %v7034_v30, %v9071_v32  ;;  %3522 = vmatpush.xpose.msrb.mxu1 %v8634_v2 }
 0x300   : > { %3638 = vmatpush.xpose.msrb.mxu3 %v8616_v22  ;;  %v5833_v22 = vpop.eup %5832  ;;  %v5652_v26 = vsel %vm3971_vm2, %v5612_v0, %v5620_v29  ;;  %v5152_v38 = vrot.slane %v5151_v28, 2  ;;  %v9082_v54 = vsel %vm4398_vm14, -1e+30, %v8970_v15  ;;  %3593 = vmatpush.xpose.msrb.mxu2 %v10145_v18  ;;  %vm3813_vm14 = vcmp.eq.f32.partialorder %v3812_v12, 8.507059e+37  ;;  %v10152_v29 = vld [vmem:[#allocation20_spill] sm:$0xff] }
 0x301   : > { %v5835_v7 = vpop.eup %5834  ;;  %v5661_v52 = vsel %vm5658_vm6, %v5652_v26, %v5628_v61  ;;  %v4438_v35 = vsel %vm3971_vm2, %v9082_v54, -inf  ;;  %v9088_v13 = vadd.f32 1.0, %v5833_v22  ;;  %v10153_v22 = vand.u32 4294901760, %v8821_v63 }
 0x302   : > { %3478 = vmatpush.xpose.msrb.mxu0 %v8680_v51  ;;  %v5670_v20 = vsel %vm9825_vm8, %v5661_v52, %v5636_v24  ;;  %vm5153_vm9 = vcmp.lt.s32.totalorder %v5151_v28, %v5152_v38  ;;  %v4439_v14 = vrot.slane %v4438_v35, 4  ;;  %v3804_v15 = vmul.f32 %v5835_v7, %v9055_v17 }
 0x303   : > { %v5679_v42 = vsel %vm10146_vm3, %v5670_v20, %v5644_v57  ;;  %v5154_v43 = vsel %vm5153_vm9, %v5151_v28, %v5152_v38  ;;  %5836 = vrcp.f32 %v9088_v13  ;;  %3524 = vmatpush.xpose.msrb.mxu1 %v10148_v36  ;;  %v3814_v51 = vand.u32 2147483648, %v9055_v17 }
 0x304   : > { %3640 = vmatpush.xpose.msrb.mxu3 %v8634_v2  ;;  %5687 = vst [vmem:[%s8003_s24 + $0x10] sm:$0xff] %v5679_v42  ;;  %v5155_v10 = vrot.slane %v5154_v43, 1  ;;  %v4440_v33 = vmax.f32 %v4438_v35, %v4439_v14  ;;  %v3805_v2 = vsub.f32 1.0, %v3804_v15  ;;  %3597 = vmatpush.xpose.msrb.mxu2 %v10149_v27  ;;  %vm3809_vm7 = vweird.f32 %v5835_v7  ;;  %v10156_v35 = vld [vmem:[#allocation15_spill] sm:$0xff] }
 0x305   : > { %vm3810_vm5 = vmor %vm3808_vm10, %vm3809_vm7  ;;  %v3815_v11 = vor.u32 1.1754944e-38, %v3814_v51  ;;  %vm3928_vm9 = vweird.f32 %v9088_v13  ;;  %v3934_v0 = vand.u32 2147483648, %v9088_v13  ;;  %v10157_v42 = vand.u32 4294901760, %v8880_v44 }
 0x306   : > { %3481 = vmatpush.xpose.msrb.mxu0 %v10147_v47  ;;  %vm5156_vm1 = vcmp.lt.s32.totalorder %v5154_v43, %v5155_v10  ;;  %v4441_v6 = vrot.slane %v4440_v33, 2  ;;  %v3806_v49 = vmul.f32 %v5835_v7, %v3805_v2  ;;  %v10159_v2 = vld [vmem:[#allocation34_spill] sm:$0xff] }
 0x307   : > { %v9104_v34 = vsel %vm5156_vm1, %v5154_v43, %v5155_v10  ;;  %3526 = vmatpush.xpose.msrb.mxu1 %v10150_v39  ;;  %v3935_v14 = vor.u32 1.1754944e-38, %v3934_v0 }
 0x308   : > { %3642 = vmatpush.xpose.msrb.mxu3 %v10148_v36  ;;  %vm5205_vm0 = vcmp.eq.s32.totalorder %v7034_v30, %v9104_v34  ;;  %vm5213_vm15 = vcmp.eq.s32.totalorder %v7088_v50, %v9104_v34  ;;  %v4442_v62 = vmax.f32 %v4440_v33, %v4441_v6  ;;  %v3807_v21 = vadd.f32 %v5835_v7, %v3806_v49  ;;  %v10158_v33 = vld [vmem:[#allocation27_spill] sm:$0xff] }
 0x309   : > { %v5837_v9 = vpop.eup %5836  ;;  %v9114_v45 = vsel %vm5205_vm0, -1e+30, %v8997_v58  ;;  %v9117_v25 = vsel %vm5213_vm15, -1e+30, %v9000_v1  ;;  %v10151_v58 = vand.u32 4294901760, %v8789_v56  ;;  %v5413_v36 = vsel %vm4197_vm11, %v10159_v2, %v8929_v60 }
 0x30a   : > { %3484 = vmatpush.xpose.msrb.mxu0 %v8789_v56  ;;  %v5255_v41 = vmax.f32 %v9114_v45, %v9117_v25  ;;  %v4443_v23 = vrot.slane %v4442_v62, 1  ;;  %v3924_v53 = vmul.f32 %v5837_v9, %v9088_v13  ;;  %v3811_v5 = vsel %vm3810_vm5, %v5835_v7, %v3807_v21 }
 0x30b   : > { %3601 = vmatpush.xpose.msrb.mxu2 %v10151_v58  ;;  %v3932_v1 = vand.u32 2147483647, %v9088_v13  ;;  %v9130_v31 = vsel %vm3813_vm14, %v3815_v11, %v3811_v5  ;;  %3528 = vmatpush.xpose.msrb.mxu1 %v10152_v29  ;;  %vm3929_vm3 = vweird.f32 %v5837_v9  ;;  %v5421_v51 = vsel %vm4206_vm12, %v5413_v36, %v9037_v8 }
 0x30c   : > { %3644 = vmatpush.xpose.msrb.mxu3 %v10150_v39  ;;  %v5256_v17 = vrot.slane %v5255_v41, 4  ;;  %v4444_v46 = vmax.f32 %v4442_v62, %v4443_v23  ;;  %v3925_v16 = vsub.f32 1.0, %v3924_v53  ;;  %v4007_v40 = vsel %vm3971_vm2, %v9130_v31, -inf  ;;  %vm9148_vm7 = vmor %vm3928_vm9, %vm3929_vm3  ;;  %v10160_v62 = vld [vmem:[#allocation2_spill] sm:$0xff] }
 0x30d   : > { %v4064_v56 = vsel %vm4028_vm4, %v9130_v31, -inf  ;;  %v4008_v61 = vrot.slane %v4007_v40, 4  ;;  %vm3933_vm0 = vcmp.eq.f32.partialorder %v3932_v1, 8.507059e+37  ;;  %v10161_v39 = vand.u32 4294901760, %v8907_v55 }
 0x30e   : > { %3487 = vmatpush.xpose.msrb.mxu0 %v8821_v63  ;;  %v5257_v3 = vmax.f32 %v5255_v41, %v5256_v17  ;;  %vm4470_vm1 = vcmp.eq.f32.partialorder %v9082_v54, %v4444_v46  ;;  %v4065_v28 = vrot.slane %v4064_v56, 4  ;;  %v3926_v26 = vmul.f32 %v5837_v9, %v3925_v16 }
 0x30f   : > { %3605 = vmatpush.xpose.msrb.mxu2 %v10153_v22  ;;  %v4478_v24 = vsel %vm4470_vm1, %v7034_v30, 4  ;;  %v4009_v57 = vmax.f32 %v4007_v40, %v4008_v61  ;;  %3530 = vmatpush.xpose.msrb.mxu1 %v10156_v35  ;;  %v10164_v61 = vld [vmem:[#allocation5_spill] sm:$0xff] }
 0x310   : > { %3646 = vmatpush.xpose.msrb.mxu3 %v10152_v29  ;;  %v5258_v38 = vrot.slane %v5257_v3, 2  ;;  %v4522_v7 = vsel %vm3971_vm2, %v4478_v24, 2147483647  ;;  %v4066_v52 = vmax.f32 %v4064_v56, %v4065_v28  ;;  %v3927_v20 = vadd.f32 %v5837_v9, %v3926_v26  ;;  %v10165_v28 = vld [vmem:[#allocation24_spill] sm:$0xff] }
 0x311   : > { %v4523_v63 = vrot.slane %v4522_v7, 4  ;;  %v4010_v18 = vrot.slane %v4009_v57, 2 }
 0x312   : > { %3490 = vmatpush.xpose.msrb.mxu0 %v8880_v44  ;;  %v5259_v15 = vmax.f32 %v5257_v3, %v5258_v38  ;;  %v4067_v43 = vrot.slane %v4066_v52, 2  ;;  %v3931_v13 = vsel %vm9148_vm7, %v5837_v9, %v3927_v20  ;;  %v10166_v38 = vld [vmem:[#allocation3_spill] sm:$0xff] }
 0x313   : > { %3609 = vmatpush.xpose.msrb.mxu2 %v10157_v42  ;;  %vm4524_vm15 = vcmp.lt.s32.totalorder %v4522_v7, %v4523_v63  ;;  %3532 = vmatpush.xpose.msrb.mxu1 %v10158_v33  ;;  %v9163_v49 = vsel %vm3933_vm0, %v3935_v14, %v3931_v13  ;;  %v4011_v27 = vmax.f32 %v4009_v57, %v4010_v18 }
 0x314   : > { %3648 = vmatpush.xpose.msrb.mxu3 %v10156_v35  ;;  %v5260_v47 = vrot.slane %v5259_v15, 1  ;;  %v4525_v10 = vsel %vm4524_vm15, %v4522_v7, %v4523_v63  ;;  %v4120_v12 = vsel %vm3971_vm2, %v9163_v49, -inf  ;;  %v4068_v60 = vmax.f32 %v4066_v52, %v4067_v43 }
 0x315   : > { %v4526_v6 = vrot.slane %v4525_v10, 2  ;;  %v4121_v9 = vrot.slane %v4120_v12, 4  ;;  %v4176_v21 = vsel %vm4028_vm4, %v9163_v49, -inf  ;;  %v4012_v58 = vrot.slane %v4011_v27, 1 }
 0x316   : > { %3493 = vmatpush.xpose.msrb.mxu0 %v8907_v55  ;;  %v5261_v44 = vmax.f32 %v5259_v15, %v5260_v47  ;;  %v4177_v17 = vrot.slane %v4176_v21, 4  ;;  %v4069_v40 = vrot.slane %v4068_v60, 1 }
 0x317   : > { %3613 = vmatpush.xpose.msrb.mxu2 %v10161_v39  ;;  %vm4527_vm10 = vcmp.lt.s32.totalorder %v4525_v10, %v4526_v6  ;;  %3534 = vmatpush.xpose.msrb.mxu1 %v8845_v19  ;;  %v4122_v1 = vmax.f32 %v4120_v12, %v4121_v9  ;;  %v4013_v52 = vmax.f32 %v4011_v27, %v4012_v58 }
 0x318   : > { %3650 = vmatpush.xpose.msrb.mxu3 %v10158_v33  ;;  %vm5293_vm5 = vcmp.eq.f32.partialorder %v9114_v45, %v5261_v44  ;;  %vm5301_vm14 = vcmp.eq.f32.partialorder %v9117_v25, %v5261_v44  ;;  %v9178_v8 = vsel %vm4215_vm13, %v5421_v51, %v5261_v44  ;;  %v4528_v41 = vsel %vm4527_vm10, %v4525_v10, %v4526_v6  ;;  %v10162_v25 = vld [vmem:[#allocation7_spill] sm:$0xff]  ;;  %v10168_v6 = vld [vmem:[#allocation6_spill] sm:$0xff] }
 0x319   : > { %3496 = vmatmul.f32.vlgmr.msrb.gmra.mxu0 %v10160_v62  ;;  %v5309_v23 = vsel %vm5293_vm5, %v7034_v30, 16  ;;  %v5317_v55 = vsel %vm5301_vm14, %v7088_v50, 16  ;;  %v5455_v11 = vsel %vm3971_vm2, %v9178_v8, 0.0  ;;  %v4529_v53 = vrot.slane %v4528_v41, 1 }
 0x31a   : > { %3615 = vmatmul.f32.vlgmr.msrb.gmra.mxu2 %v6217_v37  ;;  %vm5355_vm9 = vcmp.lt.s32.totalorder %v5309_v23, %v5317_v55  ;;  %v5456_v45 = vrot.slane %v5455_v11, 4  ;;  %vm4382_vm3 = vcmp.eq.s32.totalorder %v10162_v25, %v9071_v32  ;;  %v4123_v56 = vrot.slane %v4122_v1, 2 }
 0x31b   : > { %v5356_v5 = vsel %vm5355_vm9, %v5309_v23, %v5317_v55  ;;  %vm4530_vm1 = vcmp.lt.s32.totalorder %v4528_v41, %v4529_v53  ;;  %3536 = vmatpush.xpose.msrb.mxu1 %v8864_v59  ;;  %v4178_v0 = vmax.f32 %v4176_v21, %v4177_v17  ;;  %v4070_v54 = vmax.f32 %v4068_v60, %v4069_v40 }
 0x31c   : > { %3652 = vmatpush.xpose.msrb.mxu3 %v8845_v19  ;;  %v5357_v46 = vrot.slane %v5356_v5, 4  ;;  %v5457_v16 = vadd.f32 %v5456_v45, %v5455_v11  ;;  %v4531_v29 = vsel %vm4530_vm1, %v4528_v41, %v4529_v53  ;;  %v10163_v19 = vld [vmem:[#allocation9_spill] sm:$0xff]  ;;  %v4124_v24 = vmax.f32 %v4122_v1, %v4123_v56 }
 0x31d   : > { %vm4566_vm7 = vcmp.eq.s32.totalorder %v10162_v25, %v4531_v29  ;;  %vm4574_vm0 = vcmp.eq.s32.totalorder %v10163_v19, %v4531_v29  ;;  %vm4390_vm15 = vcmp.eq.s32.totalorder %v10163_v19, %v9071_v32  ;;  %v4179_v26 = vrot.slane %v4178_v0, 2 }
 0x31e   : > { %v5458_v3 = vrot.slane %v5457_v16, 2  ;;  %vm4582_vm10 = vmor %vm4382_vm3, %vm4566_vm7  ;;  %3540 = vmatmul.f32.vlgmr.msrb.gmra.mxu1 %v10166_v38  ;;  %vm5358_vm14 = vcmp.lt.s32.totalorder %v5356_v5, %v5357_v46  ;;  %v4125_v35 = vrot.slane %v4124_v24, 1  ;;  %v4203_v13 = vsel %vm4197_vm11, %v4013_v52, %v4070_v54  ;;  %v10169_v52 = vld [vmem:[#allocation21_spill] sm:$0xff] }
 0x31f   : > { %vm4590_vm5 = vmor %vm4390_vm15, %vm4574_vm0  ;;  %v9200_v22 = vsel %vm4582_vm10, %v10165_v28, 0.0  ;;  %v4180_v63 = vmax.f32 %v4178_v0, %v4179_v26  ;;  %v5359_v42 = vsel %vm5358_vm14, %v5356_v5, %v5357_v46  ;;  %v5621_v54 = vcvt.s32.f32 %v10169_v52 }
 0x320   : > { %3654 = vmatpush.xpose.msrb.mxu3 %v8864_v59  ;;  %v5459_v7 = vadd.f32 %v5458_v3, %v5457_v16  ;;  %v10167_v59 = vld [vmem:[#allocation18_spill] sm:$0xff]  ;;  %v4126_v15 = vmax.f32 %v4124_v24, %v4125_v35  ;;  %v5360_v33 = vrot.slane %v5359_v42, 2 }
 0x321   : > { %3501 = vmatmul.f32.gmra.mxu0 %v10164_v61  ;;  %v9204_v57 = vsel %vm4590_vm5, %v10167_v59, 0.0  ;;  %v4181_v18 = vrot.slane %v4180_v63, 1 }
 0x322   : > { %v4638_v32 = vmax.f32 %v9200_v22, %v9204_v57  ;;  %3619 = vmatmul.f32.gmra.mxu2 %v6266_v4  ;;  %v5460_v20 = vrot.slane %v5459_v7, 1  ;;  %vm5361_vm9 = vcmp.lt.s32.totalorder %v5359_v42, %v5360_v33 }
 0x323   : > { %3656 = vmatmul.f32.vlgmr.msrb.gmra.mxu3 %v6217_v37  ;;  %v4182_v10 = vmax.f32 %v4180_v63, %v4181_v18  ;;  %v4212_v37 = vsel %vm4206_vm12, %v4203_v13, %v4126_v15  ;;  %v5362_v41 = vsel %vm5361_vm9, %v5359_v42, %v5360_v33  ;;  %v5637_v63 = vcvt.s32.f32 %v9104_v34 }
 0x324   : > { %v4639_v14 = vrot.slane %v4638_v32, 4  ;;  %v5461_v43 = vadd.f32 %v5460_v20, %v5459_v7  ;;  %v5363_v1 = vrot.slane %v5362_v41, 1 }
 0x325   : > { %v9213_v36 = vsel %vm4215_vm13, %v4212_v37, %v4182_v10 }
 0x326   : > { %v4640_v47 = vmax.f32 %v4638_v32, %v4639_v14  ;;  %5838 = vrcp.f32 %v5461_v43  ;;  %3546 = vmatmul.f32.gmra.mxu1 %v10168_v6  ;;  %v4261_v44 = vsel %vm3971_vm2, %v9213_v36, -inf  ;;  %v5546_v11 = vand.u32 2147483648, %v5461_v43 }
 0x327   : > { %v4262_v27 = vrot.slane %v4261_v44, 4  ;;  %vm5540_vm15 = vweird.f32 %v5461_v43  ;;  %v5629_v32 = vcvt.s32.f32 %v8986_v48 }
 0x328   : > { %v4641_v2 = vrot.slane %v4640_v47, 2  ;;  %v5547_v40 = vor.u32 1.1754944e-38, %v5546_v11  ;;  %v3125_v11 = vpop.f32.mrf.mxu2 }
 0x329   : > { %v4263_v62 = vmax.f32 %v4261_v44, %v4262_v27 }
 0x32a   : > { %v4642_v51 = vmax.f32 %v4640_v47, %v4641_v2  ;;  %v2958_v2 = vpop.f32.mrf.mxu0 }
 0x32b   : > { %3660 = vmatmul.f32.gmra.mxu3 %v6266_v4  ;;  %v4264_v21 = vrot.slane %v4263_v62, 2  ;;  %v5544_v4 = vand.u32 2147483647, %v5461_v43 }
 0x32c   : > { %v4643_v12 = vrot.slane %v4642_v51, 1  ;;  %v5839_v39 = vpop.eup %5838 }
 0x32d   : > { %v5536_v60 = vmul.f32 %v5839_v39, %v5461_v43  ;;  %v4265_v55 = vmax.f32 %v4263_v62, %v4264_v21  ;;  %vm5541_vm7 = vweird.f32 %v5839_v39  ;;  %vm5545_vm5 = vcmp.eq.f32.partialorder %v5544_v4, 8.507059e+37 }
 0x32e   : > { %v9219_v9 = vmax.f32 %v4642_v51, %v4643_v12  ;;  %vm5542_vm10 = vmor %vm5540_vm15, %vm5541_vm7  ;;  %vm10170_vm15 = vcmask 1046528  }
 0x32f   : > { %v5537_v23 = vsub.f32 1.0, %v5536_v60  ;;  %v4266_v5 = vrot.slane %v4265_v55, 1  ;;  %v3067_v60 = vpop.f32.mrf.mxu1 }
 0x330   : > { %vm4670_vm3 = vcmp.eq.f32.partialorder %v9200_v22, %v9219_v9  ;;  %vm4678_vm1 = vcmp.eq.f32.partialorder %v9204_v57, %v9219_v9 }
 0x331   : > { %v4686_v53 = vsel %vm4670_vm3, %v7034_v30, 16  ;;  %v4694_v45 = vsel %vm4678_vm1, %v7088_v50, 16  ;;  %v5538_v58 = vmul.f32 %v5839_v39, %v5537_v23  ;;  %v4267_v29 = vmax.f32 %v4265_v55, %v4266_v5 }
 0x332   : > { %vm4742_vm0 = vcmp.lt.s32.totalorder %v4686_v53, %v4694_v45  ;;  %vm5364_vm3 = vcmp.lt.s32.totalorder %v5362_v41, %v5363_v1  ;;  %v2966_v23 = vpop.f32.mrf.mxu0 }
 0x333   : > { %v4743_v17 = vsel %vm4742_vm0, %v4686_v53, %v4694_v45  ;;  %v5539_v46 = vadd.f32 %v5839_v39, %v5538_v58  ;;  %vm4287_vm9 = vcmp.eq.f32.partialorder %v9213_v36, %v4267_v29  ;;  %v5365_v7 = vsel %vm5364_vm3, %v5362_v41, %v5363_v1 }
 0x334   : > { %v4744_v16 = vrot.slane %v4743_v17, 4  ;;  %v4295_v61 = vsel %vm4287_vm9, %v7034_v30, 4  ;;  %v5645_v15 = vcvt.s32.f32 %v5365_v7  ;;  %v3068_v53 = vadd.f32 %v3067_v60, %v2958_v2 }
 0x335   : > { %v5543_v56 = vsel %vm5542_vm10, %v5839_v39, %v5539_v46  ;;  %v4348_v26 = vsel %vm3971_vm2, %v4295_v61, 2147483647 }
 0x336   : > { %vm4745_vm14 = vcmp.lt.s32.totalorder %v4743_v17, %v4744_v16  ;;  %v5548_v0 = vsel %vm5545_vm5, %v5547_v40, %v5543_v56  ;;  %v4349_v38 = vrot.slane %v4348_v26, 4 }
 0x337   : > { %v4746_v3 = vsel %vm4745_vm14, %v4743_v17, %v4744_v16  ;;  %v5549_v28 = vmul.f32 %v5548_v0, %v9178_v8  ;;  %v3169_v17 = vpop.f32.mrf.mxu3  ;;  %v3126_v16 = vadd.f32 %v3125_v11, %v3068_v53  ;;  %v3071_v40 = vpop.f32.mrf.mxu1 }
 0x338   : > { %v4747_v24 = vrot.slane %v4746_v3, 2  ;;  %vm4350_vm7 = vcmp.lt.s32.totalorder %v4348_v26, %v4349_v38 }
 0x339   : > { %v5613_v59 = vmul.f32 2.5, %v5549_v28  ;;  %v4351_v8 = vsel %vm4350_vm7, %v4348_v26, %v4349_v38  ;;  %v3170_v26 = vadd.f32 %v3169_v17, %v3126_v16  ;;  %v3130_v38 = vpop.f32.mrf.mxu2 }
 0x33a   : > { %vm4748_vm1 = vcmp.lt.s32.totalorder %v4746_v3, %v4747_v24  ;;  %v4352_v42 = vrot.slane %v4351_v8, 2 }
 0x33b   : > { %v4749_v35 = vsel %vm4748_vm1, %v4746_v3, %v4747_v24  ;;  %v5653_v20 = vsel %vm3971_vm2, %v5613_v59, %v5621_v54  ;;  %v3072_v24 = vadd.f32 %v3071_v40, %v2966_v23 }
 0x33c   : > { %v4750_v14 = vrot.slane %v4749_v35, 1  ;;  %v5662_v18 = vsel %vm5658_vm6, %v5653_v20, %v5629_v32  ;;  %vm4353_vm10 = vcmp.lt.s32.totalorder %v4351_v8, %v4352_v42 }
 0x33d   : > { %v5671_v43 = vsel %vm9825_vm8, %v5662_v18, %v5637_v63  ;;  %v4354_v48 = vsel %vm4353_vm10, %v4351_v8, %v4352_v42 }
 0x33e   : > { %vm4751_vm0 = vcmp.lt.s32.totalorder %v4749_v35, %v4750_v14  ;;  %v5680_v13 = vsel %vm10170_vm15, %v5671_v43, %v5645_v15  ;;  %v4355_v37 = vrot.slane %v4354_v48, 1 }
 0x33f   : > { %v9238_v47 = vsel %vm4751_vm0, %v4749_v35, %v4750_v14  ;;  %5688 = vst [vmem:[%s8003_s24 + $0x18] sm:$0xff] %v5680_v13  ;;  %v3131_v35 = vadd.f32 %v3130_v38, %v3072_v24  ;;  %v3175_v63 = vpop.f32.mrf.mxu3 }
 0x340   : > { %vm4790_vm5 = vcmp.eq.s32.totalorder %v7034_v30, %v9238_v47  ;;  %vm4798_vm14 = vcmp.eq.s32.totalorder %v7088_v50, %v9238_v47  ;;  %vm4356_vm9 = vcmp.lt.s32.totalorder %v4354_v48, %v4355_v37 }
 0x341   : > { %v9246_v34 = vsel %vm4790_vm5, -1e+30, %v9200_v22  ;;  %v9249_v10 = vsel %vm4798_vm14, -1e+30, %v9204_v57  ;;  %v9253_v44 = vsel %vm4356_vm9, %v4354_v48, %v4355_v37  ;;  %v3176_v42 = vadd.f32 %v3175_v63, %v3131_v35 }
 0x342   : > { %v4846_v33 = vmax.f32 %v9246_v34, %v9249_v10  ;;  %vm4399_vm3 = vcmp.eq.s32.totalorder %v7034_v30, %v9253_v44 }
 0x343   : > { %v4407_v27 = vsel %vm4399_vm3, -1e+30, %v9213_v36 }
 0x344   : > { %v4847_v6 = vrot.slane %v4846_v33, 4  ;;  %v4445_v22 = vsel %vm3971_vm2, %v4407_v27, -inf }
 0x345   : > { %v4446_v57 = vrot.slane %v4445_v22, 4 }
 0x346   : > { %v4848_v51 = vmax.f32 %v4846_v33, %v4847_v6 }
 0x347   : > { %v4447_v39 = vmax.f32 %v4445_v22, %v4446_v57 }
 0x348   : > { %v4849_v12 = vrot.slane %v4848_v51, 2 }
 0x349   : > { %v4448_v41 = vrot.slane %v4447_v39, 2 }
 0x34a   : > { %v4850_v62 = vmax.f32 %v4848_v51, %v4849_v12 }
 0x34b   : > { %v4449_v4 = vmax.f32 %v4447_v39, %v4448_v41 }
 0x34c   : > { %v4851_v21 = vrot.slane %v4850_v62, 1 }
 0x34d   : > { %v4450_v36 = vrot.slane %v4449_v4, 1 }
 0x34e   : > { %v9259_v55 = vmax.f32 %v4850_v62, %v4851_v21 }
 0x34f   : > { %v4451_v5 = vmax.f32 %v4449_v4, %v4450_v36 }
 0x350   : > { %vm4878_vm1 = vcmp.eq.f32.partialorder %v9246_v34, %v9259_v55  ;;  %vm4886_vm7 = vcmp.eq.f32.partialorder %v9249_v10, %v9259_v55 }
 0x351   : > { %v4894_v45 = vsel %vm4878_vm1, %v7034_v30, 16  ;;  %v4902_v58 = vsel %vm4886_vm7, %v7088_v50, 16  ;;  %vm4471_vm15 = vcmp.eq.f32.partialorder %v4407_v27, %v4451_v5 }
 0x352   : > { %vm4950_vm0 = vcmp.lt.s32.totalorder %v4894_v45, %v4902_v58  ;;  %v4479_v29 = vsel %vm4471_vm15, %v7034_v30, 4  ;;  %vm4383_vm15 = vcmp.eq.s32.totalorder %v10162_v25, %v9253_v44 }
 0x353   : > { %v4951_v1 = vsel %vm4950_vm0, %v4894_v45, %v4902_v58  ;;  %v4532_v56 = vsel %vm3971_vm2, %v4479_v29, 2147483647 }
 0x354   : > { %v4952_v46 = vrot.slane %v4951_v1, 4  ;;  %v4533_v3 = vrot.slane %v4532_v56, 4 }
 0x356   : > { %vm4953_vm10 = vcmp.lt.s32.totalorder %v4951_v1, %v4952_v46  ;;  %v3244_v61 = vpop.f32.mrf.mxu0  ;;  %vm4534_vm5 = vcmp.lt.s32.totalorder %v4532_v56, %v4533_v3 }
 0x357   : > { %v4954_v0 = vsel %vm4953_vm10, %v4951_v1, %v4952_v46  ;;  %v4535_v7 = vsel %vm4534_vm5, %v4532_v56, %v4533_v3  ;;  %v3245_v32 = vadd.f32 %v3244_v61, %v3170_v26 }
 0x358   : > { %v4955_v28 = vrot.slane %v4954_v0, 2  ;;  %v4536_v52 = vrot.slane %v4535_v7, 2 }
 0x35a   : > { %vm4956_vm14 = vcmp.lt.s32.totalorder %v4954_v0, %v4955_v28  ;;  %vm4537_vm9 = vcmp.lt.s32.totalorder %v4535_v7, %v4536_v52 }
 0x35b   : > { %v4957_v59 = vsel %vm4956_vm14, %v4954_v0, %v4955_v28  ;;  %v4538_v20 = vsel %vm4537_vm9, %v4535_v7, %v4536_v52  ;;  %v3285_v15 = vpop.f32.mrf.mxu1  ;;  %vm4391_vm14 = vcmp.eq.s32.totalorder %v10163_v19, %v9253_v44 }
 0x35c   : > { %v4958_v54 = vrot.slane %v4957_v59, 1  ;;  %v4539_v8 = vrot.slane %v4538_v20, 1  ;;  %v3286_v18 = vadd.f32 %v3285_v15, %v3245_v32 }
 0x35e   : > { %vm4959_vm3 = vcmp.lt.s32.totalorder %v4957_v59, %v4958_v54  ;;  %vm4540_vm0 = vcmp.lt.s32.totalorder %v4538_v20, %v4539_v8  ;;  %v3248_v48 = vpop.f32.mrf.mxu0  ;;  %v5764_v2 = vmul.f32 -1.442695, %v3286_v18 }
 0x35f   : > { %v9269_v14 = vsel %vm4959_vm3, %v4957_v59, %v4958_v54  ;;  %v4541_v33 = vsel %vm4540_vm0, %v4538_v20, %v4539_v8 }
 0x360   : > { %vm4998_vm1 = vcmp.eq.s32.totalorder %v7034_v30, %v9269_v14  ;;  %vm5006_vm7 = vcmp.eq.s32.totalorder %v7088_v50, %v9269_v14  ;;  %vm4567_vm10 = vcmp.eq.s32.totalorder %v10162_v25, %v4541_v33  ;;  %vm4575_vm5 = vcmp.eq.s32.totalorder %v10163_v19, %v4541_v33 }
 0x361   : > { %v9276_v43 = vsel %vm4998_vm1, -1e+30, %v9246_v34  ;;  %v9279_v13 = vsel %vm5006_vm7, -1e+30, %v9249_v10  ;;  %vm4583_vm9 = vmor %vm4383_vm15, %vm4567_vm10  ;;  %5840 = vpow2.f32 %v5764_v2  ;;  %v3249_v34 = vadd.f32 %v3248_v48, %v3176_v42 }
 0x362   : > { %v5054_v37 = vmax.f32 %v9276_v43, %v9279_v13  ;;  %vm4591_vm3 = vmor %vm4391_vm14, %vm4575_vm5  ;;  %v9290_v10 = vsel %vm4583_vm9, %v9130_v31, 0.0 }
 0x363   : > { %v9293_v27 = vsel %vm4591_vm3, %v9163_v49, 0.0  ;;  %v3289_v12 = vpop.f32.mrf.mxu1 }
 0x364   : > { %v5055_v6 = vrot.slane %v5054_v37, 4  ;;  %v4645_v22 = vmax.f32 %v9290_v10, %v9293_v27  ;;  %v3290_v62 = vadd.f32 %v3289_v12, %v3249_v34 }
 0x366   : > { %v5056_v51 = vmax.f32 %v5054_v37, %v5055_v6  ;;  %v4646_v39 = vrot.slane %v4645_v22, 4  ;;  %v5772_v21 = vmul.f32 -1.442695, %v3290_v62 }
 0x367   : > { %v5841_v60 = vpop.eup %5840 }
 0x368   : > { %v5057_v57 = vrot.slane %v5056_v51, 2  ;;  %v4647_v41 = vmax.f32 %v4645_v22, %v4646_v39  ;;  %v3718_v23 = vadd.f32 1.0, %v5841_v60  ;;  %5842 = vpow2.f32 %v5772_v21 }
 0x36a   : > { %v5058_v44 = vmax.f32 %v5056_v51, %v5057_v57  ;;  %v4648_v31 = vrot.slane %v4647_v41, 2  ;;  %5844 = vrcp.f32 %v3718_v23  ;;  %v3827_v40 = vand.u32 2147483647, %v3718_v23 }
 0x36b   : > { %v3829_v28 = vand.u32 2147483648, %v3718_v23 }
 0x36c   : > { %v5059_v4 = vrot.slane %v5058_v44, 1  ;;  %v4649_v49 = vmax.f32 %v4647_v41, %v4648_v31 }
 0x36d   : > { %v3830_v32 = vor.u32 1.1754944e-38, %v3829_v28 }
 0x36e   : > { %v9297_v11 = vmax.f32 %v5058_v44, %v5059_v4  ;;  %v4650_v45 = vrot.slane %v4649_v49, 1  ;;  %v5843_v58 = vpop.eup %5842 }
 0x36f   : > { %v9307_v46 = vadd.f32 1.0, %v5843_v58 }
 0x370   : > { %vm5086_vm1 = vcmp.eq.f32.partialorder %v9276_v43, %v9297_v11  ;;  %vm5094_vm7 = vcmp.eq.f32.partialorder %v9279_v13, %v9297_v11  ;;  %v5845_v5 = vpop.eup %5844  ;;  %v9305_v17 = vmax.f32 %v4649_v49, %v4650_v45 }
 0x371   : > { %v5102_v36 = vsel %vm5086_vm1, %v7034_v30, 16  ;;  %v5110_v53 = vsel %vm5094_vm7, %v7088_v50, 16  ;;  %v3819_v29 = vmul.f32 %v5845_v5, %v3718_v23  ;;  %5846 = vrcp.f32 %v9307_v46 }
 0x372   : > { %vm5158_vm0 = vcmp.lt.s32.totalorder %v5102_v36, %v5110_v53  ;;  %vm4671_vm15 = vcmp.eq.f32.partialorder %v9290_v10, %v9305_v17  ;;  %vm4679_vm10 = vcmp.eq.f32.partialorder %v9293_v27, %v9305_v17  ;;  %vm3824_vm9 = vweird.f32 %v5845_v5 }
 0x373   : > { %v5159_v1 = vsel %vm5158_vm0, %v5102_v36, %v5110_v53  ;;  %v4687_v56 = vsel %vm4671_vm15, %v7034_v30, 16  ;;  %v4695_v0 = vsel %vm4679_vm10, %v7088_v50, 16  ;;  %v3820_v3 = vsub.f32 1.0, %v3819_v29 }
 0x374   : > { %v5160_v16 = vrot.slane %v5159_v1, 4  ;;  %vm4753_vm14 = vcmp.lt.s32.totalorder %v4687_v56, %v4695_v0  ;;  %vm3823_vm1 = vweird.f32 %v3718_v23  ;;  %vm3828_vm7 = vcmp.eq.f32.partialorder %v3827_v40, 8.507059e+37 }
 0x375   : > { %v4754_v26 = vsel %vm4753_vm14, %v4687_v56, %v4695_v0  ;;  %v3821_v38 = vmul.f32 %v5845_v5, %v3820_v3  ;;  %vm3825_vm8 = vmor %vm3823_vm1, %vm3824_vm9  ;;  %vm3943_vm15 = vweird.f32 %v9307_v46  ;;  %v3947_v42 = vand.u32 2147483647, %v9307_v46  ;;  %v9357_v56 = vpop.f32.mrf.mxu2 }
 0x376   : > { %vm5161_vm5 = vcmp.lt.s32.totalorder %v5159_v1, %v5160_v16  ;;  %v4755_v7 = vrot.slane %v4754_v26, 4  ;;  %v3949_v48 = vand.u32 2147483648, %v9307_v46 }
 0x377   : > { %v5162_v61 = vsel %vm5161_vm5, %v5159_v1, %v5160_v16  ;;  %v3822_v59 = vadd.f32 %v5845_v5, %v3821_v38  ;;  %v5847_v52 = vpop.eup %5846 }
 0x378   : > { %v5163_v24 = vrot.slane %v5162_v61, 2  ;;  %vm4756_vm0 = vcmp.lt.s32.totalorder %v4754_v26, %v4755_v7  ;;  %v3939_v8 = vmul.f32 %v5847_v52, %v9307_v46  ;;  %vm3944_vm9 = vweird.f32 %v5847_v52 }
 0x379   : > { %v4757_v63 = vsel %vm4756_vm0, %v4754_v26, %v4755_v7  ;;  %v3826_v20 = vsel %vm3825_vm8, %v5845_v5, %v3822_v59  ;;  %v3950_v23 = vor.u32 1.1754944e-38, %v3949_v48  ;;  %vm3945_vm1 = vmor %vm3943_vm15, %vm3944_vm9 }
 0x37a   : > { %vm5164_vm3 = vcmp.lt.s32.totalorder %v5162_v61, %v5163_v24  ;;  %v4758_v15 = vrot.slane %v4757_v63, 2  ;;  %v9318_v18 = vsel %vm3828_vm7, %v3830_v32, %v3826_v20  ;;  %v3940_v2 = vsub.f32 1.0, %v3939_v8 }
 0x37b   : > { %v5165_v54 = vsel %vm5164_vm3, %v5162_v61, %v5163_v24  ;;  %v4014_v37 = vsel %vm3971_vm2, %v9318_v18, -inf  ;;  %v4071_v33 = vsel %vm4028_vm4, %v9318_v18, -inf }
 0x37c   : > { %v5166_v35 = vrot.slane %v5165_v54, 1  ;;  %vm4759_vm8 = vcmp.lt.s32.totalorder %v4757_v63, %v4758_v15  ;;  %v4015_v34 = vrot.slane %v4014_v37, 4  ;;  %v4072_v51 = vrot.slane %v4071_v33, 4 }
 0x37d   : > { %v4760_v22 = vsel %vm4759_vm8, %v4757_v63, %v4758_v15  ;;  %v3941_v21 = vmul.f32 %v5847_v52, %v3940_v2 }
 0x37e   : > { %vm5167_vm10 = vcmp.lt.s32.totalorder %v5165_v54, %v5166_v35  ;;  %v4761_v62 = vrot.slane %v4760_v22, 1  ;;  %v4016_v39 = vmax.f32 %v4014_v37, %v4015_v34  ;;  %v4073_v44 = vmax.f32 %v4071_v33, %v4072_v51  ;;  %v3439_v51 = vpop.f32.mrf.mxu3 }
 0x37f   : > { %v9326_v6 = vsel %vm5167_vm10, %v5165_v54, %v5166_v35  ;;  %v3942_v36 = vadd.f32 %v5847_v52, %v3941_v21  ;;  %vm3948_vm10 = vcmp.eq.f32.partialorder %v3947_v42, 8.507059e+37  ;;  %v5414_v54 = vsel %vm4197_vm11, %v9219_v9, %v9259_v55 }
 0x380   : > { %vm5206_vm5 = vcmp.eq.s32.totalorder %v7034_v30, %v9326_v6  ;;  %vm5214_vm14 = vcmp.eq.s32.totalorder %v7088_v50, %v9326_v6  ;;  %vm4762_vm3 = vcmp.lt.s32.totalorder %v4760_v22, %v4761_v62  ;;  %v4017_v41 = vrot.slane %v4016_v39, 2 }
 0x381   : > { %v5222_v12 = vsel %vm5206_vm5, -1e+30, %v9276_v43  ;;  %v5230_v57 = vsel %vm5214_vm14, -1e+30, %v9279_v13  ;;  %v9334_v31 = vsel %vm4762_vm3, %v4760_v22, %v4761_v62  ;;  %v4074_v49 = vrot.slane %v4073_v44, 2 }
 0x382   : > { %v5262_v60 = vmax.f32 %v5222_v12, %v5230_v57  ;;  %vm4791_vm7 = vcmp.eq.s32.totalorder %v7034_v30, %v9334_v31  ;;  %vm4799_vm0 = vcmp.eq.s32.totalorder %v7088_v50, %v9334_v31  ;;  %v4018_v58 = vmax.f32 %v4016_v39, %v4017_v41 }
 0x383   : > { %v9344_v13 = vsel %vm4791_vm7, -1e+30, %v9290_v10  ;;  %v9347_v53 = vsel %vm4799_vm0, -1e+30, %v9293_v27  ;;  %v4075_v5 = vmax.f32 %v4073_v44, %v4074_v49  ;;  %v3946_v1 = vsel %vm3945_vm1, %v5847_v52, %v3942_v36 }
 0x384   : > { %v5263_v4 = vrot.slane %v5262_v60, 4  ;;  %v4853_v45 = vmax.f32 %v9344_v13, %v9347_v53  ;;  %v9351_v16 = vsel %vm3948_vm10, %v3950_v23, %v3946_v1  ;;  %v4019_v28 = vrot.slane %v4018_v58, 1 }
 0x385   : > { %v4127_v40 = vsel %vm3971_vm2, %v9351_v16, -inf  ;;  %v4183_v10 = vsel %vm4028_vm4, %v9351_v16, -inf  ;;  %v4076_v24 = vrot.slane %v4075_v5, 1  ;;  %v5422_v63 = vsel %vm4206_vm12, %v5414_v54, %v9297_v11 }
 0x386   : > { %v5264_v43 = vmax.f32 %v5262_v60, %v5263_v4  ;;  %v4854_v29 = vrot.slane %v4853_v45, 4  ;;  %v4128_v0 = vrot.slane %v4127_v40, 4  ;;  %v4184_v3 = vrot.slane %v4183_v10, 4 }
 0x387   : > { %v4020_v8 = vmax.f32 %v4018_v58, %v4019_v28  ;;  %v4077_v15 = vmax.f32 %v4075_v5, %v4076_v24  ;;  %v3443_v28 = vpop.f32.mrf.mxu3 }
 0x388   : > { %v5265_v46 = vrot.slane %v5264_v43, 2  ;;  %v4855_v61 = vmax.f32 %v4853_v45, %v4854_v29  ;;  %v4129_v38 = vmax.f32 %v4127_v40, %v4128_v0  ;;  %v4185_v7 = vmax.f32 %v4183_v10, %v4184_v3 }
 0x389   : > { %v4204_v21 = vsel %vm4197_vm11, %v4020_v8, %v4077_v15 }
 0x38a   : > { %v5266_v27 = vmax.f32 %v5264_v43, %v5265_v46  ;;  %v4856_v59 = vrot.slane %v4855_v61, 2  ;;  %v4130_v32 = vrot.slane %v4129_v38, 2  ;;  %v4186_v35 = vrot.slane %v4185_v7, 2 }
 0x38c   : > { %v5267_v26 = vrot.slane %v5266_v27, 1  ;;  %v4857_v20 = vmax.f32 %v4855_v61, %v4856_v59  ;;  %v4131_v48 = vmax.f32 %v4129_v38, %v4130_v32  ;;  %v4187_v34 = vmax.f32 %v4185_v7, %v4186_v35 }
 0x38d   : > { %v3440_v61 = vadd.f32 %v3439_v51, %v9357_v56 }
 0x38e   : > { %v5268_v52 = vmax.f32 %v5266_v27, %v5267_v26  ;;  %v4858_v55 = vrot.slane %v4857_v20, 1  ;;  %v4132_v11 = vrot.slane %v4131_v48, 1  ;;  %v4188_v44 = vrot.slane %v4187_v34, 1 }
 0x390   : > { %vm5294_vm15 = vcmp.eq.f32.partialorder %v5222_v12, %v5268_v52  ;;  %vm5302_vm8 = vcmp.eq.f32.partialorder %v5230_v57, %v5268_v52  ;;  %v9365_v42 = vsel %vm4215_vm13, %v5422_v63, %v5268_v52  ;;  %v9371_v12 = vmax.f32 %v4857_v20, %v4858_v55  ;;  %v3338_v57 = vpop.f32.mrf.mxu2 }
 0x391   : > { %v5310_v37 = vsel %vm5294_vm15, %v7034_v30, 16  ;;  %v5318_v33 = vsel %vm5302_vm8, %v7088_v50, 16  ;;  %v5462_v9 = vsel %vm3971_vm2, %v9365_v42, 0.0  ;;  %v4133_v60 = vmax.f32 %v4131_v48, %v4132_v11 }
 0x392   : > { %vm5366_vm5 = vcmp.lt.s32.totalorder %v5310_v37, %v5318_v33  ;;  %v5463_v2 = vrot.slane %v5462_v9, 4  ;;  %vm4879_vm14 = vcmp.eq.f32.partialorder %v9344_v13, %v9371_v12  ;;  %vm4887_vm9 = vcmp.eq.f32.partialorder %v9347_v53, %v9371_v12 }
 0x393   : > { %v5367_v22 = vsel %vm5366_vm5, %v5310_v37, %v5318_v33  ;;  %v4895_v23 = vsel %vm4879_vm14, %v7034_v30, 16  ;;  %v4903_v4 = vsel %vm4887_vm9, %v7088_v50, 16  ;;  %v4189_v49 = vmax.f32 %v4187_v34, %v4188_v44 }
 0x394   : > { %v5368_v62 = vrot.slane %v5367_v22, 4  ;;  %v5464_v39 = vadd.f32 %v5463_v2, %v5462_v9  ;;  %vm4961_vm1 = vcmp.lt.s32.totalorder %v4895_v23, %v4903_v4  ;;  %v4213_v36 = vsel %vm4206_vm12, %v4204_v21, %v4133_v60 }
 0x395   : > { %v4962_v45 = vsel %vm4961_vm1, %v4895_v23, %v4903_v4  ;;  %v9382_v46 = vsel %vm4215_vm13, %v4213_v36, %v4189_v49  ;;  %v3444_v20 = vadd.f32 %v3443_v28, %v3338_v57 }
 0x396   : > { %vm5369_vm3 = vcmp.lt.s32.totalorder %v5367_v22, %v5368_v62  ;;  %v5465_v41 = vrot.slane %v5464_v39, 2  ;;  %v3497_v58 = vpop.f32.mrf.mxu0  ;;  %v4963_v1 = vrot.slane %v4962_v45, 4  ;;  %v4268_v40 = vsel %vm3971_vm2, %v9382_v46, -inf }
 0x397   : > { %v5370_v5 = vsel %vm5369_vm3, %v5367_v22, %v5368_v62  ;;  %v4269_v10 = vrot.slane %v4268_v40, 4  ;;  %v3498_v59 = vadd.f32 %v3497_v58, %v3440_v61 }
 0x398   : > { %v5466_v43 = vadd.f32 %v5465_v41, %v5464_v39  ;;  %vm4964_vm7 = vcmp.lt.s32.totalorder %v4962_v45, %v4963_v1  ;;  %v5371_v27 = vrot.slane %v5370_v5, 2 }
 0x399   : > { %v4965_v3 = vsel %vm4964_vm7, %v4962_v45, %v4963_v1  ;;  %v4270_v26 = vmax.f32 %v4268_v40, %v4269_v10 }
 0x39a   : > { %v5467_v29 = vrot.slane %v5466_v43, 1  ;;  %v4966_v24 = vrot.slane %v4965_v3, 2  ;;  %vm5372_vm10 = vcmp.lt.s32.totalorder %v5370_v5, %v5371_v27 }
 0x39b   : > { %v3541_v38 = vpop.f32.mrf.mxu1  ;;  %v4271_v52 = vrot.slane %v4270_v26, 2  ;;  %v5373_v15 = vsel %vm5372_vm10, %v5370_v5, %v5371_v27 }
 0x39c   : > { %v5468_v0 = vadd.f32 %v5467_v29, %v5466_v43  ;;  %vm4967_vm0 = vcmp.lt.s32.totalorder %v4965_v3, %v4966_v24  ;;  %v3542_v32 = vadd.f32 %v3541_v38, %v3498_v59  ;;  %v5374_v34 = vrot.slane %v5373_v15, 1 }
 0x39d   : > { %v3616_v7 = vpop.f32.mrf.mxu2  ;;  %v4968_v54 = vsel %vm4967_vm0, %v4965_v3, %v4966_v24  ;;  %v4272_v63 = vmax.f32 %v4270_v26, %v4271_v52 }
 0x39e   : > { %5848 = vrcp.f32 %v5468_v0  ;;  %v4969_v35 = vrot.slane %v4968_v54, 1  ;;  %v3502_v8 = vpop.f32.mrf.mxu0  ;;  %v3617_v56 = vadd.f32 %v3616_v7, %v3542_v32  ;;  %v5559_v41 = vand.u32 2147483647, %v5468_v0 }
 0x39f   : > { %v4273_v48 = vrot.slane %v4272_v63, 1  ;;  %v3503_v2 = vadd.f32 %v3502_v8, %v3444_v20  ;;  %v5561_v23 = vand.u32 2147483648, %v5468_v0  ;;  %vm5555_vm3 = vweird.f32 %v5468_v0 }
 0x3a0   : > { %vm4970_vm15 = vcmp.lt.s32.totalorder %v4968_v54, %v4969_v35  ;;  %vm5375_vm1 = vcmp.lt.s32.totalorder %v5373_v15, %v5374_v34  ;;  %vm5560_vm0 = vcmp.eq.f32.partialorder %v5559_v41, 8.507059e+37  ;;  %v5622_v7 = vcvt.s32.f32 %v9238_v47 }
 0x3a1   : > { %v9387_v33 = vsel %vm4970_vm15, %v4968_v54, %v4969_v35  ;;  %v4274_v57 = vmax.f32 %v4272_v63, %v4273_v48  ;;  %v5562_v1 = vor.u32 1.1754944e-38, %v5561_v23  ;;  %v5376_v38 = vsel %vm5375_vm1, %v5373_v15, %v5374_v34 }
 0x3a2   : > { %vm4999_vm8 = vcmp.eq.s32.totalorder %v7034_v30, %v9387_v33  ;;  %vm5007_vm5 = vcmp.eq.s32.totalorder %v7088_v50, %v9387_v33  ;;  %v5630_v32 = vcvt.s32.f32 %v9269_v14  ;;  %v5638_v20 = vcvt.s32.f32 %v9326_v6 }
 0x3a3   : > { %v3547_v11 = vpop.f32.mrf.mxu1  ;;  %v9394_v51 = vsel %vm4999_vm8, -1e+30, %v9344_v13  ;;  %v9397_v22 = vsel %vm5007_vm5, -1e+30, %v9347_v53  ;;  %vm4288_vm9 = vcmp.eq.f32.partialorder %v9382_v46, %v4274_v57  ;;  %v5646_v15 = vcvt.s32.f32 %v5376_v38 }
 0x3a4   : > { %v5849_v37 = vpop.eup %5848  ;;  %v5061_v39 = vmax.f32 %v9394_v51, %v9397_v22  ;;  %v3548_v44 = vadd.f32 %v3547_v11, %v3503_v2  ;;  %v4296_v13 = vsel %vm4288_vm9, %v7034_v30, 4  ;;  %vm10171_vm8 = vcmask 1045504  }
 0x3a5   : > { %v5551_v55 = vmul.f32 %v5849_v37, %v5468_v0  ;;  %v3620_v21 = vpop.f32.mrf.mxu2  ;;  %vm5556_vm14 = vweird.f32 %v5849_v37  ;;  %v4358_v53 = vsel %vm3971_vm2, %v4296_v13, 2147483647  ;;  %vm10172_vm9 = vcmask 1046528  }
 0x3a6   : > { %v3657_v9 = vpop.f32.mrf.mxu3  ;;  %v5062_v49 = vrot.slane %v5061_v39, 4  ;;  %v3621_v43 = vadd.f32 %v3620_v21, %v3548_v44  ;;  %v4359_v5 = vrot.slane %v4358_v53, 4  ;;  %vm5557_vm7 = vmor %vm5555_vm3, %vm5556_vm14 }
 0x3a7   : > { %v5552_v62 = vsub.f32 1.0, %v5551_v55  ;;  %v3658_v60 = vadd.f32 %v3657_v9, %v3617_v56 }
 0x3a8   : > { %v5063_v58 = vmax.f32 %v5061_v39, %v5062_v49  ;;  %vm4360_vm10 = vcmp.lt.s32.totalorder %v4358_v53, %v4359_v5 }
 0x3a9   : > { %v5553_v4 = vmul.f32 %v5849_v37, %v5552_v62  ;;  %v5765_v36 = vmul.f32 -1.442695, %v3658_v60  ;;  %v4361_v61 = vsel %vm4360_vm10, %v4358_v53, %v4359_v5 }
 0x3aa   : > { %v5064_v10 = vrot.slane %v5063_v58, 2  ;;  %v4362_v24 = vrot.slane %v4361_v61, 2 }
 0x3ab   : > { %v5554_v45 = vadd.f32 %v5849_v37, %v5553_v4  ;;  %5850 = vpow2.f32 %v5765_v36 }
 0x3ac   : > { %v5065_v28 = vmax.f32 %v5063_v58, %v5064_v10  ;;  %vm4363_vm15 = vcmp.lt.s32.totalorder %v4361_v61, %v4362_v24 }
 0x3ad   : > { %v5558_v40 = vsel %vm5557_vm7, %v5849_v37, %v5554_v45  ;;  %v4364_v35 = vsel %vm4363_vm15, %v4361_v61, %v4362_v24 }
 0x3ae   : > { %v3661_v29 = vpop.f32.mrf.mxu3  ;;  %v5563_v3 = vsel %vm5560_vm0, %v5562_v1, %v5558_v40  ;;  %v5066_v54 = vrot.slane %v5065_v28, 1  ;;  %v4365_v48 = vrot.slane %v4364_v35, 1 }
 0x3af   : > { %v3662_v27 = vadd.f32 %v3661_v29, %v3621_v43  ;;  %v5564_v0 = vmul.f32 %v5563_v3, %v9365_v42 }
 0x3b0   : > { %v9410_v8 = vmax.f32 %v5065_v28, %v5066_v54  ;;  %vm4366_vm3 = vcmp.lt.s32.totalorder %v4364_v35, %v4365_v48 }
 0x3b1   : > { %v5773_v26 = vmul.f32 -1.442695, %v3662_v27  ;;  %v5851_v59 = vpop.eup %5850  ;;  %v5614_v52 = vmul.f32 2.5, %v5564_v0  ;;  %v9422_v55 = vsel %vm4366_vm3, %v4364_v35, %v4365_v48 }
 0x3b2   : > { %v3719_v63 = vadd.f32 1.0, %v5851_v59  ;;  %vm5087_vm5 = vcmp.eq.f32.partialorder %v9394_v51, %v9410_v8  ;;  %vm5095_vm14 = vcmp.eq.f32.partialorder %v9397_v22, %v9410_v8  ;;  %vm4400_vm7 = vcmp.eq.s32.totalorder %v7034_v30, %v9422_v55 }
 0x3b3   : > { %5852 = vpow2.f32 %v5773_v26  ;;  %v5654_v42 = vsel %vm3971_vm2, %v5614_v52, %v5622_v7  ;;  %v5103_v6 = vsel %vm5087_vm5, %v7034_v30, 16  ;;  %v5111_v37 = vsel %vm5095_vm14, %v7088_v50, 16 }
 0x3b4   : > { %v5663_v47 = vsel %vm5658_vm6, %v5654_v42, %v5630_v32  ;;  %5854 = vrcp.f32 %v3719_v63  ;;  %vm5169_vm1 = vcmp.lt.s32.totalorder %v5103_v6, %v5111_v37  ;;  %v4408_v34 = vsel %vm4400_vm7, -1e+30, %v9382_v46 }
 0x3b5   : > { %v5672_v56 = vsel %vm10171_vm8, %v5663_v47, %v5638_v20  ;;  %v5170_v2 = vsel %vm5169_vm1, %v5103_v6, %v5111_v37  ;;  %v4452_v39 = vsel %vm3971_vm2, %v4408_v34, -inf  ;;  %v3842_v49 = vand.u32 2147483647, %v3719_v63 }
 0x3b6   : > { %v5681_v14 = vsel %vm10172_vm9, %v5672_v56, %v5646_v15  ;;  %v5171_v11 = vrot.slane %v5170_v2, 4  ;;  %v4453_v60 = vrot.slane %v4452_v39, 4  ;;  %v3844_v13 = vand.u32 2147483648, %v3719_v63 }
 0x3b7   : > { %5689 = vst [vmem:[%s8003_s24 + $0x20] sm:$0xff] %v5681_v14  ;;  %vm3838_vm8 = vweird.f32 %v3719_v63  ;;  %vm3843_vm9 = vcmp.eq.f32.partialorder %v3842_v49, 8.507059e+37 }
 0x3b8   : > { %vm5172_vm0 = vcmp.lt.s32.totalorder %v5170_v2, %v5171_v11  ;;  %v4454_v23 = vmax.f32 %v4452_v39, %v4453_v60  ;;  %v3845_v1 = vor.u32 1.1754944e-38, %v3844_v13 }
 0x3b9   : > { %v5853_v9 = vpop.eup %5852  ;;  %v5173_v21 = vsel %vm5172_vm0, %v5170_v2, %v5171_v11 }
 0x3ba   : > { %v9427_v57 = vadd.f32 1.0, %v5853_v9  ;;  %v5855_v62 = vpop.eup %5854  ;;  %v5174_v41 = vrot.slane %v5173_v21, 2  ;;  %v4455_v36 = vrot.slane %v4454_v23, 2 }
 0x3bb   : > { %v3834_v44 = vmul.f32 %v5855_v62, %v3719_v63  ;;  %vm3839_vm15 = vweird.f32 %v5855_v62 }
 0x3bc   : > { %5856 = vrcp.f32 %v9427_v57  ;;  %vm5175_vm10 = vcmp.lt.s32.totalorder %v5173_v21, %v5174_v41  ;;  %v4456_v45 = vmax.f32 %v4454_v23, %v4455_v36  ;;  %vm3840_vm5 = vmor %vm3838_vm8, %vm3839_vm15  ;;  %v3964_v32 = vand.u32 2147483648, %v9427_v57 }
 0x3bd   : > { %v3835_v4 = vsub.f32 1.0, %v3834_v44  ;;  %v5176_v46 = vsel %vm5175_vm10, %v5173_v21, %v5174_v41  ;;  %v3962_v48 = vand.u32 2147483647, %v9427_v57  ;;  %vm3958_vm15 = vweird.f32 %v9427_v57 }
 0x3be   : > { %v5177_v43 = vrot.slane %v5176_v46, 1  ;;  %v4457_v29 = vrot.slane %v4456_v45, 1  ;;  %v3965_v9 = vor.u32 1.1754944e-38, %v3964_v32  ;;  %v5415_v41 = vsel %vm4197_vm11, %v9305_v17, %v9371_v12 }
 0x3bf   : > { %v3836_v53 = vmul.f32 %v5855_v62, %v3835_v4  ;;  %v5423_v4 = vsel %vm4206_vm12, %v5415_v41, %v9410_v8 }
 0x3c0   : > { %vm5178_vm14 = vcmp.lt.s32.totalorder %v5176_v46, %v5177_v43  ;;  %v4458_v61 = vmax.f32 %v4456_v45, %v4457_v29 }
 0x3c1   : > { %v3837_v58 = vadd.f32 %v5855_v62, %v3836_v53  ;;  %v9431_v10 = vsel %vm5178_vm14, %v5176_v46, %v5177_v43 }
 0x3c2   : > { %v5857_v5 = vpop.eup %5856  ;;  %vm5207_vm3 = vcmp.eq.s32.totalorder %v7034_v30, %v9431_v10  ;;  %vm5215_vm1 = vcmp.eq.s32.totalorder %v7088_v50, %v9431_v10  ;;  %vm4472_vm7 = vcmp.eq.f32.partialorder %v4408_v34, %v4458_v61 }
 0x3c3   : > { %v3841_v40 = vsel %vm3840_vm5, %v5855_v62, %v3837_v58  ;;  %v3954_v3 = vmul.f32 %v5857_v5, %v9427_v57  ;;  %v5223_v0 = vsel %vm5207_vm3, -1e+30, %v9394_v51  ;;  %v5231_v28 = vsel %vm5215_vm1, -1e+30, %v9397_v22 }
 0x3c4   : > { %v9433_v27 = vsel %vm3843_vm9, %v3845_v1, %v3841_v40  ;;  %v5269_v38 = vmax.f32 %v5223_v0, %v5231_v28  ;;  %v4480_v52 = vsel %vm4472_vm7, %v7034_v30, 4  ;;  %vm3959_vm0 = vweird.f32 %v5857_v5 }
 0x3c5   : > { %v4021_v24 = vsel %vm3971_vm2, %v9433_v27, -inf  ;;  %v4078_v26 = vsel %vm4028_vm4, %v9433_v27, -inf  ;;  %v3955_v54 = vsub.f32 1.0, %v3954_v3  ;;  %v4542_v51 = vsel %vm3971_vm2, %v4480_v52, 2147483647  ;;  %vm3960_vm8 = vmor %vm3958_vm15, %vm3959_vm0 }
 0x3c6   : > { %v4022_v7 = vrot.slane %v4021_v24, 4  ;;  %v4079_v59 = vrot.slane %v4078_v26, 4  ;;  %v5270_v35 = vrot.slane %v5269_v38, 4  ;;  %v4543_v20 = vrot.slane %v4542_v51, 4 }
 0x3c7   : > { %v3956_v42 = vmul.f32 %v5857_v5, %v3955_v54  ;;  %vm3963_vm5 = vcmp.eq.f32.partialorder %v3962_v48, 8.507059e+37  ;;  %vm4384_vm9 = vcmp.eq.s32.totalorder %v10162_v25, %v9422_v55  ;;  %vm4392_vm3 = vcmp.eq.s32.totalorder %v10163_v19, %v9422_v55 }
 0x3c8   : > { %v4023_v63 = vmax.f32 %v4021_v24, %v4022_v7  ;;  %v4080_v22 = vmax.f32 %v4078_v26, %v4079_v59  ;;  %v5271_v15 = vmax.f32 %v5269_v38, %v5270_v35  ;;  %vm4544_vm10 = vcmp.lt.s32.totalorder %v4542_v51, %v4543_v20 }
 0x3c9   : > { %v3957_v14 = vadd.f32 %v5857_v5, %v3956_v42  ;;  %v4545_v37 = vsel %vm4544_vm10, %v4542_v51, %v4543_v20 }
 0x3ca   : > { %v4024_v47 = vrot.slane %v4023_v63, 2  ;;  %v4081_v56 = vrot.slane %v4080_v22, 2  ;;  %v5272_v6 = vrot.slane %v5271_v15, 2  ;;  %v4546_v2 = vrot.slane %v4545_v37, 2 }
 0x3cb   : > { %v3961_v11 = vsel %vm3960_vm8, %v5857_v5, %v3957_v14 }
 0x3cc   : > { %v5273_v34 = vmax.f32 %v5271_v15, %v5272_v6  ;;  %v4025_v62 = vmax.f32 %v4023_v63, %v4024_v47  ;;  %v9451_v39 = vsel %vm3963_vm5, %v3965_v9, %v3961_v11  ;;  %vm4547_vm14 = vcmp.lt.s32.totalorder %v4545_v37, %v4546_v2 }
 0x3cd   : > { %v4082_v60 = vmax.f32 %v4080_v22, %v4081_v56  ;;  %v4134_v44 = vsel %vm3971_vm2, %v9451_v39, -inf  ;;  %v4190_v21 = vsel %vm4028_vm4, %v9451_v39, -inf  ;;  %v4548_v23 = vsel %vm4547_vm14, %v4545_v37, %v4546_v2 }
 0x3ce   : > { %v5274_v57 = vrot.slane %v5273_v34, 1  ;;  %v4549_v49 = vrot.slane %v4548_v23, 1  ;;  %v4135_v13 = vrot.slane %v4134_v44, 4  ;;  %v4191_v36 = vrot.slane %v4190_v21, 4 }
 0x3cf   : > { %v4026_v46 = vrot.slane %v4025_v62, 1  ;;  %v4083_v43 = vrot.slane %v4082_v60, 1 }
 0x3d0   : > { %v5275_v53 = vmax.f32 %v5273_v34, %v5274_v57  ;;  %vm4550_vm4 = vcmp.lt.s32.totalorder %v4548_v23, %v4549_v49  ;;  %v4136_v45 = vmax.f32 %v4134_v44, %v4135_v13  ;;  %v4192_v58 = vmax.f32 %v4190_v21, %v4191_v36 }
 0x3d1   : > { %v4551_v12 = vsel %vm4550_vm4, %v4548_v23, %v4549_v49  ;;  %v4027_v59 = vmax.f32 %v4025_v62, %v4026_v46  ;;  %v4084_v52 = vmax.f32 %v4082_v60, %v4083_v43 }
 0x3d2   : > { %vm5295_vm1 = vcmp.eq.f32.partialorder %v5223_v0, %v5275_v53  ;;  %vm5303_vm7 = vcmp.eq.f32.partialorder %v5231_v28, %v5275_v53  ;;  %v9467_v17 = vsel %vm4215_vm13, %v5423_v4, %v5275_v53  ;;  %vm4568_vm0 = vcmp.eq.s32.totalorder %v10162_v25, %v4551_v12 }
 0x3d3   : > { %v5311_v8 = vsel %vm5295_vm1, %v7034_v30, 16  ;;  %v5319_v5 = vsel %vm5303_vm7, %v7088_v50, 16  ;;  %v5469_v1 = vsel %vm3971_vm2, %v9467_v17, 0.0  ;;  %vm4576_vm15 = vcmp.eq.s32.totalorder %v10163_v19, %v4551_v12  ;;  %vm4584_vm8 = vmor %vm4384_vm9, %vm4568_vm0 }
 0x3d4   : > { %vm5377_vm10 = vcmp.lt.s32.totalorder %v5311_v8, %v5319_v5  ;;  %v5470_v29 = vrot.slane %v5469_v1, 4  ;;  %v4137_v40 = vrot.slane %v4136_v45, 2  ;;  %vm4592_vm5 = vmor %vm4392_vm3, %vm4576_vm15  ;;  %v9482_v61 = vsel %vm4584_vm8, %v9318_v18, 0.0 }
 0x3d5   : > { %v5378_v3 = vsel %vm5377_vm10, %v5311_v8, %v5319_v5  ;;  %v4193_v0 = vrot.slane %v4192_v58, 2  ;;  %v9485_v26 = vsel %vm4592_vm5, %v9351_v16, 0.0  ;;  %v4205_v20 = vsel %vm4197_vm11, %v4027_v59, %v4084_v52 }
 0x3d6   : > { %v5379_v28 = vrot.slane %v5378_v3, 4  ;;  %v5471_v24 = vadd.f32 %v5470_v29, %v5469_v1  ;;  %v4138_v38 = vmax.f32 %v4136_v45, %v4137_v40  ;;  %v4652_v7 = vmax.f32 %v9482_v61, %v9485_v26 }
 0x3d7   : > { %v4194_v54 = vmax.f32 %v4192_v58, %v4193_v0 }
 0x3d8   : > { %v5472_v32 = vrot.slane %v5471_v24, 2  ;;  %v4139_v35 = vrot.slane %v4138_v38, 1  ;;  %v4653_v55 = vrot.slane %v4652_v7, 4  ;;  %vm5380_vm14 = vcmp.lt.s32.totalorder %v5378_v3, %v5379_v28 }
 0x3d9   : > { %v4195_v51 = vrot.slane %v4194_v54, 1  ;;  %v5381_v15 = vsel %vm5380_vm14, %v5378_v3, %v5379_v28 }
 0x3da   : > { %v5473_v18 = vadd.f32 %v5472_v32, %v5471_v24  ;;  %v4140_v63 = vmax.f32 %v4138_v38, %v4139_v35  ;;  %v4654_v22 = vmax.f32 %v4652_v7, %v4653_v55  ;;  %v5382_v2 = vrot.slane %v5381_v15, 2 }
 0x3db   : > { %v4196_v42 = vmax.f32 %v4194_v54, %v4195_v51  ;;  %v5623_v55 = vcvt.s32.f32 %v9334_v31  ;;  %v5631_v51 = vcvt.s32.f32 %v9387_v33 }
 0x3dc   : > { %v5474_v16 = vrot.slane %v5473_v18, 1  ;;  %v4214_v48 = vsel %vm4206_vm12, %v4205_v20, %v4140_v63  ;;  %v4655_v47 = vrot.slane %v4654_v22, 2  ;;  %vm5383_vm9 = vcmp.lt.s32.totalorder %v5381_v15, %v5382_v2 }
 0x3dd   : > { %v9492_v56 = vsel %vm4215_vm13, %v4214_v48, %v4196_v42  ;;  %v5384_v23 = vsel %vm5383_vm9, %v5381_v15, %v5382_v2 }
 0x3de   : > { %v5475_v14 = vadd.f32 %v5474_v16, %v5473_v18  ;;  %v4275_v6 = vsel %vm3971_vm2, %v9492_v56, -inf  ;;  %v4656_v37 = vmax.f32 %v4654_v22, %v4655_v47  ;;  %v5385_v43 = vrot.slane %v5384_v23, 1 }
 0x3df   : > { %v4276_v9 = vrot.slane %v4275_v6, 4  ;;  %v5639_v18 = vcvt.s32.f32 %v9431_v10 }
 0x3e0   : > { %5858 = vrcp.f32 %v5475_v14  ;;  %v4657_v11 = vrot.slane %v4656_v37, 1  ;;  %v5574_v45 = vand.u32 2147483647, %v5475_v14  ;;  %v5576_v58 = vand.u32 2147483648, %v5475_v14 }
 0x3e1   : > { %v4277_v34 = vmax.f32 %v4275_v6, %v4276_v9  ;;  %vm5570_vm15 = vweird.f32 %v5475_v14  ;;  %vm5386_vm5 = vcmp.lt.s32.totalorder %v5384_v23, %v5385_v43 }
 0x3e2   : > { %v9496_v62 = vmax.f32 %v4656_v37, %v4657_v11  ;;  %v5577_v3 = vor.u32 1.1754944e-38, %v5576_v58  ;;  %vm5575_vm14 = vcmp.eq.f32.partialorder %v5574_v45, 8.507059e+37  ;;  %v5387_v54 = vsel %vm5386_vm5, %v5384_v23, %v5385_v43 }
 0x3e3   : > { %v4278_v60 = vrot.slane %v4277_v34, 2  ;;  %v5647_v22 = vcvt.s32.f32 %v5387_v54 }
 0x3e4   : > { %vm4672_vm3 = vcmp.eq.f32.partialorder %v9482_v61, %v9496_v62  ;;  %vm4680_vm4 = vcmp.eq.f32.partialorder %v9485_v26, %v9496_v62 }
 0x3e5   : > { %v4279_v44 = vmax.f32 %v4277_v34, %v4278_v60  ;;  %v4688_v57 = vsel %vm4672_vm3, %v7034_v30, 16  ;;  %v4696_v41 = vsel %vm4680_vm4, %v7088_v50, 16 }
 0x3e6   : > { %v5859_v21 = vpop.eup %5858  ;;  %vm4764_vm1 = vcmp.lt.s32.totalorder %v4688_v57, %v4696_v41 }
 0x3e7   : > { %v5566_v4 = vmul.f32 %v5859_v21, %v5475_v14  ;;  %v4280_v49 = vrot.slane %v4279_v44, 1  ;;  %v4765_v13 = vsel %vm4764_vm1, %v4688_v57, %v4696_v41  ;;  %vm5571_vm7 = vweird.f32 %v5859_v21 }
 0x3e8   : > { %v4766_v53 = vrot.slane %v4765_v13, 4  ;;  %vm5572_vm8 = vmor %vm5570_vm15, %vm5571_vm7  ;;  %vm10174_vm15 = vcmask 1046528  }
 0x3e9   : > { %v5567_v36 = vsub.f32 1.0, %v5566_v4  ;;  %v4281_v46 = vmax.f32 %v4279_v44, %v4280_v49 }
 0x3ea   : > { %vm4767_vm0 = vcmp.lt.s32.totalorder %v4765_v13, %v4766_v53 }
 0x3eb   : > { %v5568_v12 = vmul.f32 %v5859_v21, %v5567_v36  ;;  %vm4289_vm10 = vcmp.eq.f32.partialorder %v9492_v56, %v4281_v46  ;;  %v4768_v8 = vsel %vm4767_vm0, %v4765_v13, %v4766_v53 }
 0x3ec   : > { %v4297_v5 = vsel %vm4289_vm10, %v7034_v30, 4  ;;  %v4769_v29 = vrot.slane %v4768_v8, 2  ;;  %vm10173_vm10 = vcmask 1045504  }
 0x3ed   : > { %v5569_v1 = vadd.f32 %v5859_v21, %v5568_v12  ;;  %v4368_v40 = vsel %vm3971_vm2, %v4297_v5, 2147483647 }
 0x3ee   : > { %v4369_v0 = vrot.slane %v4368_v40, 4  ;;  %vm4770_vm9 = vcmp.lt.s32.totalorder %v4768_v8, %v4769_v29 }
 0x3ef   : > { %v5573_v28 = vsel %vm5572_vm8, %v5859_v21, %v5569_v1  ;;  %v4771_v38 = vsel %vm4770_vm9, %v4768_v8, %v4769_v29 }
 0x3f0   : > { %v5578_v24 = vsel %vm5575_vm14, %v5577_v3, %v5573_v28  ;;  %vm4370_vm3 = vcmp.lt.s32.totalorder %v4368_v40, %v4369_v0  ;;  %v4772_v59 = vrot.slane %v4771_v38, 1 }
 0x3f1   : > { %v5579_v7 = vmul.f32 %v5578_v24, %v9467_v17  ;;  %v4371_v52 = vsel %vm4370_vm3, %v4368_v40, %v4369_v0 }
 0x3f2   : > { %v4372_v32 = vrot.slane %v4371_v52, 2  ;;  %vm4773_vm4 = vcmp.lt.s32.totalorder %v4771_v38, %v4772_v59 }
 0x3f3   : > { %v5615_v35 = vmul.f32 2.5, %v5579_v7  ;;  %v9511_v63 = vsel %vm4773_vm4, %v4771_v38, %v4772_v59 }
 0x3f4   : > { %vm4373_vm1 = vcmp.lt.s32.totalorder %v4371_v52, %v4372_v32  ;;  %vm4792_vm7 = vcmp.eq.s32.totalorder %v7034_v30, %v9511_v63  ;;  %vm4800_vm0 = vcmp.eq.s32.totalorder %v7088_v50, %v9511_v63 }
 0x3f5   : > { %v5655_v20 = vsel %vm3971_vm2, %v5615_v35, %v5623_v55  ;;  %v4808_v17 = vsel %vm4792_vm7, -1e+30, %v9482_v61  ;;  %v4816_v33 = vsel %vm4800_vm0, -1e+30, %v9485_v26  ;;  %v4374_v42 = vsel %vm4373_vm1, %v4371_v52, %v4372_v32 }
 0x3f6   : > { %v5664_v31 = vsel %vm5658_vm6, %v5655_v20, %v5631_v51  ;;  %v4860_v16 = vmax.f32 %v4808_v17, %v4816_v33  ;;  %v4375_v48 = vrot.slane %v4374_v42, 1 }
 0x3f7   : > { %v5673_v10 = vsel %vm10173_vm10, %v5664_v31, %v5639_v18 }
 0x3f8   : > { %v5682_v15 = vsel %vm10174_vm15, %v5673_v10, %v5647_v22  ;;  %v4861_v47 = vrot.slane %v4860_v16, 4  ;;  %vm4376_vm8 = vcmp.lt.s32.totalorder %v4374_v42, %v4375_v48 }
 0x3f9   : > { %5690 = vst [vmem:[%s8003_s24 + $0x28] sm:$0xff] %v5682_v15  ;;  %v4377_v14 = vsel %vm4376_vm8, %v4374_v42, %v4375_v48 }
 0x3fa   : > { %v4862_v6 = vmax.f32 %v4860_v16, %v4861_v47  ;;  %vm4401_vm5 = vcmp.eq.s32.totalorder %v7034_v30, %v4377_v14 }
 0x3fb   : > { %v4409_v37 = vsel %vm4401_vm5, -1e+30, %v9492_v56 }
 0x3fc   : > { %v4863_v9 = vrot.slane %v4862_v6, 2  ;;  %v4459_v61 = vsel %vm3971_vm2, %v4409_v37, -inf }
 0x3fd   : > { %v4460_v26 = vrot.slane %v4459_v61, 4 }
 0x3fe   : > { %v4864_v2 = vmax.f32 %v4862_v6, %v4863_v9 }
 0x3ff   : > { %v4461_v11 = vmax.f32 %v4459_v61, %v4460_v26 }
 0x400   : > { %v4865_v34 = vrot.slane %v4864_v2, 1 }
 0x401   : > { %v4462_v60 = vrot.slane %v4461_v11, 2 }
 0x402   : > { %v9527_v44 = vmax.f32 %v4864_v2, %v4865_v34 }
 0x403   : > { %v4463_v21 = vmax.f32 %v4461_v11, %v4462_v60 }
 0x404   : > { %vm4880_vm14 = vcmp.eq.f32.partialorder %v4808_v17, %v9527_v44  ;;  %vm4888_vm9 = vcmp.eq.f32.partialorder %v4816_v33, %v9527_v44 }
 0x405   : > { %v4896_v57 = vsel %vm4880_vm14, %v7034_v30, 16  ;;  %v4904_v41 = vsel %vm4888_vm9, %v7088_v50, 16  ;;  %v4464_v56 = vrot.slane %v4463_v21, 1  ;;  %vm4385_vm9 = vcmp.eq.s32.totalorder %v10162_v25, %v4377_v14 }
 0x406   : > { %vm4972_vm3 = vcmp.lt.s32.totalorder %v4896_v57, %v4904_v41 }
 0x407   : > { %v4973_v23 = vsel %vm4972_vm3, %v4896_v57, %v4904_v41  ;;  %v4465_v4 = vmax.f32 %v4463_v21, %v4464_v56 }
 0x408   : > { %v4974_v49 = vrot.slane %v4973_v23, 4 }
 0x409   : > { %vm4473_vm4 = vcmp.eq.f32.partialorder %v4409_v37, %v4465_v4 }
 0x40a   : > { %vm4975_vm1 = vcmp.lt.s32.totalorder %v4973_v23, %v4974_v49  ;;  %v4481_v13 = vsel %vm4473_vm4, %v7034_v30, 4 }
 0x40b   : > { %v4976_v36 = vsel %vm4975_vm1, %v4973_v23, %v4974_v49  ;;  %v4552_v53 = vsel %vm3971_vm2, %v4481_v13, 2147483647  ;;  %vm4393_vm1 = vcmp.eq.s32.totalorder %v10163_v19, %v4377_v14 }
 0x40c   : > { %v4977_v46 = vrot.slane %v4976_v36, 2  ;;  %v4553_v43 = vrot.slane %v4552_v53, 4 }
 0x40e   : > { %vm4978_vm7 = vcmp.lt.s32.totalorder %v4976_v36, %v4977_v46  ;;  %vm4554_vm0 = vcmp.lt.s32.totalorder %v4552_v53, %v4553_v43 }
 0x40f   : > { %v4979_v45 = vsel %vm4978_vm7, %v4976_v36, %v4977_v46  ;;  %v4555_v58 = vsel %vm4554_vm0, %v4552_v53, %v4553_v43  ;;  %v5416_v43 = vsel %vm4197_vm11, %v9496_v62, %v9527_v44 }
 0x410   : > { %v4980_v12 = vrot.slane %v4979_v45, 1  ;;  %v4556_v8 = vrot.slane %v4555_v58, 2 }
 0x412   : > { %vm4981_vm10 = vcmp.lt.s32.totalorder %v4979_v45, %v4980_v12  ;;  %vm4557_vm15 = vcmp.lt.s32.totalorder %v4555_v58, %v4556_v8 }
 0x413   : > { %v9535_v5 = vsel %vm4981_vm10, %v4979_v45, %v4980_v12  ;;  %v4558_v1 = vsel %vm4557_vm15, %v4555_v58, %v4556_v8 }
 0x414   : > { %vm5000_vm8 = vcmp.eq.s32.totalorder %v7034_v30, %v9535_v5  ;;  %vm5008_vm5 = vcmp.eq.s32.totalorder %v7088_v50, %v9535_v5  ;;  %v4559_v29 = vrot.slane %v4558_v1, 1 }
 0x415   : > { %v5016_v40 = vsel %vm5000_vm8, -1e+30, %v4808_v17  ;;  %v5024_v3 = vsel %vm5008_vm5, -1e+30, %v4816_v33 }
 0x416   : > { %v5068_v0 = vmax.f32 %v5016_v40, %v5024_v3  ;;  %vm4560_vm14 = vcmp.lt.s32.totalorder %v4558_v1, %v4559_v29 }
 0x417   : > { %v4561_v28 = vsel %vm4560_vm14, %v4558_v1, %v4559_v29 }
 0x418   : > { %v5069_v24 = vrot.slane %v5068_v0, 4  ;;  %vm4569_vm3 = vcmp.eq.s32.totalorder %v10162_v25, %v4561_v28  ;;  %vm4577_vm4 = vcmp.eq.s32.totalorder %v10163_v19, %v4561_v28 }
 0x419   : > { %vm4585_vm7 = vmor %vm4385_vm9, %vm4569_vm3 }
 0x41a   : > { %v5070_v38 = vmax.f32 %v5068_v0, %v5069_v24  ;;  %vm4593_vm0 = vmor %vm4393_vm1, %vm4577_vm4  ;;  %v4601_v7 = vsel %vm4585_vm7, %v9433_v27, 0.0 }
 0x41b   : > { %v4609_v59 = vsel %vm4593_vm0, %v9451_v39, 0.0 }
 0x41c   : > { %v5071_v52 = vrot.slane %v5070_v38, 2  ;;  %v4659_v54 = vmax.f32 %v4601_v7, %v4609_v59 }
 0x41e   : > { %v5072_v32 = vmax.f32 %v5070_v38, %v5071_v52  ;;  %v4660_v35 = vrot.slane %v4659_v54, 4 }
 0x420   : > { %v5073_v55 = vrot.slane %v5072_v32, 1  ;;  %v4661_v51 = vmax.f32 %v4659_v54, %v4660_v35 }
 0x422   : > { %v5074_v18 = vmax.f32 %v5072_v32, %v5073_v55  ;;  %v4662_v22 = vrot.slane %v4661_v51, 2 }
 0x424   : > { %vm5088_vm10 = vcmp.eq.f32.partialorder %v5016_v40, %v5074_v18  ;;  %vm5096_vm15 = vcmp.eq.f32.partialorder %v5024_v3, %v5074_v18  ;;  %v4663_v25 = vmax.f32 %v4661_v51, %v4662_v22  ;;  %v5424_v58 = vsel %vm4206_vm12, %v5416_v43, %v5074_v18 }
 0x425   : > { %v5104_v19 = vsel %vm5088_vm10, %v7034_v30, 16  ;;  %v5112_v20 = vsel %vm5096_vm15, %v7088_v50, 16 }
 0x426   : > { %vm5180_vm8 = vcmp.lt.s32.totalorder %v5104_v19, %v5112_v20  ;;  %v4664_v31 = vrot.slane %v4663_v25, 1 }
 0x427   : > { %v5181_v27 = vsel %vm5180_vm8, %v5104_v19, %v5112_v20 }
 0x428   : > { %v5182_v17 = vrot.slane %v5181_v27, 4  ;;  %v9549_v39 = vmax.f32 %v4663_v25, %v4664_v31 }
 0x42a   : > { %vm5183_vm5 = vcmp.lt.s32.totalorder %v5181_v27, %v5182_v17  ;;  %vm4673_vm14 = vcmp.eq.f32.partialorder %v4601_v7, %v9549_v39  ;;  %vm4681_vm9 = vcmp.eq.f32.partialorder %v4609_v59, %v9549_v39 }
 0x42b   : > { %v5184_v33 = vsel %vm5183_vm5, %v5181_v27, %v5182_v17  ;;  %v4689_v42 = vsel %vm4673_vm14, %v7034_v30, 16  ;;  %v4697_v10 = vsel %vm4681_vm9, %v7088_v50, 16 }
 0x42c   : > { %v5185_v16 = vrot.slane %v5184_v33, 2  ;;  %vm4775_vm3 = vcmp.lt.s32.totalorder %v4689_v42, %v4697_v10 }
 0x42d   : > { %v4776_v48 = vsel %vm4775_vm3, %v4689_v42, %v4697_v10 }
 0x42e   : > { %vm5186_vm4 = vcmp.lt.s32.totalorder %v5184_v33, %v5185_v16  ;;  %v4777_v15 = vrot.slane %v4776_v48, 4 }
 0x42f   : > { %v5187_v47 = vsel %vm5186_vm4, %v5184_v33, %v5185_v16 }
 0x430   : > { %v5188_v14 = vrot.slane %v5187_v47, 1  ;;  %vm4778_vm1 = vcmp.lt.s32.totalorder %v4776_v48, %v4777_v15 }
 0x431   : > { %v4779_v6 = vsel %vm4778_vm1, %v4776_v48, %v4777_v15 }
 0x432   : > { %vm5189_vm7 = vcmp.lt.s32.totalorder %v5187_v47, %v5188_v14  ;;  %v4780_v37 = vrot.slane %v4779_v6, 2 }
 0x433   : > { %v9555_v9 = vsel %vm5189_vm7, %v5187_v47, %v5188_v14 }
 0x434   : > { %vm5208_vm0 = vcmp.eq.s32.totalorder %v7034_v30, %v9555_v9  ;;  %vm5216_vm10 = vcmp.eq.s32.totalorder %v7088_v50, %v9555_v9  ;;  %vm4781_vm15 = vcmp.lt.s32.totalorder %v4779_v6, %v4780_v37 }
 0x435   : > { %v5224_v61 = vsel %vm5208_vm0, -1e+30, %v5016_v40  ;;  %v5232_v26 = vsel %vm5216_vm10, -1e+30, %v5024_v3  ;;  %v4782_v2 = vsel %vm4781_vm15, %v4779_v6, %v4780_v37 }
 0x436   : > { %v5276_v11 = vmax.f32 %v5224_v61, %v5232_v26  ;;  %v4783_v34 = vrot.slane %v4782_v2, 1 }
 0x438   : > { %v5277_v60 = vrot.slane %v5276_v11, 4  ;;  %vm4784_vm8 = vcmp.lt.s32.totalorder %v4782_v2, %v4783_v34 }
 0x439   : > { %v9561_v21 = vsel %vm4784_vm8, %v4782_v2, %v4783_v34 }
 0x43a   : > { %v5278_v57 = vmax.f32 %v5276_v11, %v5277_v60  ;;  %vm4793_vm5 = vcmp.eq.s32.totalorder %v7034_v30, %v9561_v21  ;;  %vm4801_vm14 = vcmp.eq.s32.totalorder %v7088_v50, %v9561_v21 }
 0x43b   : > { %v4809_v41 = vsel %vm4793_vm5, -1e+30, %v4601_v7  ;;  %v4817_v56 = vsel %vm4801_vm14, -1e+30, %v4609_v59 }
 0x43c   : > { %v5279_v23 = vrot.slane %v5278_v57, 2  ;;  %v4867_v4 = vmax.f32 %v4809_v41, %v4817_v56 }
 0x43e   : > { %v5280_v49 = vmax.f32 %v5278_v57, %v5279_v23  ;;  %v4868_v13 = vrot.slane %v4867_v4, 4  ;;  %v5624_v23 = vcvt.s32.f32 %v9511_v63 }
 0x440   : > { %v5281_v36 = vrot.slane %v5280_v49, 1  ;;  %v4869_v53 = vmax.f32 %v4867_v4, %v4868_v13  ;;  %v5640_v13 = vcvt.s32.f32 %v9555_v9 }
 0x442   : > { %v5282_v46 = vmax.f32 %v5280_v49, %v5281_v36  ;;  %v4870_v45 = vrot.slane %v4869_v53, 2  ;;  %v5632_v49 = vcvt.s32.f32 %v9535_v5 }
 0x444   : > { %vm5296_vm9 = vcmp.eq.f32.partialorder %v5224_v61, %v5282_v46  ;;  %vm5304_vm3 = vcmp.eq.f32.partialorder %v5232_v26, %v5282_v46  ;;  %v5432_v12 = vsel %vm4215_vm13, %v5424_v58, %v5282_v46  ;;  %v4871_v8 = vmax.f32 %v4869_v53, %v4870_v45 }
 0x445   : > { %v5312_v1 = vsel %vm5296_vm9, %v7034_v30, 16  ;;  %v5320_v29 = vsel %vm5304_vm3, %v7088_v50, 16  ;;  %v5476_v40 = vsel %vm3971_vm2, %v5432_v12, 0.0 }
 0x446   : > { %vm5388_vm4 = vcmp.lt.s32.totalorder %v5312_v1, %v5320_v29  ;;  %v5477_v3 = vrot.slane %v5476_v40, 4  ;;  %v4872_v0 = vrot.slane %v4871_v8, 1 }
 0x447   : > { %v5389_v28 = vsel %vm5388_vm4, %v5312_v1, %v5320_v29 }
 0x448   : > { %v5478_v24 = vadd.f32 %v5477_v3, %v5476_v40  ;;  %v9575_v62 = vmax.f32 %v4871_v8, %v4872_v0  ;;  %v5390_v44 = vrot.slane %v5389_v28, 4 }
 0x44a   : > { %v5479_v38 = vrot.slane %v5478_v24, 2  ;;  %vm4881_vm1 = vcmp.eq.f32.partialorder %v4809_v41, %v9575_v62  ;;  %vm4889_vm7 = vcmp.eq.f32.partialorder %v4817_v56, %v9575_v62  ;;  %vm5391_vm10 = vcmp.lt.s32.totalorder %v5389_v28, %v5390_v44 }
 0x44b   : > { %v4897_v7 = vsel %vm4881_vm1, %v7034_v30, 16  ;;  %v4905_v59 = vsel %vm4889_vm7, %v7088_v50, 16  ;;  %v5392_v51 = vsel %vm5391_vm10, %v5389_v28, %v5390_v44 }
 0x44c   : > { %v5480_v52 = vadd.f32 %v5479_v38, %v5478_v24  ;;  %vm4983_vm0 = vcmp.lt.s32.totalorder %v4897_v7, %v4905_v59  ;;  %v5393_v25 = vrot.slane %v5392_v51, 2 }
 0x44d   : > { %v4984_v54 = vsel %vm4983_vm0, %v4897_v7, %v4905_v59 }
 0x44e   : > { %v5481_v32 = vrot.slane %v5480_v52, 1  ;;  %v4985_v35 = vrot.slane %v4984_v54, 4  ;;  %vm5394_vm5 = vcmp.lt.s32.totalorder %v5392_v51, %v5393_v25 }
 0x44f   : > { %v5395_v33 = vsel %vm5394_vm5, %v5392_v51, %v5393_v25 }
 0x450   : > { %v5482_v55 = vadd.f32 %v5481_v32, %v5480_v52  ;;  %vm4986_vm15 = vcmp.lt.s32.totalorder %v4984_v54, %v4985_v35  ;;  %v5396_v6 = vrot.slane %v5395_v33, 1 }
 0x451   : > { %v4987_v18 = vsel %vm4986_vm15, %v4984_v54, %v4985_v35  ;;  %vm10175_vm15 = vcmask 1045504   ;;  %v5417_v35 = vsel %vm4197_vm11, %v9549_v39, %v9575_v62 }
 0x452   : > { %5860 = vrcp.f32 %v5482_v55  ;;  %v4988_v22 = vrot.slane %v4987_v18, 2  ;;  %v5591_v10 = vand.u32 2147483648, %v5482_v55  ;;  %v5589_v47 = vand.u32 2147483647, %v5482_v55 }
 0x453   : > { %vm5585_vm1 = vweird.f32 %v5482_v55  ;;  %vm5397_vm10 = vcmp.lt.s32.totalorder %v5395_v33, %v5396_v6 }
 0x454   : > { %vm4989_vm8 = vcmp.lt.s32.totalorder %v4987_v18, %v4988_v22  ;;  %v5592_v26 = vor.u32 1.1754944e-38, %v5591_v10  ;;  %vm5590_vm0 = vcmp.eq.f32.partialorder %v5589_v47, 8.507059e+37 }
 0x455   : > { %v4990_v19 = vsel %vm4989_vm8, %v4987_v18, %v4988_v22  ;;  %vm10176_vm8 = vcmask 1046528  }
 0x456   : > { %v4991_v20 = vrot.slane %v4990_v19, 1 }
 0x458   : > { %v5861_v31 = vpop.eup %5860  ;;  %vm4992_vm14 = vcmp.lt.s32.totalorder %v4990_v19, %v4991_v20 }
 0x459   : > { %v5581_v27 = vmul.f32 %v5861_v31, %v5482_v55  ;;  %v9581_v17 = vsel %vm4992_vm14, %v4990_v19, %v4991_v20  ;;  %vm5586_vm4 = vweird.f32 %v5861_v31 }
 0x45a   : > { %vm5001_vm9 = vcmp.eq.s32.totalorder %v7034_v30, %v9581_v17  ;;  %vm5009_vm3 = vcmp.eq.s32.totalorder %v7088_v50, %v9581_v17  ;;  %vm5587_vm7 = vmor %vm5585_vm1, %vm5586_vm4 }
 0x45b   : > { %v5582_v42 = vsub.f32 1.0, %v5581_v27  ;;  %v5017_v16 = vsel %vm5001_vm9, -1e+30, %v4809_v41  ;;  %v5025_v48 = vsel %vm5009_vm3, -1e+30, %v4817_v56  ;;  %v5398_v41 = vsel %vm5397_vm10, %v5395_v33, %v5396_v6 }
 0x45c   : > { %v5075_v14 = vmax.f32 %v5017_v16, %v5025_v48  ;;  %v5648_v46 = vcvt.s32.f32 %v5398_v41  ;;  %v5625_v41 = vcvt.s32.f32 %v9561_v21 }
 0x45d   : > { %v5583_v15 = vmul.f32 %v5861_v31, %v5582_v42 }
 0x45e   : > { %v5076_v61 = vrot.slane %v5075_v14, 4 }
 0x45f   : > { %v5584_v37 = vadd.f32 %v5861_v31, %v5583_v15 }
 0x460   : > { %v5077_v11 = vmax.f32 %v5075_v14, %v5076_v61 }
 0x461   : > { %v5588_v2 = vsel %vm5587_vm7, %v5861_v31, %v5584_v37 }
 0x462   : > { %v5593_v34 = vsel %vm5590_vm0, %v5592_v26, %v5588_v2  ;;  %v5078_v57 = vrot.slane %v5077_v11, 2 }
 0x463   : > { %v5594_v60 = vmul.f32 %v5593_v34, %v5432_v12 }
 0x464   : > { %v5079_v4 = vmax.f32 %v5077_v11, %v5078_v57 }
 0x465   : > { %v5616_v56 = vmul.f32 2.5, %v5594_v60 }
 0x466   : > { %v5080_v53 = vrot.slane %v5079_v4, 1 }
 0x467   : > { %v5656_v36 = vsel %vm3971_vm2, %v5616_v56, %v5624_v23  ;;  %v5633_v56 = vcvt.s32.f32 %v9581_v17 }
 0x468   : > { %v5665_v43 = vsel %vm5658_vm6, %v5656_v36, %v5632_v49  ;;  %v5081_v58 = vmax.f32 %v5079_v4, %v5080_v53 }
 0x469   : > { %v5674_v45 = vsel %vm10175_vm15, %v5665_v43, %v5640_v13 }
 0x46a   : > { %v5683_v12 = vsel %vm10176_vm8, %v5674_v45, %v5648_v46  ;;  %vm5089_vm5 = vcmp.eq.f32.partialorder %v5017_v16, %v5081_v58  ;;  %vm5097_vm14 = vcmp.eq.f32.partialorder %v5025_v48, %v5081_v58  ;;  %v5425_v55 = vsel %vm4206_vm12, %v5417_v35, %v5081_v58 }
 0x46b   : > { %5691 = vst [vmem:[%s8003_s24 + $0x30] sm:$0xff] %v5683_v12  ;;  %v5105_v63 = vsel %vm5089_vm5, %v7034_v30, 16  ;;  %v5113_v5 = vsel %vm5097_vm14, %v7088_v50, 16 }
 0x46c   : > { %vm5191_vm9 = vcmp.lt.s32.totalorder %v5105_v63, %v5113_v5 }
 0x46d   : > { %v5192_v9 = vsel %vm5191_vm9, %v5105_v63, %v5113_v5 }
 0x46e   : > { %v5193_v8 = vrot.slane %v5192_v9, 4 }
 0x470   : > { %vm5194_vm3 = vcmp.lt.s32.totalorder %v5192_v9, %v5193_v8 }
 0x471   : > { %v5195_v1 = vsel %vm5194_vm3, %v5192_v9, %v5193_v8 }
 0x472   : > { %v5196_v29 = vrot.slane %v5195_v1, 2 }
 0x474   : > { %vm5197_vm4 = vcmp.lt.s32.totalorder %v5195_v1, %v5196_v29 }
 0x475   : > { %v5198_v40 = vsel %vm5197_vm4, %v5195_v1, %v5196_v29  ;;  %vm10177_vm4 = vcmask 1045504  }
 0x476   : > { %v5199_v3 = vrot.slane %v5198_v40, 1 }
 0x478   : > { %vm5200_vm1 = vcmp.lt.s32.totalorder %v5198_v40, %v5199_v3 }
 0x479   : > { %v5201_v0 = vsel %vm5200_vm1, %v5198_v40, %v5199_v3  ;;  %vm10178_vm1 = vcmask 1046528  }
 0x47a   : > { %vm5209_vm7 = vcmp.eq.s32.totalorder %v7034_v30, %v5201_v0  ;;  %vm5217_vm0 = vcmp.eq.s32.totalorder %v7088_v50, %v5201_v0  ;;  %v5641_v23 = vcvt.s32.f32 %v5201_v0 }
 0x47b   : > { %v5225_v28 = vsel %vm5209_vm7, -1e+30, %v5017_v16  ;;  %v5233_v24 = vsel %vm5217_vm0, -1e+30, %v5025_v48 }
 0x47c   : > { %v5283_v44 = vmax.f32 %v5225_v28, %v5233_v24 }
 0x47e   : > { %v5284_v38 = vrot.slane %v5283_v44, 4 }
 0x480   : > { %v5285_v7 = vmax.f32 %v5283_v44, %v5284_v38 }
 0x482   : > { %v5286_v59 = vrot.slane %v5285_v7, 2 }
 0x484   : > { %v5287_v52 = vmax.f32 %v5285_v7, %v5286_v59 }
 0x486   : > { %v5288_v54 = vrot.slane %v5287_v52, 1 }
 0x488   : > { %v5289_v32 = vmax.f32 %v5287_v52, %v5288_v54 }
 0x48a   : > { %vm5297_vm10 = vcmp.eq.f32.partialorder %v5225_v28, %v5289_v32  ;;  %vm5305_vm15 = vcmp.eq.f32.partialorder %v5233_v24, %v5289_v32  ;;  %v5433_v51 = vsel %vm4215_vm13, %v5425_v55, %v5289_v32 }
 0x48b   : > { %v5313_v18 = vsel %vm5297_vm10, %v7034_v30, 16  ;;  %v5321_v22 = vsel %vm5305_vm15, %v7088_v50, 16  ;;  %v5483_v25 = vsel %vm3971_vm2, %v5433_v51, 0.0 }
 0x48c   : > { %vm5399_vm8 = vcmp.lt.s32.totalorder %v5313_v18, %v5321_v22  ;;  %v5484_v19 = vrot.slane %v5483_v25, 4 }
 0x48d   : > { %v5400_v20 = vsel %vm5399_vm8, %v5313_v18, %v5321_v22 }
 0x48e   : > { %v5485_v31 = vadd.f32 %v5484_v19, %v5483_v25  ;;  %v5401_v27 = vrot.slane %v5400_v20, 4 }
 0x490   : > { %v5486_v33 = vrot.slane %v5485_v31, 2  ;;  %vm5402_vm11 = vcmp.lt.s32.totalorder %v5400_v20, %v5401_v27 }
 0x491   : > { %v5403_v10 = vsel %vm5402_vm11, %v5400_v20, %v5401_v27 }
 0x492   : > { %v5487_v42 = vadd.f32 %v5486_v33, %v5485_v31  ;;  %v5404_v16 = vrot.slane %v5403_v10, 2 }
 0x494   : > { %v5488_v39 = vrot.slane %v5487_v42, 1  ;;  %vm5405_vm12 = vcmp.lt.s32.totalorder %v5403_v10, %v5404_v16 }
 0x495   : > { %v5406_v15 = vsel %vm5405_vm12, %v5403_v10, %v5404_v16 }
 0x496   : > { %v5489_v62 = vadd.f32 %v5488_v39, %v5487_v42  ;;  %v5407_v37 = vrot.slane %v5406_v15, 1 }
 0x498   : > { %5862 = vrcp.f32 %v5489_v62  ;;  %v5606_v47 = vand.u32 2147483648, %v5489_v62  ;;  %v5604_v6 = vand.u32 2147483647, %v5489_v62  ;;  %vm5600_vm5 = vweird.f32 %v5489_v62 }
 0x499   : > { %vm5408_vm3 = vcmp.lt.s32.totalorder %v5406_v15, %v5407_v37 }
 0x49a   : > { %v5607_v26 = vor.u32 1.1754944e-38, %v5606_v47  ;;  %vm5605_vm9 = vcmp.eq.f32.partialorder %v5604_v6, 8.507059e+37  ;;  %v5409_v60 = vsel %vm5408_vm3, %v5406_v15, %v5407_v37 }
 0x49b   : > { %v5649_v49 = vcvt.s32.f32 %v5409_v60 }
 0x49e   : > { %v5863_v48 = vpop.eup %5862 }
 0x49f   : > { %v5596_v30 = vmul.f32 %v5863_v48, %v5489_v62  ;;  %vm5601_vm13 = vweird.f32 %v5863_v48 }
 0x4a0   : > { %vm5602_vm14 = vmor %vm5600_vm5, %vm5601_vm13 }
 0x4a1   : > { %v5597_v50 = vsub.f32 1.0, %v5596_v30 }
 0x4a3   : > { %v5598_v14 = vmul.f32 %v5863_v48, %v5597_v50 }
 0x4a5   : > { %v5599_v61 = vadd.f32 %v5863_v48, %v5598_v14 }
 0x4a7   : > { %v5603_v2 = vsel %vm5602_vm14, %v5863_v48, %v5599_v61 }
 0x4a8   : > { %v5608_v11 = vsel %vm5605_vm9, %v5607_v26, %v5603_v2 }
 0x4a9   : > { %v5609_v34 = vmul.f32 %v5608_v11, %v5433_v51 }
 0x4ab   : > { %v5617_v57 = vmul.f32 2.5, %v5609_v34 }
 0x4ad   : > { %v5657_v4 = vsel %vm3971_vm2, %v5617_v57, %v5625_v41 }
 0x4ae   : > { %v5666_v13 = vsel %vm5658_vm6, %v5657_v4, %v5633_v56 }
 0x4af   : > { %v5675_v36 = vsel %vm10177_vm4, %v5666_v13, %v5641_v23 }
 0x4b0   : > { %v5684_v53 = vsel %vm10178_vm1, %v5675_v36, %v5649_v49 }
 0x4b1   : > { %5692 = vst [vmem:[%s8003_s24 + $0x38] sm:$0xff] %v5684_v53 }
 0x4b2 PF: > { %s12_s9 = sadd.s32 1, %s5870_s9  }
 0x4b3   : > { %p9_p5 = scmp.ge.s32.totalorder %s12_s9, 4  }
 0x4b5   :  { %11 = sbr.rel (!%p9_p5) target bundleno = 1 (0x1), region = 58 }

</bundles_post_ra>
